<compile_context>
chip_gen: v6e
topology: v6e:2x2x1
jax: 0.10.0
libtpu: 0.0.40
codegen_flags: <defaults>
</compile_context>

<pallas_src>
import functools

import jax
import jax.numpy as jnp
from jax import lax
from jax.experimental import pallas as pl
from jax.experimental.pallas import tpu as pltpu

HIDDEN = 32
IN_DIM = 16
OUT_DIM = 4
K = 204                      # forced by mlp input dim 3136 = 32 * (K//2 - 4)
B = 2                        # number of graphs
N_PER = 208                  # nodes per graph (padded, equal-size batching)
N = B * N_PER
CAT_DIM = 3 * HIDDEN + 1     # 97
PAD_DIM = 4 * HIDDEN         # 128  (lane-padded concat width)
L_POOL = K // 2              # 102
LP_PAD = 104                 # pooled length padded to a sublane multiple of 8
L_CONV2 = L_POOL - 4         # 98
C1 = 16                      # conv1 out channels
C2 = 32                      # conv2 out channels
KS = 5                       # conv2 kernel size
FLAT = L_CONV2 * C2          # 3136
VMEM_LIMIT = 32 * 1024 * 1024


# ----------------------------- Kernel A: fused per-graph GCN -----------------------------

def gcn_kernel(a_ref, x_ref, gw_ref, gb_ref, slab_ref, key_ref):
    # a (N_PER,N_PER) bf16 normalized per-graph adjacency block, x (N_PER,32) bf16
    # (features zero-padded 16->32), gw (4,32,32) bf16 packed weights, gb (4,1,32) f32.
    # Outputs: slab (N_PER,128) bf16 lane-dense [h0|h1|h2|h3pad], key (N_PER,1) f32.
    a = a_ref[...]

    def layer(h_bf16, l):
        xw = jnp.dot(h_bf16, gw_ref[l], preferred_element_type=jnp.float32)
        agg = jnp.dot(a, xw.astype(jnp.bfloat16), preferred_element_type=jnp.float32)
        return jnp.tanh(agg + gb_ref[l])          # f32 tanh on the EUP (v5e-safe)

    h0 = layer(x_ref[...], 0)                     # (N_PER,32)
    h1 = layer(h0.astype(jnp.bfloat16), 1)
    h2 = layer(h1.astype(jnp.bfloat16), 2)
    h3 = layer(h2.astype(jnp.bfloat16), 3)        # col 0 real, cols 1..31 == tanh(0) == 0
    slab_ref[...] = jnp.concatenate([h0, h1, h2, h3], axis=-1).astype(jnp.bfloat16)
    key_ref[...] = h3[:, 0:1]                     # exact f32 sort key (tie-order fidelity)


def gcn_fused(a_blocks, x3, p, num_graphs):
    full = lambda shape: pl.BlockSpec(shape, lambda g: (0,) * len(shape))
    return pl.pallas_call(
        gcn_kernel,
        out_shape=(jax.ShapeDtypeStruct((num_graphs, N_PER, PAD_DIM), jnp.bfloat16),
                   jax.ShapeDtypeStruct((num_graphs, N_PER, 1), jnp.float32)),
        grid=(num_graphs,),
        in_specs=[pl.BlockSpec((None, N_PER, N_PER), lambda g: (g, 0, 0)),
                  pl.BlockSpec((None, N_PER, HIDDEN), lambda g: (g, 0, 0)),
                  full((4, HIDDEN, HIDDEN)),
                  full((4, 1, HIDDEN))],
        out_specs=[pl.BlockSpec((None, N_PER, PAD_DIM), lambda g: (g, 0, 0)),
                   pl.BlockSpec((None, N_PER, 1), lambda g: (g, 0, 0))],
        compiler_params=pltpu.CompilerParams(
            dimension_semantics=("parallel",),
            vmem_limit_bytes=VMEM_LIMIT),
    )(a_blocks, x3, p["gcn_w"], p["gcn_b"])


# -------------------- Kernel B: gather + conv1 + maxpool + conv2 + MLP --------------------

def head_kernel(h_ref, idx_ref, w1c_ref, b1c_ref, w2_ref, b2c_ref,
                wmix_ref, g3_ref, b1f_ref, w2m_ref, b2m_ref, o_ref):
    f32, bf16 = jnp.float32, jnp.bfloat16

    # ---- top-K gather straight into even/odd maxpool slabs (one-hot MXU matmuls) ----
    # idx_ref (LP_PAD, 2) int32: column 0 = sorted rank 2i, column 1 = rank 2i+1, -1 = pad.
    h = h_ref[...]                                               # (N_PER, 128) bf16
    node_iota = lax.broadcasted_iota(jnp.int32, (LP_PAD, N_PER), 1)
    sel_e = (node_iota == idx_ref[:, 0:1]).astype(bf16)          # invalid (-1) -> zero row
    sel_o = (node_iota == idx_ref[:, 1:2]).astype(bf16)
    ge = jnp.dot(sel_e, h, preferred_element_type=f32)           # exact bf16 row copies
    go = jnp.dot(sel_o, h, preferred_element_type=f32)

    # ---- conv1 (1x1) + ReLU + MaxPool1d(2,2)  (relu∘maxpool == maxpool∘relu) ----
    w1c, b1c = w1c_ref[...], b1c_ref[...]
    ye = jnp.dot(ge.astype(bf16), w1c, preferred_element_type=f32) + b1c
    yo = jnp.dot(go.astype(bf16), w1c, preferred_element_type=f32) + b1c
    p = jnp.maximum(jnp.maximum(ye, yo), 0.0).astype(bf16)       # (LP_PAD, 16)

    # ---- conv2 (ks=5) + ReLU: taps via sublane-aligned 0/1 shift matmuls (no retile slices) ----
    r_i = lax.broadcasted_iota(jnp.int32, (LP_PAD, LP_PAD), 0)
    c_i = lax.broadcasted_iota(jnp.int32, (LP_PAD, LP_PAD), 1)
    y = jnp.zeros((LP_PAD, C2), f32) + b2c_ref[...]
    for j in range(KS):
        shift_j = (c_i - r_i == j).astype(bf16)                  # row i picks p[i+j]
        p_j = jnp.dot(shift_j, p, preferred_element_type=f32)    # exact shifted copies
        y = y + jnp.dot(p_j.astype(bf16), w2_ref[j], preferred_element_type=f32)
    og = jnp.maximum(y, 0.0).astype(bf16)                        # (LP_PAD, 32); rows >= 98 junk

    # ---- flatten + Linear(3136,32) (BatchNorm folded) + ReLU + Linear(32,out) ----
    # wmix[c, l*32+m] = W1'[c*98+l, m]; the mask keeps U[l, l*32+m] only (kills junk rows),
    # and g3[j, m] = (j % 32 == m) folds the 98 per-length partial rows -> a (1,32) row.
    u = jnp.dot(og, wmix_ref[...], preferred_element_type=f32)   # (LP_PAD, FLAT)
    lane = lax.broadcasted_iota(jnp.int32, (LP_PAD, FLAT), 1)
    row = lax.broadcasted_iota(jnp.int32, (LP_PAD, FLAT), 0)
    keep = jnp.right_shift(lane, 5) == row                       # lane // 32 == length pos
    flat = jnp.sum(jnp.where(keep, u, 0.0), axis=0, keepdims=True)   # (1, FLAT)
    h1 = jnp.dot(flat, g3_ref[...], preferred_element_type=f32) + b1f_ref[...]
    h1 = jnp.maximum(h1, 0.0)
    o_ref[...] = jnp.dot(h1, w2m_ref[...], preferred_element_type=f32) + b2m_ref[...]


def head_fused(slab, idx_eo, p, num_graphs):
    full = lambda shape: pl.BlockSpec(shape, lambda g: (0,) * len(shape))
    out = pl.pallas_call(
        head_kernel,
        out_shape=jax.ShapeDtypeStruct((num_graphs, 1, OUT_DIM), jnp.float32),
        grid=(num_graphs,),
        in_specs=[pl.BlockSpec((None, N_PER, PAD_DIM), lambda g: (g, 0, 0)),
                  pl.BlockSpec((None, LP_PAD, 2), lambda g: (g, 0, 0)),
                  full((PAD_DIM, C1)),
                  full((1, C1)),
                  full((KS, C1, C2)),
                  full((1, C2)),
                  full((C2, FLAT)),
                  full((FLAT, HIDDEN)),
                  full((1, HIDDEN)),
                  full((HIDDEN, OUT_DIM)),
                  full((1, OUT_DIM))],
        out_specs=pl.BlockSpec((None, 1, OUT_DIM), lambda g: (g, 0, 0)),
        compiler_params=pltpu.CompilerParams(
            dimension_semantics=("parallel",),
            vmem_limit_bytes=VMEM_LIMIT),
    )(slab, idx_eo, p["conv1_wT"], p["conv1_b"], p["conv2_w"], p["conv2_b"],
      p["mlp_wmix"], p["fold_g3"], p["mlp_b1f"], p["mlp_w2"], p["mlp_b2"])
    return out[:, 0, :]


# ------------------------------ JAX glue ------------------------------

def _normalized_adjacency_blocks(edge_index, batch, num_graphs, n_per):
    # Ahat = D^{-1/2} (A + I) D^{-1/2}, built per graph (block diagonal) with one-hot
    # matmuls on the MXU instead of a dense scatter-add (duplicate edges accumulate,
    # matching the previous reference behavior). Messages flow src -> dst.
    src, dst = edge_index[0], edge_index[1]
    g_of_edge = batch[dst]                                # edges never cross graphs
    off = g_of_edge * n_per
    dst_l = dst - off
    src_l = src - off
    node_ids = jnp.arange(n_per, dtype=jnp.int32)
    graph_ids = jnp.arange(num_graphs, dtype=jnp.int32)
    dst_oh = ((dst_l[:, None] == node_ids[None, :])[:, None, :]
              & (g_of_edge[:, None, None] == graph_ids[None, :, None])).astype(jnp.bfloat16)
    src_oh = (src_l[:, None] == node_ids[None, :]).astype(jnp.bfloat16)
    a = jnp.einsum('egi,ej->gij', dst_oh, src_oh, preferred_element_type=jnp.float32)
    a = a + jnp.eye(n_per, dtype=jnp.float32)[None]
    deg = jnp.sum(a, axis=2)
    dinv = jnp.where(deg > 0.0, lax.rsqrt(deg), 0.0)
    return (dinv[:, :, None] * a * dinv[:, None, :]).astype(jnp.bfloat16)


@functools.partial(jax.jit, static_argnames=("num_graphs",))
def sortpool_forward(params, x, edge_index, batch, num_graphs):
    n = x.shape[0]
    n_per = n // num_graphs
    # TODO(synk): assumes graphs are contiguous in `batch` and padded to an equal size
    # n_per (true for the harness); ragged batches need host-side padding to n_per.
    a_blocks = _normalized_adjacency_blocks(edge_index, batch, num_graphs, n_per)
    x3 = jnp.pad(x.reshape(num_graphs, n_per, IN_DIM).astype(jnp.bfloat16),
                 ((0, 0), (0, 0), (0, HIDDEN - IN_DIM)))

    # A) per-graph fused 4-layer GCN -> bf16 slab + f32 sort key.
    slab, key = gcn_fused(a_blocks, x3, params, num_graphs)

    # global_sort_pool: per-graph descending sort by last channel, keep top-K (zero-pad).
    # TODO(synk): argsort has no Pallas equivalent; it stays as tiny XLA glue. The row
    # gather / masking / even-odd split are done INSIDE kernel B from these indices.
    counts = jnp.sum((batch[:, None] == jnp.arange(num_graphs)[None, :]).astype(jnp.int32),
                     axis=0)
    key = key[..., 0]                                                     # (B, n_per)
    in_graph = jnp.arange(n_per, dtype=jnp.int32)[None, :] < counts[:, None]
    key = jnp.where(in_graph, key, -jnp.inf)                              # pad nodes sort last
    order = jnp.argsort(-key, axis=1).astype(jnp.int32)                   # descending; stable
    idx = order[:, :K]                                                    # (B, K) local row ids
    valid = jnp.arange(K, dtype=jnp.int32)[None, :] < counts[:, None]
    idx = jnp.where(valid, idx, -1)                                       # -1 -> zero row
    pad = -jnp.ones((num_graphs, LP_PAD - L_POOL), jnp.int32)
    idx_e = jnp.concatenate([idx[:, 0::2], pad], axis=1)                  # (B, 104)
    idx_o = jnp.concatenate([idx[:, 1::2], pad], axis=1)
    idx_eo = jnp.stack([idx_e, idx_o], axis=-1)                           # (B, 104, 2)

    # B) fused gather + conv1/relu/maxpool + conv2/relu + flatten + MLP -> (B, out_dim)
    return head_fused(slab, idx_eo, params, num_graphs)


# ------------------------------ parameters ------------------------------

def init_params(key):
    ks = jax.random.split(key, 8)

    def lin(k_, fan_in, shape):
        return jax.random.normal(k_, shape, jnp.float32) / jnp.sqrt(float(fan_in))

    gcn_dims = [(IN_DIM, HIDDEN), (HIDDEN, HIDDEN), (HIDDEN, HIDDEN), (HIDDEN, 1)]
    gcn = [(lin(ks[i], fi, (fi, fo)), jnp.zeros((fo,), jnp.float32))
           for i, (fi, fo) in enumerate(gcn_dims)]
    return dict(
        gcn=gcn,
        conv1_w=lin(ks[4], CAT_DIM, (C1, CAT_DIM)),      # Conv1d(97->16, ks=1): (out, in)
        conv1_b=jnp.zeros((C1,), jnp.float32),
        conv2_w=lin(ks[5], C1 * KS, (C2, C1, KS)),       # Conv1d(16->32, ks=5): torch (out,in,ks)
        conv2_b=jnp.zeros((C2,), jnp.float32),
        mlp_w1=lin(ks[6], FLAT, (FLAT, HIDDEN)),         # stored as (in, out) = torch weight.T
        mlp_b1=jnp.zeros((HIDDEN,), jnp.float32),
        bn_gamma=jnp.ones((HIDDEN,), jnp.float32),
        bn_beta=jnp.zeros((HIDDEN,), jnp.float32),
        bn_rmean=jnp.zeros((HIDDEN,), jnp.float32),
        bn_rvar=jnp.ones((HIDDEN,), jnp.float32),
        mlp_w2=lin(ks[7], HIDDEN, (HIDDEN, OUT_DIM)),
        mlp_b2=jnp.zeros((OUT_DIM,), jnp.float32),
    )


def prepare_params(p):
    """One-time repack of weights into kernel-ready (packed / padded / BN-folded) form."""
    bf = jnp.bfloat16
    (w0, b0), (w1, b1), (w2, b2), (w3, b3) = p["gcn"]
    # Pack all four GCN layers: layer 0 input padded 16->32 (zero rows), layer 3 output
    # padded 1->32 (zero cols; tanh(0)=0 so slab lanes 97..127 are exactly zero).
    gw = jnp.zeros((4, HIDDEN, HIDDEN), jnp.float32)
    gw = gw.at[0, :IN_DIM, :].set(w0).at[1].set(w1).at[2].set(w2).at[3, :, :1].set(w3)
    gb = jnp.zeros((4, 1, HIDDEN), jnp.float32)
    gb = gb.at[0, 0].set(b0).at[1, 0].set(b1).at[2, 0].set(b2).at[3, 0, :1].set(b3)

    # conv1 (1x1): weight^T zero-padded to the 128-lane slab width.
    conv1_wT = jnp.zeros((PAD_DIM, C1), jnp.float32).at[:CAT_DIM, :].set(p["conv1_w"].T)
    # conv2: torch (out, in, ks) -> per-tap (ks, in, out).
    conv2_w = jnp.transpose(p["conv2_w"], (2, 1, 0))

    # Eval-mode BatchNorm folded into Linear(3136,32) (exact transform).
    # TODO(synk): training-mode batch statistics are not replicated.
    eps = 1e-5
    scale = p["bn_gamma"] * lax.rsqrt(p["bn_rvar"] + eps)
    w1f = p["mlp_w1"] * scale[None, :]                                      # (3136, 32)
    b1f = (p["mlp_b1"] - p["bn_rmean"]) * scale + p["bn_beta"]
    # rows of mlp_w1 follow torch's channel-major flatten (c*98 + l); repack so the
    # head kernel contracts og (length, channel) against it:  wmix[c, l*32+m] = w1f[c*98+l, m]
    wmix = w1f.reshape(HIDDEN, FLAT)
    # lane-fold matrix for the flatten trick: g3[j, m] = (j % 32 == m)  (f32 for accuracy).
    jj = jnp.arange(FLAT, dtype=jnp.int32)
    g3 = (jj[:, None] % C2 == jnp.arange(HIDDEN, dtype=jnp.int32)[None, :]).astype(jnp.float32)

    return dict(
        gcn_w=gw.astype(bf), gcn_b=gb,
        conv1_wT=conv1_wT.astype(bf), conv1_b=p["conv1_b"].reshape(1, -1),
        conv2_w=conv2_w.astype(bf), conv2_b=p["conv2_b"].reshape(1, -1),
        mlp_wmix=wmix.astype(bf), fold_g3=g3,
        mlp_b1f=b1f.reshape(1, -1),
        mlp_w2=p["mlp_w2"], mlp_b2=p["mlp_b2"].reshape(1, -1),
    )


if __name__ == "__main__":
    key = jax.random.PRNGKey(0)
    k_x, k_s, k_d, k_p = jax.random.split(key, 4)

    # node features
    x = jax.random.normal(k_x, (N, IN_DIM), jnp.float32)

    # random undirected edges within each graph (deterministic)
    e_per = 4 * N_PER
    src = jax.random.randint(k_s, (B, e_per), 0, N_PER)
    dst = jax.random.randint(k_d, (B, e_per), 0, N_PER)
    offsets = (jnp.arange(B, dtype=jnp.int32) * N_PER)[:, None]
    src = (src + offsets).reshape(-1)
    dst = (dst + offsets).reshape(-1)
    edge_index = jnp.stack([jnp.concatenate([src, dst]),
                            jnp.concatenate([dst, src])]).astype(jnp.int32)

    batch = jnp.repeat(jnp.arange(B, dtype=jnp.int32), N_PER)

    params = prepare_params(init_params(k_p))

    out = sortpool_forward(params, x, edge_index, batch, B)
    out = jax.block_until_ready(out)
    assert out.shape == (B, OUT_DIM)
    assert bool(jnp.all(jnp.isfinite(out)))
    print("KERNEL_OK")
</pallas_src>

<mosaic_0001>
module attributes {stable_mosaic.version = 11 : i64} {
  func.func @gcn_kernel(%arg0: i32, %arg1: memref<1x208x208xbf16, #tpu.memory_space<vmem>>, %arg2: memref<1x208x32xbf16, #tpu.memory_space<vmem>>, %arg3: memref<4x32x32xbf16, #tpu.memory_space<vmem>>, %arg4: memref<4x1x32xf32, #tpu.memory_space<vmem>>, %arg5: memref<1x208x128xbf16, #tpu.memory_space<vmem>>, %arg6: memref<1x208x1xf32, #tpu.memory_space<vmem>>) attributes {dimension_semantics = [#tpu.dimension_semantics<parallel>], iteration_bounds = array<i64: 2>, scalar_prefetch = 0 : i64, scratch_operands = 0 : i64, tpu.core_type = #tpu.core_type<tc>, window_params = [{transform_indices = @transform_0, window_bounds = array<i64: 1, 208, 208>}, {transform_indices = @transform_1, window_bounds = array<i64: 1, 208, 32>}, {pipeline_mode = #tpu.pipeline_mode<synchronous>, transform_indices = @transform_2, window_bounds = array<i64: 4, 32, 32>}, {pipeline_mode = #tpu.pipeline_mode<synchronous>, transform_indices = @transform_3, window_bounds = array<i64: 4, 1, 32>}, {transform_indices = @transform_4, window_bounds = array<i64: 1, 208, 128>}, {transform_indices = @transform_5, window_bounds = array<i64: 1, 208, 1>}]} {
    %c0 = arith.constant 0 : index
    %c0_0 = arith.constant 0 : index
    %c0_1 = arith.constant 0 : index
    %0 = vector.load %arg1[%c0, %c0_0, %c0_1] : memref<1x208x208xbf16, #tpu.memory_space<vmem>>, vector<1x208x208xbf16>
    %1 = vector.shape_cast %0 : vector<1x208x208xbf16> to vector<208x208xbf16>
    %c0_2 = arith.constant 0 : index
    %c0_3 = arith.constant 0 : index
    %c0_4 = arith.constant 0 : index
    %2 = vector.load %arg2[%c0_2, %c0_3, %c0_4] : memref<1x208x32xbf16, #tpu.memory_space<vmem>>, vector<1x208x32xbf16>
    %3 = vector.shape_cast %2 : vector<1x208x32xbf16> to vector<208x32xbf16>
    %c0_5 = arith.constant 0 : index
    %c0_6 = arith.constant 0 : index
    %c0_7 = arith.constant 0 : index
    %4 = vector.load %arg3[%c0_5, %c0_6, %c0_7] : memref<4x32x32xbf16, #tpu.memory_space<vmem>>, vector<1x32x32xbf16>
    %5 = vector.shape_cast %4 : vector<1x32x32xbf16> to vector<32x32xbf16>
    %cst = arith.constant dense<0.000000e+00> : vector<208x32xf32>
    %6 = tpu.matmul %3, %5, %cst {dimension_numbers = #tpu.dot_dimension_numbers<[1], [0], [0], [1], [0, 0, 1, 1], [], []>} : vector<208x32xbf16>, vector<32x32xbf16>, vector<208x32xf32> -> vector<208x32xf32>
    %7 = arith.truncf %6 : vector<208x32xf32> to vector<208x32xbf16>
    %cst_8 = arith.constant dense<0.000000e+00> : vector<208x32xf32>
    %8 = tpu.matmul %1, %7, %cst_8 {dimension_numbers = #tpu.dot_dimension_numbers<[1], [0], [0], [1], [0, 0, 1, 1], [], []>} : vector<208x208xbf16>, vector<208x32xbf16>, vector<208x32xf32> -> vector<208x32xf32>
    %c0_9 = arith.constant 0 : index
    %c0_10 = arith.constant 0 : index
    %c0_11 = arith.constant 0 : index
    %9 = vector.load %arg4[%c0_9, %c0_10, %c0_11] : memref<4x1x32xf32, #tpu.memory_space<vmem>>, vector<1x1x32xf32>
    %10 = vector.shape_cast %9 : vector<1x1x32xf32> to vector<1x32xf32>
    %11 = vector.broadcast %10 : vector<1x32xf32> to vector<208x32xf32>
    %12 = arith.addf %8, %11 : vector<208x32xf32>
    %13 = math.tanh %12 : vector<208x32xf32>
    %14 = arith.truncf %13 : vector<208x32xf32> to vector<208x32xbf16>
    %c1 = arith.constant 1 : index
    %c0_12 = arith.constant 0 : index
    %c0_13 = arith.constant 0 : index
    %15 = vector.load %arg3[%c1, %c0_12, %c0_13] : memref<4x32x32xbf16, #tpu.memory_space<vmem>>, vector<1x32x32xbf16>
    %16 = vector.shape_cast %15 : vector<1x32x32xbf16> to vector<32x32xbf16>
    %cst_14 = arith.constant dense<0.000000e+00> : vector<208x32xf32>
    %17 = tpu.matmul %14, %16, %cst_14 {dimension_numbers = #tpu.dot_dimension_numbers<[1], [0], [0], [1], [0, 0, 1, 1], [], []>} : vector<208x32xbf16>, vector<32x32xbf16>, vector<208x32xf32> -> vector<208x32xf32>
    %18 = arith.truncf %17 : vector<208x32xf32> to vector<208x32xbf16>
    %cst_15 = arith.constant dense<0.000000e+00> : vector<208x32xf32>
    %19 = tpu.matmul %1, %18, %cst_15 {dimension_numbers = #tpu.dot_dimension_numbers<[1], [0], [0], [1], [0, 0, 1, 1], [], []>} : vector<208x208xbf16>, vector<208x32xbf16>, vector<208x32xf32> -> vector<208x32xf32>
    %c1_16 = arith.constant 1 : index
    %c0_17 = arith.constant 0 : index
    %c0_18 = arith.constant 0 : index
    %20 = vector.load %arg4[%c1_16, %c0_17, %c0_18] : memref<4x1x32xf32, #tpu.memory_space<vmem>>, vector<1x1x32xf32>
    %21 = vector.shape_cast %20 : vector<1x1x32xf32> to vector<1x32xf32>
    %22 = vector.broadcast %21 : vector<1x32xf32> to vector<208x32xf32>
    %23 = arith.addf %19, %22 : vector<208x32xf32>
    %24 = math.tanh %23 : vector<208x32xf32>
    %25 = arith.truncf %24 : vector<208x32xf32> to vector<208x32xbf16>
    %c2 = arith.constant 2 : index
    %c0_19 = arith.constant 0 : index
    %c0_20 = arith.constant 0 : index
    %26 = vector.load %arg3[%c2, %c0_19, %c0_20] : memref<4x32x32xbf16, #tpu.memory_space<vmem>>, vector<1x32x32xbf16>
    %27 = vector.shape_cast %26 : vector<1x32x32xbf16> to vector<32x32xbf16>
    %cst_21 = arith.constant dense<0.000000e+00> : vector<208x32xf32>
    %28 = tpu.matmul %25, %27, %cst_21 {dimension_numbers = #tpu.dot_dimension_numbers<[1], [0], [0], [1], [0, 0, 1, 1], [], []>} : vector<208x32xbf16>, vector<32x32xbf16>, vector<208x32xf32> -> vector<208x32xf32>
    %29 = arith.truncf %28 : vector<208x32xf32> to vector<208x32xbf16>
    %cst_22 = arith.constant dense<0.000000e+00> : vector<208x32xf32>
    %30 = tpu.matmul %1, %29, %cst_22 {dimension_numbers = #tpu.dot_dimension_numbers<[1], [0], [0], [1], [0, 0, 1, 1], [], []>} : vector<208x208xbf16>, vector<208x32xbf16>, vector<208x32xf32> -> vector<208x32xf32>
    %c2_23 = arith.constant 2 : index
    %c0_24 = arith.constant 0 : index
    %c0_25 = arith.constant 0 : index
    %31 = vector.load %arg4[%c2_23, %c0_24, %c0_25] : memref<4x1x32xf32, #tpu.memory_space<vmem>>, vector<1x1x32xf32>
    %32 = vector.shape_cast %31 : vector<1x1x32xf32> to vector<1x32xf32>
    %33 = vector.broadcast %32 : vector<1x32xf32> to vector<208x32xf32>
    %34 = arith.addf %30, %33 : vector<208x32xf32>
    %35 = math.tanh %34 : vector<208x32xf32>
    %36 = arith.truncf %35 : vector<208x32xf32> to vector<208x32xbf16>
    %c3 = arith.constant 3 : index
    %c0_26 = arith.constant 0 : index
    %c0_27 = arith.constant 0 : index
    %37 = vector.load %arg3[%c3, %c0_26, %c0_27] : memref<4x32x32xbf16, #tpu.memory_space<vmem>>, vector<1x32x32xbf16>
    %38 = vector.shape_cast %37 : vector<1x32x32xbf16> to vector<32x32xbf16>
    %cst_28 = arith.constant dense<0.000000e+00> : vector<208x32xf32>
    %39 = tpu.matmul %36, %38, %cst_28 {dimension_numbers = #tpu.dot_dimension_numbers<[1], [0], [0], [1], [0, 0, 1, 1], [], []>} : vector<208x32xbf16>, vector<32x32xbf16>, vector<208x32xf32> -> vector<208x32xf32>
    %40 = arith.truncf %39 : vector<208x32xf32> to vector<208x32xbf16>
    %cst_29 = arith.constant dense<0.000000e+00> : vector<208x32xf32>
    %41 = tpu.matmul %1, %40, %cst_29 {dimension_numbers = #tpu.dot_dimension_numbers<[1], [0], [0], [1], [0, 0, 1, 1], [], []>} : vector<208x208xbf16>, vector<208x32xbf16>, vector<208x32xf32> -> vector<208x32xf32>
    %c3_30 = arith.constant 3 : index
    %c0_31 = arith.constant 0 : index
    %c0_32 = arith.constant 0 : index
    %42 = vector.load %arg4[%c3_30, %c0_31, %c0_32] : memref<4x1x32xf32, #tpu.memory_space<vmem>>, vector<1x1x32xf32>
    %43 = vector.shape_cast %42 : vector<1x1x32xf32> to vector<1x32xf32>
    %44 = vector.broadcast %43 : vector<1x32xf32> to vector<208x32xf32>
    %45 = arith.addf %41, %44 : vector<208x32xf32>
    %46 = math.tanh %45 : vector<208x32xf32>
    %47 = tpu.concatenate %13, %24, %35, %46 in 1 : vector<208x32xf32>, vector<208x32xf32>, vector<208x32xf32>, vector<208x32xf32> -> vector<208x128xf32>
    %48 = arith.truncf %47 : vector<208x128xf32> to vector<208x128xbf16>
    %c0_33 = arith.constant 0 : index
    %c0_34 = arith.constant 0 : index
    %c0_35 = arith.constant 0 : index
    %49 = vector.load %arg5[%c0_33, %c0_34, %c0_35] : memref<1x208x128xbf16, #tpu.memory_space<vmem>>, vector<1x208x128xbf16>
    %50 = vector.shape_cast %49 : vector<1x208x128xbf16> to vector<208x128xbf16>
    %51 = vector.shape_cast %48 : vector<208x128xbf16> to vector<1x208x128xbf16>
    tpu.vector_store %arg5[%c0_33, %c0_34, %c0_35], %51 {strides = array<i32>} : memref<1x208x128xbf16, #tpu.memory_space<vmem>>, vector<1x208x128xbf16>,
    %52 = vector.extract_strided_slice %46 {offsets = [0, 0], sizes = [208, 1], strides = [1, 1]} : vector<208x32xf32> to vector<208x1xf32>
    %c0_36 = arith.constant 0 : index
    %c0_37 = arith.constant 0 : index
    %c0_38 = arith.constant 0 : index
    %53 = vector.load %arg6[%c0_36, %c0_37, %c0_38] : memref<1x208x1xf32, #tpu.memory_space<vmem>>, vector<1x208x1xf32>
    %54 = vector.shape_cast %53 : vector<1x208x1xf32> to vector<208x1xf32>
    %55 = vector.shape_cast %52 : vector<208x1xf32> to vector<1x208x1xf32>
    tpu.vector_store %arg6[%c0_36, %c0_37, %c0_38], %55 {strides = array<i32>} : memref<1x208x1xf32, #tpu.memory_space<vmem>>, vector<1x208x1xf32>,
    return
  }
  func.func @transform_0(%arg0: i32) -> (i32, i32, i32) {
    %c0_i32 = arith.constant 0 : i32
    %c0_i32_0 = arith.constant 0 : i32
    %c0_i32_1 = arith.constant 0 : i32
    return %arg0, %c0_i32, %c0_i32_0 : i32, i32, i32
  }
  func.func @transform_1(%arg0: i32) -> (i32, i32, i32) {
    %c0_i32 = arith.constant 0 : i32
    %c0_i32_0 = arith.constant 0 : i32
    %c0_i32_1 = arith.constant 0 : i32
    return %arg0, %c0_i32, %c0_i32_0 : i32, i32, i32
  }
  func.func @transform_2(%arg0: i32) -> (i32, i32, i32) {
    %c0_i32 = arith.constant 0 : i32
    %c0_i32_0 = arith.constant 0 : i32
    %c0_i32_1 = arith.constant 0 : i32
    %c0_i32_2 = arith.constant 0 : i32
    return %c0_i32, %c0_i32_0, %c0_i32_1 : i32, i32, i32
  }
  func.func @transform_3(%arg0: i32) -> (i32, i32, i32) {
    %c0_i32 = arith.constant 0 : i32
    %c0_i32_0 = arith.constant 0 : i32
    %c0_i32_1 = arith.constant 0 : i32
    %c0_i32_2 = arith.constant 0 : i32
    return %c0_i32, %c0_i32_0, %c0_i32_1 : i32, i32, i32
  }
  func.func @transform_4(%arg0: i32) -> (i32, i32, i32) {
    %c0_i32 = arith.constant 0 : i32
    %c0_i32_0 = arith.constant 0 : i32
    %c0_i32_1 = arith.constant 0 : i32
    return %arg0, %c0_i32, %c0_i32_0 : i32, i32, i32
  }
  func.func @transform_5(%arg0: i32) -> (i32, i32, i32) {
    %c0_i32 = arith.constant 0 : i32
    %c0_i32_0 = arith.constant 0 : i32
    %c0_i32_1 = arith.constant 0 : i32
    return %arg0, %c0_i32, %c0_i32_0 : i32, i32, i32
  }
}

module attributes {stable_mosaic.version = 11 : i64} {
  func.func @head_kernel(%arg0: i32, %arg1: memref<1x208x128xbf16, #tpu.memory_space<vmem>>, %arg2: memref<1x104x2xi32, #tpu.memory_space<vmem>>, %arg3: memref<128x16xbf16, #tpu.memory_space<vmem>>, %arg4: memref<1x16xf32, #tpu.memory_space<vmem>>, %arg5: memref<5x16x32xbf16, #tpu.memory_space<vmem>>, %arg6: memref<1x32xf32, #tpu.memory_space<vmem>>, %arg7: memref<32x3136xbf16, #tpu.memory_space<vmem>>, %arg8: memref<3136x32xf32, #tpu.memory_space<vmem>>, %arg9: memref<1x32xf32, #tpu.memory_space<vmem>>, %arg10: memref<32x4xf32, #tpu.memory_space<vmem>>, %arg11: memref<1x4xf32, #tpu.memory_space<vmem>>, %arg12: memref<1x1x4xf32, #tpu.memory_space<vmem>>) attributes {dimension_semantics = [#tpu.dimension_semantics<parallel>], iteration_bounds = array<i64: 2>, scalar_prefetch = 0 : i64, scratch_operands = 0 : i64, tpu.core_type = #tpu.core_type<tc>, window_params = [{transform_indices = @transform_0, window_bounds = array<i64: 1, 208, 128>}, {transform_indices = @transform_1, window_bounds = array<i64: 1, 104, 2>}, {pipeline_mode = #tpu.pipeline_mode<synchronous>, transform_indices = @transform_2, window_bounds = array<i64: 128, 16>}, {pipeline_mode = #tpu.pipeline_mode<synchronous>, transform_indices = @transform_3, window_bounds = array<i64: 1, 16>}, {pipeline_mode = #tpu.pipeline_mode<synchronous>, transform_indices = @transform_4, window_bounds = array<i64: 5, 16, 32>}, {pipeline_mode = #tpu.pipeline_mode<synchronous>, transform_indices = @transform_5, window_bounds = array<i64: 1, 32>}, {pipeline_mode = #tpu.pipeline_mode<synchronous>, transform_indices = @transform_6, window_bounds = array<i64: 32, 3136>}, {pipeline_mode = #tpu.pipeline_mode<synchronous>, transform_indices = @transform_7, window_bounds = array<i64: 3136, 32>}, {pipeline_mode = #tpu.pipeline_mode<synchronous>, transform_indices = @transform_8, window_bounds = array<i64: 1, 32>}, {pipeline_mode = #tpu.pipeline_mode<synchronous>, transform_indices = @transform_9, window_bounds = array<i64: 32, 4>}, {pipeline_mode = #tpu.pipeline_mode<synchronous>, transform_indices = @transform_10, window_bounds = array<i64: 1, 4>}, {transform_indices = @transform_11, window_bounds = array<i64: 1, 1, 4>}]} {
    %c0 = arith.constant 0 : index
    %c0_0 = arith.constant 0 : index
    %c0_1 = arith.constant 0 : index
    %0 = vector.load %arg1[%c0, %c0_0, %c0_1] : memref<1x208x128xbf16, #tpu.memory_space<vmem>>, vector<1x208x128xbf16>
    %1 = vector.shape_cast %0 : vector<1x208x128xbf16> to vector<208x128xbf16>
    %2 = tpu.iota {dimensions = array<i32: 1>} : vector<104x208xi32>
    %c0_2 = arith.constant 0 : index
    %c0_3 = arith.constant 0 : index
    %c0_4 = arith.constant 0 : index
    %3 = vector.load %arg2[%c0_2, %c0_3, %c0_4] : memref<1x104x2xi32, #tpu.memory_space<vmem>>, vector<1x104x1xi32>
    %4 = vector.shape_cast %3 : vector<1x104x1xi32> to vector<104x1xi32>
    %5 = vector.broadcast %4 : vector<104x1xi32> to vector<104x208xi32>
    %6 = arith.cmpi eq, %2, %5 : vector<104x208xi32>
    %7 = arith.extui %6 : vector<104x208xi1> to vector<104x208xi32>
    %8 = arith.sitofp %7 : vector<104x208xi32> to vector<104x208xf32>
    %9 = arith.truncf %8 : vector<104x208xf32> to vector<104x208xbf16>
    %c0_5 = arith.constant 0 : index
    %c0_6 = arith.constant 0 : index
    %c1 = arith.constant 1 : index
    %10 = vector.load %arg2[%c0_5, %c0_6, %c1] : memref<1x104x2xi32, #tpu.memory_space<vmem>>, vector<1x104x1xi32>
    %11 = vector.shape_cast %10 : vector<1x104x1xi32> to vector<104x1xi32>
    %12 = vector.broadcast %11 : vector<104x1xi32> to vector<104x208xi32>
    %13 = arith.cmpi eq, %2, %12 : vector<104x208xi32>
    %14 = arith.extui %13 : vector<104x208xi1> to vector<104x208xi32>
    %15 = arith.sitofp %14 : vector<104x208xi32> to vector<104x208xf32>
    %16 = arith.truncf %15 : vector<104x208xf32> to vector<104x208xbf16>
    %cst = arith.constant dense<0.000000e+00> : vector<104x128xf32>
    %17 = tpu.matmul %9, %1, %cst {dimension_numbers = #tpu.dot_dimension_numbers<[1], [0], [0], [1], [0, 0, 1, 1], [], []>} : vector<104x208xbf16>, vector<208x128xbf16>, vector<104x128xf32> -> vector<104x128xf32>
    %cst_7 = arith.constant dense<0.000000e+00> : vector<104x128xf32>
    %18 = tpu.matmul %16, %1, %cst_7 {dimension_numbers = #tpu.dot_dimension_numbers<[1], [0], [0], [1], [0, 0, 1, 1], [], []>} : vector<104x208xbf16>, vector<208x128xbf16>, vector<104x128xf32> -> vector<104x128xf32>
    %c0_8 = arith.constant 0 : index
    %c0_9 = arith.constant 0 : index
    %19 = vector.load %arg3[%c0_8, %c0_9] : memref<128x16xbf16, #tpu.memory_space<vmem>>, vector<128x16xbf16>
    %c0_10 = arith.constant 0 : index
    %c0_11 = arith.constant 0 : index
    %20 = vector.load %arg4[%c0_10, %c0_11] : memref<1x16xf32, #tpu.memory_space<vmem>>, vector<1x16xf32>
    %21 = arith.truncf %17 : vector<104x128xf32> to vector<104x128xbf16>
    %cst_12 = arith.constant dense<0.000000e+00> : vector<104x16xf32>
    %22 = tpu.matmul %21, %19, %cst_12 {dimension_numbers = #tpu.dot_dimension_numbers<[1], [0], [0], [1], [0, 0, 1, 1], [], []>} : vector<104x128xbf16>, vector<128x16xbf16>, vector<104x16xf32> -> vector<104x16xf32>
    %23 = vector.broadcast %20 : vector<1x16xf32> to vector<104x16xf32>
    %24 = arith.addf %22, %23 : vector<104x16xf32>
    %25 = arith.truncf %18 : vector<104x128xf32> to vector<104x128xbf16>
    %cst_13 = arith.constant dense<0.000000e+00> : vector<104x16xf32>
    %26 = tpu.matmul %25, %19, %cst_13 {dimension_numbers = #tpu.dot_dimension_numbers<[1], [0], [0], [1], [0, 0, 1, 1], [], []>} : vector<104x128xbf16>, vector<128x16xbf16>, vector<104x16xf32> -> vector<104x16xf32>
    %27 = vector.broadcast %20 : vector<1x16xf32> to vector<104x16xf32>
    %28 = arith.addf %26, %27 : vector<104x16xf32>
    %29 = arith.maximumf %24, %28 : vector<104x16xf32>
    %cst_14 = arith.constant 0.000000e+00 : f32
    %30 = vector.broadcast %cst_14 : f32 to vector<104x16xf32>
    %31 = arith.maximumf %29, %30 : vector<104x16xf32>
    %32 = arith.truncf %31 : vector<104x16xf32> to vector<104x16xbf16>
    %33 = tpu.iota {dimensions = array<i32: 0>} : vector<104x104xi32>
    %34 = tpu.iota {dimensions = array<i32: 1>} : vector<104x104xi32>
    %cst_15 = arith.constant 0.000000e+00 : f32
    %35 = vector.broadcast %cst_15 : f32 to vector<104x32xf32>
    %c0_16 = arith.constant 0 : index
    %c0_17 = arith.constant 0 : index
    %36 = vector.load %arg6[%c0_16, %c0_17] : memref<1x32xf32, #tpu.memory_space<vmem>>, vector<1x32xf32>
    %37 = vector.broadcast %36 : vector<1x32xf32> to vector<104x32xf32>
    %38 = arith.addf %35, %37 : vector<104x32xf32>
    %39 = arith.subi %34, %33 : vector<104x104xi32>
    %c0_i32 = arith.constant 0 : i32
    %40 = vector.broadcast %c0_i32 : i32 to vector<104x104xi32>
    %41 = arith.cmpi eq, %39, %40 : vector<104x104xi32>
    %42 = arith.extui %41 : vector<104x104xi1> to vector<104x104xi32>
    %43 = arith.sitofp %42 : vector<104x104xi32> to vector<104x104xf32>
    %44 = arith.truncf %43 : vector<104x104xf32> to vector<104x104xbf16>
    %cst_18 = arith.constant dense<0.000000e+00> : vector<104x16xf32>
    %45 = tpu.matmul %44, %32, %cst_18 {dimension_numbers = #tpu.dot_dimension_numbers<[1], [0], [0], [1], [0, 0, 1, 1], [], []>} : vector<104x104xbf16>, vector<104x16xbf16>, vector<104x16xf32> -> vector<104x16xf32>
    %46 = arith.truncf %45 : vector<104x16xf32> to vector<104x16xbf16>
    %c0_19 = arith.constant 0 : index
    %c0_20 = arith.constant 0 : index
    %c0_21 = arith.constant 0 : index
    %47 = vector.load %arg5[%c0_19, %c0_20, %c0_21] : memref<5x16x32xbf16, #tpu.memory_space<vmem>>, vector<1x16x32xbf16>
    %48 = vector.shape_cast %47 : vector<1x16x32xbf16> to vector<16x32xbf16>
    %cst_22 = arith.constant dense<0.000000e+00> : vector<104x32xf32>
    %49 = tpu.matmul %46, %48, %cst_22 {dimension_numbers = #tpu.dot_dimension_numbers<[1], [0], [0], [1], [0, 0, 1, 1], [], []>} : vector<104x16xbf16>, vector<16x32xbf16>, vector<104x32xf32> -> vector<104x32xf32>
    %50 = arith.addf %38, %49 : vector<104x32xf32>
    %51 = arith.subi %34, %33 : vector<104x104xi32>
    %c1_i32 = arith.constant 1 : i32
    %52 = vector.broadcast %c1_i32 : i32 to vector<104x104xi32>
    %53 = arith.cmpi eq, %51, %52 : vector<104x104xi32>
    %54 = arith.extui %53 : vector<104x104xi1> to vector<104x104xi32>
    %55 = arith.sitofp %54 : vector<104x104xi32> to vector<104x104xf32>
    %56 = arith.truncf %55 : vector<104x104xf32> to vector<104x104xbf16>
    %cst_23 = arith.constant dense<0.000000e+00> : vector<104x16xf32>
    %57 = tpu.matmul %56, %32, %cst_23 {dimension_numbers = #tpu.dot_dimension_numbers<[1], [0], [0], [1], [0, 0, 1, 1], [], []>} : vector<104x104xbf16>, vector<104x16xbf16>, vector<104x16xf32> -> vector<104x16xf32>
    %58 = arith.truncf %57 : vector<104x16xf32> to vector<104x16xbf16>
    %c1_24 = arith.constant 1 : index
    %c0_25 = arith.constant 0 : index
    %c0_26 = arith.constant 0 : index
    %59 = vector.load %arg5[%c1_24, %c0_25, %c0_26] : memref<5x16x32xbf16, #tpu.memory_space<vmem>>, vector<1x16x32xbf16>
    %60 = vector.shape_cast %59 : vector<1x16x32xbf16> to vector<16x32xbf16>
    %cst_27 = arith.constant dense<0.000000e+00> : vector<104x32xf32>
    %61 = tpu.matmul %58, %60, %cst_27 {dimension_numbers = #tpu.dot_dimension_numbers<[1], [0], [0], [1], [0, 0, 1, 1], [], []>} : vector<104x16xbf16>, vector<16x32xbf16>, vector<104x32xf32> -> vector<104x32xf32>
    %62 = arith.addf %50, %61 : vector<104x32xf32>
    %63 = arith.subi %34, %33 : vector<104x104xi32>
    %c2_i32 = arith.constant 2 : i32
    %64 = vector.broadcast %c2_i32 : i32 to vector<104x104xi32>
    %65 = arith.cmpi eq, %63, %64 : vector<104x104xi32>
    %66 = arith.extui %65 : vector<104x104xi1> to vector<104x104xi32>
    %67 = arith.sitofp %66 : vector<104x104xi32> to vector<104x104xf32>
    %68 = arith.truncf %67 : vector<104x104xf32> to vector<104x104xbf16>
    %cst_28 = arith.constant dense<0.000000e+00> : vector<104x16xf32>
    %69 = tpu.matmul %68, %32, %cst_28 {dimension_numbers = #tpu.dot_dimension_numbers<[1], [0], [0], [1], [0, 0, 1, 1], [], []>} : vector<104x104xbf16>, vector<104x16xbf16>, vector<104x16xf32> -> vector<104x16xf32>
    %70 = arith.truncf %69 : vector<104x16xf32> to vector<104x16xbf16>
    %c2 = arith.constant 2 : index
    %c0_29 = arith.constant 0 : index
    %c0_30 = arith.constant 0 : index
    %71 = vector.load %arg5[%c2, %c0_29, %c0_30] : memref<5x16x32xbf16, #tpu.memory_space<vmem>>, vector<1x16x32xbf16>
    %72 = vector.shape_cast %71 : vector<1x16x32xbf16> to vector<16x32xbf16>
    %cst_31 = arith.constant dense<0.000000e+00> : vector<104x32xf32>
    %73 = tpu.matmul %70, %72, %cst_31 {dimension_numbers = #tpu.dot_dimension_numbers<[1], [0], [0], [1], [0, 0, 1, 1], [], []>} : vector<104x16xbf16>, vector<16x32xbf16>, vector<104x32xf32> -> vector<104x32xf32>
    %74 = arith.addf %62, %73 : vector<104x32xf32>
    %75 = arith.subi %34, %33 : vector<104x104xi32>
    %c3_i32 = arith.constant 3 : i32
    %76 = vector.broadcast %c3_i32 : i32 to vector<104x104xi32>
    %77 = arith.cmpi eq, %75, %76 : vector<104x104xi32>
    %78 = arith.extui %77 : vector<104x104xi1> to vector<104x104xi32>
    %79 = arith.sitofp %78 : vector<104x104xi32> to vector<104x104xf32>
    %80 = arith.truncf %79 : vector<104x104xf32> to vector<104x104xbf16>
    %cst_32 = arith.constant dense<0.000000e+00> : vector<104x16xf32>
    %81 = tpu.matmul %80, %32, %cst_32 {dimension_numbers = #tpu.dot_dimension_numbers<[1], [0], [0], [1], [0, 0, 1, 1], [], []>} : vector<104x104xbf16>, vector<104x16xbf16>, vector<104x16xf32> -> vector<104x16xf32>
    %82 = arith.truncf %81 : vector<104x16xf32> to vector<104x16xbf16>
    %c3 = arith.constant 3 : index
    %c0_33 = arith.constant 0 : index
    %c0_34 = arith.constant 0 : index
    %83 = vector.load %arg5[%c3, %c0_33, %c0_34] : memref<5x16x32xbf16, #tpu.memory_space<vmem>>, vector<1x16x32xbf16>
    %84 = vector.shape_cast %83 : vector<1x16x32xbf16> to vector<16x32xbf16>
    %cst_35 = arith.constant dense<0.000000e+00> : vector<104x32xf32>
    %85 = tpu.matmul %82, %84, %cst_35 {dimension_numbers = #tpu.dot_dimension_numbers<[1], [0], [0], [1], [0, 0, 1, 1], [], []>} : vector<104x16xbf16>, vector<16x32xbf16>, vector<104x32xf32> -> vector<104x32xf32>
    %86 = arith.addf %74, %85 : vector<104x32xf32>
    %87 = arith.subi %34, %33 : vector<104x104xi32>
    %c4_i32 = arith.constant 4 : i32
    %88 = vector.broadcast %c4_i32 : i32 to vector<104x104xi32>
    %89 = arith.cmpi eq, %87, %88 : vector<104x104xi32>
    %90 = arith.extui %89 : vector<104x104xi1> to vector<104x104xi32>
    %91 = arith.sitofp %90 : vector<104x104xi32> to vector<104x104xf32>
    %92 = arith.truncf %91 : vector<104x104xf32> to vector<104x104xbf16>
    %cst_36 = arith.constant dense<0.000000e+00> : vector<104x16xf32>
    %93 = tpu.matmul %92, %32, %cst_36 {dimension_numbers = #tpu.dot_dimension_numbers<[1], [0], [0], [1], [0, 0, 1, 1], [], []>} : vector<104x104xbf16>, vector<104x16xbf16>, vector<104x16xf32> -> vector<104x16xf32>
    %94 = arith.truncf %93 : vector<104x16xf32> to vector<104x16xbf16>
    %c4 = arith.constant 4 : index
    %c0_37 = arith.constant 0 : index
    %c0_38 = arith.constant 0 : index
    %95 = vector.load %arg5[%c4, %c0_37, %c0_38] : memref<5x16x32xbf16, #tpu.memory_space<vmem>>, vector<1x16x32xbf16>
    %96 = vector.shape_cast %95 : vector<1x16x32xbf16> to vector<16x32xbf16>
    %cst_39 = arith.constant dense<0.000000e+00> : vector<104x32xf32>
    %97 = tpu.matmul %94, %96, %cst_39 {dimension_numbers = #tpu.dot_dimension_numbers<[1], [0], [0], [1], [0, 0, 1, 1], [], []>} : vector<104x16xbf16>, vector<16x32xbf16>, vector<104x32xf32> -> vector<104x32xf32>
    %98 = arith.addf %86, %97 : vector<104x32xf32>
    %cst_40 = arith.constant 0.000000e+00 : f32
    %99 = vector.broadcast %cst_40 : f32 to vector<104x32xf32>
    %100 = arith.maximumf %98, %99 : vector<104x32xf32>
    %101 = arith.truncf %100 : vector<104x32xf32> to vector<104x32xbf16>
    %c0_41 = arith.constant 0 : index
    %c0_42 = arith.constant 0 : index
    %102 = vector.load %arg7[%c0_41, %c0_42] : memref<32x3136xbf16, #tpu.memory_space<vmem>>, vector<32x3136xbf16>
    %cst_43 = arith.constant dense<0.000000e+00> : vector<104x3136xf32>
    %103 = tpu.matmul %101, %102, %cst_43 {dimension_numbers = #tpu.dot_dimension_numbers<[1], [0], [0], [1], [0, 0, 1, 1], [], []>} : vector<104x32xbf16>, vector<32x3136xbf16>, vector<104x3136xf32> -> vector<104x3136xf32>
    %104 = tpu.iota {dimensions = array<i32: 1>} : vector<104x3136xi32>
    %105 = tpu.iota {dimensions = array<i32: 0>} : vector<104x3136xi32>
    %c5_i32 = arith.constant 5 : i32
    %106 = vector.broadcast %c5_i32 : i32 to vector<104x3136xi32>
    %107 = arith.shrsi %104, %106 : vector<104x3136xi32>
    %108 = arith.cmpi eq, %107, %105 : vector<104x3136xi32>
    %cst_44 = arith.constant 0.000000e+00 : f32
    %109 = vector.broadcast %cst_44 : f32 to vector<104x3136xf32>
    %110 = arith.select %108, %103, %109 : vector<104x3136xi1>, vector<104x3136xf32>
    %cst_45 = arith.constant dense<0.000000e+00> : vector<3136xf32>
    %111 = vector.multi_reduction <add>, %110, %cst_45 [0] : vector<104x3136xf32> to vector<3136xf32>
    %112 = vector.shape_cast %111 : vector<3136xf32> to vector<1x3136xf32>
    %c0_46 = arith.constant 0 : index
    %c0_47 = arith.constant 0 : index
    %113 = vector.load %arg8[%c0_46, %c0_47] : memref<3136x32xf32, #tpu.memory_space<vmem>>, vector<3136x32xf32>
    %cst_48 = arith.constant dense<0.000000e+00> : vector<1x32xf32>
    %114 = tpu.matmul %112, %113, %cst_48 {dimension_numbers = #tpu.dot_dimension_numbers<[1], [0], [0], [1], [0, 0, 1, 1], [], []>} : vector<1x3136xf32>, vector<3136x32xf32>, vector<1x32xf32> -> vector<1x32xf32>
    %c0_49 = arith.constant 0 : index
    %c0_50 = arith.constant 0 : index
    %115 = vector.load %arg9[%c0_49, %c0_50] : memref<1x32xf32, #tpu.memory_space<vmem>>, vector<1x32xf32>
    %116 = arith.addf %114, %115 : vector<1x32xf32>
    %cst_51 = arith.constant 0.000000e+00 : f32
    %117 = vector.broadcast %cst_51 : f32 to vector<1x32xf32>
    %118 = arith.maximumf %116, %117 : vector<1x32xf32>
    %c0_52 = arith.constant 0 : index
    %c0_53 = arith.constant 0 : index
    %119 = vector.load %arg10[%c0_52, %c0_53] : memref<32x4xf32, #tpu.memory_space<vmem>>, vector<32x4xf32>
    %cst_54 = arith.constant dense<0.000000e+00> : vector<1x4xf32>
    %120 = tpu.matmul %118, %119, %cst_54 {dimension_numbers = #tpu.dot_dimension_numbers<[1], [0], [0], [1], [0, 0, 1, 1], [], []>} : vector<1x32xf32>, vector<32x4xf32>, vector<1x4xf32> -> vector<1x4xf32>
    %c0_55 = arith.constant 0 : index
    %c0_56 = arith.constant 0 : index
    %121 = vector.load %arg11[%c0_55, %c0_56] : memref<1x4xf32, #tpu.memory_space<vmem>>, vector<1x4xf32>
    %122 = arith.addf %120, %121 : vector<1x4xf32>
    %c0_57 = arith.constant 0 : index
    %c0_58 = arith.constant 0 : index
    %c0_59 = arith.constant 0 : index
    %123 = vector.load %arg12[%c0_57, %c0_58, %c0_59] : memref<1x1x4xf32, #tpu.memory_space<vmem>>, vector<1x1x4xf32>
    %124 = vector.shape_cast %123 : vector<1x1x4xf32> to vector<1x4xf32>
    %125 = vector.shape_cast %122 : vector<1x4xf32> to vector<1x1x4xf32>
    tpu.vector_store %arg12[%c0_57, %c0_58, %c0_59], %125 {strides = array<i32>} : memref<1x1x4xf32, #tpu.memory_space<vmem>>, vector<1x1x4xf32>,
    return
  }
  func.func @transform_0(%arg0: i32) -> (i32, i32, i32) {
    %c0_i32 = arith.constant 0 : i32
    %c0_i32_0 = arith.constant 0 : i32
    %c0_i32_1 = arith.constant 0 : i32
    return %arg0, %c0_i32, %c0_i32_0 : i32, i32, i32
  }
  func.func @transform_1(%arg0: i32) -> (i32, i32, i32) {
    %c0_i32 = arith.constant 0 : i32
    %c0_i32_0 = arith.constant 0 : i32
    %c0_i32_1 = arith.constant 0 : i32
    return %arg0, %c0_i32, %c0_i32_0 : i32, i32, i32
  }
  func.func @transform_2(%arg0: i32) -> (i32, i32) {
    %c0_i32 = arith.constant 0 : i32
    %c0_i32_0 = arith.constant 0 : i32
    %c0_i32_1 = arith.constant 0 : i32
    return %c0_i32, %c0_i32_0 : i32, i32
  }
  func.func @transform_3(%arg0: i32) -> (i32, i32) {
    %c0_i32 = arith.constant 0 : i32
    %c0_i32_0 = arith.constant 0 : i32
    %c0_i32_1 = arith.constant 0 : i32
    return %c0_i32, %c0_i32_0 : i32, i32
  }
  func.func @transform_4(%arg0: i32) -> (i32, i32, i32) {
    %c0_i32 = arith.constant 0 : i32
    %c0_i32_0 = arith.constant 0 : i32
    %c0_i32_1 = arith.constant 0 : i32
    %c0_i32_2 = arith.constant 0 : i32
    return %c0_i32, %c0_i32_0, %c0_i32_1 : i32, i32, i32
  }
  func.func @transform_5(%arg0: i32) -> (i32, i32) {
    %c0_i32 = arith.constant 0 : i32
    %c0_i32_0 = arith.constant 0 : i32
    %c0_i32_1 = arith.constant 0 : i32
    return %c0_i32, %c0_i32_0 : i32, i32
  }
  func.func @transform_6(%arg0: i32) -> (i32, i32) {
    %c0_i32 = arith.constant 0 : i32
    %c0_i32_0 = arith.constant 0 : i32
    %c0_i32_1 = arith.constant 0 : i32
    return %c0_i32, %c0_i32_0 : i32, i32
  }
  func.func @transform_7(%arg0: i32) -> (i32, i32) {
    %c0_i32 = arith.constant 0 : i32
    %c0_i32_0 = arith.constant 0 : i32
    %c0_i32_1 = arith.constant 0 : i32
    return %c0_i32, %c0_i32_0 : i32, i32
  }
  func.func @transform_8(%arg0: i32) -> (i32, i32) {
    %c0_i32 = arith.constant 0 : i32
    %c0_i32_0 = arith.constant 0 : i32
    %c0_i32_1 = arith.constant 0 : i32
    return %c0_i32, %c0_i32_0 : i32, i32
  }
  func.func @transform_9(%arg0: i32) -> (i32, i32) {
    %c0_i32 = arith.constant 0 : i32
    %c0_i32_0 = arith.constant 0 : i32
    %c0_i32_1 = arith.constant 0 : i32
    return %c0_i32, %c0_i32_0 : i32, i32
  }
  func.func @transform_10(%arg0: i32) -> (i32, i32) {
    %c0_i32 = arith.constant 0 : i32
    %c0_i32_0 = arith.constant 0 : i32
    %c0_i32_1 = arith.constant 0 : i32
    return %c0_i32, %c0_i32_0 : i32, i32
  }
  func.func @transform_11(%arg0: i32) -> (i32, i32, i32) {
    %c0_i32 = arith.constant 0 : i32
    %c0_i32_0 = arith.constant 0 : i32
    %c0_i32_1 = arith.constant 0 : i32
    return %arg0, %c0_i32, %c0_i32_0 : i32, i32, i32
  }
}

</mosaic_0001>

<bundles_post_ra>
// kernel: sortpool_forward.2
= control target key start
LH: loop header
LB: loop body
LE: loop exit
PB: predicated region body
PF: predicated region fallthrough
CT: control target
= control target key end

     0   :  { %s3897_s18 = smov 0   ;;  %s5062_s0 = inlined_call_operand.vmem [shape: bf16[2,208,208], index: 0, kind: input, shape index: {}]   ;;  %s5063_s1 = inlined_call_operand.vmem [shape: bf16[2,208,32], index: 1, kind: input, shape index: {}]   ;;  %s5064_s2 = inlined_call_operand.vmem [shape: bf16[4,32,32], index: 2, kind: input, shape index: {}]   ;;  %s5065_s3 = inlined_call_operand.vmem [shape: f32[4,1,32], index: 3, kind: input, shape index: {}]   ;;  %s5066_s4 = inlined_call_operand.vmem [shape: bf16[2,208,128], index: 4, kind: output, shape index: {0}]   ;;  %s5067_s5 = inlined_call_operand.vmem [shape: f32[2,208,1], index: 5, kind: output, shape index: {1}]  }
   0x1 LB: > { %s2728_s19 = sadd.s32 4294967295, %s3859_s18   ;;  %p2732_p0 = scmp.ge.s32.totalorder %s3859_s18, 1  ;;  %s3859_s18 = sphi %s3897_s18, %s16_s18  }
   0x2   : > { %p200_p1 = scmp.lt.s32.totalorder %s3859_s18, 3 }
   0x4   : > { %p201_p2 = pnand %p2732_p0, %p200_p1 }
   0x6   : > { %204 = sbr.rel (%p201_p2) target bundleno = 2353 (0x931), region = 36 }
   0xb   : > { %v3559_v0 = vld [vmem:[%s5064_s2 + $0x8] sm:$0xff]   ;;  %v5074_v1 = vmov 0.0   ;;  %v3560_v2 = vld [vmem:[%s5064_s2] sm:$0xff]   ;;  %vm3862_vm0 = vmmov 0   ;;  %p238_p3 = scmp.lt.s32.totalorder %s2728_s19, 1  ;;  %vm392_vm1 = vcmask 261120  }
   0xc   : > { %3098 = vmatprep.subr.bf16.mxu0 %v5074_v1  ;;  %3102 = vmatprep.mubr.msk.bf16.mxu0 %vm3862_vm0, %v5074_v1  ;;  %v5068_v16 = vmov 0   ;;  %vm706_vm2 = vcmask 654336   ;;  %s3864_s21 = smov 32   ;;  %s3865_s30 = smov 64   ;;  %vm2417_vm3 = vcmask 523264   ;;  %vm2601_vm4 = vcmask 7168  }
   0xd   : > { %3099 = vmatpush3.bf16.msra.mxu0 %v3559_v0  ;;  %s5159_s19 = smov (!%p238_p3, %s2728_s19), 1  ;;  %3322 = vmatprep.subr.bf16.mxu1 %v5068_v16  ;;  %vm2444_vm5 = vcmask 785408  }
   0xe   : > { %3100 = vmatprep.subr.bf16.mxu0 %v5074_v1  ;;  %s3349_s24 = smul.u32 104, %s5159_s19 }
   0xf   : > { %s3348_s28 = smul.u32 208, %s5159_s19 }
  0x10   : > { %s3923_s27 = scalar_lea.vmem %s5063_s1, %s3349_s24  ;;  %s4928_s13 = scalar_lea.vmem %s5066_s4, %s3349_s24 }
  0x11   : > { %3101 = vmatpush3.bf16.msra.mxu0 %v3560_v2  ;;  %v3561_v3 = vld [vmem:[%s3923_s27] sm:$0xff]   ;;  %v3562_v4 = vld [vmem:[%s3923_s27 + $0x8] sm:$0xff]   ;;  %v3563_v5 = vld [vmem:[%s3923_s27 + $0x10] sm:$0xff]   ;;  %s3983_s6 = scalar_lea.vmem %s5062_s0, %s3348_s28  ;;  %s4822_s10 = scalar_lea.vmem %s5067_s5, %s3348_s28 }
  0x12   : > { %v3564_v6 = vld [vmem:[%s3923_s27 + $0x18] sm:$0xff]   ;;  %v3565_v7 = vld [vmem:[%s3923_s27 + $0x20] sm:$0xff]   ;;  %v3566_v8 = vld [vmem:[%s3923_s27 + $0x28] sm:$0xff]   ;;  %746 = vmatprep.subr.bf16.mxu0 %v5068_v16  ;;  %s3866_s28 = smov 96  }
  0x13   : > { %v3567_v9 = vld [vmem:[%s3923_s27 + $0x30] sm:$0xff]   ;;  %v3568_v10 = vld [vmem:[%s3923_s27 + $0x38] sm:$0xff]   ;;  %v3569_v11 = vld [vmem:[%s3923_s27 + $0x40] sm:$0xff]  }
  0x14   : > { %3103 = vmatmul.mubr.msk.bf16.vlgmr.msra.gmra.mxu0 %vm392_vm1, %v3561_v3  ;;  %v3570_v12 = vld [vmem:[%s3923_s27 + $0x48] sm:$0xff]   ;;  %v3571_v13 = vld [vmem:[%s3923_s27 + $0x50] sm:$0xff]   ;;  %v3572_v14 = vld [vmem:[%s3923_s27 + $0x58] sm:$0xff]  }
  0x15   : > { %3106 = vmatprep.mubr.msk.bf16.mxu0 %vm3862_vm0, %v5074_v1  ;;  %v3573_v15 = vld [vmem:[%s3923_s27 + $0x60] sm:$0xff]  }
  0x16   : > { %v3986_v17 = vld [vmem:[%s3983_s6 + $0x4] ss:$8 sps:$4 sm:$0xff]  }
  0x17   : > { %v3991_v19 = vld [vmem:[%s3983_s6 + $0x24] ss:$8 sps:$4 sm:$0xff]  }
  0x18   : > { %2794 = vmatprep.mubr.msk.bf16.mxu1 %vm706_vm2, %v3991_v19 }
  0x1c   : > { %3107 = vmatmul.mubr.msk.bf16.gmra.mxu0 %vm392_vm1, %v3562_v4 }
  0x1d   : > { %3110 = vmatprep.mubr.msk.bf16.mxu0 %vm3862_vm0, %v5074_v1 }
  0x24   : > { %3111 = vmatmul.mubr.msk.bf16.gmra.mxu0 %vm392_vm1, %v3563_v5 }
  0x25   : > { %3114 = vmatprep.mubr.msk.bf16.mxu0 %vm3862_vm0, %v5074_v1 }
  0x2c   : > { %3115 = vmatmul.mubr.msk.bf16.gmra.mxu0 %vm392_vm1, %v3564_v6 }
  0x2d   : > { %3118 = vmatprep.mubr.msk.bf16.mxu0 %vm3862_vm0, %v5074_v1 }
  0x34   : > { %3119 = vmatmul.mubr.msk.bf16.gmra.mxu0 %vm392_vm1, %v3565_v7 }
  0x35   : > { %3122 = vmatprep.mubr.msk.bf16.mxu0 %vm3862_vm0, %v5074_v1 }
  0x3c   : > { %3123 = vmatmul.mubr.msk.bf16.gmra.mxu0 %vm392_vm1, %v3566_v8 }
  0x3d   : > { %3126 = vmatprep.mubr.msk.bf16.mxu0 %vm3862_vm0, %v5074_v1 }
  0x44   : > { %3127 = vmatmul.mubr.msk.bf16.gmra.mxu0 %vm392_vm1, %v3567_v9 }
  0x45   : > { %3130 = vmatprep.mubr.msk.bf16.mxu0 %vm3862_vm0, %v5074_v1 }
  0x4c   : > { %3131 = vmatmul.mubr.msk.bf16.gmra.mxu0 %vm392_vm1, %v3568_v10 }
  0x4d   : > { %3134 = vmatprep.mubr.msk.bf16.mxu0 %vm3862_vm0, %v5074_v1 }
  0x54   : > { %3135 = vmatmul.mubr.msk.bf16.gmra.mxu0 %vm392_vm1, %v3569_v11 }
  0x55   : > { %3138 = vmatprep.mubr.msk.bf16.mxu0 %vm3862_vm0, %v5074_v1 }
  0x5c   : > { %3139 = vmatmul.mubr.msk.bf16.gmra.mxu0 %vm392_vm1, %v3570_v12 }
  0x5d   : > { %3142 = vmatprep.mubr.msk.bf16.mxu0 %vm3862_vm0, %v5074_v1 }
  0x64   : > { %3143 = vmatmul.mubr.msk.bf16.gmra.mxu0 %vm392_vm1, %v3571_v13 }
  0x65   : > { %3146 = vmatprep.mubr.msk.bf16.mxu0 %vm3862_vm0, %v5074_v1 }
  0x6c   : > { %3147 = vmatmul.mubr.msk.bf16.gmra.mxu0 %vm392_vm1, %v3572_v14 }
  0x6d   : > { %3150 = vmatprep.mubr.msk.bf16.mxu0 %vm3862_vm0, %v5074_v1 }
  0x74   : > { %3151 = vmatmul.mubr.msk.bf16.gmra.mxu0 %vm392_vm1, %v3573_v15 }
  0x75   : > { %2792 = vmatprep.mubr.msk.bf16.mxu0 %vm706_vm2, %v3986_v17 }
  0xd4   : > { %v466_v18 = vpop.f32.mrf.mxu0 }
  0xd6   : > { %v3104_v20 = vpop.f32.mrf.mxu0 }
  0xd8   : > { %v469_v21 = vpop.f32.mrf.mxu0 }
  0xd9   : > { %v3995_v22 = vpack.c.bf16 %v469_v21, %v466_v18 }
  0xda   : > { %v3105_v23 = vpop.f32.mrf.mxu0 }
  0xdc   : > { %v474_v24 = vpop.f32.mrf.mxu0 }
  0xde   : > { %v3108_v25 = vpop.f32.mrf.mxu0 }
  0xdf   : > { %v4037_v25 = vld [vmem:[%s3983_s6 + $0x20] ss:$8 sps:$4 sm:$0xff]  }
  0xe0   : > { %v477_v26 = vpop.f32.mrf.mxu0 }
  0xe1   : > { %v3997_v27 = vpack.c.bf16 %v477_v26, %v474_v24  ;;  %v4034_v24 = vld [vmem:[%s3983_s6] ss:$8 sps:$4 sm:$0xff]   ;;  %v4040_v26 = vld [vmem:[%s3983_s6 + $0x14] ss:$8 sps:$4 sm:$0xff]  }
  0xe2   : > { %v3109_v28 = vpop.f32.mrf.mxu0 }
  0xe3   : > { %v4054_v28 = vld [vmem:[%s3983_s6 + $0x10] ss:$8 sps:$4 sm:$0xff]  }
  0xe4   : > { %v482_v29 = vpop.f32.mrf.mxu0 }
  0xe6   : > { %v3112_v30 = vpop.f32.mrf.mxu0 }
  0xe7   : > { %v4060_v30 = vld [vmem:[%s3983_s6 + $0x44] ss:$8 sps:$4 sm:$0xff]  }
  0xe8   : > { %v485_v31 = vpop.f32.mrf.mxu0 }
  0xe9   : > { %v571_v4 = vpack.c.bf16 %v485_v31, %v482_v29  ;;  %v4057_v29 = vld [vmem:[%s3983_s6 + $0x30] ss:$8 sps:$4 sm:$0xff]   ;;  %v4069_v31 = vld [vmem:[%s3983_s6 + $0x40] ss:$8 sps:$4 sm:$0xff]  }
  0xea   : > { %v3113_v32 = vpop.f32.mrf.mxu0 }
  0xeb   : > { %v4072_v32 = vld [vmem:[%s3983_s6 + $0x54] ss:$8 sps:$4 sm:$0xff]  }
  0xec   : > { %v490_v33 = vpop.f32.mrf.mxu0 }
  0xee   : > { %v3116_v34 = vpop.f32.mrf.mxu0 }
  0xef   : > { %v4081_v34 = vld [vmem:[%s3983_s6 + $0x64] ss:$8 sps:$4 sm:$0xff]  }
  0xf0   : > { %v493_v35 = vpop.f32.mrf.mxu0 }
  0xf1   : > { %v572_v0 = vpack.c.bf16 %v493_v35, %v490_v33  ;;  %v4078_v33 = vld [vmem:[%s3983_s6 + $0x50] ss:$8 sps:$4 sm:$0xff]   ;;  %v4087_v35 = vld [vmem:[%s3983_s6 + $0x60] ss:$8 sps:$4 sm:$0xff]  }
  0xf2   : > { %v3117_v36 = vpop.f32.mrf.mxu0 }
  0xf3   : > { %v4090_v36 = vld [vmem:[%s3983_s6 + $0x74] ss:$8 sps:$4 sm:$0xff]  }
  0xf4   : > { %v498_v37 = vpop.f32.mrf.mxu0 }
  0xf6   : > { %v3120_v38 = vpop.f32.mrf.mxu0 }
  0xf7   : > { %v4099_v38 = vld [vmem:[%s3983_s6 + $0x84] ss:$8 sps:$4 sm:$0xff]  }
  0xf8   : > { %v501_v39 = vpop.f32.mrf.mxu0 }
  0xf9   : > { %v573_v61 = vpack.c.bf16 %v501_v39, %v498_v37  ;;  %v4096_v37 = vld [vmem:[%s3983_s6 + $0x70] ss:$8 sps:$4 sm:$0xff]   ;;  %v4105_v39 = vld [vmem:[%s3983_s6 + $0x80] ss:$8 sps:$4 sm:$0xff]  }
  0xfa   : > { %v3121_v40 = vpop.f32.mrf.mxu0 }
  0xfb   : > { %v4108_v40 = vld [vmem:[%s3983_s6 + $0x94] ss:$8 sps:$4 sm:$0xff]  }
  0xfc   : > { %v506_v41 = vpop.f32.mrf.mxu0 }
  0xfe   : > { %v3124_v42 = vpop.f32.mrf.mxu0 }
  0xff   : > { %v4117_v42 = vld [vmem:[%s3983_s6 + $0xa4] ss:$8 sps:$4 sm:$0xff]  }
 0x100   : > { %v509_v43 = vpop.f32.mrf.mxu0 }
 0x101   : > { %v574_v58 = vpack.c.bf16 %v509_v43, %v506_v41  ;;  %v4114_v41 = vld [vmem:[%s3983_s6 + $0x90] ss:$8 sps:$4 sm:$0xff]   ;;  %v4123_v43 = vld [vmem:[%s3983_s6 + $0xa0] ss:$8 sps:$4 sm:$0xff]  }
 0x102   : > { %v3125_v44 = vpop.f32.mrf.mxu0 }
 0x103   : > { %v4126_v44 = vld [vmem:[%s3983_s6 + $0xb4] ss:$8 sps:$4 sm:$0xff]  }
 0x104   : > { %v514_v45 = vpop.f32.mrf.mxu0 }
 0x106   : > { %v3128_v46 = vpop.f32.mrf.mxu0 }
 0x107   : > { %v4135_v46 = vld [vmem:[%s3983_s6 + $0xc4] ss:$8 sps:$4 sm:$0xff]  }
 0x108   : > { %v517_v47 = vpop.f32.mrf.mxu0 }
 0x109   : > { %v575_v55 = vpack.c.bf16 %v517_v47, %v514_v45  ;;  %v4132_v45 = vld [vmem:[%s3983_s6 + $0xb0] ss:$8 sps:$4 sm:$0xff]   ;;  %v4141_v47 = vld [vmem:[%s3983_s6 + $0xc0] ss:$8 sps:$4 sm:$0xff]  }
 0x10a   : > { %v3129_v48 = vpop.f32.mrf.mxu0 }
 0x10b   : > { %v3613_v48 = vld [vmem:[%s5064_s2 + $0x18] sm:$0xff]  }
 0x10c   : > { %v522_v49 = vpop.f32.mrf.mxu0 }
 0x10e   : > { %v3132_v50 = vpop.f32.mrf.mxu0 }
 0x10f   : > { %v4157_v50 = vld [vmem:[%s5065_s3] ss:$0 sm:$0xff] }
 0x110   : > { %v525_v51 = vpop.f32.mrf.mxu0 }
 0x111   : > { %v576_v52 = vpack.c.bf16 %v525_v51, %v522_v49  ;;  %v3614_v49 = vld [vmem:[%s5064_s2 + $0x10] sm:$0xff]  }
 0x112   : > { %v3133_v53 = vpop.f32.mrf.mxu0 }
 0x113   : > { %747 = vmatpush1.bf16.msra.mxu0 %v576_v52  ;;  %3335 = vmatpush1.bf16.msra.mxu1 %v576_v52 }
 0x114   : > { %v3999_v54 = vpop.f32.mrf.mxu0  ;;  %748 = vmatprep.subr.bf16.mxu0 %v5068_v16  ;;  %3323 = vmatprep.subr.bf16.mxu1 %v5068_v16 }
 0x116   : > { %v3136_v56 = vpop.f32.mrf.mxu0 }
 0x117   : > { %749 = vmatpush1.bf16.msra.mxu0 %v575_v55  ;;  %3336 = vmatpush1.bf16.msra.mxu1 %v575_v55 }
 0x118   : > { %v4003_v57 = vpop.f32.mrf.mxu0  ;;  %750 = vmatprep.subr.bf16.mxu0 %v5068_v16  ;;  %3324 = vmatprep.subr.bf16.mxu1 %v5068_v16 }
 0x119   : > { %v577_v23 = vpack.c.bf16 %v4003_v57, %v3999_v54 }
 0x11a   : > { %v3137_v59 = vpop.f32.mrf.mxu0 }
 0x11b   : > { %751 = vmatpush1.bf16.msra.mxu0 %v574_v58  ;;  %3337 = vmatpush1.bf16.msra.mxu1 %v574_v58 }
 0x11c   : > { %v538_v60 = vpop.f32.mrf.mxu0  ;;  %752 = vmatprep.subr.bf16.mxu0 %v5068_v16  ;;  %3325 = vmatprep.subr.bf16.mxu1 %v5068_v16 }
 0x11e   : > { %v3140_v62 = vpop.f32.mrf.mxu0 }
 0x11f   : > { %753 = vmatpush1.bf16.msra.mxu0 %v573_v61  ;;  %3338 = vmatpush1.bf16.msra.mxu1 %v573_v61 }
 0x120   : > { %v541_v63 = vpop.f32.mrf.mxu0  ;;  %754 = vmatprep.subr.bf16.mxu0 %v5068_v16  ;;  %3326 = vmatprep.subr.bf16.mxu1 %v5068_v16 }
 0x122   : > { %v3141_v2 = vpop.f32.mrf.mxu0 }
 0x123   : > { %755 = vmatpush1.bf16.msra.mxu0 %v572_v0  ;;  %3339 = vmatpush1.bf16.msra.mxu1 %v572_v0 }
 0x124   : > { %v546_v3 = vpop.f32.mrf.mxu0  ;;  %756 = vmatprep.subr.bf16.mxu0 %v5068_v16  ;;  %3327 = vmatprep.subr.bf16.mxu1 %v5068_v16 }
 0x126   : > { %v3144_v5 = vpop.f32.mrf.mxu0 }
 0x127   : > { %757 = vmatpush1.bf16.msra.mxu0 %v571_v4  ;;  %3340 = vmatpush1.bf16.msra.mxu1 %v571_v4 }
 0x128   : > { %v549_v6 = vpop.f32.mrf.mxu0  ;;  %758 = vmatprep.subr.bf16.mxu0 %v5068_v16  ;;  %3328 = vmatprep.subr.bf16.mxu1 %v5068_v16 }
 0x129   : > { %v579_v21 = vpack.c.bf16 %v549_v6, %v546_v3 }
 0x12a   : > { %v3145_v7 = vpop.f32.mrf.mxu0 }
 0x12b   : > { %759 = vmatpush1.bf16.msra.mxu0 %v3997_v27  ;;  %3341 = vmatpush1.bf16.msra.mxu1 %v3997_v27  ;;  %v4043_v27 = vld [vmem:[%s3983_s6 + $0x34] ss:$8 sps:$4 sm:$0xff]  }
 0x12c   : > { %v554_v8 = vpop.f32.mrf.mxu0  ;;  %760 = vmatprep.subr.bf16.mxu0 %v5068_v16  ;;  %3329 = vmatprep.subr.bf16.mxu1 %v5068_v16 }
 0x12e   : > { %v3148_v9 = vpop.f32.mrf.mxu0 }
 0x12f   : > { %761 = vmatpush1.bf16.msra.mxu0 %v3995_v22  ;;  %3342 = vmatpush1.bf16.msra.mxu1 %v3995_v22  ;;  %v578_v22 = vpack.c.bf16 %v541_v63, %v538_v60 }
 0x130   : > { %v557_v10 = vpop.f32.mrf.mxu0  ;;  %768 = vmatprep.subr.bf16.mxu0 %v5068_v16  ;;  %3330 = vmatprep.subr.bf16.mxu1 %v5068_v16 }
 0x131   : > { %v580_v20 = vpack.c.bf16 %v557_v10, %v554_v8 }
 0x132   : > { %v3149_v11 = vpop.f32.mrf.mxu0 }
 0x134   : > { %v562_v12 = vpop.f32.mrf.mxu0 }
 0x136   : > { %v3152_v13 = vpop.f32.mrf.mxu0 }
 0x138   : > { %v565_v14 = vpop.f32.mrf.mxu0 }
 0x139   : > { %v581_v15 = vpack.c.bf16 %v565_v14, %v562_v12 }
 0x13a   : > { %v3153_v18 = vpop.f32.mrf.mxu0 }
 0x13b   : > { %769 = vmatpush2.bf16.msra.mxu0 %v581_v15  ;;  %3343 = vmatpush2.bf16.msra.mxu1 %v581_v15 }
 0x13c   : > { %770 = vmatprep.subr.bf16.mxu0 %v5068_v16  ;;  %3331 = vmatprep.subr.bf16.mxu1 %v5068_v16 }
 0x13f   : > { %771 = vmatpush2.bf16.msra.mxu0 %v580_v20  ;;  %3344 = vmatpush2.bf16.msra.mxu1 %v580_v20 }
 0x140   : > { %772 = vmatprep.subr.bf16.mxu0 %v5068_v16  ;;  %3332 = vmatprep.subr.bf16.mxu1 %v5068_v16 }
 0x143   : > { %773 = vmatpush2.bf16.msra.mxu0 %v579_v21  ;;  %3345 = vmatpush2.bf16.msra.mxu1 %v579_v21 }
 0x144   : > { %774 = vmatprep.subr.bf16.mxu0 %v5068_v16  ;;  %3333 = vmatprep.subr.bf16.mxu1 %v5068_v16 }
 0x147   : > { %775 = vmatpush2.bf16.msra.mxu0 %v578_v22  ;;  %3346 = vmatpush2.bf16.msra.mxu1 %v578_v22 }
 0x148   : > { %776 = vmatprep.subr.bf16.mxu0 %v5068_v16  ;;  %3334 = vmatprep.subr.bf16.mxu1 %v5068_v16 }
 0x14b   : > { %777 = vmatpush2.bf16.msra.mxu0 %v577_v23  ;;  %3347 = vmatpush2.bf16.msra.mxu1 %v577_v23 }
 0x14c   : > { %3154 = vmatprep.subr.bf16.mxu0 %v5074_v1  ;;  %1136 = vmatprep.subr.bf16.mxu1 %v5068_v16 }
 0x14e   : > { %779 = vmatmul.mubr.bf16.vlgmr.msra.gmra.mxu0 %v4034_v24  ;;  %795 = vmatmul.mubr.bf16.vlgmr.msra.gmra.mxu1 %v4037_v25 }
 0x14f   : > { %2793 = vmatprep.mubr.msk.bf16.mxu0 %vm706_vm2, %v4040_v26  ;;  %2795 = vmatprep.mubr.msk.bf16.mxu1 %vm706_vm2, %v4043_v27 }
 0x150   : > { %3155 = vmatpush3.bf16.msra.mxu0 %v3613_v48 }
 0x151   : > { %3156 = vmatprep.subr.bf16.mxu0 %v5074_v1 }
 0x154   : > { %3157 = vmatpush3.bf16.msra.mxu0 %v3614_v49 }
 0x155   : > { %3210 = vmatprep.subr.bf16.mxu0 %v5074_v1 }
 0x156   : > { %787 = vmatmul.mubr.bf16.gmra.mxu0 %v4054_v28  ;;  %803 = vmatmul.mubr.bf16.gmra.mxu1 %v4057_v29 }
 0x157   : > { %2796 = vmatprep.mubr.msk.bf16.mxu1 %vm706_vm2, %v4060_v30  ;;  %3158 = vmatprep.mubr.msk.bf16.mxu0 %vm3862_vm0, %v5074_v1 }
 0x15e   : > { %811 = vmatmul.mubr.bf16.gmra.mxu1 %v4069_v31 }
 0x15f   : > { %2797 = vmatprep.mubr.msk.bf16.mxu1 %vm706_vm2, %v4072_v32 }
 0x166   : > { %819 = vmatmul.mubr.bf16.gmra.mxu1 %v4078_v33 }
 0x167   : > { %2798 = vmatprep.mubr.msk.bf16.mxu1 %vm706_vm2, %v4081_v34 }
 0x16e   : > { %827 = vmatmul.mubr.bf16.gmra.mxu1 %v4087_v35 }
 0x16f   : > { %2799 = vmatprep.mubr.msk.bf16.mxu1 %vm706_vm2, %v4090_v36 }
 0x176   : > { %835 = vmatmul.mubr.bf16.gmra.mxu1 %v4096_v37 }
 0x177   : > { %2800 = vmatprep.mubr.msk.bf16.mxu1 %vm706_vm2, %v4099_v38 }
 0x17e   : > { %843 = vmatmul.mubr.bf16.gmra.mxu1 %v4105_v39 }
 0x17f   : > { %2801 = vmatprep.mubr.msk.bf16.mxu1 %vm706_vm2, %v4108_v40 }
 0x186   : > { %851 = vmatmul.mubr.bf16.gmra.mxu1 %v4114_v41 }
 0x187   : > { %2802 = vmatprep.mubr.msk.bf16.mxu1 %vm706_vm2, %v4117_v42 }
 0x18e   : > { %859 = vmatmul.mubr.bf16.gmra.mxu1 %v4123_v43 }
 0x18f   : > { %2803 = vmatprep.mubr.msk.bf16.mxu1 %vm706_vm2, %v4126_v44 }
 0x196   : > { %867 = vmatmul.mubr.bf16.gmra.mxu1 %v4132_v45 }
 0x197   : > { %2804 = vmatprep.mubr.msk.bf16.mxu1 %vm706_vm2, %v4135_v46 }
 0x19e   : > { %875 = vmatmul.mubr.bf16.gmra.mxu1 %v4141_v47 }
 0x19f   : > { %2826 = vmatprep.mubr.msk.bf16.mxu1 %vm706_vm2, %v3986_v17 }
 0x20e   : > { %v780_v51 = vpop.f32.mrf.mxu0  ;;  %v796_v52 = vpop.f32.mrf.mxu1 }
 0x20f   : > { %v781_v53 = vadd.f32 %v4157_v50, %v780_v51  ;;  %v797_v8 = vadd.f32 %v4157_v50, %v796_v52 }
 0x210   : > { %v782_v54 = vpop.f32.mrf.mxu0  ;;  %v798_v55 = vpop.f32.mrf.mxu1 }
 0x211   : > { %3619 = vtanh.f32 %v781_v53 }
 0x212   : > { %v783_v56 = vpop.f32.mrf.mxu0  ;;  %v799_v57 = vpop.f32.mrf.mxu1 }
 0x213   : > { %v784_v58 = vadd.f32 %v4157_v50, %v783_v56  ;;  %v800_v10 = vadd.f32 %v4157_v50, %v799_v57 }
 0x214   : > { %v785_v59 = vpop.f32.mrf.mxu0  ;;  %v801_v60 = vpop.f32.mrf.mxu1 }
 0x215   : > { %3621 = vtanh.f32 %v784_v58 }
 0x216   : > { %v788_v61 = vpop.f32.mrf.mxu0  ;;  %v804_v62 = vpop.f32.mrf.mxu1 }
 0x217   : > { %v789_v63 = vadd.f32 %v4157_v50, %v788_v61  ;;  %v805_v20 = vadd.f32 %v4157_v50, %v804_v62 }
 0x218   : > { %v790_v0 = vpop.f32.mrf.mxu0  ;;  %v806_v2 = vpop.f32.mrf.mxu1 }
 0x219   : > { %3623 = vtanh.f32 %v789_v63 }
 0x21a   : > { %v791_v3 = vpop.f32.mrf.mxu0  ;;  %v807_v4 = vpop.f32.mrf.mxu1 }
 0x21b   : > { %v792_v5 = vadd.f32 %v4157_v50, %v791_v3  ;;  %v808_v22 = vadd.f32 %v4157_v50, %v807_v4 }
 0x21c   : > { %v793_v6 = vpop.f32.mrf.mxu0  ;;  %v809_v7 = vpop.f32.mrf.mxu1 }
 0x21d   : > { %3625 = vtanh.f32 %v792_v5 }
 0x21e   : > { %v812_v9 = vpop.f32.mrf.mxu1  ;;  %v4165_v12 = vpop.eup %3619  ;;  %3627 = vtanh.f32 %v797_v8 }
 0x21f   : > { %3629 = vtanh.f32 %v800_v10  ;;  %v813_v54 = vadd.f32 %v4157_v50, %v812_v9 }
 0x220   : > { %v814_v11 = vpop.f32.mrf.mxu1  ;;  %3631 = vtanh.f32 %v805_v20 }
 0x221   : > { %3633 = vtanh.f32 %v808_v22 }
 0x222   : > { %v4167_v13 = vpop.eup %3621  ;;  %v815_v14 = vpop.f32.mrf.mxu1  ;;  %3635 = vtanh.f32 %v813_v54 }
 0x223   : > { %v909_v15 = vpack.c.bf16 %v4167_v13, %v4165_v12  ;;  %v816_v57 = vadd.f32 %v4157_v50, %v815_v14 }
 0x224   : > { %v817_v18 = vpop.f32.mrf.mxu1 }
 0x225   : > { %3159 = vmatmul.mubr.msk.bf16.vlgmr.msra.gmra.mxu0 %vm392_vm1, %v909_v15  ;;  %3637 = vtanh.f32 %v816_v57 }
 0x226   : > { %3162 = vmatprep.mubr.msk.bf16.mxu0 %vm3862_vm0, %v5074_v1  ;;  %v820_v21 = vpop.f32.mrf.mxu1  ;;  %v4176_v48 = vpop.eup %3623 }
 0x227   : > { %5094 = vst [vmem:[#allocation2_spill] sm:$0xff] %v4176_v48  ;;  %v821_v63 = vadd.f32 %v4157_v50, %v820_v21 }
 0x228   : > { %v822_v23 = vpop.f32.mrf.mxu1 }
 0x229   : > { %3639 = vtanh.f32 %v821_v63 }
 0x22a   : > { %v4178_v49 = vpop.eup %3625  ;;  %v823_v51 = vpop.f32.mrf.mxu1 }
 0x22b   : > { %v910_v52 = vpack.c.bf16 %v4178_v49, %v4176_v48  ;;  %v4186_v56 = vpop.eup %3627  ;;  %v824_v3 = vadd.f32 %v4157_v50, %v823_v51 }
 0x22c   : > { %v825_v53 = vpop.f32.mrf.mxu1  ;;  %5095 = vst [vmem:[#allocation3_spill] sm:$0xff] %v4186_v56  ;;  %v4189_v58 = vpop.eup %3629 }
 0x22d   : > { %3163 = vmatmul.mubr.msk.bf16.gmra.mxu0 %vm392_vm1, %v910_v52  ;;  %5096 = vst [vmem:[#allocation4_spill] sm:$0xff] %v4189_v58  ;;  %v911_v61 = vpack.c.bf16 %v4189_v58, %v4186_v56  ;;  %v4197_v2 = vpop.eup %3631  ;;  %3641 = vtanh.f32 %v824_v3 }
 0x22e   : > { %3166 = vmatprep.mubr.msk.bf16.mxu0 %vm3862_vm0, %v5074_v1  ;;  %v828_v55 = vpop.f32.mrf.mxu1  ;;  %5097 = vst [vmem:[#allocation5_spill] sm:$0xff] %v4197_v2  ;;  %v4200_v4 = vpop.eup %3633 }
 0x22f   : > { %5098 = vst [vmem:[#allocation6_spill] sm:$0xff] %v4200_v4  ;;  %v912_v7 = vpack.c.bf16 %v4200_v4, %v4197_v2  ;;  %v829_v9 = vadd.f32 %v4157_v50, %v828_v55  ;;  %v4208_v11 = vpop.eup %3635 }
 0x230   : > { %v830_v59 = vpop.f32.mrf.mxu1  ;;  %5099 = vst [vmem:[#allocation7_spill] sm:$0xff] %v4208_v11 }
 0x231   : > { %3643 = vtanh.f32 %v829_v9 }
 0x232   : > { %v831_v60 = vpop.f32.mrf.mxu1  ;;  %v4211_v15 = vpop.eup %3637 }
 0x233   : > { %v832_v14 = vadd.f32 %v4157_v50, %v831_v60  ;;  %5100 = vst [vmem:[#allocation8_spill] sm:$0xff] %v4211_v15  ;;  %v913_v21 = vpack.c.bf16 %v4211_v15, %v4208_v11 }
 0x234   : > { %v833_v62 = vpop.f32.mrf.mxu1 }
 0x235   : > { %3167 = vmatmul.mubr.msk.bf16.gmra.mxu0 %vm392_vm1, %v911_v61  ;;  %3645 = vtanh.f32 %v832_v14 }
 0x236   : > { %3170 = vmatprep.mubr.msk.bf16.mxu0 %vm3862_vm0, %v5074_v1  ;;  %v836_v0 = vpop.f32.mrf.mxu1  ;;  %v4219_v52 = vpop.eup %3639 }
 0x237   : > { %v837_v23 = vadd.f32 %v4157_v50, %v836_v0  ;;  %5101 = vst [vmem:[#allocation9_spill] sm:$0xff] %v4219_v52 }
 0x238   : > { %v838_v5 = vpop.f32.mrf.mxu1 }
 0x239   : > { %3647 = vtanh.f32 %v837_v23 }
 0x23a   : > { %v839_v6 = vpop.f32.mrf.mxu1  ;;  %v4222_v54 = vpop.eup %3641 }
 0x23b   : > { %v840_v53 = vadd.f32 %v4157_v50, %v839_v6  ;;  %5102 = vst [vmem:[#allocation10_spill] sm:$0xff] %v4222_v54  ;;  %v914_v59 = vpack.c.bf16 %v4222_v54, %v4219_v52 }
 0x23c   : > { %v841_v8 = vpop.f32.mrf.mxu1 }
 0x23d   : > { %3171 = vmatmul.mubr.msk.bf16.gmra.mxu0 %vm392_vm1, %v912_v7  ;;  %3649 = vtanh.f32 %v840_v53 }
 0x23e   : > { %3174 = vmatprep.mubr.msk.bf16.mxu0 %vm3862_vm0, %v5074_v1  ;;  %v844_v10 = vpop.f32.mrf.mxu1  ;;  %v4230_v63 = vpop.eup %3643 }
 0x23f   : > { %v845_v61 = vadd.f32 %v4157_v50, %v844_v10  ;;  %5103 = vst [vmem:[#allocation11_spill] sm:$0xff] %v4230_v63 }
 0x240   : > { %v846_v18 = vpop.f32.mrf.mxu1 }
 0x241   : > { %3651 = vtanh.f32 %v845_v61 }
 0x242   : > { %v847_v20 = vpop.f32.mrf.mxu1  ;;  %v4233_v3 = vpop.eup %3645 }
 0x243   : > { %v848_v0 = vadd.f32 %v4157_v50, %v847_v20  ;;  %5104 = vst [vmem:[#allocation12_spill] sm:$0xff] %v4233_v3  ;;  %v915_v7 = vpack.c.bf16 %v4233_v3, %v4230_v63 }
 0x244   : > { %v849_v22 = vpop.f32.mrf.mxu1 }
 0x245   : > { %3175 = vmatmul.mubr.msk.bf16.gmra.mxu0 %vm392_vm1, %v913_v21  ;;  %3653 = vtanh.f32 %v848_v0 }
 0x246   : > { %3178 = vmatprep.mubr.msk.bf16.mxu0 %vm3862_vm0, %v5074_v1  ;;  %v852_v51 = vpop.f32.mrf.mxu1  ;;  %v4241_v14 = vpop.eup %3647 }
 0x247   : > { %v853_v9 = vadd.f32 %v4157_v50, %v852_v51 }
 0x248   : > { %v854_v55 = vpop.f32.mrf.mxu1 }
 0x249   : > { %3655 = vtanh.f32 %v853_v9 }
 0x24a   : > { %v855_v57 = vpop.f32.mrf.mxu1  ;;  %v4244_v20 = vpop.eup %3649 }
 0x24b   : > { %v856_v18 = vadd.f32 %v4157_v50, %v855_v57  ;;  %v916_v23 = vpack.c.bf16 %v4244_v20, %v4241_v14 }
 0x24c   : > { %v857_v60 = vpop.f32.mrf.mxu1 }
 0x24d   : > { %3179 = vmatmul.mubr.msk.bf16.gmra.mxu0 %vm392_vm1, %v914_v59  ;;  %3657 = vtanh.f32 %v856_v18 }
 0x24e   : > { %3182 = vmatprep.mubr.msk.bf16.mxu0 %vm3862_vm0, %v5074_v1  ;;  %v860_v62 = vpop.f32.mrf.mxu1  ;;  %v4252_v59 = vpop.eup %3651 }
 0x24f   : > { %v861_v51 = vadd.f32 %v4157_v50, %v860_v62 }
 0x250   : > { %v862_v5 = vpop.f32.mrf.mxu1 }
 0x251   : > { %3659 = vtanh.f32 %v861_v51 }
 0x252   : > { %v863_v6 = vpop.f32.mrf.mxu1  ;;  %v4255_v60 = vpop.eup %3653 }
 0x253   : > { %v864_v57 = vadd.f32 %v4157_v50, %v863_v6  ;;  %v917_v5 = vpack.c.bf16 %v4255_v60, %v4252_v59 }
 0x254   : > { %v865_v8 = vpop.f32.mrf.mxu1 }
 0x255   : > { %3183 = vmatmul.mubr.msk.bf16.gmra.mxu0 %vm392_vm1, %v915_v7  ;;  %3661 = vtanh.f32 %v864_v57 }
 0x256   : > { %3186 = vmatprep.mubr.msk.bf16.mxu0 %vm3862_vm0, %v5074_v1  ;;  %v868_v10 = vpop.f32.mrf.mxu1  ;;  %v4263_v8 = vpop.eup %3655 }
 0x257   : > { %v869_v62 = vadd.f32 %v4157_v50, %v868_v10 }
 0x258   : > { %v870_v21 = vpop.f32.mrf.mxu1 }
 0x259   : > { %3663 = vtanh.f32 %v869_v62 }
 0x25a   : > { %v871_v22 = vpop.f32.mrf.mxu1  ;;  %v4266_v9 = vpop.eup %3657 }
 0x25b   : > { %v872_v6 = vadd.f32 %v4157_v50, %v871_v22  ;;  %v918_v18 = vpack.c.bf16 %v4266_v9, %v4263_v8 }
 0x25c   : > { %v873_v53 = vpop.f32.mrf.mxu1 }
 0x25d   : > { %3187 = vmatmul.mubr.msk.bf16.gmra.mxu0 %vm392_vm1, %v916_v23  ;;  %3665 = vtanh.f32 %v872_v6 }
 0x25e   : > { %3190 = vmatprep.mubr.msk.bf16.mxu0 %vm3862_vm0, %v5074_v1  ;;  %v876_v55 = vpop.f32.mrf.mxu1  ;;  %v4274_v10 = vpop.eup %3659 }
 0x25f   : > { %v877_v21 = vadd.f32 %v4157_v50, %v876_v55 }
 0x260   : > { %v878_v61 = vpop.f32.mrf.mxu1 }
 0x261   : > { %3667 = vtanh.f32 %v877_v21 }
 0x262   : > { %v879_v0 = vpop.f32.mrf.mxu1  ;;  %v4277_v53 = vpop.eup %3661 }
 0x263   : > { %v880_v23 = vadd.f32 %v4157_v50, %v879_v0  ;;  %v919_v22 = vpack.c.bf16 %v4277_v53, %v4274_v10 }
 0x264   : > { %v881_v7 = vpop.f32.mrf.mxu1 }
 0x265   : > { %3191 = vmatmul.mubr.msk.bf16.gmra.mxu0 %vm392_vm1, %v917_v5  ;;  %3669 = vtanh.f32 %v880_v23 }
 0x266   : > { %3194 = vmatprep.mubr.msk.bf16.mxu0 %vm3862_vm0, %v5074_v1  ;;  %v4284_v51 = vpop.eup %3663 }
 0x267   : > { %5105 = vst [vmem:[#allocation13_spill] sm:$0xff] %v4284_v51 }
 0x26a   : > { %v4286_v55 = vpop.eup %3665 }
 0x26b   : > { %5106 = vst [vmem:[#allocation14_spill] sm:$0xff] %v4286_v55  ;;  %v920_v57 = vpack.c.bf16 %v4286_v55, %v4284_v51 }
 0x26d   : > { %3195 = vmatmul.mubr.msk.bf16.gmra.mxu0 %vm392_vm1, %v918_v18 }
 0x26e   : > { %3198 = vmatprep.mubr.msk.bf16.mxu0 %vm3862_vm0, %v5074_v1  ;;  %v4293_v50 = vpop.eup %3667 }
 0x26f   : > { %5107 = vst [vmem:[#allocation15_spill] sm:$0xff] %v4293_v50 }
 0x272   : > { %v4295_v61 = vpop.eup %3669 }
 0x273   : > { %5108 = vst [vmem:[#allocation16_spill] sm:$0xff] %v4295_v61  ;;  %v921_v0 = vpack.c.bf16 %v4295_v61, %v4293_v50 }
 0x275   : > { %3199 = vmatmul.mubr.msk.bf16.gmra.mxu0 %vm392_vm1, %v919_v22 }
 0x276   : > { %3202 = vmatprep.mubr.msk.bf16.mxu0 %vm3862_vm0, %v5074_v1 }
 0x27d   : > { %3203 = vmatmul.mubr.msk.bf16.gmra.mxu0 %vm392_vm1, %v920_v57 }
 0x27e   : > { %3206 = vmatprep.mubr.msk.bf16.mxu0 %vm3862_vm0, %v5074_v1 }
 0x285   : > { %3207 = vmatmul.mubr.msk.bf16.gmra.mxu0 %vm392_vm1, %v921_v0 }
 0x286   : > { %3214 = vmatprep.mubr.msk.bf16.mxu0 %vm3862_vm0, %v5074_v1 }
 0x2e5   : > { %v4302_v5 = vpop.f32.mrf.mxu0 }
 0x2e7   : > { %v3160_v7 = vpop.f32.mrf.mxu0 }
 0x2e9   : > { %v4304_v62 = vpop.f32.mrf.mxu0 }
 0x2eb   : > { %v3161_v18 = vpop.f32.mrf.mxu0 }
 0x2ed   : > { %v1020_v21 = vpop.f32.mrf.mxu0 }
 0x2ef   : > { %v3164_v23 = vpop.f32.mrf.mxu0 }
 0x2f1   : > { %v1023_v22 = vpop.f32.mrf.mxu0 }
 0x2f2   : > { %v1116_v57 = vpack.c.bf16 %v1023_v22, %v1020_v21 }
 0x2f3   : > { %v3165_v16 = vpop.f32.mrf.mxu0 }
 0x2f5   : > { %v1028_v50 = vpop.f32.mrf.mxu0 }
 0x2f7   : > { %v3168_v61 = vpop.f32.mrf.mxu0 }
 0x2f9   : > { %v1031_v0 = vpop.f32.mrf.mxu0 }
 0x2fb   : > { %v3169_v51 = vpop.f32.mrf.mxu0 }
 0x2fd   : > { %v1036_v55 = vpop.f32.mrf.mxu0 }
 0x2ff   : > { %v3172_v1 = vpop.f32.mrf.mxu0 }
 0x301   : > { %v1039_v63 = vpop.f32.mrf.mxu0 }
 0x303   : > { %v3173_v3 = vpop.f32.mrf.mxu0 }
 0x304   : > { %v5109_v3 = vmov 0  }
 0x305   : > { %v1044_v7 = vpop.f32.mrf.mxu0 }
 0x307   : > { %v3176_v52 = vpop.f32.mrf.mxu0 }
 0x309   : > { %v1047_v54 = vpop.f32.mrf.mxu0 }
 0x30b   : > { %v3177_v11 = vpop.f32.mrf.mxu0 }
 0x30d   : > { %v1052_v15 = vpop.f32.mrf.mxu0 }
 0x30f   : > { %v3180_v6 = vpop.f32.mrf.mxu0 }
 0x311   : > { %v1055_v18 = vpop.f32.mrf.mxu0 }
 0x313   : > { %v3181_v2 = vpop.f32.mrf.mxu0 }
 0x314   : > { %v1120_v2 = vpack.c.bf16 %v1055_v18, %v1052_v15 }
 0x315   : > { %v1060_v23 = vpop.f32.mrf.mxu0 }
 0x317   : > { %v3184_v4 = vpop.f32.mrf.mxu0 }
 0x319   : > { %v1063_v21 = vpop.f32.mrf.mxu0 }
 0x31a   : > { %v1121_v52 = vpack.c.bf16 %v1063_v21, %v1060_v23  ;;  %v1117_v23 = vpack.c.bf16 %v1031_v0, %v1028_v50  ;;  %v5111_v0 = vmov 0.0  }
 0x31b   : > { %v3185_v16 = vpop.f32.mrf.mxu0 }
 0x31c   : > { %v1119_v16 = vpack.c.bf16 %v1047_v54, %v1044_v7 }
 0x31d   : > { %v1068_v22 = vpop.f32.mrf.mxu0 }
 0x31f   : > { %v3188_v61 = vpop.f32.mrf.mxu0 }
 0x321   : > { %v1071_v56 = vpop.f32.mrf.mxu0 }
 0x322   : > { %v1122_v51 = vpack.c.bf16 %v1071_v56, %v1068_v22 }
 0x323   : > { %v3189_v58 = vpop.f32.mrf.mxu0 }
 0x324   : > { %1137 = vmatpush1.bf16.msra.mxu1 %v1122_v51  ;;  %v1118_v58 = vpack.c.bf16 %v1039_v63, %v1036_v55  ;;  %v3615_v63 = vld [vmem:[%s5064_s2 + $0x28] sm:$0xff]   ;;  %v5110_v55 = vpack.c.bf16 %v4304_v62, %v4302_v5 }
 0x325   : > { %v1076_v1 = vpop.f32.mrf.mxu0  ;;  %1138 = vmatprep.subr.bf16.mxu1 %v5109_v3  ;;  %3211 = vmatpush3.bf16.msra.mxu0 %v3615_v63 }
 0x326   : > { %3212 = vmatprep.subr.bf16.mxu0 %v5111_v0 }
 0x327   : > { %v3192_v48 = vpop.f32.mrf.mxu0 }
 0x328   : > { %1139 = vmatpush1.bf16.msra.mxu1 %v1121_v52 }
 0x329   : > { %v1079_v11 = vpop.f32.mrf.mxu0  ;;  %1140 = vmatprep.subr.bf16.mxu1 %v5109_v3 }
 0x32b   : > { %v3193_v6 = vpop.f32.mrf.mxu0 }
 0x32c   : > { %1141 = vmatpush1.bf16.msra.mxu1 %v1120_v2 }
 0x32d   : > { %v1084_v4 = vpop.f32.mrf.mxu0  ;;  %1142 = vmatprep.subr.bf16.mxu1 %v5109_v3 }
 0x32f   : > { %v3196_v61 = vpop.f32.mrf.mxu0 }
 0x330   : > { %1143 = vmatpush1.bf16.msra.mxu1 %v1119_v16 }
 0x331   : > { %v1087_v56 = vpop.f32.mrf.mxu0  ;;  %1144 = vmatprep.subr.bf16.mxu1 %v5109_v3 }
 0x332   : > { %v1124_v62 = vpack.c.bf16 %v1087_v56, %v1084_v4 }
 0x333   : > { %v3197_v22 = vpop.f32.mrf.mxu0 }
 0x334   : > { %1145 = vmatpush1.bf16.msra.mxu1 %v1118_v58  ;;  %v1123_v58 = vpack.c.bf16 %v1079_v11, %v1076_v1 }
 0x335   : > { %v1092_v48 = vpop.f32.mrf.mxu0  ;;  %1146 = vmatprep.subr.bf16.mxu1 %v5109_v3 }
 0x337   : > { %v3200_v21 = vpop.f32.mrf.mxu0 }
 0x338   : > { %1147 = vmatpush1.bf16.msra.mxu1 %v1117_v23 }
 0x339   : > { %v1095_v15 = vpop.f32.mrf.mxu0  ;;  %1148 = vmatprep.subr.bf16.mxu1 %v5109_v3 }
 0x33a   : > { %v1125_v5 = vpack.c.bf16 %v1095_v15, %v1092_v48 }
 0x33b   : > { %v3201_v18 = vpop.f32.mrf.mxu0 }
 0x33c   : > { %1149 = vmatpush1.bf16.msra.mxu1 %v1116_v57 }
 0x33d   : > { %v1100_v54 = vpop.f32.mrf.mxu0  ;;  %1150 = vmatprep.subr.bf16.mxu1 %v5109_v3 }
 0x33f   : > { %v3204_v7 = vpop.f32.mrf.mxu0 }
 0x340   : > { %1151 = vmatpush1.bf16.msra.mxu1 %v5110_v55 }
 0x341   : > { %v1103_v50 = vpop.f32.mrf.mxu0  ;;  %1158 = vmatprep.subr.bf16.mxu1 %v5109_v3 }
 0x342   : > { %v1126_v61 = vpack.c.bf16 %v1103_v50, %v1100_v54 }
 0x343   : > { %v3205_v51 = vpop.f32.mrf.mxu0 }
 0x345   : > { %v1108_v57 = vpop.f32.mrf.mxu0 }
 0x347   : > { %v3208_v52 = vpop.f32.mrf.mxu0 }
 0x349   : > { %v1111_v2 = vpop.f32.mrf.mxu0 }
 0x34a   : > { %v1127_v6 = vpack.c.bf16 %v1111_v2, %v1108_v57 }
 0x34b   : > { %v3209_v16 = vpop.f32.mrf.mxu0 }
 0x34c   : > { %1159 = vmatpush2.bf16.msra.mxu1 %v1127_v6 }
 0x34d   : > { %1160 = vmatprep.subr.bf16.mxu1 %v5109_v3 }
 0x350   : > { %1161 = vmatpush2.bf16.msra.mxu1 %v1126_v61 }
 0x351   : > { %1162 = vmatprep.subr.bf16.mxu1 %v5109_v3 }
 0x354   : > { %1163 = vmatpush2.bf16.msra.mxu1 %v1125_v5 }
 0x355   : > { %1164 = vmatprep.subr.bf16.mxu1 %v5109_v3 }
 0x358   : > { %1165 = vmatpush2.bf16.msra.mxu1 %v1124_v62 }
 0x359   : > { %1166 = vmatprep.subr.bf16.mxu1 %v5109_v3 }
 0x35c   : > { %1167 = vmatpush2.bf16.msra.mxu1 %v1123_v58 }
 0x35d   : > { %1526 = vmatprep.subr.bf16.mxu1 %v5109_v3 }
 0x35f   : > { %1169 = vmatmul.mubr.bf16.vlgmr.msra.gmra.mxu1 %v4034_v24  ;;  %v4374_v24 = vld [vmem:[%s5065_s3 + $0x1] ss:$0 sm:$0xff] }
 0x360   : > { %2827 = vmatprep.mubr.msk.bf16.mxu1 %vm706_vm2, %v4040_v26 }
 0x367   : > { %1177 = vmatmul.mubr.bf16.gmra.mxu1 %v4054_v28 }
 0x368   : > { %2828 = vmatprep.mubr.msk.bf16.mxu1 %vm706_vm2, %v3991_v19  ;;  %v3616_v19 = vld [vmem:[%s5064_s2 + $0x20] sm:$0xff]  }
 0x369   : > { %3213 = vmatpush3.bf16.msra.mxu0 %v3616_v19 }
 0x36a   : > { %3266 = vmatprep.subr.bf16.mxu0 %v5111_v0 }
 0x36f   : > { %1185 = vmatmul.mubr.bf16.gmra.mxu1 %v4037_v25 }
 0x370   : > { %2829 = vmatprep.mubr.msk.bf16.mxu1 %vm706_vm2, %v4043_v27 }
 0x377   : > { %1193 = vmatmul.mubr.bf16.gmra.mxu1 %v4057_v29 }
 0x378   : > { %2830 = vmatprep.mubr.msk.bf16.mxu1 %vm706_vm2, %v4060_v30 }
 0x37f   : > { %1201 = vmatmul.mubr.bf16.gmra.mxu1 %v4069_v31 }
 0x380   : > { %2831 = vmatprep.mubr.msk.bf16.mxu1 %vm706_vm2, %v4072_v32 }
 0x387   : > { %1209 = vmatmul.mubr.bf16.gmra.mxu1 %v4078_v33 }
 0x388   : > { %2832 = vmatprep.mubr.msk.bf16.mxu1 %vm706_vm2, %v4081_v34 }
 0x38f   : > { %1217 = vmatmul.mubr.bf16.gmra.mxu1 %v4087_v35 }
 0x390   : > { %2833 = vmatprep.mubr.msk.bf16.mxu1 %vm706_vm2, %v4090_v36 }
 0x397   : > { %1225 = vmatmul.mubr.bf16.gmra.mxu1 %v4096_v37 }
 0x398   : > { %2834 = vmatprep.mubr.msk.bf16.mxu1 %vm706_vm2, %v4099_v38 }
 0x39f   : > { %1233 = vmatmul.mubr.bf16.gmra.mxu1 %v4105_v39 }
 0x3a0   : > { %2835 = vmatprep.mubr.msk.bf16.mxu1 %vm706_vm2, %v4108_v40 }
 0x3a7   : > { %1241 = vmatmul.mubr.bf16.gmra.mxu1 %v4114_v41 }
 0x3a8   : > { %2836 = vmatprep.mubr.msk.bf16.mxu1 %vm706_vm2, %v4117_v42 }
 0x3af   : > { %1249 = vmatmul.mubr.bf16.gmra.mxu1 %v4123_v43 }
 0x3b0   : > { %2837 = vmatprep.mubr.msk.bf16.mxu1 %vm706_vm2, %v4126_v44 }
 0x3b7   : > { %1257 = vmatmul.mubr.bf16.gmra.mxu1 %v4132_v45 }
 0x3b8   : > { %2838 = vmatprep.mubr.msk.bf16.mxu1 %vm706_vm2, %v4135_v46 }
 0x3bf   : > { %1265 = vmatmul.mubr.bf16.gmra.mxu1 %v4141_v47 }
 0x3c0   : > { %2860 = vmatprep.mubr.msk.bf16.mxu1 %vm706_vm2, %v3986_v17 }
 0x41f   : > { %v1170_v25 = vpop.f32.mrf.mxu1 }
 0x420   : > { %v1171_v26 = vadd.f32 %v4374_v24, %v1170_v25 }
 0x421   : > { %v1172_v27 = vpop.f32.mrf.mxu1 }
 0x422   : > { %3671 = vtanh.f32 %v1171_v26 }
 0x423   : > { %v1173_v28 = vpop.f32.mrf.mxu1 }
 0x424   : > { %v1174_v29 = vadd.f32 %v4374_v24, %v1173_v28 }
 0x425   : > { %v1175_v30 = vpop.f32.mrf.mxu1 }
 0x426   : > { %3673 = vtanh.f32 %v1174_v29 }
 0x427   : > { %v1178_v31 = vpop.f32.mrf.mxu1 }
 0x428   : > { %v1179_v32 = vadd.f32 %v4374_v24, %v1178_v31 }
 0x429   : > { %v1180_v33 = vpop.f32.mrf.mxu1 }
 0x42a   : > { %3675 = vtanh.f32 %v1179_v32 }
 0x42b   : > { %v1181_v17 = vpop.f32.mrf.mxu1 }
 0x42c   : > { %v1182_v34 = vadd.f32 %v4374_v24, %v1181_v17 }
 0x42d   : > { %v1183_v35 = vpop.f32.mrf.mxu1 }
 0x42e   : > { %3677 = vtanh.f32 %v1182_v34 }
 0x42f   : > { %v1186_v36 = vpop.f32.mrf.mxu1  ;;  %v3672_v39 = vpop.eup %3671 }
 0x430   : > { %v1187_v37 = vadd.f32 %v4374_v24, %v1186_v36 }
 0x431   : > { %v1188_v38 = vpop.f32.mrf.mxu1 }
 0x432   : > { %3679 = vtanh.f32 %v1187_v37 }
 0x433   : > { %v3674_v40 = vpop.eup %3673  ;;  %v1189_v41 = vpop.f32.mrf.mxu1 }
 0x434   : > { %v1299_v42 = vpack.c.bf16 %v3674_v40, %v3672_v39  ;;  %v1190_v43 = vadd.f32 %v4374_v24, %v1189_v41  ;;  %v3364_v44 = vpack.i.bf16 %v3674_v40, %v3672_v39 }
 0x435   : > { %v1191_v45 = vpop.f32.mrf.mxu1 }
 0x436   : > { %3681 = vtanh.f32 %v1190_v43  ;;  %3365 = vrot.lane.b32.xlu0 %v3364_v44, %s3864_s21  ;;  %3215 = vmatmul.mubr.msk.bf16.vlgmr.msra.gmra.mxu0 %vm392_vm1, %v1299_v42 }
 0x437   : > { %v1194_v46 = vpop.f32.mrf.mxu1  ;;  %3218 = vmatprep.mubr.msk.bf16.mxu0 %vm3862_vm0, %v5111_v0  ;;  %v3676_v11 = vpop.eup %3675 }
 0x438   : > { %v1195_v47 = vadd.f32 %v4374_v24, %v1194_v46 }
 0x439   : > { %v1196_v1 = vpop.f32.mrf.mxu1 }
 0x43a   : > { %3683 = vtanh.f32 %v1195_v47 }
 0x43b   : > { %v3678_v4 = vpop.eup %3677  ;;  %v1197_v56 = vpop.f32.mrf.mxu1 }
 0x43c   : > { %v1198_v22 = vadd.f32 %v4374_v24, %v1197_v56  ;;  %v3369_v48 = vpack.i.bf16 %v3678_v4, %v3676_v11  ;;  %v1300_v23 = vpack.c.bf16 %v3678_v4, %v3676_v11 }
 0x43d   : > { %v1199_v21 = vpop.f32.mrf.mxu1 }
 0x43e   : > { %3685 = vtanh.f32 %v1198_v22  ;;  %3370 = vrot.lane.b32.xlu0 %v3369_v48, %s3864_s21  ;;  %3219 = vmatmul.mubr.msk.bf16.gmra.mxu0 %vm392_vm1, %v1300_v23 }
 0x43f   : > { %v1202_v15 = vpop.f32.mrf.mxu1  ;;  %3222 = vmatprep.mubr.msk.bf16.mxu0 %vm3862_vm0, %v5111_v0  ;;  %v3680_v7 = vpop.eup %3679 }
 0x440   : > { %v1203_v18 = vadd.f32 %v4374_v24, %v1202_v15 }
 0x441   : > { %v1204_v54 = vpop.f32.mrf.mxu1 }
 0x442   : > { %3687 = vtanh.f32 %v1203_v18 }
 0x443   : > { %v3682_v63 = vpop.eup %3681  ;;  %v1205_v55 = vpop.f32.mrf.mxu1 }
 0x444   : > { %v1206_v50 = vadd.f32 %v4374_v24, %v1205_v55  ;;  %v3374_v51 = vpack.i.bf16 %v3682_v63, %v3680_v7  ;;  %v1301_v57 = vpack.c.bf16 %v3682_v63, %v3680_v7 }
 0x445   : > { %v1207_v52 = vpop.f32.mrf.mxu1 }
 0x446   : > { %3689 = vtanh.f32 %v1206_v50  ;;  %3375 = vrot.lane.b32.xlu1 %v3374_v51, %s3864_s21  ;;  %3223 = vmatmul.mubr.msk.bf16.gmra.mxu0 %vm392_vm1, %v1301_v57 }
 0x447   : > { %v1210_v2 = vpop.f32.mrf.mxu1  ;;  %3226 = vmatprep.mubr.msk.bf16.mxu0 %vm3862_vm0, %v5111_v0  ;;  %v3684_v61 = vpop.eup %3683 }
 0x448   : > { %v1211_v6 = vadd.f32 %v4374_v24, %v1210_v2 }
 0x449   : > { %v1212_v16 = vpop.f32.mrf.mxu1 }
 0x44a   : > { %3691 = vtanh.f32 %v1211_v6 }
 0x44b   : > { %v3686_v5 = vpop.eup %3685  ;;  %v1213_v62 = vpop.f32.mrf.mxu1 }
 0x44c   : > { %v1214_v58 = vadd.f32 %v4374_v24, %v1213_v62  ;;  %v3379_v19 = vpack.i.bf16 %v3686_v5, %v3684_v61  ;;  %v1302_v25 = vpack.c.bf16 %v3686_v5, %v3684_v61 }
 0x44d   : > { %v1215_v26 = vpop.f32.mrf.mxu1 }
 0x44e   : > { %3693 = vtanh.f32 %v1214_v58  ;;  %3380 = vrot.lane.b32.xlu1 %v3379_v19, %s3864_s21  ;;  %3227 = vmatmul.mubr.msk.bf16.gmra.mxu0 %vm392_vm1, %v1302_v25 }
 0x44f   : > { %v1218_v27 = vpop.f32.mrf.mxu1  ;;  %3230 = vmatprep.mubr.msk.bf16.mxu0 %vm3862_vm0, %v5111_v0  ;;  %v3688_v30 = vpop.eup %3687 }
 0x450   : > { %v1219_v28 = vadd.f32 %v4374_v24, %v1218_v27 }
 0x451   : > { %v1220_v29 = vpop.f32.mrf.mxu1 }
 0x452   : > { %3695 = vtanh.f32 %v1219_v28 }
 0x453   : > { %v3690_v31 = vpop.eup %3689  ;;  %v1221_v32 = vpop.f32.mrf.mxu1 }
 0x454   : > { %v1222_v33 = vadd.f32 %v4374_v24, %v1221_v32  ;;  %v3384_v17 = vpack.i.bf16 %v3690_v31, %v3688_v30  ;;  %v1303_v34 = vpack.c.bf16 %v3690_v31, %v3688_v30 }
 0x455   : > { %v1223_v35 = vpop.f32.mrf.mxu1 }
 0x456   : > { %3697 = vtanh.f32 %v1222_v33  ;;  %3385 = vrot.lane.b32.xlu0 %v3384_v17, %s3864_s21  ;;  %3231 = vmatmul.mubr.msk.bf16.gmra.mxu0 %vm392_vm1, %v1303_v34 }
 0x457   : > { %v1226_v36 = vpop.f32.mrf.mxu1  ;;  %3234 = vmatprep.mubr.msk.bf16.mxu0 %vm3862_vm0, %v5111_v0  ;;  %v3692_v39 = vpop.eup %3691 }
 0x458   : > { %v1227_v37 = vadd.f32 %v4374_v24, %v1226_v36 }
 0x459   : > { %v1228_v38 = vpop.f32.mrf.mxu1 }
 0x45a   : > { %3699 = vtanh.f32 %v1227_v37 }
 0x45b   : > { %v3694_v40 = vpop.eup %3693  ;;  %v1229_v41 = vpop.f32.mrf.mxu1 }
 0x45c   : > { %v1230_v42 = vadd.f32 %v4374_v24, %v1229_v41  ;;  %v3389_v43 = vpack.i.bf16 %v3694_v40, %v3692_v39  ;;  %v1304_v44 = vpack.c.bf16 %v3694_v40, %v3692_v39 }
 0x45d   : > { %v1231_v45 = vpop.f32.mrf.mxu1 }
 0x45e   : > { %3701 = vtanh.f32 %v1230_v42  ;;  %3390 = vrot.lane.b32.xlu1 %v3389_v43, %s3864_s21  ;;  %3235 = vmatmul.mubr.msk.bf16.gmra.mxu0 %vm392_vm1, %v1304_v44 }
 0x45f   : > { %v1234_v46 = vpop.f32.mrf.mxu1  ;;  %3238 = vmatprep.mubr.msk.bf16.mxu0 %vm3862_vm0, %v5111_v0  ;;  %v3696_v11 = vpop.eup %3695 }
 0x460   : > { %v1235_v47 = vadd.f32 %v4374_v24, %v1234_v46 }
 0x461   : > { %v1236_v1 = vpop.f32.mrf.mxu1 }
 0x462   : > { %3703 = vtanh.f32 %v1235_v47 }
 0x463   : > { %v3698_v4 = vpop.eup %3697  ;;  %v1237_v56 = vpop.f32.mrf.mxu1 }
 0x464   : > { %v1238_v22 = vadd.f32 %v4374_v24, %v1237_v56  ;;  %v3394_v48 = vpack.i.bf16 %v3698_v4, %v3696_v11  ;;  %v1305_v23 = vpack.c.bf16 %v3698_v4, %v3696_v11 }
 0x465   : > { %v1239_v21 = vpop.f32.mrf.mxu1 }
 0x466   : > { %3705 = vtanh.f32 %v1238_v22  ;;  %3395 = vrot.lane.b32.xlu0 %v3394_v48, %s3864_s21  ;;  %3239 = vmatmul.mubr.msk.bf16.gmra.mxu0 %vm392_vm1, %v1305_v23 }
 0x467   : > { %v1242_v15 = vpop.f32.mrf.mxu1  ;;  %3242 = vmatprep.mubr.msk.bf16.mxu0 %vm3862_vm0, %v5111_v0  ;;  %v3700_v7 = vpop.eup %3699 }
 0x468   : > { %v1243_v18 = vadd.f32 %v4374_v24, %v1242_v15 }
 0x469   : > { %v1244_v54 = vpop.f32.mrf.mxu1 }
 0x46a   : > { %3707 = vtanh.f32 %v1243_v18 }
 0x46b   : > { %v3702_v63 = vpop.eup %3701  ;;  %v1245_v55 = vpop.f32.mrf.mxu1 }
 0x46c   : > { %v1246_v50 = vadd.f32 %v4374_v24, %v1245_v55  ;;  %v3399_v51 = vpack.i.bf16 %v3702_v63, %v3700_v7  ;;  %v1306_v57 = vpack.c.bf16 %v3702_v63, %v3700_v7 }
 0x46d   : > { %v1247_v52 = vpop.f32.mrf.mxu1 }
 0x46e   : > { %3709 = vtanh.f32 %v1246_v50  ;;  %3400 = vrot.lane.b32.xlu1 %v3399_v51, %s3864_s21  ;;  %3243 = vmatmul.mubr.msk.bf16.gmra.mxu0 %vm392_vm1, %v1306_v57 }
 0x46f   : > { %v1250_v2 = vpop.f32.mrf.mxu1  ;;  %3246 = vmatprep.mubr.msk.bf16.mxu0 %vm3862_vm0, %v5111_v0  ;;  %v3704_v61 = vpop.eup %3703 }
 0x470   : > { %v1251_v6 = vadd.f32 %v4374_v24, %v1250_v2 }
 0x471   : > { %v1252_v16 = vpop.f32.mrf.mxu1 }
 0x472   : > { %3711 = vtanh.f32 %v1251_v6 }
 0x473   : > { %v3706_v5 = vpop.eup %3705  ;;  %v1253_v62 = vpop.f32.mrf.mxu1 }
 0x474   : > { %v1254_v58 = vadd.f32 %v4374_v24, %v1253_v62  ;;  %v3404_v19 = vpack.i.bf16 %v3706_v5, %v3704_v61  ;;  %v1307_v25 = vpack.c.bf16 %v3706_v5, %v3704_v61 }
 0x475   : > { %v1255_v26 = vpop.f32.mrf.mxu1 }
 0x476   : > { %3713 = vtanh.f32 %v1254_v58  ;;  %3405 = vrot.lane.b32.xlu0 %v3404_v19, %s3864_s21  ;;  %3247 = vmatmul.mubr.msk.bf16.gmra.mxu0 %vm392_vm1, %v1307_v25 }
 0x477   : > { %v1258_v27 = vpop.f32.mrf.mxu1  ;;  %3250 = vmatprep.mubr.msk.bf16.mxu0 %vm3862_vm0, %v5111_v0  ;;  %v3708_v30 = vpop.eup %3707 }
 0x478   : > { %v1259_v28 = vadd.f32 %v4374_v24, %v1258_v27 }
 0x479   : > { %v1260_v29 = vpop.f32.mrf.mxu1 }
 0x47a   : > { %3715 = vtanh.f32 %v1259_v28 }
 0x47b   : > { %v3710_v31 = vpop.eup %3709  ;;  %v1261_v32 = vpop.f32.mrf.mxu1 }
 0x47c   : > { %v1262_v33 = vadd.f32 %v4374_v24, %v1261_v32  ;;  %v3409_v17 = vpack.i.bf16 %v3710_v31, %v3708_v30  ;;  %v1308_v34 = vpack.c.bf16 %v3710_v31, %v3708_v30 }
 0x47d   : > { %v1263_v35 = vpop.f32.mrf.mxu1 }
 0x47e   : > { %3717 = vtanh.f32 %v1262_v33  ;;  %3410 = vrot.lane.b32.xlu1 %v3409_v17, %s3864_s21  ;;  %3251 = vmatmul.mubr.msk.bf16.gmra.mxu0 %vm392_vm1, %v1308_v34 }
 0x47f   : > { %v1266_v36 = vpop.f32.mrf.mxu1  ;;  %3254 = vmatprep.mubr.msk.bf16.mxu0 %vm3862_vm0, %v5111_v0  ;;  %v3712_v39 = vpop.eup %3711 }
 0x480   : > { %v1267_v37 = vadd.f32 %v4374_v24, %v1266_v36 }
 0x481   : > { %v1268_v38 = vpop.f32.mrf.mxu1 }
 0x482   : > { %3719 = vtanh.f32 %v1267_v37 }
 0x483   : > { %v3714_v40 = vpop.eup %3713  ;;  %v1269_v41 = vpop.f32.mrf.mxu1 }
 0x484   : > { %v1270_v42 = vadd.f32 %v4374_v24, %v1269_v41  ;;  %v3414_v43 = vpack.i.bf16 %v3714_v40, %v3712_v39  ;;  %v1309_v44 = vpack.c.bf16 %v3714_v40, %v3712_v39 }
 0x485   : > { %v1271_v45 = vpop.f32.mrf.mxu1 }
 0x486   : > { %3721 = vtanh.f32 %v1270_v42  ;;  %3415 = vrot.lane.b32.xlu0 %v3414_v43, %s3864_s21  ;;  %3255 = vmatmul.mubr.msk.bf16.gmra.mxu0 %vm392_vm1, %v1309_v44 }
 0x487   : > { %3258 = vmatprep.mubr.msk.bf16.mxu0 %vm3862_vm0, %v5111_v0  ;;  %v3716_v46 = vpop.eup %3715 }
 0x48b   : > { %v3718_v47 = vpop.eup %3717 }
 0x48c   : > { %v3419_v1 = vpack.i.bf16 %v3718_v47, %v3716_v46  ;;  %v1310_v11 = vpack.c.bf16 %v3718_v47, %v3716_v46 }
 0x48e   : > { %3420 = vrot.lane.b32.xlu1 %v3419_v1, %s3864_s21  ;;  %3259 = vmatmul.mubr.msk.bf16.gmra.mxu0 %vm392_vm1, %v1310_v11 }
 0x48f   : > { %3262 = vmatprep.mubr.msk.bf16.mxu0 %vm3862_vm0, %v5111_v0  ;;  %v3720_v24 = vpop.eup %3719 }
 0x493   : > { %v3722_v4 = vpop.eup %3721 }
 0x494   : > { %v3424_v56 = vpack.i.bf16 %v3722_v4, %v3720_v24  ;;  %v1311_v22 = vpack.c.bf16 %v3722_v4, %v3720_v24 }
 0x496   : > { %3425 = vrot.lane.b32.xlu0 %v3424_v56, %s3864_s21  ;;  %3263 = vmatmul.mubr.msk.bf16.gmra.mxu0 %vm392_vm1, %v1311_v22 }
 0x497   : > { %3270 = vmatprep.mubr.msk.bf16.mxu0 %vm3862_vm0, %v5111_v0 }
 0x4f6   : > { %v4454_v48 = vpop.f32.mrf.mxu0 }
 0x4f8   : > { %v3216_v23 = vpop.f32.mrf.mxu0 }
 0x4fa   : > { %v4456_v21 = vpop.f32.mrf.mxu0 }
 0x4fb   : > { %v1505_v15 = vpack.c.bf16 %v4456_v21, %v4454_v48 }
 0x4fc   : > { %v3217_v18 = vpop.f32.mrf.mxu0 }
 0x4fe   : > { %v1410_v54 = vpop.f32.mrf.mxu0 }
 0x500   : > { %v3220_v7 = vpop.f32.mrf.mxu0 }
 0x501   : > { %v3617_v7 = vld [vmem:[%s5064_s2 + $0x38] sm:$0xff]  }
 0x502   : > { %v1413_v63 = vpop.f32.mrf.mxu0  ;;  %3267 = vmatpush3.bf16.msra.mxu0 %v3617_v7 }
 0x503   : > { %v1506_v55 = vpack.c.bf16 %v1413_v63, %v1410_v54  ;;  %3268 = vmatprep.subr.bf16.mxu0 %v5111_v0 }
 0x504   : > { %v3221_v50 = vpop.f32.mrf.mxu0 }
 0x506   : > { %v1418_v51 = vpop.f32.mrf.mxu0 }
 0x508   : > { %v3224_v57 = vpop.f32.mrf.mxu0 }
 0x50a   : > { %v1421_v52 = vpop.f32.mrf.mxu0 }
 0x50b   : > { %v1507_v4 = vpack.c.bf16 %v1421_v52, %v1418_v51 }
 0x50c   : > { %v3225_v2 = vpop.f32.mrf.mxu0 }
 0x50e   : > { %v1426_v6 = vpop.f32.mrf.mxu0 }
 0x510   : > { %v3228_v16 = vpop.f32.mrf.mxu0 }
 0x511   : > { %v4481_v16 = vld [vmem:[%s3983_s6] ss:$8 sps:$4 sm:$0xff]  }
 0x512   : > { %v1429_v61 = vpop.f32.mrf.mxu0 }
 0x513   : > { %v1508_v1 = vpack.c.bf16 %v1429_v61, %v1426_v6  ;;  %v4485_v61 = vld [vmem:[%s3983_s6 + $0x14] ss:$8 sps:$4 sm:$0xff]  }
 0x514   : > { %v3229_v5 = vpop.f32.mrf.mxu0 }
 0x515   : > { %v4490_v5 = vld [vmem:[%s3983_s6 + $0x10] ss:$8 sps:$4 sm:$0xff]  }
 0x516   : > { %v1434_v62 = vpop.f32.mrf.mxu0 }
 0x518   : > { %v3232_v58 = vpop.f32.mrf.mxu0 }
 0x519   : > { %v4499_v58 = vld [vmem:[%s3983_s6 + $0x20] ss:$8 sps:$4 sm:$0xff]  }
 0x51a   : > { %v1437_v19 = vpop.f32.mrf.mxu0 }
 0x51b   : > { %v1509_v45 = vpack.c.bf16 %v1437_v19, %v1434_v62  ;;  %v4494_v62 = vld [vmem:[%s3983_s6 + $0x24] ss:$8 sps:$4 sm:$0xff]   ;;  %v4503_v19 = vld [vmem:[%s3983_s6 + $0x34] ss:$8 sps:$4 sm:$0xff]  }
 0x51c   : > { %v3233_v25 = vpop.f32.mrf.mxu0 }
 0x51d   : > { %v4508_v25 = vld [vmem:[%s3983_s6 + $0x30] ss:$8 sps:$4 sm:$0xff]  }
 0x51e   : > { %v1442_v26 = vpop.f32.mrf.mxu0 }
 0x520   : > { %v3236_v27 = vpop.f32.mrf.mxu0 }
 0x521   : > { %v4517_v27 = vld [vmem:[%s3983_s6 + $0x40] ss:$8 sps:$4 sm:$0xff]  }
 0x522   : > { %v1445_v28 = vpop.f32.mrf.mxu0 }
 0x523   : > { %v1510_v42 = vpack.c.bf16 %v1445_v28, %v1442_v26  ;;  %v4512_v26 = vld [vmem:[%s3983_s6 + $0x44] ss:$8 sps:$4 sm:$0xff]   ;;  %v4521_v28 = vld [vmem:[%s3983_s6 + $0x54] ss:$8 sps:$4 sm:$0xff]  }
 0x524   : > { %v3237_v29 = vpop.f32.mrf.mxu0 }
 0x525   : > { %v4526_v29 = vld [vmem:[%s3983_s6 + $0x50] ss:$8 sps:$4 sm:$0xff]  }
 0x526   : > { %v1450_v30 = vpop.f32.mrf.mxu0 }
 0x528   : > { %v3240_v31 = vpop.f32.mrf.mxu0 }
 0x529   : > { %v4535_v31 = vld [vmem:[%s3983_s6 + $0x60] ss:$8 sps:$4 sm:$0xff]  }
 0x52a   : > { %v1453_v32 = vpop.f32.mrf.mxu0 }
 0x52b   : > { %v1511_v39 = vpack.c.bf16 %v1453_v32, %v1450_v30  ;;  %v4530_v30 = vld [vmem:[%s3983_s6 + $0x64] ss:$8 sps:$4 sm:$0xff]   ;;  %v4539_v32 = vld [vmem:[%s3983_s6 + $0x74] ss:$8 sps:$4 sm:$0xff]  }
 0x52c   : > { %v3241_v33 = vpop.f32.mrf.mxu0 }
 0x52d   : > { %v4544_v33 = vld [vmem:[%s3983_s6 + $0x70] ss:$8 sps:$4 sm:$0xff]  }
 0x52e   : > { %v1458_v17 = vpop.f32.mrf.mxu0 }
 0x530   : > { %v3244_v34 = vpop.f32.mrf.mxu0 }
 0x531   : > { %v4553_v34 = vld [vmem:[%s3983_s6 + $0x80] ss:$8 sps:$4 sm:$0xff]  }
 0x532   : > { %v1461_v35 = vpop.f32.mrf.mxu0 }
 0x533   : > { %v1512_v36 = vpack.c.bf16 %v1461_v35, %v1458_v17  ;;  %v4548_v17 = vld [vmem:[%s3983_s6 + $0x84] ss:$8 sps:$4 sm:$0xff]   ;;  %v4557_v35 = vld [vmem:[%s3983_s6 + $0x94] ss:$8 sps:$4 sm:$0xff]  }
 0x534   : > { %v3245_v37 = vpop.f32.mrf.mxu0 }
 0x535   : > { %1527 = vmatpush1.bf16.msra.mxu1 %v1512_v36  ;;  %v4562_v36 = vld [vmem:[%s3983_s6 + $0x90] ss:$8 sps:$4 sm:$0xff]   ;;  %v4566_v37 = vld [vmem:[%s3983_s6 + $0xa4] ss:$8 sps:$4 sm:$0xff]  }
 0x536   : > { %v1466_v38 = vpop.f32.mrf.mxu0  ;;  %1528 = vmatprep.subr.bf16.mxu1 %v5109_v3 }
 0x538   : > { %v3248_v40 = vpop.f32.mrf.mxu0 }
 0x539   : > { %1529 = vmatpush1.bf16.msra.mxu1 %v1511_v39  ;;  %v4575_v39 = vld [vmem:[%s3983_s6 + $0xb4] ss:$8 sps:$4 sm:$0xff]  }
 0x53a   : > { %v1469_v41 = vpop.f32.mrf.mxu0  ;;  %1530 = vmatprep.subr.bf16.mxu1 %v5109_v3  ;;  %v3618_v40 = vld [vmem:[%s5064_s2 + $0x30] sm:$0xff]  }
 0x53b   : > { %3269 = vmatpush3.bf16.msra.mxu0 %v3618_v40 }
 0x53c   : > { %v3249_v43 = vpop.f32.mrf.mxu0 }
 0x53d   : > { %1531 = vmatpush1.bf16.msra.mxu1 %v1510_v42  ;;  %v4587_v42 = vld [vmem:[%s3983_s6 + $0xc4] ss:$8 sps:$4 sm:$0xff]   ;;  %v4592_v43 = vld [vmem:[%s3983_s6 + $0xc0] ss:$8 sps:$4 sm:$0xff]  }
 0x53e   : > { %v1474_v44 = vpop.f32.mrf.mxu0  ;;  %1532 = vmatprep.subr.bf16.mxu1 %v5109_v3 }
 0x540   : > { %v3252_v46 = vpop.f32.mrf.mxu0 }
 0x541   : > { %1533 = vmatpush1.bf16.msra.mxu1 %v1509_v45  ;;  %v4600_v45 = vld [vmem:[%s5065_s3 + $0x2] ss:$0 sm:$0xff] }
 0x542   : > { %v1477_v47 = vpop.f32.mrf.mxu0  ;;  %1534 = vmatprep.subr.bf16.mxu1 %v5109_v3 }
 0x543   : > { %v1514_v21 = vpack.c.bf16 %v1477_v47, %v1474_v44  ;;  %v3852_v44 = vld [vmem:[%s3983_s6 + $0x4] ss:$8 sps:$4 sm:$0xff]  }
 0x544   : > { %v3253_v11 = vpop.f32.mrf.mxu0 }
 0x545   : > { %1535 = vmatpush1.bf16.msra.mxu1 %v1508_v1 }
 0x546   : > { %v1482_v24 = vpop.f32.mrf.mxu0  ;;  %1536 = vmatprep.subr.bf16.mxu1 %v5109_v3 }
 0x548   : > { %v3256_v56 = vpop.f32.mrf.mxu0 }
 0x549   : > { %1537 = vmatpush1.bf16.msra.mxu1 %v1507_v4 }
 0x54a   : > { %v1485_v22 = vpop.f32.mrf.mxu0  ;;  %1538 = vmatprep.subr.bf16.mxu1 %v5109_v3 }
 0x54b   : > { %v1515_v48 = vpack.c.bf16 %v1485_v22, %v1482_v24 }
 0x54c   : > { %v3257_v23 = vpop.f32.mrf.mxu0 }
 0x54d   : > { %1539 = vmatpush1.bf16.msra.mxu1 %v1506_v55 }
 0x54e   : > { %v1490_v18 = vpop.f32.mrf.mxu0  ;;  %1540 = vmatprep.subr.bf16.mxu1 %v5109_v3 }
 0x550   : > { %v3260_v54 = vpop.f32.mrf.mxu0 }
 0x551   : > { %1541 = vmatpush1.bf16.msra.mxu1 %v1505_v15  ;;  %v1513_v15 = vpack.c.bf16 %v1469_v41, %v1466_v38  ;;  %v4571_v38 = vld [vmem:[%s3983_s6 + $0xa0] ss:$8 sps:$4 sm:$0xff]   ;;  %v4583_v41 = vld [vmem:[%s3983_s6 + $0xb0] ss:$8 sps:$4 sm:$0xff]  }
 0x552   : > { %v1493_v63 = vpop.f32.mrf.mxu0  ;;  %1548 = vmatprep.subr.bf16.mxu1 %v5109_v3 }
 0x553   : > { %v1516_v6 = vpack.c.bf16 %v1493_v63, %v1490_v18 }
 0x554   : > { %v3261_v50 = vpop.f32.mrf.mxu0 }
 0x556   : > { %v1498_v55 = vpop.f32.mrf.mxu0 }
 0x558   : > { %v3264_v51 = vpop.f32.mrf.mxu0 }
 0x55a   : > { %v1501_v57 = vpop.f32.mrf.mxu0 }
 0x55b   : > { %v1517_v52 = vpack.c.bf16 %v1501_v57, %v1498_v55 }
 0x55c   : > { %v3265_v2 = vpop.f32.mrf.mxu0 }
 0x55d   : > { %1549 = vmatpush2.bf16.msra.mxu1 %v1517_v52 }
 0x55e   : > { %1550 = vmatprep.subr.bf16.mxu1 %v5109_v3 }
 0x561   : > { %1551 = vmatpush2.bf16.msra.mxu1 %v1516_v6 }
 0x562   : > { %1552 = vmatprep.subr.bf16.mxu1 %v5109_v3 }
 0x565   : > { %1553 = vmatpush2.bf16.msra.mxu1 %v1515_v48 }
 0x566   : > { %1554 = vmatprep.subr.bf16.mxu1 %v5109_v3 }
 0x569   : > { %1555 = vmatpush2.bf16.msra.mxu1 %v1514_v21 }
 0x56a   : > { %1556 = vmatprep.subr.bf16.mxu1 %v5109_v3 }
 0x56d   : > { %1557 = vmatpush2.bf16.msra.mxu1 %v1513_v15 }
 0x56e   : > { %1916 = vmatprep.subr.bf16.mxu1 %v5109_v3 }
 0x570   : > { %1559 = vmatmul.mubr.bf16.vlgmr.msra.gmra.mxu1 %v4481_v16 }
 0x571   : > { %2861 = vmatprep.mubr.msk.bf16.mxu1 %vm706_vm2, %v4485_v61 }
 0x578   : > { %1567 = vmatmul.mubr.bf16.gmra.mxu1 %v4490_v5 }
 0x579   : > { %2862 = vmatprep.mubr.msk.bf16.mxu1 %vm706_vm2, %v4494_v62 }
 0x580   : > { %1575 = vmatmul.mubr.bf16.gmra.mxu1 %v4499_v58 }
 0x581   : > { %2863 = vmatprep.mubr.msk.bf16.mxu1 %vm706_vm2, %v4503_v19 }
 0x588   : > { %1583 = vmatmul.mubr.bf16.gmra.mxu1 %v4508_v25 }
 0x589   : > { %2864 = vmatprep.mubr.msk.bf16.mxu1 %vm706_vm2, %v4512_v26 }
 0x590   : > { %1591 = vmatmul.mubr.bf16.gmra.mxu1 %v4517_v27 }
 0x591   : > { %2865 = vmatprep.mubr.msk.bf16.mxu1 %vm706_vm2, %v4521_v28 }
 0x598   : > { %1599 = vmatmul.mubr.bf16.gmra.mxu1 %v4526_v29 }
 0x599   : > { %2866 = vmatprep.mubr.msk.bf16.mxu1 %vm706_vm2, %v4530_v30 }
 0x5a0   : > { %1607 = vmatmul.mubr.bf16.gmra.mxu1 %v4535_v31 }
 0x5a1   : > { %2867 = vmatprep.mubr.msk.bf16.mxu1 %vm706_vm2, %v4539_v32 }
 0x5a8   : > { %1615 = vmatmul.mubr.bf16.gmra.mxu1 %v4544_v33 }
 0x5a9   : > { %2868 = vmatprep.mubr.msk.bf16.mxu1 %vm706_vm2, %v4548_v17 }
 0x5b0   : > { %1623 = vmatmul.mubr.bf16.gmra.mxu1 %v4553_v34 }
 0x5b1   : > { %2869 = vmatprep.mubr.msk.bf16.mxu1 %vm706_vm2, %v4557_v35 }
 0x5b8   : > { %1631 = vmatmul.mubr.bf16.gmra.mxu1 %v4562_v36 }
 0x5b9   : > { %2870 = vmatprep.mubr.msk.bf16.mxu1 %vm706_vm2, %v4566_v37 }
 0x5c0   : > { %1639 = vmatmul.mubr.bf16.gmra.mxu1 %v4571_v38 }
 0x5c1   : > { %2871 = vmatprep.mubr.msk.bf16.mxu1 %vm706_vm2, %v4575_v39 }
 0x5c8   : > { %1647 = vmatmul.mubr.bf16.gmra.mxu1 %v4583_v41 }
 0x5c9   : > { %2872 = vmatprep.mubr.msk.bf16.mxu1 %vm706_vm2, %v4587_v42 }
 0x5d0   : > { %1655 = vmatmul.mubr.bf16.gmra.mxu1 %v4592_v43 }
 0x5d1   : > { %2894 = vmatprep.mubr.msk.bf16.mxu1 %vm706_vm2, %v3852_v44 }
 0x630   : > { %v1560_v46 = vpop.f32.mrf.mxu1 }
 0x631   : > { %v1561_v47 = vadd.f32 %v4600_v45, %v1560_v46 }
 0x632   : > { %v1562_v1 = vpop.f32.mrf.mxu1 }
 0x633   : > { %3723 = vtanh.f32 %v1561_v47 }
 0x634   : > { %v1563_v11 = vpop.f32.mrf.mxu1 }
 0x635   : > { %v1564_v24 = vadd.f32 %v4600_v45, %v1563_v11 }
 0x636   : > { %v1565_v4 = vpop.f32.mrf.mxu1 }
 0x637   : > { %3725 = vtanh.f32 %v1564_v24 }
 0x638   : > { %v1568_v56 = vpop.f32.mrf.mxu1 }
 0x639   : > { %v1569_v22 = vadd.f32 %v4600_v45, %v1568_v56 }
 0x63a   : > { %v1570_v23 = vpop.f32.mrf.mxu1 }
 0x63b   : > { %3727 = vtanh.f32 %v1569_v22 }
 0x63c   : > { %v1571_v18 = vpop.f32.mrf.mxu1 }
 0x63d   : > { %v1572_v54 = vadd.f32 %v4600_v45, %v1571_v18 }
 0x63e   : > { %v1573_v7 = vpop.f32.mrf.mxu1 }
 0x63f   : > { %3729 = vtanh.f32 %v1572_v54 }
 0x640   : > { %v1576_v63 = vpop.f32.mrf.mxu1  ;;  %v3724_v51 = vpop.eup %3723 }
 0x641   : > { %v1577_v50 = vadd.f32 %v4600_v45, %v1576_v63 }
 0x642   : > { %v1578_v55 = vpop.f32.mrf.mxu1 }
 0x643   : > { %3731 = vtanh.f32 %v1577_v50 }
 0x644   : > { %v3726_v57 = vpop.eup %3725  ;;  %v1579_v52 = vpop.f32.mrf.mxu1 }
 0x645   : > { %v1689_v2 = vpack.c.bf16 %v3726_v57, %v3724_v51  ;;  %v1580_v6 = vadd.f32 %v4600_v45, %v1579_v52  ;;  %v3429_v48 = vpack.i.bf16 %v3726_v57, %v3724_v51 }
 0x646   : > { %v1581_v21 = vpop.f32.mrf.mxu1 }
 0x647   : > { %3733 = vtanh.f32 %v1580_v6  ;;  %3430 = vrot.lane.b32.xlu1 %v3429_v48, %s3865_s30  ;;  %3271 = vmatmul.mubr.msk.bf16.vlgmr.msra.gmra.mxu0 %vm392_vm1, %v1689_v2 }
 0x648   : > { %v1584_v15 = vpop.f32.mrf.mxu1  ;;  %3274 = vmatprep.mubr.msk.bf16.mxu0 %vm3862_vm0, %v5111_v0  ;;  %v3728_v46 = vpop.eup %3727 }
 0x649   : > { %v1585_v40 = vadd.f32 %v4600_v45, %v1584_v15 }
 0x64a   : > { %v1586_v44 = vpop.f32.mrf.mxu1 }
 0x64b   : > { %3735 = vtanh.f32 %v1585_v40 }
 0x64c   : > { %v3730_v47 = vpop.eup %3729  ;;  %v1587_v1 = vpop.f32.mrf.mxu1 }
 0x64d   : > { %v1588_v11 = vadd.f32 %v4600_v45, %v1587_v1  ;;  %v3434_v24 = vpack.i.bf16 %v3730_v47, %v3728_v46  ;;  %v1690_v4 = vpack.c.bf16 %v3730_v47, %v3728_v46 }
 0x64e   : > { %v1589_v56 = vpop.f32.mrf.mxu1 }
 0x64f   : > { %3737 = vtanh.f32 %v1588_v11  ;;  %3435 = vrot.lane.b32.xlu0 %v3434_v24, %s3865_s30  ;;  %3275 = vmatmul.mubr.msk.bf16.gmra.mxu0 %vm392_vm1, %v1690_v4 }
 0x650   : > { %v1592_v22 = vpop.f32.mrf.mxu1  ;;  %3278 = vmatprep.mubr.msk.bf16.mxu0 %vm3862_vm0, %v5111_v0  ;;  %v3732_v54 = vpop.eup %3731 }
 0x651   : > { %v1593_v23 = vadd.f32 %v4600_v45, %v1592_v22 }
 0x652   : > { %v1594_v18 = vpop.f32.mrf.mxu1 }
 0x653   : > { %3739 = vtanh.f32 %v1593_v23 }
 0x654   : > { %v3734_v7 = vpop.eup %3733  ;;  %v1595_v63 = vpop.f32.mrf.mxu1 }
 0x655   : > { %v1596_v50 = vadd.f32 %v4600_v45, %v1595_v63  ;;  %v3439_v55 = vpack.i.bf16 %v3734_v7, %v3732_v54  ;;  %v1691_v51 = vpack.c.bf16 %v3734_v7, %v3732_v54 }
 0x656   : > { %v1597_v57 = vpop.f32.mrf.mxu1 }
 0x657   : > { %3741 = vtanh.f32 %v1596_v50  ;;  %3440 = vrot.lane.b32.xlu1 %v3439_v55, %s3865_s30  ;;  %3279 = vmatmul.mubr.msk.bf16.gmra.mxu0 %vm392_vm1, %v1691_v51 }
 0x658   : > { %v1600_v52 = vpop.f32.mrf.mxu1  ;;  %3282 = vmatprep.mubr.msk.bf16.mxu0 %vm3862_vm0, %v5111_v0  ;;  %v3736_v48 = vpop.eup %3735 }
 0x659   : > { %v1601_v2 = vadd.f32 %v4600_v45, %v1600_v52 }
 0x65a   : > { %v1602_v6 = vpop.f32.mrf.mxu1 }
 0x65b   : > { %3743 = vtanh.f32 %v1601_v2 }
 0x65c   : > { %v3738_v21 = vpop.eup %3737  ;;  %v1603_v15 = vpop.f32.mrf.mxu1 }
 0x65d   : > { %v1604_v40 = vadd.f32 %v4600_v45, %v1603_v15  ;;  %v3444_v44 = vpack.i.bf16 %v3738_v21, %v3736_v48  ;;  %v1692_v46 = vpack.c.bf16 %v3738_v21, %v3736_v48 }
 0x65e   : > { %v1605_v47 = vpop.f32.mrf.mxu1 }
 0x65f   : > { %3745 = vtanh.f32 %v1604_v40  ;;  %3445 = vrot.lane.b32.xlu0 %v3444_v44, %s3865_s30  ;;  %3283 = vmatmul.mubr.msk.bf16.gmra.mxu0 %vm392_vm1, %v1692_v46 }
 0x660   : > { %v1608_v1 = vpop.f32.mrf.mxu1  ;;  %3286 = vmatprep.mubr.msk.bf16.mxu0 %vm3862_vm0, %v5111_v0  ;;  %v3740_v4 = vpop.eup %3739 }
 0x661   : > { %v1609_v11 = vadd.f32 %v4600_v45, %v1608_v1 }
 0x662   : > { %v1610_v24 = vpop.f32.mrf.mxu1 }
 0x663   : > { %3747 = vtanh.f32 %v1609_v11 }
 0x664   : > { %v3742_v56 = vpop.eup %3741  ;;  %v1611_v22 = vpop.f32.mrf.mxu1 }
 0x665   : > { %v1612_v23 = vadd.f32 %v4600_v45, %v1611_v22  ;;  %v3449_v18 = vpack.i.bf16 %v3742_v56, %v3740_v4  ;;  %v1693_v54 = vpack.c.bf16 %v3742_v56, %v3740_v4 }
 0x666   : > { %v1613_v7 = vpop.f32.mrf.mxu1 }
 0x667   : > { %3749 = vtanh.f32 %v1612_v23  ;;  %3450 = vrot.lane.b32.xlu1 %v3449_v18, %s3865_s30  ;;  %3287 = vmatmul.mubr.msk.bf16.gmra.mxu0 %vm392_vm1, %v1693_v54 }
 0x668   : > { %v1616_v63 = vpop.f32.mrf.mxu1  ;;  %3290 = vmatprep.mubr.msk.bf16.mxu0 %vm3862_vm0, %v5111_v0  ;;  %v3744_v51 = vpop.eup %3743 }
 0x669   : > { %v1617_v50 = vadd.f32 %v4600_v45, %v1616_v63 }
 0x66a   : > { %v1618_v55 = vpop.f32.mrf.mxu1 }
 0x66b   : > { %3751 = vtanh.f32 %v1617_v50 }
 0x66c   : > { %v3746_v57 = vpop.eup %3745  ;;  %v1619_v52 = vpop.f32.mrf.mxu1 }
 0x66d   : > { %v1620_v2 = vadd.f32 %v4600_v45, %v1619_v52  ;;  %v3454_v6 = vpack.i.bf16 %v3746_v57, %v3744_v51  ;;  %v1694_v48 = vpack.c.bf16 %v3746_v57, %v3744_v51 }
 0x66e   : > { %v1621_v21 = vpop.f32.mrf.mxu1 }
 0x66f   : > { %3753 = vtanh.f32 %v1620_v2  ;;  %3455 = vrot.lane.b32.xlu0 %v3454_v6, %s3865_s30  ;;  %3291 = vmatmul.mubr.msk.bf16.gmra.mxu0 %vm392_vm1, %v1694_v48 }
 0x670   : > { %v1624_v15 = vpop.f32.mrf.mxu1  ;;  %3294 = vmatprep.mubr.msk.bf16.mxu0 %vm3862_vm0, %v5111_v0  ;;  %v3748_v46 = vpop.eup %3747 }
 0x671   : > { %v1625_v40 = vadd.f32 %v4600_v45, %v1624_v15 }
 0x672   : > { %v1626_v44 = vpop.f32.mrf.mxu1 }
 0x673   : > { %3755 = vtanh.f32 %v1625_v40 }
 0x674   : > { %v3750_v47 = vpop.eup %3749  ;;  %v1627_v1 = vpop.f32.mrf.mxu1 }
 0x675   : > { %v1628_v11 = vadd.f32 %v4600_v45, %v1627_v1  ;;  %v3459_v24 = vpack.i.bf16 %v3750_v47, %v3748_v46  ;;  %v1695_v4 = vpack.c.bf16 %v3750_v47, %v3748_v46 }
 0x676   : > { %v1629_v56 = vpop.f32.mrf.mxu1 }
 0x677   : > { %3757 = vtanh.f32 %v1628_v11  ;;  %3460 = vrot.lane.b32.xlu1 %v3459_v24, %s3865_s30  ;;  %3295 = vmatmul.mubr.msk.bf16.gmra.mxu0 %vm392_vm1, %v1695_v4 }
 0x678   : > { %v1632_v22 = vpop.f32.mrf.mxu1  ;;  %3298 = vmatprep.mubr.msk.bf16.mxu0 %vm3862_vm0, %v5111_v0  ;;  %v3752_v54 = vpop.eup %3751 }
 0x679   : > { %v1633_v23 = vadd.f32 %v4600_v45, %v1632_v22 }
 0x67a   : > { %v1634_v18 = vpop.f32.mrf.mxu1 }
 0x67b   : > { %3759 = vtanh.f32 %v1633_v23 }
 0x67c   : > { %v3754_v7 = vpop.eup %3753  ;;  %v1635_v63 = vpop.f32.mrf.mxu1 }
 0x67d   : > { %v1636_v50 = vadd.f32 %v4600_v45, %v1635_v63  ;;  %v3464_v55 = vpack.i.bf16 %v3754_v7, %v3752_v54  ;;  %v1696_v51 = vpack.c.bf16 %v3754_v7, %v3752_v54 }
 0x67e   : > { %v1637_v57 = vpop.f32.mrf.mxu1 }
 0x67f   : > { %3761 = vtanh.f32 %v1636_v50  ;;  %3465 = vrot.lane.b32.xlu0 %v3464_v55, %s3865_s30  ;;  %3299 = vmatmul.mubr.msk.bf16.gmra.mxu0 %vm392_vm1, %v1696_v51 }
 0x680   : > { %v1640_v52 = vpop.f32.mrf.mxu1  ;;  %3302 = vmatprep.mubr.msk.bf16.mxu0 %vm3862_vm0, %v5111_v0  ;;  %v3756_v48 = vpop.eup %3755 }
 0x681   : > { %v1641_v2 = vadd.f32 %v4600_v45, %v1640_v52 }
 0x682   : > { %v1642_v6 = vpop.f32.mrf.mxu1 }
 0x683   : > { %3763 = vtanh.f32 %v1641_v2 }
 0x684   : > { %v3758_v21 = vpop.eup %3757  ;;  %v1643_v15 = vpop.f32.mrf.mxu1 }
 0x685   : > { %v1644_v40 = vadd.f32 %v4600_v45, %v1643_v15  ;;  %v3469_v44 = vpack.i.bf16 %v3758_v21, %v3756_v48  ;;  %v1697_v46 = vpack.c.bf16 %v3758_v21, %v3756_v48 }
 0x686   : > { %v1645_v47 = vpop.f32.mrf.mxu1 }
 0x687   : > { %3765 = vtanh.f32 %v1644_v40  ;;  %3470 = vrot.lane.b32.xlu1 %v3469_v44, %s3865_s30  ;;  %3303 = vmatmul.mubr.msk.bf16.gmra.mxu0 %vm392_vm1, %v1697_v46 }
 0x688   : > { %v1648_v1 = vpop.f32.mrf.mxu1  ;;  %3306 = vmatprep.mubr.msk.bf16.mxu0 %vm3862_vm0, %v5111_v0  ;;  %v3760_v4 = vpop.eup %3759 }
 0x689   : > { %v1649_v11 = vadd.f32 %v4600_v45, %v1648_v1 }
 0x68a   : > { %v1650_v24 = vpop.f32.mrf.mxu1 }
 0x68b   : > { %3767 = vtanh.f32 %v1649_v11  ;;  %v4678_v24 = vpop.permute.xlu0 %3365 }
 0x68c   : > { %v3762_v56 = vpop.eup %3761  ;;  %v1651_v22 = vpop.f32.mrf.mxu1 }
 0x68d   : > { %v1652_v23 = vadd.f32 %v4600_v45, %v1651_v22  ;;  %v3474_v18 = vpack.i.bf16 %v3762_v56, %v3760_v4  ;;  %v1698_v54 = vpack.c.bf16 %v3762_v56, %v3760_v4  ;;  %v4682_v56 = vpop.permute.xlu1 %3375 }
 0x68e   : > { %v1653_v7 = vpop.f32.mrf.mxu1 }
 0x68f   : > { %3769 = vtanh.f32 %v1652_v23  ;;  %3475 = vrot.lane.b32.xlu0 %v3474_v18, %s3865_s30  ;;  %3307 = vmatmul.mubr.msk.bf16.gmra.mxu0 %vm392_vm1, %v1698_v54  ;;  %v4680_v4 = vpop.permute.xlu0 %3370 }
 0x690   : > { %v1656_v63 = vpop.f32.mrf.mxu1  ;;  %3310 = vmatprep.mubr.msk.bf16.mxu0 %vm3862_vm0, %v5111_v0  ;;  %v3764_v51 = vpop.eup %3763 }
 0x691   : > { %v1657_v50 = vadd.f32 %v4600_v45, %v1656_v63  ;;  %v4686_v23 = vpop.permute.xlu1 %3380 }
 0x692   : > { %v1658_v55 = vpop.f32.mrf.mxu1 }
 0x693   : > { %3771 = vtanh.f32 %v1657_v50  ;;  %v4684_v22 = vpop.permute.xlu0 %3385 }
 0x694   : > { %v3766_v57 = vpop.eup %3765  ;;  %v1659_v52 = vpop.f32.mrf.mxu1 }
 0x695   : > { %v1660_v2 = vadd.f32 %v4600_v45, %v1659_v52  ;;  %v3479_v6 = vpack.i.bf16 %v3766_v57, %v3764_v51  ;;  %v1699_v48 = vpack.c.bf16 %v3766_v57, %v3764_v51 }
 0x696   : > { %v1661_v21 = vpop.f32.mrf.mxu1 }
 0x697   : > { %3773 = vtanh.f32 %v1660_v2  ;;  %3480 = vrot.lane.b32.xlu1 %v3479_v6, %s3865_s30  ;;  %3311 = vmatmul.mubr.msk.bf16.gmra.mxu0 %vm392_vm1, %v1699_v48  ;;  %v4688_v18 = vpop.permute.xlu0 %3395 }
 0x698   : > { %3314 = vmatprep.mubr.msk.bf16.mxu0 %vm3862_vm0, %v5111_v0  ;;  %v3768_v15 = vpop.eup %3767  ;;  %5112 = vst [vmem:[#allocation17_spill] sm:$0xff] %v4688_v18 }
 0x69b   : > { %v3406_v54 = vpop.permute.xlu0 %3405 }
 0x69c   : > { %v3770_v40 = vpop.eup %3769  ;;  %v3407_v18 = vunpack.i.l.bf16 %v3406_v54 }
 0x69d   : > { %v3484_v44 = vpack.i.bf16 %v3770_v40, %v3768_v15  ;;  %v1700_v46 = vpack.c.bf16 %v3770_v40, %v3768_v15 }
 0x69f   : > { %3485 = vrot.lane.b32.xlu0 %v3484_v44, %s3865_s30  ;;  %3315 = vmatmul.mubr.msk.bf16.gmra.mxu0 %vm392_vm1, %v1700_v46  ;;  %v3416_v63 = vpop.permute.xlu0 %3415 }
 0x6a0   : > { %3318 = vmatprep.mubr.msk.bf16.mxu0 %vm3862_vm0, %v5111_v0  ;;  %v3772_v45 = vpop.eup %3771  ;;  %v4690_v0 = vpop.permute.xlu1 %3390 }
 0x6a1   : > { %5113 = vst [vmem:[#allocation18_spill] sm:$0xff] %v4690_v0 }
 0x6a3   : > { %v4692_v55 = vpop.permute.xlu0 %3425 }
 0x6a4   : > { %v3774_v47 = vpop.eup %3773  ;;  %v3401_v7 = vpop.permute.xlu1 %3400  ;;  %5114 = vst [vmem:[#allocation19_spill] sm:$0xff] %v4692_v55 }
 0x6a5   : > { %v3489_v1 = vpack.i.bf16 %v3774_v47, %v3772_v45  ;;  %v1701_v11 = vpack.c.bf16 %v3774_v47, %v3772_v45  ;;  %v3403_v21 = vunpack.i.h.bf16 %v3401_v7  ;;  %v3402_v15 = vunpack.i.l.bf16 %v3401_v7 }
 0x6a6   : > { %v3408_v7 = vunpack.i.h.bf16 %v3406_v54 }
 0x6a7   : > { %3490 = vrot.lane.b32.xlu1 %v3489_v1, %s3865_s30  ;;  %3319 = vmatmul.mubr.msk.bf16.gmra.mxu0 %vm392_vm1, %v1701_v11  ;;  %v2406_v47 = vsel %vm392_vm1, %v4244_v20, %v3403_v21  ;;  %v2405_v1 = vsel %vm392_vm1, %v4241_v14, %v3402_v15  ;;  %v2407_v14 = vsel %vm392_vm1, %v4252_v59, %v3407_v18  ;;  %v3418_v18 = vunpack.i.h.bf16 %v3416_v63 }
 0x6a8   : > { %v3411_v50 = vpop.permute.xlu1 %3410  ;;  %v2408_v20 = vsel %vm392_vm1, %v4255_v60, %v3408_v7 }
 0x6ac   : > { %v4694_v51 = vpop.permute.xlu1 %3420 }
 0x6ad   : > { %5115 = vst [vmem:[#allocation20_spill] sm:$0xff] %v4694_v51 }
 0x6b9   : > { %v4698_v52 = vpop.permute.xlu1 %3430 }
 0x6c1   : > { %v4696_v57 = vpop.permute.xlu0 %3435 }
 0x6c9   : > { %v4702_v6 = vpop.permute.xlu1 %3440 }
 0x6d1   : > { %v4700_v2 = vpop.permute.xlu0 %3445 }
 0x6d9   : > { %v4706_v40 = vpop.permute.xlu1 %3450 }
 0x6da   : > { %5117 = vst [vmem:[#allocation22_spill] sm:$0xff] %v4706_v40 }
 0x6e1   : > { %v4704_v48 = vpop.permute.xlu0 %3455 }
 0x6e2   : > { %5116 = vst [vmem:[#allocation21_spill] sm:$0xff] %v4704_v48 }
 0x6e9   : > { %v4718_v51 = vpop.permute.xlu1 %3460 }
 0x6ea   : > { %5120 = vst [vmem:[#allocation25_spill] sm:$0xff] %v4718_v51 }
 0x6f1   : > { %v3466_v44 = vpop.permute.xlu0 %3465 }
 0x6f2   : > { %v3468_v46 = vunpack.i.h.bf16 %v3466_v44  ;;  %v3467_v45 = vunpack.i.l.bf16 %v3466_v44 }
 0x6f4   : > { %v4713_v11 = vsel %vm2417_vm3, %v2406_v47, %v3468_v46  ;;  %v4716_v55 = vsel %vm2417_vm3, %v2405_v1, %v3467_v45  ;;  %v3413_v46 = vunpack.i.h.bf16 %v3411_v50  ;;  %v3412_v45 = vunpack.i.l.bf16 %v3411_v50 }
 0x6f5   : > { %5118 = vst [vmem:[#allocation23_spill] sm:$0xff] %v4713_v11  ;;  %5119 = vst [vmem:[#allocation24_spill] sm:$0xff] %v4716_v55 }
 0x6f6   : > { %v2409_v60 = vsel %vm392_vm1, %v4263_v8, %v3412_v45 }
 0x6f9   : > { %v3471_v48 = vpop.permute.xlu1 %3470 }
 0x6fa   : > { %v3473_v0 = vunpack.i.h.bf16 %v3471_v48  ;;  %v3472_v44 = vunpack.i.l.bf16 %v3471_v48  ;;  %v2410_v48 = vsel %vm392_vm1, %v4266_v9, %v3413_v46  ;;  %v2412_v9 = vsel %vm392_vm1, %v4277_v53, %v3418_v18 }
 0x6fc   : > { %v4725_v21 = vsel %vm2417_vm3, %v2408_v20, %v3473_v0  ;;  %v4728_v15 = vsel %vm2417_vm3, %v2407_v14, %v3472_v44  ;;  %v3417_v0 = vunpack.i.l.bf16 %v3416_v63 }
 0x6fd   : > { %5121 = vst [vmem:[#allocation26_spill] sm:$0xff] %v4725_v21  ;;  %5122 = vst [vmem:[#allocation27_spill] sm:$0xff] %v4728_v15 }
 0x6fe   : > { %v2411_v8 = vsel %vm392_vm1, %v4274_v10, %v3417_v0 }
 0x701   : > { %v3476_v47 = vpop.permute.xlu0 %3475 }
 0x702   : > { %v3478_v1 = vunpack.i.h.bf16 %v3476_v47  ;;  %v3477_v54 = vunpack.i.l.bf16 %v3476_v47 }
 0x704   : > { %v4735_v7 = vsel %vm2417_vm3, %v2410_v48, %v3478_v1  ;;  %v4738_v59 = vsel %vm2417_vm3, %v2409_v60, %v3477_v54 }
 0x705   : > { %5123 = vst [vmem:[#allocation28_spill] sm:$0xff] %v4735_v7  ;;  %5124 = vst [vmem:[#allocation29_spill] sm:$0xff] %v4738_v59 }
 0x707   : > { %v4740_v44 = vpop.f32.mrf.mxu0 }
 0x709   : > { %v3481_v50 = vpop.permute.xlu1 %3480  ;;  %v3272_v20 = vpop.f32.mrf.mxu0 }
 0x70a   : > { %v3483_v14 = vunpack.i.h.bf16 %v3481_v50  ;;  %v3482_v47 = vunpack.i.l.bf16 %v3481_v50 }
 0x70b   : > { %v4746_v46 = vpop.f32.mrf.mxu0 }
 0x70c   : > { %v4749_v45 = vsel %vm2417_vm3, %v2412_v9, %v3483_v14  ;;  %v4752_v1 = vsel %vm2417_vm3, %v2411_v8, %v3482_v47 }
 0x70d   : > { %5125 = vst [vmem:[#allocation30_spill] sm:$0xff] %v4749_v45  ;;  %5126 = vst [vmem:[#allocation31_spill] sm:$0xff] %v4752_v1  ;;  %v3273_v54 = vpop.f32.mrf.mxu0 }
 0x70f   : > { %v1800_v48 = vpop.f32.mrf.mxu0 }
 0x711   : > { %v3276_v60 = vpop.f32.mrf.mxu0 }
 0x713   : > { %v1803_v50 = vpop.f32.mrf.mxu0 }
 0x714   : > { %v1896_v20 = vpack.c.bf16 %v1803_v50, %v1800_v48 }
 0x715   : > { %v3277_v53 = vpop.f32.mrf.mxu0 }
 0x717   : > { %v1808_v18 = vpop.f32.mrf.mxu0 }
 0x719   : > { %v3280_v59 = vpop.f32.mrf.mxu0 }
 0x71b   : > { %v1811_v10 = vpop.f32.mrf.mxu0 }
 0x71d   : > { %v3281_v0 = vpop.f32.mrf.mxu0 }
 0x71f   : > { %v1816_v7 = vpop.f32.mrf.mxu0 }
 0x721   : > { %v3284_v15 = vpop.f32.mrf.mxu0 }
 0x723   : > { %v1819_v14 = vpop.f32.mrf.mxu0 }
 0x725   : > { %v3285_v9 = vpop.f32.mrf.mxu0 }
 0x727   : > { %v1824_v45 = vpop.f32.mrf.mxu0 }
 0x729   : > { %v3288_v47 = vpop.f32.mrf.mxu0 }
 0x72b   : > { %v1827_v8 = vpop.f32.mrf.mxu0 }
 0x72d   : > { %v3289_v1 = vpop.f32.mrf.mxu0 }
 0x72f   : > { %v1832_v21 = vpop.f32.mrf.mxu0 }
 0x731   : > { %v3292_v63 = vpop.f32.mrf.mxu0 }
 0x733   : > { %v1835_v54 = vpop.f32.mrf.mxu0 }
 0x735   : > { %v3293_v55 = vpop.f32.mrf.mxu0 }
 0x736   : > { %v1900_v55 = vpack.c.bf16 %v1835_v54, %v1832_v21 }
 0x737   : > { %v1840_v60 = vpop.f32.mrf.mxu0 }
 0x739   : > { %v3296_v11 = vpop.f32.mrf.mxu0 }
 0x73b   : > { %v1843_v48 = vpop.f32.mrf.mxu0 }
 0x73c   : > { %v1901_v9 = vpack.c.bf16 %v1843_v48, %v1840_v60  ;;  %v1897_v48 = vpack.c.bf16 %v1811_v10, %v1808_v18 }
 0x73d   : > { %v3297_v50 = vpop.f32.mrf.mxu0 }
 0x73e   : > { %v1899_v50 = vpack.c.bf16 %v1827_v8, %v1824_v45 }
 0x73f   : > { %v1848_v53 = vpop.f32.mrf.mxu0 }
 0x741   : > { %v3300_v59 = vpop.f32.mrf.mxu0 }
 0x743   : > { %v1851_v51 = vpop.f32.mrf.mxu0 }
 0x744   : > { %v1902_v0 = vpack.c.bf16 %v1851_v51, %v1848_v53 }
 0x745   : > { %v3301_v40 = vpop.f32.mrf.mxu0 }
 0x746   : > { %1917 = vmatpush1.bf16.msra.mxu1 %v1902_v0  ;;  %v1898_v40 = vpack.c.bf16 %v1819_v14, %v1816_v7  ;;  %v5127_v7 = vpack.c.bf16 %v4746_v46, %v4740_v44 }
 0x747   : > { %v1856_v15 = vpop.f32.mrf.mxu0  ;;  %1918 = vmatprep.subr.bf16.mxu1 %v5109_v3 }
 0x749   : > { %v3304_v47 = vpop.f32.mrf.mxu0 }
 0x74a   : > { %1919 = vmatpush1.bf16.msra.mxu1 %v1901_v9 }
 0x74b   : > { %v1859_v1 = vpop.f32.mrf.mxu0  ;;  %1920 = vmatprep.subr.bf16.mxu1 %v5109_v3 }
 0x74c   : > { %v1903_v46 = vpack.c.bf16 %v1859_v1, %v1856_v15 }
 0x74d   : > { %v3305_v63 = vpop.f32.mrf.mxu0 }
 0x74e   : > { %1921 = vmatpush1.bf16.msra.mxu1 %v1900_v55 }
 0x74f   : > { %v1864_v11 = vpop.f32.mrf.mxu0  ;;  %1922 = vmatprep.subr.bf16.mxu1 %v5109_v3 }
 0x751   : > { %v3308_v59 = vpop.f32.mrf.mxu0 }
 0x752   : > { %1923 = vmatpush1.bf16.msra.mxu1 %v1899_v50 }
 0x753   : > { %v1867_v51 = vpop.f32.mrf.mxu0  ;;  %1924 = vmatprep.subr.bf16.mxu1 %v5109_v3 }
 0x754   : > { %v1904_v44 = vpack.c.bf16 %v1867_v51, %v1864_v11 }
 0x755   : > { %v3309_v53 = vpop.f32.mrf.mxu0 }
 0x756   : > { %1925 = vmatpush1.bf16.msra.mxu1 %v1898_v40 }
 0x757   : > { %v1872_v60 = vpop.f32.mrf.mxu0  ;;  %1926 = vmatprep.subr.bf16.mxu1 %v5109_v3 }
 0x759   : > { %v3312_v0 = vpop.f32.mrf.mxu0 }
 0x75a   : > { %1927 = vmatpush1.bf16.msra.mxu1 %v1897_v48 }
 0x75b   : > { %v1875_v21 = vpop.f32.mrf.mxu0  ;;  %1928 = vmatprep.subr.bf16.mxu1 %v5109_v3 }
 0x75c   : > { %v1905_v50 = vpack.c.bf16 %v1875_v21, %v1872_v60 }
 0x75d   : > { %v3313_v54 = vpop.f32.mrf.mxu0 }
 0x75e   : > { %1929 = vmatpush1.bf16.msra.mxu1 %v1896_v20 }
 0x75f   : > { %v1880_v45 = vpop.f32.mrf.mxu0  ;;  %1930 = vmatprep.subr.bf16.mxu1 %v5109_v3 }
 0x761   : > { %v3316_v8 = vpop.f32.mrf.mxu0 }
 0x762   : > { %1931 = vmatpush1.bf16.msra.mxu1 %v5127_v7 }
 0x763   : > { %v1883_v14 = vpop.f32.mrf.mxu0  ;;  %1938 = vmatprep.subr.bf16.mxu1 %v5109_v3 }
 0x764   : > { %v1906_v20 = vpack.c.bf16 %v1883_v14, %v1880_v45 }
 0x765   : > { %v3317_v9 = vpop.f32.mrf.mxu0 }
 0x767   : > { %v1888_v18 = vpop.f32.mrf.mxu0 }
 0x769   : > { %v3320_v10 = vpop.f32.mrf.mxu0 }
 0x76b   : > { %v1891_v47 = vpop.f32.mrf.mxu0 }
 0x76c   : > { %v1907_v55 = vpack.c.bf16 %v1891_v47, %v1888_v18 }
 0x76d   : > { %v3321_v63 = vpop.f32.mrf.mxu0 }
 0x76e   : > { %1939 = vmatpush2.bf16.msra.mxu1 %v1907_v55 }
 0x76f   : > { %1940 = vmatprep.subr.bf16.mxu1 %v5109_v3 }
 0x772   : > { %1941 = vmatpush2.bf16.msra.mxu1 %v1906_v20 }
 0x773   : > { %1942 = vmatprep.subr.bf16.mxu1 %v5109_v3 }
 0x776   : > { %1943 = vmatpush2.bf16.msra.mxu1 %v1905_v50 }
 0x777   : > { %1944 = vmatprep.subr.bf16.mxu1 %v5109_v3 }
 0x77a   : > { %1945 = vmatpush2.bf16.msra.mxu1 %v1904_v44 }
 0x77b   : > { %1946 = vmatprep.subr.bf16.mxu1 %v5109_v3  ;;  %v4811_v3 = vld [vmem:[%s5065_s3 + $0x3] ss:$0 sm:$0xff] }
 0x77e   : > { %1947 = vmatpush2.bf16.msra.mxu1 %v1903_v46 }
 0x781   : > { %1949 = vmatmul.mubr.bf16.vlgmr.msra.gmra.mxu1 %v4481_v16 }
 0x782   : > { %2895 = vmatprep.mubr.msk.bf16.mxu1 %vm706_vm2, %v4485_v61 }
 0x789   : > { %1957 = vmatmul.mubr.bf16.gmra.mxu1 %v4490_v5 }
 0x78a   : > { %2896 = vmatprep.mubr.msk.bf16.mxu1 %vm706_vm2, %v4494_v62 }
 0x791   : > { %1965 = vmatmul.mubr.bf16.gmra.mxu1 %v4499_v58 }
 0x792   : > { %2897 = vmatprep.mubr.msk.bf16.mxu1 %vm706_vm2, %v4503_v19 }
 0x799   : > { %1973 = vmatmul.mubr.bf16.gmra.mxu1 %v4508_v25 }
 0x79a   : > { %2898 = vmatprep.mubr.msk.bf16.mxu1 %vm706_vm2, %v4512_v26 }
 0x7a1   : > { %1981 = vmatmul.mubr.bf16.gmra.mxu1 %v4517_v27 }
 0x7a2   : > { %2899 = vmatprep.mubr.msk.bf16.mxu1 %vm706_vm2, %v4521_v28 }
 0x7a9   : > { %1989 = vmatmul.mubr.bf16.gmra.mxu1 %v4526_v29 }
 0x7aa   : > { %2900 = vmatprep.mubr.msk.bf16.mxu1 %vm706_vm2, %v4530_v30 }
 0x7b1   : > { %1997 = vmatmul.mubr.bf16.gmra.mxu1 %v4535_v31 }
 0x7b2   : > { %2901 = vmatprep.mubr.msk.bf16.mxu1 %vm706_vm2, %v4539_v32 }
 0x7b9   : > { %2005 = vmatmul.mubr.bf16.gmra.mxu1 %v4544_v33 }
 0x7ba   : > { %2902 = vmatprep.mubr.msk.bf16.mxu1 %vm706_vm2, %v4548_v17 }
 0x7c1   : > { %2013 = vmatmul.mubr.bf16.gmra.mxu1 %v4553_v34 }
 0x7c2   : > { %2903 = vmatprep.mubr.msk.bf16.mxu1 %vm706_vm2, %v4557_v35 }
 0x7c9   : > { %2021 = vmatmul.mubr.bf16.gmra.mxu1 %v4562_v36 }
 0x7ca   : > { %2904 = vmatprep.mubr.msk.bf16.mxu1 %vm706_vm2, %v4566_v37 }
 0x7d1   : > { %2029 = vmatmul.mubr.bf16.gmra.mxu1 %v4571_v38 }
 0x7d2   : > { %2905 = vmatprep.mubr.msk.bf16.mxu1 %vm706_vm2, %v4575_v39 }
 0x7d9   : > { %2037 = vmatmul.mubr.bf16.gmra.mxu1 %v4583_v41 }
 0x7da   : > { %2906 = vmatprep.mubr.msk.bf16.mxu1 %vm706_vm2, %v4587_v42 }
 0x7e1   : > { %2045 = vmatmul.mubr.bf16.gmra.mxu1 %v4592_v43 }
 0x841   : > { %v1950_v16 = vpop.f32.mrf.mxu1 }
 0x842   : > { %v1951_v61 = vadd.f32 %v4811_v3, %v1950_v16 }
 0x843   : > { %v1952_v5 = vpop.f32.mrf.mxu1 }
 0x844   : > { %3775 = vtanh.f32 %v1951_v61 }
 0x845   : > { %v1953_v62 = vpop.f32.mrf.mxu1 }
 0x846   : > { %v1954_v58 = vadd.f32 %v4811_v3, %v1953_v62 }
 0x847   : > { %v1955_v19 = vpop.f32.mrf.mxu1 }
 0x848   : > { %3777 = vtanh.f32 %v1954_v58 }
 0x849   : > { %v1958_v25 = vpop.f32.mrf.mxu1 }
 0x84a   : > { %v1959_v26 = vadd.f32 %v4811_v3, %v1958_v25 }
 0x84b   : > { %v1960_v27 = vpop.f32.mrf.mxu1 }
 0x84c   : > { %3779 = vtanh.f32 %v1959_v26 }
 0x84d   : > { %v1961_v28 = vpop.f32.mrf.mxu1 }
 0x84e   : > { %v1962_v29 = vadd.f32 %v4811_v3, %v1961_v28 }
 0x84f   : > { %v1963_v30 = vpop.f32.mrf.mxu1 }
 0x850   : > { %3781 = vtanh.f32 %v1962_v29 }
 0x851   : > { %v3776_v31 = vpop.eup %3775  ;;  %v1966_v32 = vpop.f32.mrf.mxu1 }
 0x852   : > { %2602 = vst.msk [vmem:[%s4822_s10] sm:$0xff] %vm2601_vm4, %v3776_v31  ;;  %v1967_v33 = vadd.f32 %v4811_v3, %v1966_v32 }
 0x853   : > { %v1968_v17 = vpop.f32.mrf.mxu1 }
 0x854   : > { %3783 = vtanh.f32 %v1967_v33 }
 0x855   : > { %v3778_v34 = vpop.eup %3777  ;;  %v1969_v35 = vpop.f32.mrf.mxu1 }
 0x856   : > { %2603 = vst.msk [vmem:[%s4822_s10 + $0x8] sm:$0xff] %vm2601_vm4, %v3778_v34  ;;  %v1970_v36 = vadd.f32 %v4811_v3, %v1969_v35  ;;  %v3494_v37 = vpack.i.bf16 %v3778_v34, %v3776_v31 }
 0x857   : > { %v1971_v38 = vpop.f32.mrf.mxu1 }
 0x858   : > { %3785 = vtanh.f32 %v1970_v36  ;;  %3495 = vrot.lane.b32.xlu0 %v3494_v37, %s3866_s28 }
 0x859   : > { %v3780_v39 = vpop.eup %3779  ;;  %v1974_v41 = vpop.f32.mrf.mxu1 }
 0x85a   : > { %2604 = vst.msk [vmem:[%s4822_s10 + $0x10] sm:$0xff] %vm2601_vm4, %v3780_v39  ;;  %v1975_v42 = vadd.f32 %v4811_v3, %v1974_v41 }
 0x85b   : > { %v1976_v43 = vpop.f32.mrf.mxu1 }
 0x85c   : > { %3787 = vtanh.f32 %v1975_v42 }
 0x85d   : > { %v3782_v15 = vpop.eup %3781  ;;  %v1977_v1 = vpop.f32.mrf.mxu1 }
 0x85e   : > { %2605 = vst.msk [vmem:[%s4822_s10 + $0x18] sm:$0xff] %vm2601_vm4, %v3782_v15  ;;  %v1978_v11 = vadd.f32 %v4811_v3, %v1977_v1  ;;  %v3499_v59 = vpack.i.bf16 %v3782_v15, %v3780_v39 }
 0x85f   : > { %v1979_v51 = vpop.f32.mrf.mxu1 }
 0x860   : > { %3789 = vtanh.f32 %v1978_v11  ;;  %3500 = vrot.lane.b32.xlu1 %v3499_v59, %s3866_s28 }
 0x861   : > { %v3784_v40 = vpop.eup %3783  ;;  %v1982_v53 = vpop.f32.mrf.mxu1 }
 0x862   : > { %2606 = vst.msk [vmem:[%s4822_s10 + $0x20] sm:$0xff] %vm2601_vm4, %v3784_v40  ;;  %v1983_v60 = vadd.f32 %v4811_v3, %v1982_v53 }
 0x863   : > { %v1984_v48 = vpop.f32.mrf.mxu1 }
 0x864   : > { %3791 = vtanh.f32 %v1983_v60 }
 0x865   : > { %v3786_v0 = vpop.eup %3785  ;;  %v1985_v21 = vpop.f32.mrf.mxu1 }
 0x866   : > { %2607 = vst.msk [vmem:[%s4822_s10 + $0x28] sm:$0xff] %vm2601_vm4, %v3786_v0  ;;  %v1986_v54 = vadd.f32 %v4811_v3, %v1985_v21  ;;  %v3504_v45 = vpack.i.bf16 %v3786_v0, %v3784_v40 }
 0x867   : > { %v1987_v8 = vpop.f32.mrf.mxu1 }
 0x868   : > { %3793 = vtanh.f32 %v1986_v54  ;;  %3505 = vrot.lane.b32.xlu0 %v3504_v45, %s3866_s28 }
 0x869   : > { %v3788_v7 = vpop.eup %3787  ;;  %v1990_v14 = vpop.f32.mrf.mxu1 }
 0x86a   : > { %2608 = vst.msk [vmem:[%s4822_s10 + $0x30] sm:$0xff] %vm2601_vm4, %v3788_v7  ;;  %v1991_v9 = vadd.f32 %v4811_v3, %v1990_v14 }
 0x86b   : > { %v1992_v18 = vpop.f32.mrf.mxu1 }
 0x86c   : > { %3795 = vtanh.f32 %v1991_v9 }
 0x86d   : > { %v3790_v10 = vpop.eup %3789  ;;  %v1993_v47 = vpop.f32.mrf.mxu1 }
 0x86e   : > { %2609 = vst.msk [vmem:[%s4822_s10 + $0x38] sm:$0xff] %vm2601_vm4, %v3790_v10  ;;  %v1994_v55 = vadd.f32 %v4811_v3, %v1993_v47  ;;  %v3509_v63 = vpack.i.bf16 %v3790_v10, %v3788_v7 }
 0x86f   : > { %v1995_v20 = vpop.f32.mrf.mxu1 }
 0x870   : > { %3797 = vtanh.f32 %v1994_v55  ;;  %3510 = vrot.lane.b32.xlu1 %v3509_v63, %s3866_s28 }
 0x871   : > { %v3792_v50 = vpop.eup %3791  ;;  %v1998_v44 = vpop.f32.mrf.mxu1 }
 0x872   : > { %2610 = vst.msk [vmem:[%s4822_s10 + $0x40] sm:$0xff] %vm2601_vm4, %v3792_v50  ;;  %v1999_v46 = vadd.f32 %v4811_v3, %v1998_v44 }
 0x873   : > { %v2000_v16 = vpop.f32.mrf.mxu1 }
 0x874   : > { %3799 = vtanh.f32 %v1999_v46 }
 0x875   : > { %v3794_v61 = vpop.eup %3793  ;;  %v2001_v5 = vpop.f32.mrf.mxu1 }
 0x876   : > { %2611 = vst.msk [vmem:[%s4822_s10 + $0x48] sm:$0xff] %vm2601_vm4, %v3794_v61  ;;  %v2002_v62 = vadd.f32 %v4811_v3, %v2001_v5  ;;  %v3514_v58 = vpack.i.bf16 %v3794_v61, %v3792_v50 }
 0x877   : > { %v2003_v19 = vpop.f32.mrf.mxu1 }
 0x878   : > { %3801 = vtanh.f32 %v2002_v62  ;;  %3515 = vrot.lane.b32.xlu0 %v3514_v58, %s3866_s28 }
 0x879   : > { %v3796_v25 = vpop.eup %3795  ;;  %v2006_v26 = vpop.f32.mrf.mxu1 }
 0x87a   : > { %2612 = vst.msk [vmem:[%s4822_s10 + $0x50] sm:$0xff] %vm2601_vm4, %v3796_v25  ;;  %v2007_v27 = vadd.f32 %v4811_v3, %v2006_v26 }
 0x87b   : > { %v2008_v28 = vpop.f32.mrf.mxu1 }
 0x87c   : > { %3803 = vtanh.f32 %v2007_v27 }
 0x87d   : > { %v3798_v29 = vpop.eup %3797  ;;  %v2009_v30 = vpop.f32.mrf.mxu1 }
 0x87e   : > { %2613 = vst.msk [vmem:[%s4822_s10 + $0x58] sm:$0xff] %vm2601_vm4, %v3798_v29  ;;  %v2010_v31 = vadd.f32 %v4811_v3, %v2009_v30  ;;  %v3519_v32 = vpack.i.bf16 %v3798_v29, %v3796_v25 }
 0x87f   : > { %v2011_v33 = vpop.f32.mrf.mxu1 }
 0x880   : > { %3805 = vtanh.f32 %v2010_v31  ;;  %3520 = vrot.lane.b32.xlu1 %v3519_v32, %s3866_s28  ;;  %v4911_v33 = vpop.permute.xlu0 %3485 }
 0x881   : > { %v3800_v17 = vpop.eup %3799  ;;  %v2014_v34 = vpop.f32.mrf.mxu1 }
 0x882   : > { %2614 = vst.msk [vmem:[%s4822_s10 + $0x60] sm:$0xff] %vm2601_vm4, %v3800_v17  ;;  %v2015_v35 = vadd.f32 %v4811_v3, %v2014_v34  ;;  %v3367_v34 = vunpack.i.l.bf16 %v4678_v24 }
 0x883   : > { %v2016_v36 = vpop.f32.mrf.mxu1 }
 0x884   : > { %3807 = vtanh.f32 %v2015_v35  ;;  %v3433_v35 = vunpack.i.h.bf16 %v4698_v52  ;;  %v3432_v36 = vunpack.i.l.bf16 %v4698_v52  ;;  %v4932_v52 = vpop.permute.xlu1 %3490 }
 0x885   : > { %v3802_v37 = vpop.eup %3801  ;;  %v2017_v38 = vpop.f32.mrf.mxu1 }
 0x886   : > { %2615 = vst.msk [vmem:[%s4822_s10 + $0x68] sm:$0xff] %vm2601_vm4, %v3802_v37  ;;  %v2018_v39 = vadd.f32 %v4811_v3, %v2017_v38  ;;  %v3524_v41 = vpack.i.bf16 %v3802_v37, %v3800_v17  ;;  %v3368_v17 = vunpack.i.h.bf16 %v4678_v24 }
 0x887   : > { %v2019_v42 = vpop.f32.mrf.mxu1 }
 0x888   : > { %3809 = vtanh.f32 %v2018_v39  ;;  %3525 = vrot.lane.b32.xlu0 %v3524_v41, %s3866_s28  ;;  %v2392_v38 = vsel %vm392_vm1, %v4167_v13, %v3368_v17  ;;  %v2391_v39 = vsel %vm392_vm1, %v4165_v12, %v3367_v34  ;;  %v3388_v17 = vunpack.i.h.bf16 %v4684_v22 }
 0x889   : > { %v3804_v43 = vpop.eup %3803  ;;  %v2022_v15 = vpop.f32.mrf.mxu1  ;;  %v3387_v34 = vunpack.i.l.bf16 %v4684_v22 }
 0x88a   : > { %2616 = vst.msk [vmem:[%s4822_s10 + $0x70] sm:$0xff] %vm2601_vm4, %v3804_v43  ;;  %v2023_v1 = vadd.f32 %v4811_v3, %v2022_v15  ;;  %v2418_v15 = vsel %vm2417_vm3, %v2391_v39, %v3432_v36  ;;  %v5134_v39 = vld [vmem:[#allocation8_spill] sm:$0xff] }
 0x88b   : > { %v2024_v11 = vpop.f32.mrf.mxu1 }
 0x88c   : > { %3811 = vtanh.f32 %v2023_v1  ;;  %v3373_v1 = vunpack.i.h.bf16 %v4680_v4  ;;  %v3372_v11 = vunpack.i.l.bf16 %v4680_v4 }
 0x88d   : > { %v3806_v59 = vpop.eup %3805  ;;  %v2025_v51 = vpop.f32.mrf.mxu1 }
 0x88e   : > { %2617 = vst.msk [vmem:[%s4822_s10 + $0x78] sm:$0xff] %vm2601_vm4, %v3806_v59  ;;  %v2026_v40 = vadd.f32 %v4811_v3, %v2025_v51  ;;  %v3529_v53 = vpack.i.bf16 %v3806_v59, %v3804_v43  ;;  %v2419_v43 = vsel %vm2417_vm3, %v2392_v38, %v3433_v35  ;;  %v3438_v59 = vunpack.i.h.bf16 %v4696_v57  ;;  %v5133_v35 = vld [vmem:[#allocation22_spill] sm:$0xff] }
 0x88f   : > { %v2027_v60 = vpop.f32.mrf.mxu1  ;;  %v3437_v51 = vunpack.i.l.bf16 %v4696_v57  ;;  %v3453_v36 = vunpack.i.h.bf16 %v5133_v35 }
 0x890   : > { %3813 = vtanh.f32 %v2026_v40  ;;  %3530 = vrot.lane.b32.xlu1 %v3529_v53, %s3866_s28  ;;  %v2394_v53 = vsel %vm392_vm1, %v4178_v49, %v3373_v1  ;;  %v5128_v60 = vld [vmem:[#allocation2_spill] sm:$0xff]  ;;  %v3443_v49 = vunpack.i.h.bf16 %v4702_v6 }
 0x891   : > { %v3808_v48 = vpop.eup %3807  ;;  %v2030_v0 = vpop.f32.mrf.mxu1 }
 0x892   : > { %2618 = vst.msk [vmem:[%s4822_s10 + $0x80] sm:$0xff] %vm2601_vm4, %v3808_v48  ;;  %v2031_v21 = vadd.f32 %v4811_v3, %v2030_v0 }
 0x893   : > { %v2032_v54 = vpop.f32.mrf.mxu1 }
 0x894   : > { %3815 = vtanh.f32 %v2031_v21  ;;  %v2421_v54 = vsel %vm2417_vm3, %v2394_v53, %v3438_v59  ;;  %v5136_v59 = vld [vmem:[#allocation18_spill] sm:$0xff]  ;;  %v5137_v53 = vld [vmem:[#allocation21_spill] sm:$0xff] }
 0x895   : > { %v3810_v45 = vpop.eup %3809  ;;  %v2033_v8 = vpop.f32.mrf.mxu1 }
 0x896   : > { %2619 = vst.msk [vmem:[%s4822_s10 + $0x88] sm:$0xff] %vm2601_vm4, %v3810_v45  ;;  %v2034_v7 = vadd.f32 %v4811_v3, %v2033_v8  ;;  %v3534_v14 = vpack.i.bf16 %v3810_v45, %v3808_v48  ;;  %v2393_v48 = vsel %vm392_vm1, %v5128_v60, %v3372_v11  ;;  %v3458_v60 = vunpack.i.h.bf16 %v5137_v53 }
 0x897   : > { %v2035_v9 = vpop.f32.mrf.mxu1  ;;  %v2420_v45 = vsel %vm2417_vm3, %v2393_v48, %v3437_v51  ;;  %v3393_v51 = vunpack.i.h.bf16 %v5136_v59  ;;  %v3457_v48 = vunpack.i.l.bf16 %v5137_v53  ;;  %v5151_v53 = vld [vmem:[#allocation31_spill] sm:$0xff] }
 0x898   : > { %3817 = vtanh.f32 %v2034_v7  ;;  %3535 = vrot.lane.b32.xlu0 %v3534_v14, %s3866_s28  ;;  %v3378_v7 = vunpack.i.h.bf16 %v4682_v56  ;;  %v3377_v14 = vunpack.i.l.bf16 %v4682_v56  ;;  %v3442_v9 = vunpack.i.l.bf16 %v4702_v6 }
 0x899   : > { %v3812_v18 = vpop.eup %3811  ;;  %v2038_v10 = vpop.f32.mrf.mxu1 }
 0x89a   : > { %2620 = vst.msk [vmem:[%s4822_s10 + $0x90] sm:$0xff] %vm2601_vm4, %v3812_v18  ;;  %v2039_v47 = vadd.f32 %v4811_v3, %v2038_v10  ;;  %v5129_v10 = vld [vmem:[#allocation4_spill] sm:$0xff] }
 0x89b   : > { %v2040_v55 = vpop.f32.mrf.mxu1 }
 0x89c   : > { %3819 = vtanh.f32 %v2039_v47  ;;  %v2396_v47 = vsel %vm392_vm1, %v5129_v10, %v3378_v7  ;;  %v5130_v55 = vld [vmem:[#allocation3_spill] sm:$0xff]  ;;  %v5140_v10 = vld [vmem:[#allocation17_spill] sm:$0xff] }
 0x89d   : > { %v3814_v63 = vpop.eup %3813  ;;  %v2041_v20 = vpop.f32.mrf.mxu1 }
 0x89e   : > { %2621 = vst.msk [vmem:[%s4822_s10 + $0x98] sm:$0xff] %vm2601_vm4, %v3814_v63  ;;  %v2042_v50 = vadd.f32 %v4811_v3, %v2041_v20  ;;  %v3539_v44 = vpack.i.bf16 %v3814_v63, %v3812_v18  ;;  %v2395_v63 = vsel %vm392_vm1, %v5130_v55, %v3377_v14  ;;  %v3397_v55 = vunpack.i.l.bf16 %v5140_v10 }
 0x89f   : > { %v2043_v46 = vpop.f32.mrf.mxu1 }
 0x8a0   : > { %3821 = vtanh.f32 %v2042_v50  ;;  %3540 = vrot.lane.b32.xlu1 %v3539_v44, %s3866_s28  ;;  %v2423_v44 = vsel %vm2417_vm3, %v2396_v47, %v3443_v49  ;;  %v2422_v46 = vsel %vm2417_vm3, %v2395_v63, %v3442_v9  ;;  %v3398_v47 = vunpack.i.h.bf16 %v5140_v10  ;;  %v5141_v63 = vld [vmem:[#allocation25_spill] sm:$0xff] }
 0x8a1   : > { %v3816_v16 = vpop.eup %3815  ;;  %v2046_v61 = vpop.f32.mrf.mxu1 }
 0x8a2   : > { %2622 = vst.msk [vmem:[%s4822_s10 + $0xa0] sm:$0xff] %vm2601_vm4, %v3816_v16  ;;  %v2047_v5 = vadd.f32 %v4811_v3, %v2046_v61  ;;  %v3383_v61 = vunpack.i.h.bf16 %v4686_v23 }
 0x8a3   : > { %v2048_v62 = vpop.f32.mrf.mxu1 }
 0x8a4   : > { %3823 = vtanh.f32 %v2047_v5  ;;  %v3382_v5 = vunpack.i.l.bf16 %v4686_v23  ;;  %v3448_v62 = vunpack.i.h.bf16 %v4700_v2 }
 0x8a5   : > { %v3818_v58 = vpop.eup %3817  ;;  %v2049_v19 = vpop.f32.mrf.mxu1 }
 0x8a6   : > { %2623 = vst.msk [vmem:[%s4822_s10 + $0xa8] sm:$0xff] %vm2601_vm4, %v3818_v58  ;;  %v2050_v25 = vadd.f32 %v4811_v3, %v2049_v19  ;;  %v3544_v26 = vpack.i.bf16 %v3818_v58, %v3816_v16  ;;  %v3447_v58 = vunpack.i.l.bf16 %v4700_v2 }
 0x8a7   : > { %v2051_v27 = vpop.f32.mrf.mxu1 }
 0x8a8   : > { %3825 = vtanh.f32 %v2050_v25  ;;  %3545 = vrot.lane.b32.xlu0 %v3544_v26, %s3866_s28  ;;  %v5131_v25 = vld [vmem:[#allocation6_spill] sm:$0xff]  ;;  %v5132_v27 = vld [vmem:[#allocation5_spill] sm:$0xff] }
 0x8a9   : > { %v3820_v28 = vpop.eup %3819  ;;  %v2398_v26 = vsel %vm392_vm1, %v5131_v25, %v3383_v61 }
 0x8aa   : > { %2624 = vst.msk [vmem:[%s4822_s10 + $0xb0] sm:$0xff] %vm2601_vm4, %v3820_v28 }
 0x8ad   : > { %v3822_v29 = vpop.eup %3821 }
 0x8ae   : > { %2625 = vst.msk [vmem:[%s4822_s10 + $0xb8] sm:$0xff] %vm2601_vm4, %v3822_v29  ;;  %v3549_v30 = vpack.i.bf16 %v3822_v29, %v3820_v28  ;;  %v2397_v28 = vsel %vm392_vm1, %v5132_v27, %v3382_v5 }
 0x8b0   : > { %3550 = vrot.lane.b32.xlu1 %v3549_v30, %s3866_s28 }
 0x8b1   : > { %v3824_v31 = vpop.eup %3823 }
 0x8b2   : > { %2626 = vst.msk [vmem:[%s4822_s10 + $0xc0] sm:$0xff] %vm2601_vm4, %v3824_v31 }
 0x8b5   : > { %v3826_v32 = vpop.eup %3825 }
 0x8b6   : > { %2627 = vst.msk [vmem:[%s4822_s10 + $0xc8] sm:$0xff] %vm2601_vm4, %v3826_v32  ;;  %v3554_v3 = vpack.i.bf16 %v3826_v32, %v3824_v31  ;;  %v2425_v31 = vsel %vm2417_vm3, %v2398_v26, %v3448_v62  ;;  %v2424_v32 = vsel %vm2417_vm3, %v2397_v28, %v3447_v58 }
 0x8b8   : > { %3555 = vrot.lane.b32.xlu0 %v3554_v3, %s3866_s28 }
 0x8ca   : > { %v3496_v37 = vpop.permute.xlu0 %3495 }
 0x8cb   : > { %v3498_v41 = vunpack.i.h.bf16 %v3496_v37  ;;  %v3497_v42 = vunpack.i.l.bf16 %v3496_v37  ;;  %v3452_v37 = vunpack.i.l.bf16 %v5133_v35  ;;  %v5146_v35 = vld [vmem:[#allocation26_spill] sm:$0xff] }
 0x8cd   : > { %v2446_v24 = vsel %vm2444_vm5, %v2419_v43, %v3498_v41  ;;  %v2445_v13 = vsel %vm2444_vm5, %v2418_v15, %v3497_v42  ;;  %v2400_v41 = vsel %vm392_vm1, %v5134_v39, %v3388_v17  ;;  %v5135_v42 = vld [vmem:[#allocation7_spill] sm:$0xff] }
 0x8ce   : > { %v2964_v12 = vpack.c.bf16 %v2446_v24, %v2445_v13  ;;  %v2399_v43 = vsel %vm392_vm1, %v5135_v42, %v3387_v34  ;;  %v2427_v13 = vsel %vm2417_vm3, %v2400_v41, %v3453_v36 }
 0x8d0   : > { %2965 = vst [vmem:[%s4928_s13] sm:$0xff] %v2964_v12   ;;  %v2426_v12 = vsel %vm2417_vm3, %v2399_v43, %v3452_v37  ;;  %v5147_v37 = vld [vmem:[#allocation27_spill] sm:$0xff] }
 0x8d2   : > { %v3501_v40 = vpop.permute.xlu1 %3500 }
 0x8d3   : > { %v3503_v0 = vunpack.i.h.bf16 %v3501_v40  ;;  %v3502_v21 = vunpack.i.l.bf16 %v3501_v40  ;;  %v3392_v40 = vunpack.i.l.bf16 %v5136_v59 }
 0x8d5   : > { %v2448_v4 = vsel %vm2444_vm5, %v2421_v54, %v3503_v0  ;;  %v2447_v8 = vsel %vm2444_vm5, %v2420_v45, %v3502_v21  ;;  %v5138_v21 = vld [vmem:[#allocation10_spill] sm:$0xff]  ;;  %v5139_v45 = vld [vmem:[#allocation9_spill] sm:$0xff] }
 0x8d6   : > { %v2969_v57 = vpack.c.bf16 %v2448_v4, %v2447_v8  ;;  %v2402_v54 = vsel %vm392_vm1, %v5138_v21, %v3393_v51  ;;  %v2401_v4 = vsel %vm392_vm1, %v5139_v45, %v3392_v40  ;;  %v5150_v51 = vld [vmem:[#allocation30_spill] sm:$0xff]  ;;  %v3488_v45 = vunpack.i.h.bf16 %v4911_v33 }
 0x8d7   : > { %v2429_v7 = vsel %vm2417_vm3, %v2402_v54, %v3458_v60  ;;  %v2428_v14 = vsel %vm2417_vm3, %v2401_v4, %v3457_v48  ;;  %v3487_v4 = vunpack.i.l.bf16 %v4911_v33 }
 0x8d8   : > { %3026 = vst [vmem:[%s4928_s13 + $0x8] sm:$0xff] %v2969_v57  }
 0x8da   : > { %v3506_v18 = vpop.permute.xlu0 %3505 }
 0x8db   : > { %v3508_v20 = vunpack.i.h.bf16 %v3506_v18  ;;  %v3507_v50 = vunpack.i.l.bf16 %v3506_v18 }
 0x8dd   : > { %v2450_v56 = vsel %vm2444_vm5, %v2423_v44, %v3508_v20  ;;  %v2449_v16 = vsel %vm2444_vm5, %v2422_v46, %v3507_v50  ;;  %v3463_v20 = vunpack.i.h.bf16 %v5141_v63  ;;  %v3462_v50 = vunpack.i.l.bf16 %v5141_v63  ;;  %v5142_v46 = vld [vmem:[#allocation12_spill] sm:$0xff] }
 0x8de   : > { %v2974_v6 = vpack.c.bf16 %v2450_v56, %v2449_v16  ;;  %v2404_v56 = vsel %vm392_vm1, %v5142_v46, %v3398_v47  ;;  %v5143_v16 = vld [vmem:[#allocation11_spill] sm:$0xff]  ;;  %v3493_v46 = vunpack.i.h.bf16 %v4932_v52 }
 0x8df   : > { %v2431_v62 = vsel %vm2417_vm3, %v2404_v56, %v3463_v20  ;;  %v5155_v20 = vld [vmem:[#allocation19_spill] sm:$0xff]  ;;  %v3492_v56 = vunpack.i.l.bf16 %v4932_v52 }
 0x8e0   : > { %3027 = vst [vmem:[%s4928_s13 + $0x10] sm:$0xff] %v2974_v6   ;;  %v2403_v6 = vsel %vm392_vm1, %v5143_v16, %v3397_v55 }
 0x8e1   : > { %v2430_v58 = vsel %vm2417_vm3, %v2403_v6, %v3462_v50  ;;  %v3428_v50 = vunpack.i.h.bf16 %v5155_v20  ;;  %v5156_v6 = vld [vmem:[#allocation16_spill] sm:$0xff] }
 0x8e2   : > { %v3511_v19 = vpop.permute.xlu1 %3510 }
 0x8e3   : > { %v3513_v29 = vunpack.i.h.bf16 %v3511_v19  ;;  %v3512_v30 = vunpack.i.l.bf16 %v3511_v19 }
 0x8e5   : > { %v2452_v23 = vsel %vm2444_vm5, %v2425_v31, %v3513_v29  ;;  %v2451_v3 = vsel %vm2444_vm5, %v2424_v32, %v3512_v30  ;;  %v5144_v30 = vld [vmem:[#allocation23_spill] sm:$0xff]  ;;  %v5145_v32 = vld [vmem:[#allocation24_spill] sm:$0xff] }
 0x8e6   : > { %v2979_v2 = vpack.c.bf16 %v2452_v23, %v2451_v3 }
 0x8e8   : > { %3028 = vst [vmem:[%s4928_s13 + $0x18] sm:$0xff] %v2979_v2  }
 0x8ea   : > { %v3516_v38 = vpop.permute.xlu0 %3515 }
 0x8eb   : > { %v3518_v15 = vunpack.i.h.bf16 %v3516_v38  ;;  %v3517_v24 = vunpack.i.l.bf16 %v3516_v38 }
 0x8ed   : > { %v2454_v22 = vsel %vm2444_vm5, %v2427_v13, %v3518_v15  ;;  %v2453_v1 = vsel %vm2444_vm5, %v2426_v12, %v3517_v24  ;;  %v5148_v15 = vld [vmem:[#allocation28_spill] sm:$0xff]  ;;  %v5149_v13 = vld [vmem:[#allocation29_spill] sm:$0xff] }
 0x8ee   : > { %v2984_v11 = vpack.c.bf16 %v2454_v22, %v2453_v1 }
 0x8f0   : > { %3029 = vst [vmem:[%s4928_s13 + $0x20] sm:$0xff] %v2984_v11  }
 0x8f2   : > { %v3521_v0 = vpop.permute.xlu1 %3520 }
 0x8f3   : > { %v3523_v8 = vunpack.i.h.bf16 %v3521_v0  ;;  %v3522_v57 = vunpack.i.l.bf16 %v3521_v0  ;;  %v5152_v0 = vld [vmem:[#allocation20_spill] sm:$0xff] }
 0x8f4   : > { %v3423_v21 = vunpack.i.h.bf16 %v5152_v0  ;;  %v3422_v54 = vunpack.i.l.bf16 %v5152_v0 }
 0x8f5   : > { %v2456_v49 = vsel %vm2444_vm5, %v2429_v7, %v3523_v8  ;;  %v2455_v9 = vsel %vm2444_vm5, %v2428_v14, %v3522_v57  ;;  %v5153_v57 = vld [vmem:[#allocation14_spill] sm:$0xff]  ;;  %v5154_v14 = vld [vmem:[#allocation13_spill] sm:$0xff] }
 0x8f6   : > { %v2989_v18 = vpack.c.bf16 %v2456_v49, %v2455_v9  ;;  %v2414_v7 = vsel %vm392_vm1, %v5153_v57, %v3423_v21  ;;  %v2413_v49 = vsel %vm392_vm1, %v5154_v14, %v3422_v54 }
 0x8f7   : > { %v2441_v10 = vsel %vm2417_vm3, %v2414_v7, %v3488_v45  ;;  %v2440_v47 = vsel %vm2417_vm3, %v2413_v49, %v3487_v4 }
 0x8f8   : > { %3030 = vst [vmem:[%s4928_s13 + $0x28] sm:$0xff] %v2989_v18  }
 0x8fa   : > { %v3526_v44 = vpop.permute.xlu0 %3525 }
 0x8fb   : > { %v3528_v61 = vunpack.i.h.bf16 %v3526_v44  ;;  %v3527_v5 = vunpack.i.l.bf16 %v3526_v44  ;;  %v3427_v44 = vunpack.i.l.bf16 %v5155_v20 }
 0x8fd   : > { %v2458_v19 = vsel %vm2444_vm5, %v2431_v62, %v3528_v61  ;;  %v2457_v25 = vsel %vm2444_vm5, %v2430_v58, %v3527_v5  ;;  %v2416_v61 = vsel %vm392_vm1, %v5156_v6, %v3428_v50  ;;  %v5157_v5 = vld [vmem:[#allocation15_spill] sm:$0xff] }
 0x8fe   : > { %v2994_v26 = vpack.c.bf16 %v2458_v19, %v2457_v25  ;;  %v2415_v62 = vsel %vm392_vm1, %v5157_v5, %v3427_v44  ;;  %v2443_v25 = vsel %vm2417_vm3, %v2416_v61, %v3493_v46 }
 0x900   : > { %3031 = vst [vmem:[%s4928_s13 + $0x30] sm:$0xff] %v2994_v26   ;;  %v2442_v26 = vsel %vm2417_vm3, %v2415_v62, %v3492_v56 }
 0x902   : > { %v3531_v27 = vpop.permute.xlu1 %3530 }
 0x903   : > { %v3533_v28 = vunpack.i.h.bf16 %v3531_v27  ;;  %v3532_v29 = vunpack.i.l.bf16 %v3531_v27 }
 0x905   : > { %v2460_v31 = vsel %vm2444_vm5, %v5144_v30, %v3533_v28  ;;  %v2459_v23 = vsel %vm2444_vm5, %v5145_v32, %v3532_v29 }
 0x906   : > { %v2999_v3 = vpack.c.bf16 %v2460_v31, %v2459_v23 }
 0x908   : > { %3032 = vst [vmem:[%s4928_s13 + $0x38] sm:$0xff] %v2999_v3  }
 0x90a   : > { %v3536_v2 = vpop.permute.xlu0 %3535 }
 0x90b   : > { %v3538_v17 = vunpack.i.h.bf16 %v3536_v2  ;;  %v3537_v34 = vunpack.i.l.bf16 %v3536_v2 }
 0x90d   : > { %v2462_v36 = vsel %vm2444_vm5, %v5146_v35, %v3538_v17  ;;  %v2461_v38 = vsel %vm2444_vm5, %v5147_v37, %v3537_v34 }
 0x90e   : > { %v3004_v39 = vpack.c.bf16 %v2462_v36, %v2461_v38 }
 0x910   : > { %3033 = vst [vmem:[%s4928_s13 + $0x40] sm:$0xff] %v3004_v39  }
 0x912   : > { %v3541_v41 = vpop.permute.xlu1 %3540 }
 0x913   : > { %v3543_v42 = vunpack.i.h.bf16 %v3541_v41  ;;  %v3542_v43 = vunpack.i.l.bf16 %v3541_v41 }
 0x915   : > { %v2464_v24 = vsel %vm2444_vm5, %v5148_v15, %v3543_v42  ;;  %v2463_v12 = vsel %vm2444_vm5, %v5149_v13, %v3542_v43 }
 0x916   : > { %v3009_v22 = vpack.c.bf16 %v2464_v24, %v2463_v12 }
 0x918   : > { %3034 = vst [vmem:[%s4928_s13 + $0x48] sm:$0xff] %v3009_v22  }
 0x91a   : > { %v3546_v1 = vpop.permute.xlu0 %3545 }
 0x91b   : > { %v3548_v11 = vunpack.i.h.bf16 %v3546_v1  ;;  %v3547_v59 = vunpack.i.l.bf16 %v3546_v1 }
 0x91d   : > { %v2466_v40 = vsel %vm2444_vm5, %v5150_v51, %v3548_v11  ;;  %v2465_v60 = vsel %vm2444_vm5, %v5151_v53, %v3547_v59 }
 0x91e   : > { %v3014_v48 = vpack.c.bf16 %v2466_v40, %v2465_v60 }
 0x920   : > { %3035 = vst [vmem:[%s4928_s13 + $0x50] sm:$0xff] %v3014_v48  }
 0x922   : > { %v3551_v8 = vpop.permute.xlu1 %3550 }
 0x923   : > { %v3553_v9 = vunpack.i.h.bf16 %v3551_v8  ;;  %v3552_v18 = vunpack.i.l.bf16 %v3551_v8 }
 0x925   : > { %v2468_v55 = vsel %vm2444_vm5, %v2441_v10, %v3553_v9  ;;  %v2467_v63 = vsel %vm2444_vm5, %v2440_v47, %v3552_v18 }
 0x926   : > { %v3019_v33 = vpack.c.bf16 %v2468_v55, %v2467_v63 }
 0x928   : > { %3036 = vst [vmem:[%s4928_s13 + $0x58] sm:$0xff] %v3019_v33  }
 0x92a   : > { %v3556_v16 = vpop.permute.xlu0 %3555 }
 0x92b   : > { %v3558_v58 = vunpack.i.h.bf16 %v3556_v16  ;;  %v3557_v19 = vunpack.i.l.bf16 %v3556_v16 }
 0x92d   : > { %v2470_v27 = vsel %vm2444_vm5, %v2443_v25, %v3558_v58  ;;  %v2469_v28 = vsel %vm2444_vm5, %v2442_v26, %v3557_v19 }
 0x92e   : > { %v3024_v29 = vpack.c.bf16 %v2470_v27, %v2469_v28 }
 0x930   : > { %3037 = vst [vmem:[%s4928_s13 + $0x60] sm:$0xff] %v3024_v29  }
 0x931 PF: > { %s16_s18 = sadd.s32 1, %s3859_s18  }
 0x932   : > { %p13_p4 = scmp.ge.s32.totalorder %s16_s18, 4  }
 0x934   :  { %15 = sbr.rel (!%p13_p4) target bundleno = 1 (0x1), region = 87 }

// kernel: sortpool_forward.3
= control target key start
LH: loop header
LB: loop body
LE: loop exit
PB: predicated region body
PF: predicated region fallthrough
CT: control target
= control target key end

     0   :  { %s13587_s0 = inlined_call_operand.vmem [shape: bf16[2,208,128], index: 0, kind: input, shape index: {}]   ;;  %s13588_s1 = inlined_call_operand.vmem [shape: s32[2,104,2], index: 1, kind: input, shape index: {}]   ;;  %s13589_s2 = inlined_call_operand.vmem [shape: bf16[128,16], index: 2, kind: input, shape index: {}]   ;;  %s13590_s3 = inlined_call_operand.vmem [shape: f32[1,16], index: 3, kind: input, shape index: {}]   ;;  %s13591_s4 = inlined_call_operand.vmem [shape: bf16[5,16,32], index: 4, kind: input, shape index: {}]   ;;  %s13592_s5 = inlined_call_operand.vmem [shape: f32[1,32], index: 5, kind: input, shape index: {}]   ;;  %s13593_s6 = inlined_call_operand.vmem [shape: bf16[32,3136], index: 6, kind: input, shape index: {}]   ;;  %s13594_s7 = inlined_call_operand.vmem [shape: f32[3136,32], index: 7, kind: input, shape index: {}]   ;;  %s13595_s8 = inlined_call_operand.vmem [shape: f32[1,32], index: 8, kind: input, shape index: {}]   ;;  %s13596_s9 = inlined_call_operand.vmem [shape: f32[32,4], index: 9, kind: input, shape index: {}]   ;;  %s13597_s10 = inlined_call_operand.vmem [shape: f32[1,4], index: 10, kind: input, shape index: {}]   ;;  %s13598_s11 = inlined_call_operand.hbm [shape: f32[2,1,4], index: 11, kind: output, shape index: {}]  }
   0x1   :  { %13611 = sst [smem:[#allocation13_spill]] %s13587_s0 }
   0x2   :  { %16 = vsyncpa [#allocation3], 0 }
   0x3   :  { %18 = vsyncpa [#allocation3 + $0x1], 0  ;;  %s8881_s17 = smov 0   ;;  %s8883_s18 = smov 0  }
   0x4   :  { %s8885_s19 = smov 0   ;;  %s8887_s20 = smov 0  }
   0x5 LB: > { %s8902_s21 = sadd.s32 4294967295, %s8813_s20   ;;  %s7080_s22 = sadd.s32 4294967294, %s8813_s20   ;;  %s8813_s20 = sphi %s8887_s20, %s13679_s20   ;;  %s8809_s19 = sphi %s8885_s19, %s13678_s19   ;;  %s8805_s18 = sphi %s8883_s18, %s13677_s18   ;;  %s8801_s17 = sphi %s8881_s17, %s13676_s17  }
   0x6   : > { %s8906_s23 = sadd.s32 1, %s8813_s20   ;;  %s272_s24 = sadd.s32 1, %s8809_s19 }
   0x7   : > { %s269_s25 = ssub.s32 %s8813_s20, %s8906_s23  ;;  %p282_p0 = scmp.ne.s32.totalorder %s8809_s19, %s8805_s18 }
   0x8   : > { %p270_p1 = scmp.eq.s32.totalorder %s269_s25, 0  ;;  %p283_p2 = scmp.eq.s32.totalorder %s8902_s21, 1 }
   0x9   : > { %p288_p3 = scmp.ne.s32.totalorder %s8805_s18, %s8801_s17  ;;  %p289_p4 = scmp.eq.s32.totalorder %s7080_s22, 1 }
   0xa   : > { %s8917_s26 = scalar_select %p270_p1, %s8809_s19, %s272_s24  }
   0xb   : > { %p8919_p5 = por %p283_p2, %p282_p0  ;;  %p8923_p6 = por %p289_p4, %p288_p3 }
   0xc   : > { %p7083_p7 = scmp.ge.s32.totalorder %s8813_s20, 1  ;;  %p350_p8 = scmp.lt.s32.totalorder %s8813_s20, 3 }
   0xe   : > { %p351_p9 = pnand %p7083_p7, %p350_p8 }
  0x10   : > { %354 = sbr.rel (%p351_p9) target bundleno = 2282 (0x8ea), region = 64 }
  0x15   : > { %p394_p10 = scmp.lt.s32.totalorder %s8902_s21, 1  ;;  %v8815_v0 = vmov 1   ;;  %v8816_v1 = vmov 0   ;;  %s13614_s0 = sld [smem:[#allocation13_spill]]  ;;  %v13599_v28 = vmov 0.0   ;;  %v431_v29 = vlaneseq  ;;  %v8666_v39 = vld [vmem:[%s13589_s2 + $0x38] sm:$0xff]  }
  0x16   : > { %8636 = vset.pattern.permute.xlu1 %v8815_v0  ;;  %8635 = vset.pattern.permute.xlu0 %v8816_v1  ;;  %vm787_vm3 = vcmask 654336   ;;  %v8818_v42 = vmov 1.0|1.0   ;;  %v8667_v45 = vld [vmem:[%s13589_s2 + $0x30] sm:$0xff]   ;;  %v8668_v55 = vld [vmem:[%s13589_s2 + $0x28] sm:$0xff]   ;;  %v8669_v60 = vld [vmem:[%s13589_s2 + $0x20] sm:$0xff]  }
  0x17   : > { %s395_s29 = scalar_select %p394_p10, %s8902_s21, 1  ;;  %918 = vmatprep.subr.bf16.mxu1 %v8816_v1  ;;  %809 = vmatprep.subr.bf16.mxu0 %v8816_v1  ;;  %v9014_v30 = vand.u32 127, %v431_v29 }
  0x18   : > { %s392_s12 = sand.u32 1, %s8805_s18   ;;  %s7494_s15 = sshll.u32 %s8902_s21, 4 }
  0x19   : > { %s8590_s30 = smul.u32 104, %s395_s29  ;;  %13615 = vst [vmem:[#allocation5_spill] sm:$0xff] %v9014_v30  ;;  %v9017_v31 = vadd.s32 128, %v9014_v30  ;;  %s393_s16 = scalar_lea.vmem [#allocation2], %s392_s12 }
  0x1a   : > { %s13552_s29 = scalar_lea.hbm %s13598_s11, %s7494_s15  ;;  %s8820_s21 = smov [#allocation2]  }
  0x1b   : > { %s8938_s14 = scalar_lea.vmem %s13588_s1, %s8590_s30  ;;  %s8944_s22 = scalar_lea.vmem %s13614_s0, %s8590_s30 }
  0x1c   : > { %v434_v2 = vld [vmem:[%s8938_s14] sm:$0xff]  ;;  %v435_v3 = vld [vmem:[%s8938_s14 + $0x8] sm:$0xff]  ;;  %v436_v4 = vld [vmem:[%s8938_s14 + $0x10] sm:$0xff]  ;;  %s7001_s30 = scalar_lea.sflag [#allocation3], %s392_s12  ;;  %s8757_s13 = sshll.u32 %s8820_s21, 4  ;;  %s8758_s13 = int_to_ptr.vmem [resolvable:$false] %s8757_s13 }
  0x1d   : > { %579 = vperm.xlu1 %8636, %v434_v2   ;;  %448 = vperm.xlu0 %8635, %v434_v2   ;;  %v8653_v5 = vld [vmem:[%s8944_s22 + $0x38] sm:$0xff]   ;;  %v8654_v7 = vld [vmem:[%s8944_s22 + $0x30] sm:$0xff]   ;;  %v8655_v8 = vld [vmem:[%s8944_s22 + $0x28] sm:$0xff]  }
  0x1e   : > { %v437_v6 = vld [vmem:[%s8938_s14 + $0x18] sm:$0xff]  ;;  %919 = vmatpush1.bf16.msra.mxu1 %v8653_v5  ;;  %810 = vmatpush1.bf16.msra.mxu0 %v8653_v5  ;;  %v439_v9 = vld [vmem:[%s8938_s14 + $0x28] sm:$0xff]  ;;  %v8656_v10 = vld [vmem:[%s8944_s22 + $0x20] sm:$0xff]  }
  0x1f   : > { %920 = vmatprep.subr.bf16.mxu1 %v8816_v1  ;;  %811 = vmatprep.subr.bf16.mxu0 %v8816_v1  ;;  %v438_v11 = vld [vmem:[%s8938_s14 + $0x20] sm:$0xff]  ;;  %v440_v12 = vld [vmem:[%s8938_s14 + $0x30] sm:$0xff]  ;;  %v8657_v13 = vld [vmem:[%s8944_s22 + $0x18] sm:$0xff]  }
  0x20   : > { %v8658_v14 = vld [vmem:[%s8944_s22 + $0x10] sm:$0xff]   ;;  %v443_v15 = vld [vmem:[%s8938_s14 + $0x48] sm:$0xff]  ;;  %v441_v17 = vld [vmem:[%s8938_s14 + $0x38] sm:$0xff] }
  0x21   : > { %582 = vperm.xlu1 %8636, %v435_v3   ;;  %8638 = vset.pattern.permute.xlu0 %v8815_v0  ;;  %v8659_v16 = vld [vmem:[%s8944_s22 + $0x8] sm:$0xff]   ;;  %v444_v18 = vld [vmem:[%s8938_s14 + $0x50] sm:$0xff]  ;;  %v8660_v19 = vld [vmem:[%s8944_s22] sm:$0xff]  }
  0x22   : > { %585 = vperm.xlu0 %8638, %v436_v4   ;;  %921 = vmatpush1.bf16.msra.mxu1 %v8654_v7  ;;  %v8661_v20 = vld [vmem:[%s8944_s22 + $0x60] sm:$0xff]   ;;  %v8662_v22 = vld [vmem:[%s8944_s22 + $0x58] sm:$0xff]   ;;  %v8663_v24 = vld [vmem:[%s8944_s22 + $0x50] sm:$0xff]  }
  0x23   : > { %922 = vmatprep.subr.bf16.mxu1 %v8816_v1  ;;  %812 = vmatpush1.bf16.msra.mxu0 %v8654_v7  ;;  %v442_v21 = vld [vmem:[%s8938_s14 + $0x40] sm:$0xff]  ;;  %v8664_v25 = vld [vmem:[%s8944_s22 + $0x48] sm:$0xff]   ;;  %v445_v27 = vld [vmem:[%s8938_s14 + $0x58] sm:$0xff] }
  0x24   : > { %813 = vmatprep.subr.bf16.mxu0 %v8816_v1  ;;  %v446_v23 = vld [vmem:[%s8938_s14 + $0x60] sm:$0xff]  ;;  %s8759_s14 = scalar_lea.vmem %s8758_s13, 32 }
  0x25   : > { %8637 = vset.pattern.permute.xlu1 %v8816_v1  ;;  %v8665_v26 = vld [vmem:[%s8944_s22 + $0x40] sm:$0xff]   ;;  %s7013_s22 = sshll.u32 %s393_s16, 4  ;;  %s7014_s22 = int_to_ptr.vmem [resolvable:$true] %s7013_s22 }
  0x26   : > { %457 = vperm.xlu1 %8637, %v437_v6   ;;  %8639 = vset.pattern.permute.xlu0 %v8816_v1  ;;  %s8753_s0 = scalar_lea.vmem %s7014_s22, 16  ;;  %p8760_p0 = scmp.lt.s32.totalorder %s7014_s22, %s8758_s13 }
  0x27   : > { %451 = vperm.xlu0 %8639, %v435_v3   ;;  %923 = vmatpush1.bf16.msra.mxu1 %v8655_v8  ;;  %p8754_p11 = scmp.ne.s32.totalorder %s7014_s22, %s8753_s0  ;;  %p8761_p1 = scmp.lt.s32.totalorder %s8759_s14, %s8753_s0 }
  0x28   : > { %814 = vmatpush1.bf16.msra.mxu0 %v8655_v8  ;;  %924 = vmatprep.subr.bf16.mxu1 %v8816_v1 }
  0x29   : > { %815 = vmatprep.subr.bf16.mxu0 %v8816_v1  ;;  %p8755_p12 = pnand %p8754_p11, %p8919_p5  ;;  %p8762_p2 = por %p8761_p1, %p8760_p0 }
  0x2a   : > { %8640 = vset.pattern.permute.xlu1 %v8815_v0 }
  0x2b   : > { %588 = vperm.xlu1 %8640, %v437_v6   ;;  %454 = vperm.xlu0 %8639, %v436_v4   ;;  %v8671_v4 = vld [vmem:[%s13589_s2 + $0x10] sm:$0xff]   ;;  %p8756_p13 = pneg %p8755_p12 }
  0x2c   : > { %925 = vmatpush1.bf16.msra.mxu1 %v8656_v10  ;;  %816 = vmatpush1.bf16.msra.mxu0 %v8656_v10 }
  0x2d   : > { %926 = vmatprep.subr.bf16.mxu1 %v8816_v1  ;;  %817 = vmatprep.subr.bf16.mxu0 %v8816_v1  ;;  %p8763_p3 = pnand %p8762_p2, %p8756_p13 }
  0x2f   : > { %8641 = vset.pattern.permute.xlu1 %v8816_v1  ;;  %463 = vperm.xlu0 %8639, %v439_v9  }
  0x30   : > { %460 = vperm.xlu1 %8641, %v438_v11   ;;  %927 = vmatpush1.bf16.msra.mxu1 %v8657_v13 }
  0x31   : > { %928 = vmatprep.subr.bf16.mxu1 %v8816_v1  ;;  %818 = vmatpush1.bf16.msra.mxu0 %v8657_v13 }
  0x32   : > { %819 = vmatprep.subr.bf16.mxu0 %v8816_v1 }
  0x33   : > { %8644 = vset.pattern.permute.xlu0 %v8815_v0 }
  0x34   : > { %8642 = vset.pattern.permute.xlu1 %v8815_v0  ;;  %597 = vperm.xlu0 %8644, %v440_v12  }
  0x35   : > { %591 = vperm.xlu1 %8642, %v438_v11   ;;  %929 = vmatpush1.bf16.msra.mxu1 %v8658_v14 }
  0x36   : > { %820 = vmatpush1.bf16.msra.mxu0 %v8658_v14  ;;  %930 = vmatprep.subr.bf16.mxu1 %v8816_v1 }
  0x37   : > { %821 = vmatprep.subr.bf16.mxu0 %v8816_v1 }
  0x38   : > { %8645 = vset.pattern.permute.xlu0 %v8816_v1 }
  0x39   : > { %594 = vperm.xlu1 %8642, %v439_v9   ;;  %466 = vperm.xlu0 %8645, %v440_v12  }
  0x3a   : > { %931 = vmatpush1.bf16.msra.mxu1 %v8659_v16  ;;  %822 = vmatpush1.bf16.msra.mxu0 %v8659_v16 }
  0x3b   : > { %932 = vmatprep.subr.bf16.mxu1 %v8816_v1  ;;  %823 = vmatprep.subr.bf16.mxu0 %v8816_v1 }
  0x3d   : > { %8643 = vset.pattern.permute.xlu1 %v8816_v1  ;;  %475 = vperm.xlu0 %8645, %v443_v15  }
  0x3e   : > { %469 = vperm.xlu1 %8643, %v441_v17   ;;  %933 = vmatpush1.bf16.msra.mxu1 %v8660_v19 }
  0x3f   : > { %940 = vmatprep.subr.bf16.mxu1 %v8816_v1  ;;  %824 = vmatpush1.bf16.msra.mxu0 %v8660_v19 }
  0x40   : > { %831 = vmatprep.subr.bf16.mxu0 %v8816_v1 }
  0x41   : > { %478 = vperm.xlu0 %8645, %v444_v18  }
  0x42   : > { %8646 = vset.pattern.permute.xlu1 %v8815_v0  ;;  %941 = vmatpush2.bf16.msra.mxu1 %v8661_v20 }
  0x43   : > { %600 = vperm.xlu1 %8646, %v441_v17   ;;  %942 = vmatprep.subr.bf16.mxu1 %v8816_v1 }
  0x44   : > { %832 = vmatpush2.bf16.msra.mxu0 %v8661_v20 }
  0x45   : > { %8650 = vset.pattern.permute.xlu0 %v8815_v0  ;;  %833 = vmatprep.subr.bf16.mxu0 %v8816_v1 }
  0x46   : > { %609 = vperm.xlu0 %8650, %v444_v18   ;;  %943 = vmatpush2.bf16.msra.mxu1 %v8662_v22 }
  0x47   : > { %8647 = vset.pattern.permute.xlu1 %v8816_v1  ;;  %944 = vmatprep.subr.bf16.mxu1 %v8816_v1 }
  0x48   : > { %472 = vperm.xlu1 %8647, %v442_v21   ;;  %834 = vmatpush2.bf16.msra.mxu0 %v8662_v22 }
  0x49   : > { %835 = vmatprep.subr.bf16.mxu0 %v8816_v1 }
  0x4a   : > { %615 = vperm.xlu0 %8650, %v446_v23   ;;  %945 = vmatpush2.bf16.msra.mxu1 %v8663_v24 }
  0x4b   : > { %946 = vmatprep.subr.bf16.mxu1 %v8816_v1 }
  0x4c   : > { %8648 = vset.pattern.permute.xlu1 %v8815_v0  ;;  %836 = vmatpush2.bf16.msra.mxu0 %v8663_v24 }
  0x4d   : > { %603 = vperm.xlu1 %8648, %v442_v21   ;;  %837 = vmatprep.subr.bf16.mxu0 %v8816_v1 }
  0x4e   : > { %947 = vmatpush2.bf16.msra.mxu1 %v8664_v25 }
  0x4f   : > { %948 = vmatprep.subr.bf16.mxu1 %v8816_v1 }
  0x50   : > { %838 = vmatpush2.bf16.msra.mxu0 %v8664_v25 }
  0x51   : > { %606 = vperm.xlu1 %8648, %v443_v15   ;;  %839 = vmatprep.subr.bf16.mxu0 %v8816_v1 }
  0x52   : > { %949 = vmatpush2.bf16.msra.mxu1 %v8665_v26 }
  0x53   : > { %8124 = vmatprep.subr.bf16.mxu1 %v13599_v28 }
  0x54   : > { %840 = vmatpush2.bf16.msra.mxu0 %v8665_v26 }
  0x55   : > { %8649 = vset.pattern.permute.xlu1 %v8816_v1  ;;  %8080 = vmatprep.subr.bf16.mxu0 %v13599_v28 }
  0x56   : > { %481 = vperm.xlu1 %8649, %v445_v27  }
  0x5a   : > { %8651 = vset.pattern.permute.xlu1 %v8815_v0  ;;  %v8670_v0 = vld [vmem:[%s13589_s2 + $0x18] sm:$0xff]  }
  0x5b   : > { %612 = vperm.xlu1 %8651, %v445_v27  }
  0x5f   : > { %8652 = vset.pattern.permute.xlu1 %v8816_v1 }
  0x60   : > { %484 = vperm.xlu1 %8652, %v446_v23  }
  0x98   : > { %v580_v32 = vpop.permute.xlu1 %579  ;;  %v449_v33 = vpop.permute.xlu0 %448 }
  0x99   : > { %vm618_vm0 = vcmp.eq.s32.totalorder %v9017_v31, %v580_v32  ;;  %vm487_vm4 = vcmp.eq.s32.totalorder %v9017_v31, %v449_v33  ;;  %vm617_vm5 = vcmp.eq.s32.totalorder %v9014_v30, %v580_v32  ;;  %vm486_vm7 = vcmp.eq.s32.totalorder %v9014_v30, %v449_v33 }
  0x9a   : > { %v7113_v36 = vsel %vm618_vm0, 1.0, %v13599_v28  ;;  %v7087_v43 = vsel %vm487_vm4, 1.0, %v13599_v28 }
  0x9c   : > { %v583_v34 = vpop.permute.xlu1 %582 }
  0x9d   : > { %vm620_vm1 = vcmp.eq.s32.totalorder %v9017_v31, %v583_v34  ;;  %v586_v35 = vpop.permute.xlu0 %585  ;;  %vm619_vm2 = vcmp.eq.s32.totalorder %v9014_v30, %v583_v34 }
  0x9e   : > { %v7115_v37 = vsel %vm620_vm1, 1.0, %v13599_v28  ;;  %vm7173_vm6 = vmpackc.low %vm619_vm2, %vm617_vm5  ;;  %vm622_vm8 = vcmp.eq.s32.totalorder %v9017_v31, %v586_v35  ;;  %vm621_vm13 = vcmp.eq.s32.totalorder %v9014_v30, %v586_v35 }
  0x9f   : > { %v696_v38 = vpack.c.bf16 %v7115_v37, %v7113_v36  ;;  %v7117_v47 = vsel %vm622_vm8, 1.0, %v13599_v28 }
  0xa1   : > { %7172 = vmatprep.mubr.msk.bf16.mxu1 %vm787_vm3, %v696_v38  ;;  %v458_v40 = vpop.permute.xlu1 %457 }
  0xa2   : > { %v452_v41 = vpop.permute.xlu0 %451  ;;  %7174 = vmatmul.mubr.msk.bf16.vlgmr.msra.gmra.mxu1 %vm7173_vm6, %v8818_v42  ;;  %vm493_vm11 = vcmp.eq.s32.totalorder %v9017_v31, %v458_v40  ;;  %vm492_vm6 = vcmp.eq.s32.totalorder %v9014_v30, %v458_v40 }
  0xa3   : > { %vm488_vm9 = vcmp.eq.s32.totalorder %v9014_v30, %v452_v41  ;;  %vm489_vm10 = vcmp.eq.s32.totalorder %v9017_v31, %v452_v41  ;;  %8125 = vmatpush3.bf16.msra.mxu1 %v8666_v39  ;;  %v7093_v50 = vsel %vm493_vm11, 1.0, %v13599_v28 }
  0xa4   : > { %v7089_v44 = vsel %vm489_vm10, 1.0, %v13599_v28  ;;  %8126 = vmatprep.subr.bf16.mxu1 %v13599_v28  ;;  %vm7152_vm12 = vmpackc.low %vm488_vm9, %vm486_vm7 }
  0xa5   : > { %v565_v46 = vpack.c.bf16 %v7089_v44, %v7087_v43 }
  0xa6   : > { %v589_v48 = vpop.permute.xlu1 %588  ;;  %v455_v49 = vpop.permute.xlu0 %454 }
  0xa7   : > { %vm624_vm14 = vcmp.eq.s32.totalorder %v9017_v31, %v589_v48  ;;  %vm491_vm15 = vcmp.eq.s32.totalorder %v9017_v31, %v455_v49  ;;  %7151 = vmatprep.mubr.msk.bf16.mxu0 %vm787_vm3, %v565_v46  ;;  %vm623_vm0 = vcmp.eq.s32.totalorder %v9014_v30, %v589_v48  ;;  %8127 = vmatpush3.bf16.msra.mxu1 %v8667_v45  ;;  %v8673_v48 = vld [vmem:[%s13589_s2] sm:$0xff]  }
  0xa8   : > { %v7119_v51 = vsel %vm624_vm14, 1.0, %v13599_v28  ;;  %v7091_v52 = vsel %vm491_vm15, 1.0, %v13599_v28  ;;  %7153 = vmatmul.mubr.msk.bf16.vlgmr.msra.gmra.mxu0 %vm7152_vm12, %v8818_v42  ;;  %8128 = vmatprep.subr.bf16.mxu1 %v13599_v28  ;;  %vm7176_vm1 = vmpackc.low %vm623_vm0, %vm621_vm13  ;;  %vm490_vm4 = vcmp.eq.s32.totalorder %v9014_v30, %v455_v49 }
  0xa9   : > { %v698_v53 = vpack.c.bf16 %v7119_v51, %v7117_v47  ;;  %v567_v54 = vpack.c.bf16 %v7093_v50, %v7091_v52  ;;  %8081 = vmatpush3.bf16.msra.mxu0 %v8666_v39  ;;  %vm7155_vm7 = vmpackc.low %vm492_vm6, %vm490_vm4  ;;  %v8672_v47 = vld [vmem:[%s13589_s2 + $0x8] sm:$0xff]  }
  0xaa   : > { %v464_v56 = vpop.permute.xlu0 %463  ;;  %8082 = vmatprep.subr.bf16.mxu0 %v13599_v28 }
  0xab   : > { %v461_v57 = vpop.permute.xlu1 %460  ;;  %vm497_vm2 = vcmp.eq.s32.totalorder %v9017_v31, %v464_v56  ;;  %7154 = vmatprep.mubr.msk.bf16.mxu0 %vm787_vm3, %v567_v54  ;;  %7175 = vmatprep.mubr.msk.bf16.mxu1 %vm787_vm3, %v698_v53  ;;  %vm496_vm10 = vcmp.eq.s32.totalorder %v9014_v30, %v464_v56 }
  0xac   : > { %vm495_vm5 = vcmp.eq.s32.totalorder %v9017_v31, %v461_v57  ;;  %v7097_v58 = vsel %vm497_vm2, 1.0, %v13599_v28  ;;  %7177 = vmatmul.mubr.msk.bf16.gmra.mxu1 %vm7176_vm1, %v8818_v42  ;;  %vm494_vm9 = vcmp.eq.s32.totalorder %v9014_v30, %v461_v57 }
  0xad   : > { %v7095_v59 = vsel %vm495_vm5, 1.0, %v13599_v28  ;;  %8129 = vmatpush3.bf16.msra.mxu1 %v8668_v55  ;;  %8083 = vmatpush3.bf16.msra.mxu0 %v8667_v45  ;;  %vm7158_vm14 = vmpackc.low %vm496_vm10, %vm494_vm9 }
  0xae   : > { %v569_v61 = vpack.c.bf16 %v7097_v58, %v7095_v59  ;;  %8130 = vmatprep.subr.bf16.mxu1 %v13599_v28  ;;  %8084 = vmatprep.subr.bf16.mxu0 %v13599_v28 }
  0xaf   : > { %v598_v62 = vpop.permute.xlu0 %597 }
  0xb0   : > { %v592_v63 = vpop.permute.xlu1 %591  ;;  %7156 = vmatmul.mubr.msk.bf16.gmra.mxu0 %vm7155_vm7, %v8818_v42  ;;  %vm630_vm2 = vcmp.eq.s32.totalorder %v9017_v31, %v598_v62 }
  0xb1   : > { %7157 = vmatprep.mubr.msk.bf16.mxu0 %vm787_vm3, %v569_v61  ;;  %8131 = vmatpush3.bf16.msra.mxu1 %v8669_v60  ;;  %vm626_vm8 = vcmp.eq.s32.totalorder %v9017_v31, %v592_v63  ;;  %vm625_vm15 = vcmp.eq.s32.totalorder %v9014_v30, %v592_v63  ;;  %v7125_v13 = vsel %vm630_vm2, 1.0, %v13599_v28 }
  0xb2   : > { %8085 = vmatpush3.bf16.msra.mxu0 %v8668_v55  ;;  %8132 = vmatprep.subr.bf16.mxu1 %v13599_v28  ;;  %v7121_v5 = vsel %vm626_vm8, 1.0, %v13599_v28  ;;  %vm629_vm8 = vcmp.eq.s32.totalorder %v9014_v30, %v598_v62 }
  0xb3   : > { %8086 = vmatprep.subr.bf16.mxu0 %v13599_v28 }
  0xb4   : > { %v595_v2 = vpop.permute.xlu1 %594  ;;  %v467_v3 = vpop.permute.xlu0 %466 }
  0xb5   : > { %vm628_vm11 = vcmp.eq.s32.totalorder %v9017_v31, %v595_v2  ;;  %8133 = vmatpush3.bf16.msra.mxu1 %v8670_v0  ;;  %vm627_vm12 = vcmp.eq.s32.totalorder %v9014_v30, %v595_v2  ;;  %vm499_vm13 = vcmp.eq.s32.totalorder %v9017_v31, %v467_v3  ;;  %vm498_vm5 = vcmp.eq.s32.totalorder %v9014_v30, %v467_v3 }
  0xb6   : > { %v7123_v6 = vsel %vm628_vm11, 1.0, %v13599_v28  ;;  %8087 = vmatpush3.bf16.msra.mxu0 %v8669_v60  ;;  %8134 = vmatprep.subr.bf16.mxu1 %v13599_v28  ;;  %vm7179_vm0 = vmpackc.low %vm627_vm12, %vm625_vm15  ;;  %v7099_v9 = vsel %vm499_vm13, 1.0, %v13599_v28 }
  0xb7   : > { %v700_v7 = vpack.c.bf16 %v7123_v6, %v7121_v5  ;;  %8088 = vmatprep.subr.bf16.mxu0 %v13599_v28 }
  0xb8   : > { %7159 = vmatmul.mubr.msk.bf16.gmra.mxu0 %vm7158_vm14, %v8818_v42  ;;  %v476_v12 = vpop.permute.xlu0 %475 }
  0xb9   : > { %v470_v8 = vpop.permute.xlu1 %469  ;;  %7178 = vmatprep.mubr.msk.bf16.mxu1 %vm787_vm3, %v700_v7  ;;  %8135 = vmatpush3.bf16.msra.mxu1 %v8671_v4  ;;  %vm505_vm10 = vcmp.eq.s32.totalorder %v9017_v31, %v476_v12  ;;  %vm504_vm13 = vcmp.eq.s32.totalorder %v9014_v30, %v476_v12 }
  0xba   : > { %vm501_vm1 = vcmp.eq.s32.totalorder %v9017_v31, %v470_v8  ;;  %7180 = vmatmul.mubr.msk.bf16.gmra.mxu1 %vm7179_vm0, %v8818_v42  ;;  %8089 = vmatpush3.bf16.msra.mxu0 %v8670_v0  ;;  %vm500_vm4 = vcmp.eq.s32.totalorder %v9014_v30, %v470_v8  ;;  %v7105_v17 = vsel %vm505_vm10, 1.0, %v13599_v28 }
  0xbb   : > { %v7101_v10 = vsel %vm501_vm1, 1.0, %v13599_v28  ;;  %8136 = vmatprep.subr.bf16.mxu1 %v13599_v28  ;;  %8090 = vmatprep.subr.bf16.mxu0 %v13599_v28  ;;  %vm7161_vm6 = vmpackc.low %vm500_vm4, %vm498_vm5 }
  0xbc   : > { %v571_v11 = vpack.c.bf16 %v7101_v10, %v7099_v9  ;;  %v479_v21 = vpop.permute.xlu0 %478 }
  0xbd   : > { %vm507_vm4 = vcmp.eq.s32.totalorder %v9017_v31, %v479_v21  ;;  %vm506_vm10 = vcmp.eq.s32.totalorder %v9014_v30, %v479_v21  ;;  %8137 = vmatpush3.bf16.msra.mxu1 %v8672_v47 }
  0xbe   : > { %v601_v14 = vpop.permute.xlu1 %600  ;;  %7160 = vmatprep.mubr.msk.bf16.mxu0 %vm787_vm3, %v571_v11  ;;  %8091 = vmatpush3.bf16.msra.mxu0 %v8671_v4  ;;  %v7107_v34 = vsel %vm507_vm4, 1.0, %v13599_v28 }
  0xbf   : > { %vm632_vm7 = vcmp.eq.s32.totalorder %v9017_v31, %v601_v14  ;;  %8092 = vmatprep.subr.bf16.mxu0 %v13599_v28  ;;  %vm631_vm9 = vcmp.eq.s32.totalorder %v9014_v30, %v601_v14  ;;  %8138 = vmatprep.subr.bf16.mxu1 %v13599_v28 }
  0xc0   : > { %v7127_v15 = vsel %vm632_vm7, 1.0, %v13599_v28  ;;  %7162 = vmatmul.mubr.msk.bf16.gmra.mxu0 %vm7161_vm6, %v8818_v42  ;;  %vm7182_vm11 = vmpackc.low %vm631_vm9, %vm629_vm8 }
  0xc1   : > { %v702_v16 = vpack.c.bf16 %v7127_v15, %v7125_v13  ;;  %v610_v24 = vpop.permute.xlu0 %609  ;;  %8139 = vmatpush3.bf16.msra.mxu1 %v8673_v48 }
  0xc2   : > { %vm638_vm9 = vcmp.eq.s32.totalorder %v9017_v31, %v610_v24  ;;  %8093 = vmatpush3.bf16.msra.mxu0 %v8672_v47  ;;  %8210 = vmatprep.subr.bf16.mxu1 %v13599_v28 }
  0xc3   : > { %v473_v18 = vpop.permute.xlu1 %472  ;;  %7181 = vmatprep.mubr.msk.bf16.mxu1 %vm787_vm3, %v702_v16  ;;  %v7133_v37 = vsel %vm638_vm9, 1.0, %v13599_v28  ;;  %8094 = vmatprep.subr.bf16.mxu0 %v13599_v28 }
  0xc4   : > { %vm503_vm12 = vcmp.eq.s32.totalorder %v9017_v31, %v473_v18  ;;  %7183 = vmatmul.mubr.msk.bf16.gmra.mxu1 %vm7182_vm11, %v8818_v42  ;;  %vm502_vm14 = vcmp.eq.s32.totalorder %v9014_v30, %v473_v18 }
  0xc5   : > { %v7103_v19 = vsel %vm503_vm12, 1.0, %v13599_v28  ;;  %vm7164_vm15 = vmpackc.low %vm504_vm13, %vm502_vm14  ;;  %v616_v33 = vpop.permute.xlu0 %615  ;;  %vm637_vm14 = vcmp.eq.s32.totalorder %v9014_v30, %v610_v24 }
  0xc6   : > { %v573_v20 = vpack.c.bf16 %v7105_v17, %v7103_v19  ;;  %vm642_vm11 = vcmp.eq.s32.totalorder %v9017_v31, %v616_v33  ;;  %8095 = vmatpush3.bf16.msra.mxu0 %v8673_v48 }
  0xc7   : > { %v7137_v40 = vsel %vm642_vm11, 1.0, %v13599_v28  ;;  %8168 = vmatprep.subr.bf16.mxu0 %v13599_v28 }
  0xc8   : > { %v604_v22 = vpop.permute.xlu1 %603  ;;  %7163 = vmatprep.mubr.msk.bf16.mxu0 %vm787_vm3, %v573_v20  ;;  %v708_v43 = vpack.c.bf16 %v7137_v40, %v7137_v40 }
  0xc9   : > { %7165 = vmatmul.mubr.msk.bf16.gmra.mxu0 %vm7164_vm15, %v8818_v42  ;;  %vm634_vm0 = vcmp.eq.s32.totalorder %v9017_v31, %v604_v22  ;;  %vm633_vm5 = vcmp.eq.s32.totalorder %v9014_v30, %v604_v22 }
  0xca   : > { %v7129_v25 = vsel %vm634_vm0, 1.0, %v13599_v28 }
  0xcc   : > { %v607_v23 = vpop.permute.xlu1 %606 }
  0xcd   : > { %vm636_vm1 = vcmp.eq.s32.totalorder %v9017_v31, %v607_v23  ;;  %vm635_vm2 = vcmp.eq.s32.totalorder %v9014_v30, %v607_v23 }
  0xce   : > { %v7131_v26 = vsel %vm636_vm1, 1.0, %v13599_v28  ;;  %vm7185_vm6 = vmpackc.low %vm635_vm2, %vm633_vm5  ;;  %vm641_vm5 = vcmp.eq.s32.totalorder %v9014_v30, %v616_v33 }
  0xcf   : > { %v704_v27 = vpack.c.bf16 %v7131_v26, %v7129_v25 }
  0xd1   : > { %v482_v32 = vpop.permute.xlu1 %481  ;;  %7184 = vmatprep.mubr.msk.bf16.mxu1 %vm787_vm3, %v704_v27 }
  0xd2   : > { %vm509_vm7 = vcmp.eq.s32.totalorder %v9017_v31, %v482_v32  ;;  %7186 = vmatmul.mubr.msk.bf16.gmra.mxu1 %vm7185_vm6, %v8818_v42  ;;  %vm508_vm8 = vcmp.eq.s32.totalorder %v9014_v30, %v482_v32  ;;  %vm7191_vm6 = vmpackc.low %vm641_vm5, %vm641_vm5 }
  0xd3   : > { %v7109_v35 = vsel %vm509_vm7, 1.0, %v13599_v28  ;;  %vm7167_vm12 = vmpackc.low %vm508_vm8, %vm506_vm10  ;;  %vm1403_vm7 = vcmask 1043456   ;;  %vm1381_vm10 = vcmask 850944  }
  0xd4   : > { %v575_v36 = vpack.c.bf16 %v7109_v35, %v7107_v34 }
  0xd6   : > { %v613_v38 = vpop.permute.xlu1 %612  ;;  %7166 = vmatprep.mubr.msk.bf16.mxu0 %vm787_vm3, %v575_v36 }
  0xd7   : > { %vm640_vm13 = vcmp.eq.s32.totalorder %v9017_v31, %v613_v38  ;;  %7168 = vmatmul.mubr.msk.bf16.gmra.mxu0 %vm7167_vm12, %v8818_v42  ;;  %vm639_vm15 = vcmp.eq.s32.totalorder %v9014_v30, %v613_v38 }
  0xd8   : > { %v7135_v39 = vsel %vm640_vm13, 1.0, %v13599_v28  ;;  %vm7188_vm0 = vmpackc.low %vm639_vm15, %vm637_vm14 }
  0xd9   : > { %v706_v41 = vpack.c.bf16 %v7135_v39, %v7133_v37 }
  0xdb   : > { %v485_v44 = vpop.permute.xlu1 %484  ;;  %7187 = vmatprep.mubr.msk.bf16.mxu1 %vm787_vm3, %v706_v41 }
  0xdc   : > { %vm510_vm1 = vcmp.eq.s32.totalorder %v9014_v30, %v485_v44  ;;  %vm511_vm2 = vcmp.eq.s32.totalorder %v9017_v31, %v485_v44  ;;  %7189 = vmatmul.mubr.msk.bf16.gmra.mxu1 %vm7188_vm0, %v8818_v42 }
  0xdd   : > { %v7111_v45 = vsel %vm511_vm2, 1.0, %v13599_v28  ;;  %7190 = vmatprep.mubr.msk.bf16.mxu1 %vm787_vm3, %v708_v43  ;;  %vm7170_vm4 = vmpackc.low %vm510_vm1, %vm510_vm1 }
  0xde   : > { %v577_v46 = vpack.c.bf16 %v7111_v45, %v7111_v45 }
  0xe0   : > { %7169 = vmatprep.mubr.msk.bf16.mxu0 %vm787_vm3, %v577_v46  ;;  %vm13604_vm3 = vmmov 0  }
  0xe1   : > { %7171 = vmatmul.mubr.msk.bf16.gmra.mxu0 %vm7170_vm4, %v8818_v42 }
  0xe2   : > { %8096 = vmatprep.mubr.msk.bf16.mxu0 %vm13604_vm3, %v13599_v28 }
  0xe4   : > { %7192 = vmatmul.mubr.msk.bf16.gmra.mxu1 %vm7191_vm6, %v8818_v42 }
  0xe5   : > { %8140 = vmatprep.mubr.msk.bf16.mxu1 %vm13604_vm3, %v13599_v28 }
 0x162   : > { %v952_v42 = vpop.f32.mrf.mxu1 }
 0x164   : > { %v954_v49 = vpop.f32.mrf.mxu1 }
 0x166   : > { %v955_v50 = vpop.f32.mrf.mxu1 }
 0x167   : > { %v1172_v51 = vpack.c.bf16 %v955_v50, %v952_v42 }
 0x168   : > { %v843_v52 = vpop.f32.mrf.mxu0  ;;  %v957_v53 = vpop.f32.mrf.mxu1 }
 0x169   : > { %8141 = vmatmul.mubr.bf16.vlgmr.msra.gmra.mxu1 %v1172_v51 }
 0x16a   : > { %v845_v54 = vpop.f32.mrf.mxu0  ;;  %8144 = vmatprep.mubr.msk.bf16.mxu1 %vm13604_vm3, %v13599_v28 }
 0x16c   : > { %v846_v55 = vpop.f32.mrf.mxu0  ;;  %v960_v56 = vpop.f32.mrf.mxu1 }
 0x16d   : > { %v1023_v57 = vpack.c.bf16 %v846_v55, %v843_v52 }
 0x16e   : > { %v848_v58 = vpop.f32.mrf.mxu0  ;;  %v962_v59 = vpop.f32.mrf.mxu1 }
 0x16f   : > { %8097 = vmatmul.mubr.bf16.vlgmr.msra.gmra.mxu0 %v1023_v57 }
 0x170   : > { %v851_v60 = vpop.f32.mrf.mxu0  ;;  %v963_v61 = vpop.f32.mrf.mxu1  ;;  %8100 = vmatprep.mubr.msk.bf16.mxu0 %vm13604_vm3, %v13599_v28 }
 0x171   : > { %v1173_v62 = vpack.c.bf16 %v963_v61, %v960_v56  ;;  %v9202_v61 = vld [vmem:[%s13590_s3] ss:$0 sm:$0xff] }
 0x172   : > { %v853_v63 = vpop.f32.mrf.mxu0  ;;  %v965_v0 = vpop.f32.mrf.mxu1 }
 0x173   : > { %8145 = vmatmul.mubr.bf16.gmra.mxu1 %v1173_v62 }
 0x174   : > { %v854_v2 = vpop.f32.mrf.mxu0  ;;  %8148 = vmatprep.mubr.msk.bf16.mxu1 %vm13604_vm3, %v13599_v28 }
 0x175   : > { %v1024_v3 = vpack.c.bf16 %v854_v2, %v851_v60 }
 0x176   : > { %v856_v4 = vpop.f32.mrf.mxu0 }
 0x177   : > { %8101 = vmatmul.mubr.bf16.gmra.mxu0 %v1024_v3 }
 0x178   : > { %v859_v5 = vpop.f32.mrf.mxu0  ;;  %8104 = vmatprep.mubr.msk.bf16.mxu0 %vm13604_vm3, %v13599_v28 }
 0x17a   : > { %v861_v6 = vpop.f32.mrf.mxu0  ;;  %v968_v7 = vpop.f32.mrf.mxu1 }
 0x17c   : > { %v862_v8 = vpop.f32.mrf.mxu0  ;;  %v970_v9 = vpop.f32.mrf.mxu1 }
 0x17d   : > { %v1025_v10 = vpack.c.bf16 %v862_v8, %v859_v5 }
 0x17e   : > { %v864_v11 = vpop.f32.mrf.mxu0  ;;  %v971_v12 = vpop.f32.mrf.mxu1 }
 0x17f   : > { %v1174_v13 = vpack.c.bf16 %v971_v12, %v968_v7  ;;  %8105 = vmatmul.mubr.bf16.gmra.mxu0 %v1025_v10 }
 0x180   : > { %v867_v14 = vpop.f32.mrf.mxu0  ;;  %v973_v15 = vpop.f32.mrf.mxu1  ;;  %8108 = vmatprep.mubr.msk.bf16.mxu0 %vm13604_vm3, %v13599_v28 }
 0x181   : > { %8149 = vmatmul.mubr.bf16.gmra.mxu1 %v1174_v13 }
 0x182   : > { %v869_v16 = vpop.f32.mrf.mxu0  ;;  %8152 = vmatprep.mubr.msk.bf16.mxu1 %vm13604_vm3, %v13599_v28 }
 0x184   : > { %v870_v17 = vpop.f32.mrf.mxu0  ;;  %v976_v18 = vpop.f32.mrf.mxu1 }
 0x185   : > { %v1026_v19 = vpack.c.bf16 %v870_v17, %v867_v14 }
 0x186   : > { %v872_v20 = vpop.f32.mrf.mxu0  ;;  %v978_v21 = vpop.f32.mrf.mxu1 }
 0x187   : > { %8109 = vmatmul.mubr.bf16.gmra.mxu0 %v1026_v19 }
 0x188   : > { %v979_v22 = vpop.f32.mrf.mxu1  ;;  %8112 = vmatprep.mubr.msk.bf16.mxu0 %vm13604_vm3, %v13599_v28 }
 0x189   : > { %v1175_v23 = vpack.c.bf16 %v979_v22, %v976_v18  ;;  %v875_v24 = vpop.f32.mrf.mxu0 }
 0x18a   : > { %v981_v25 = vpop.f32.mrf.mxu1 }
 0x18b   : > { %v877_v26 = vpop.f32.mrf.mxu0  ;;  %8153 = vmatmul.mubr.bf16.gmra.mxu1 %v1175_v23 }
 0x18c   : > { %8156 = vmatprep.mubr.msk.bf16.mxu1 %vm13604_vm3, %v13599_v28 }
 0x18d   : > { %v878_v27 = vpop.f32.mrf.mxu0 }
 0x18e   : > { %v1027_v32 = vpack.c.bf16 %v878_v27, %v875_v24 }
 0x18f   : > { %v880_v33 = vpop.f32.mrf.mxu0 }
 0x190   : > { %8113 = vmatmul.mubr.bf16.gmra.mxu0 %v1027_v32 }
 0x191   : > { %8116 = vmatprep.mubr.msk.bf16.mxu0 %vm13604_vm3, %v13599_v28 }
 0x192   : > { %v984_v34 = vpop.f32.mrf.mxu1 }
 0x194   : > { %v986_v35 = vpop.f32.mrf.mxu1 }
 0x196   : > { %v987_v36 = vpop.f32.mrf.mxu1 }
 0x197   : > { %v1176_v37 = vpack.c.bf16 %v987_v36, %v984_v34  ;;  %v883_v38 = vpop.f32.mrf.mxu0 }
 0x198   : > { %v989_v39 = vpop.f32.mrf.mxu1 }
 0x199   : > { %v885_v40 = vpop.f32.mrf.mxu0  ;;  %8157 = vmatmul.mubr.bf16.gmra.mxu1 %v1176_v37 }
 0x19a   : > { %8160 = vmatprep.mubr.msk.bf16.mxu1 %vm13604_vm3, %v13599_v28 }
 0x19b   : > { %v886_v41 = vpop.f32.mrf.mxu0 }
 0x19c   : > { %v1028_v43 = vpack.c.bf16 %v886_v41, %v883_v38  ;;  %v992_v44 = vpop.f32.mrf.mxu1 }
 0x19d   : > { %v888_v45 = vpop.f32.mrf.mxu0 }
 0x19e   : > { %v994_v46 = vpop.f32.mrf.mxu1  ;;  %8117 = vmatmul.mubr.bf16.gmra.mxu0 %v1028_v43 }
 0x19f   : > { %8120 = vmatprep.mubr.msk.bf16.mxu0 %vm13604_vm3, %v13599_v28 }
 0x1a0   : > { %v995_v47 = vpop.f32.mrf.mxu1 }
 0x1a1   : > { %v1177_v48 = vpack.c.bf16 %v995_v47, %v992_v44  ;;  %v891_v42 = vpop.f32.mrf.mxu0 }
 0x1a2   : > { %v1029_v49 = vpack.c.bf16 %v891_v42, %v891_v42  ;;  %v997_v50 = vpop.f32.mrf.mxu1 }
 0x1a3   : > { %v893_v51 = vpop.f32.mrf.mxu0  ;;  %8161 = vmatmul.mubr.bf16.gmra.mxu1 %v1177_v48 }
 0x1a4   : > { %v1000_v52 = vpop.f32.mrf.mxu1  ;;  %8164 = vmatprep.mubr.msk.bf16.mxu1 %vm13604_vm3, %v13599_v28 }
 0x1a5   : > { %v894_v53 = vpop.f32.mrf.mxu0  ;;  %v1178_v57 = vpack.c.bf16 %v1000_v52, %v1000_v52 }
 0x1a6   : > { %v1002_v54 = vpop.f32.mrf.mxu1  ;;  %8121 = vmatmul.mubr.bf16.gmra.mxu0 %v1029_v49 }
 0x1a7   : > { %v895_v55 = vpop.f32.mrf.mxu0  ;;  %8182 = vmatprep.mubr.msk.bf16.mxu0 %vm13604_vm3, %v13599_v28 }
 0x1a8   : > { %v1003_v56 = vpop.f32.mrf.mxu1 }
 0x1aa   : > { %v1004_v58 = vpop.f32.mrf.mxu1 }
 0x1ab   : > { %8165 = vmatmul.mubr.bf16.gmra.mxu1 %v1178_v57 }
 0x1ac   : > { %8212 = vmatprep.mubr.msk.bf16.mxu1 %vm13604_vm3, %v13599_v28 }
 0x229   : > { %v1213_v59 = vpop.f32.mrf.mxu1 }
 0x22a   : > { %v1214_v2 = vadd.f32 %v9202_v61, %v1213_v59 }
 0x22b   : > { %v8142_v60 = vpop.f32.mrf.mxu1 }
 0x22d   : > { %v1216_v62 = vpop.f32.mrf.mxu1 }
 0x22e   : > { %v1217_v8 = vadd.f32 %v9202_v61, %v1216_v62 }
 0x22f   : > { %v1118_v63 = vpop.f32.mrf.mxu0  ;;  %v8143_v0 = vpop.f32.mrf.mxu1 }
 0x230   : > { %v1119_v3 = vadd.f32 %v9202_v61, %v1118_v63 }
 0x231   : > { %v8098_v4 = vpop.f32.mrf.mxu0 }
 0x232   : > { %v1267_v5 = vmax.f32 %v1119_v3, %v1214_v2 }
 0x233   : > { %v1121_v6 = vpop.f32.mrf.mxu0  ;;  %v1221_v7 = vpop.f32.mrf.mxu1 }
 0x234   : > { %v1122_v9 = vadd.f32 %v9202_v61, %v1121_v6  ;;  %v1280_v15 = vmax.f32 %v1267_v5, 0.0  ;;  %v1222_v17 = vadd.f32 %v9202_v61, %v1221_v7 }
 0x235   : > { %v8099_v10 = vpop.f32.mrf.mxu0  ;;  %v8146_v11 = vpop.f32.mrf.mxu1 }
 0x236   : > { %v1268_v12 = vmax.f32 %v1122_v9, %v1217_v8 }
 0x237   : > { %v1126_v13 = vpop.f32.mrf.mxu0  ;;  %v1224_v14 = vpop.f32.mrf.mxu1 }
 0x238   : > { %v1281_v16 = vmax.f32 %v1268_v12, 0.0  ;;  %v1127_v18 = vadd.f32 %v9202_v61, %v1126_v13  ;;  %v1225_v24 = vadd.f32 %v9202_v61, %v1224_v14 }
 0x239   : > { %v8102_v19 = vpop.f32.mrf.mxu0  ;;  %v8147_v20 = vpop.f32.mrf.mxu1 }
 0x23a   : > { %v9210_v21 = vpack.c.bf16 %v1281_v16, %v1280_v15  ;;  %v1269_v22 = vmax.f32 %v1127_v18, %v1222_v17 }
 0x23b   : > { %v1129_v23 = vpop.f32.mrf.mxu0 }
 0x23c   : > { %v1130_v25 = vadd.f32 %v9202_v61, %v1129_v23  ;;  %v1282_v33 = vmax.f32 %v1269_v22, 0.0 }
 0x23d   : > { %v8103_v26 = vpop.f32.mrf.mxu0 }
 0x23e   : > { %v1270_v27 = vmax.f32 %v1130_v25, %v1225_v24 }
 0x23f   : > { %v9214_v32 = vpop.f32.mrf.mxu0 }
 0x240   : > { %v1283_v34 = vmax.f32 %v1270_v27, 0.0 }
 0x241   : > { %v8106_v35 = vpop.f32.mrf.mxu0  ;;  %v9216_v36 = vpop.f32.mrf.mxu1 }
 0x242   : > { %v9218_v37 = vpack.c.bf16 %v1283_v34, %v1282_v33 }
 0x243   : > { %v9220_v38 = vpop.f32.mrf.mxu0  ;;  %v8150_v39 = vpop.f32.mrf.mxu1 }
 0x245   : > { %v8107_v40 = vpop.f32.mrf.mxu0  ;;  %v1232_v41 = vpop.f32.mrf.mxu1 }
 0x247   : > { %v1142_v43 = vpop.f32.mrf.mxu0  ;;  %v8151_v44 = vpop.f32.mrf.mxu1 }
 0x249   : > { %v8110_v45 = vpop.f32.mrf.mxu0 }
 0x24b   : > { %v1145_v46 = vpop.f32.mrf.mxu0  ;;  %v1237_v47 = vpop.f32.mrf.mxu1 }
 0x24c   : > { %v1146_v44 = vadd.f32 %v9202_v61, %v1145_v46  ;;  %v1238_v45 = vadd.f32 %v9202_v61, %v1237_v47  ;;  %v1138_v46 = vadd.f32 %v9202_v61, %v9220_v38 }
 0x24d   : > { %v8111_v48 = vpop.f32.mrf.mxu0  ;;  %v8154_v42 = vpop.f32.mrf.mxu1 }
 0x24f   : > { %v1240_v49 = vpop.f32.mrf.mxu1 }
 0x250   : > { %v1150_v50 = vpop.f32.mrf.mxu0  ;;  %v1241_v33 = vadd.f32 %v9202_v61, %v1240_v49  ;;  %v1143_v49 = vadd.f32 %v9202_v61, %v1142_v43  ;;  %v1135_v43 = vadd.f32 %v9202_v61, %v9214_v32 }
 0x251   : > { %v8155_v51 = vpop.f32.mrf.mxu1  ;;  %v1151_v34 = vadd.f32 %v9202_v61, %v1150_v50 }
 0x252   : > { %v8114_v52 = vpop.f32.mrf.mxu0  ;;  %v1233_v51 = vadd.f32 %v9202_v61, %v1232_v41  ;;  %v1273_v47 = vmax.f32 %v1143_v49, %v1238_v45  ;;  %v9250_v41 = vshrl.u32 %v431_v29, 7 }
 0x253   : > { %v1274_v52 = vmax.f32 %v1146_v44, %v1241_v33 }
 0x254   : > { %v1153_v53 = vpop.f32.mrf.mxu0  ;;  %v9259_v38 = vadd.s32 8, %v9250_v41  ;;  %v9400_v49 = vadd.s32 96, %v9250_v41 }
 0x255   : > { %v1154_v23 = vadd.f32 %v9202_v61, %v1153_v53 }
 0x256   : > { %v8115_v54 = vpop.f32.mrf.mxu0  ;;  %v9271_v32 = vsub.s32 %v9014_v30, %v9259_v38 }
 0x257   : > { %v1230_v54 = vadd.f32 %v9202_v61, %v9216_v36 }
 0x258   : > { %vm1336_vm9 = vcmp.eq.s32.totalorder %v9271_v32, 0 }
 0x259   : > { %v1245_v55 = vpop.f32.mrf.mxu1  ;;  %v1271_v36 = vmax.f32 %v1135_v43, %v1230_v54  ;;  %v9409_v54 = vsub.s32 %v9014_v30, %v9400_v49 }
 0x25a   : > { %v1246_v24 = vadd.f32 %v9202_v61, %v1245_v55 }
 0x25b   : > { %v8158_v56 = vpop.f32.mrf.mxu1  ;;  %v1284_v29 = vmax.f32 %v1271_v36, 0.0  ;;  %vm1347_vm6 = vcmp.eq.s32.totalorder %v9409_v54, 0 }
 0x25c   : > { %v1275_v48 = vmax.f32 %v1151_v34, %v1246_v24  ;;  %v1272_v56 = vmax.f32 %v1138_v46, %v1233_v51  ;;  %v9355_v24 = vadd.s32 72, %v9250_v41 }
 0x25d   : > { %v1248_v57 = vpop.f32.mrf.mxu1 }
 0x25e   : > { %v1158_v58 = vpop.f32.mrf.mxu0  ;;  %v1249_v17 = vadd.f32 %v9202_v61, %v1248_v57  ;;  %v1288_v55 = vmax.f32 %v1275_v48, 0.0  ;;  %v1287_v57 = vmax.f32 %v1274_v52, 0.0  ;;  %v9370_v33 = vsub.s32 %v9014_v30, %v9355_v24 }
 0x25f   : > { %v8159_v59 = vpop.f32.mrf.mxu1  ;;  %v1159_v18 = vadd.f32 %v9202_v61, %v1158_v58 }
 0x260   : > { %v8118_v60 = vpop.f32.mrf.mxu0  ;;  %v1276_v35 = vmax.f32 %v1154_v23, %v1249_v17  ;;  %v1286_v59 = vmax.f32 %v1273_v47, 0.0  ;;  %v9352_v23 = vadd.s32 64, %v9250_v41  ;;  %vm1344_vm2 = vcmp.eq.s32.totalorder %v9370_v33, 0 }
 0x261   : > { %v1285_v60 = vmax.f32 %v1272_v56, 0.0  ;;  %v7212_v45 = vsel %vm1344_vm2, 1.0, %v13599_v28  ;;  %v7215_v47 = vsel %vm1347_vm6, 1.0, %v13599_v28 }
 0x262   : > { %v1161_v62 = vpop.f32.mrf.mxu0  ;;  %v1289_v50 = vmax.f32 %v1276_v35, 0.0  ;;  %v9377_v35 = vadd.s32 80, %v9250_v41  ;;  %v1380_v43 = vpack.c.bf16 %v7215_v47, %v7215_v47 }
 0x263   : > { %v1253_v63 = vpop.f32.mrf.mxu1  ;;  %v1162_v13 = vadd.f32 %v9202_v61, %v1161_v62  ;;  %v9261_v62 = vpack.c.bf16 %v1287_v57, %v1286_v59 }
 0x264   : > { %v8119_v0 = vpop.f32.mrf.mxu0  ;;  %v1254_v14 = vadd.f32 %v9202_v61, %v1253_v63  ;;  %v9254_v58 = vpack.c.bf16 %v1289_v50, %v1288_v55  ;;  %v9273_v63 = vpack.c.bf16 %v1285_v60, %v1284_v29  ;;  %v9390_v48 = vsub.s32 %v9014_v30, %v9377_v35  ;;  %v8674_v55 = vld [vmem:[%s13591_s4] sm:$0xff]  }
 0x265   : > { %v8162_v2 = vpop.f32.mrf.mxu1  ;;  %v9280_v0 = vadd.s32 16, %v9250_v41  ;;  %8211 = vmatpush3.bf16.msra.mxu1 %v8674_v55 }
 0x266   : > { %v1166_v3 = vpop.f32.mrf.mxu0  ;;  %v1277_v25 = vmax.f32 %v1159_v18, %v1254_v14  ;;  %v9283_v2 = vadd.s32 24, %v9250_v41  ;;  %vm1345_vm4 = vcmp.eq.s32.totalorder %v9390_v48, 0  ;;  %8282 = vmatprep.subr.bf16.mxu1 %v13599_v28  ;;  %vm1643_vm2 = vcmp.eq.s32.totalorder %v9390_v48, 1 }
 0x267   : > { %v1256_v4 = vpop.f32.mrf.mxu1  ;;  %v1167_v10 = vadd.f32 %v9202_v61, %v1166_v3  ;;  %v7213_v52 = vsel %vm1345_vm4, 1.0, %v13599_v28 }
 0x268   : > { %v8122_v5 = vpop.f32.mrf.mxu0  ;;  %v1257_v8 = vadd.f32 %v9202_v61, %v1256_v4  ;;  %v1290_v42 = vmax.f32 %v1277_v25, 0.0  ;;  %v7204_v4 = vsel %vm1336_vm9, 1.0, %v13599_v28 }
 0x269   : > { %v8163_v6 = vpop.f32.mrf.mxu1  ;;  %v9291_v5 = vsub.s32 %v9014_v30, %v9280_v0 }
 0x26a   : > { %v1169_v7 = vpop.f32.mrf.mxu0  ;;  %v1278_v19 = vmax.f32 %v1162_v13, %v1257_v8  ;;  %v9295_v6 = vsub.s32 %v9014_v30, %v9283_v2  ;;  %v9302_v8 = vadd.s32 32, %v9250_v41 }
 0x26b   : > { %v1261_v9 = vpop.f32.mrf.mxu1  ;;  %vm1337_vm11 = vcmp.eq.s32.totalorder %v9291_v5, 0  ;;  %vm1635_vm9 = vcmp.eq.s32.totalorder %v9291_v5, 1 }
 0x26c   : > { %v1262_v11 = vadd.f32 %v9202_v61, %v1261_v9  ;;  %v8123_v12 = vpop.f32.mrf.mxu0  ;;  %v1291_v39 = vmax.f32 %v1278_v19, 0.0  ;;  %v9267_v61 = vsub.s32 %v9014_v30, %v9250_v41  ;;  %vm1338_vm12 = vcmp.eq.s32.totalorder %v9295_v6, 0 }
 0x26d   : > { %v8166_v15 = vpop.f32.mrf.mxu1  ;;  %v9305_v9 = vadd.s32 40, %v9250_v41  ;;  %v9316_v12 = vsub.s32 %v9014_v30, %v9302_v8  ;;  %v7233_v59 = vsel %vm1635_vm9, 1.0, %v13599_v28  ;;  %vm1929_vm9 = vcmp.eq.s32.totalorder %v9295_v6, 2 }
 0x26e   : > { %v1279_v16 = vmax.f32 %v1167_v10, %v1262_v11  ;;  %v9241_v53 = vpack.c.bf16 %v1291_v39, %v1290_v42  ;;  %vm1335_vm8 = vcmp.eq.s32.totalorder %v9267_v61, 0  ;;  %v7205_v10 = vsel %vm1337_vm11, 1.0, %v13599_v28 }
 0x26f   : > { %v1264_v20 = vpop.f32.mrf.mxu1  ;;  %v7203_v3 = vsel %vm1335_vm8, 1.0, %v13599_v28  ;;  %v7206_v11 = vsel %vm1338_vm12, 1.0, %v13599_v28  ;;  %v9320_v13 = vsub.s32 %v9014_v30, %v9305_v9  ;;  %vm1339_vm13 = vcmp.eq.s32.totalorder %v9316_v12, 0 }
 0x270   : > { %v1292_v22 = vmax.f32 %v1279_v16, 0.0  ;;  %v1374_v7 = vpack.c.bf16 %v7204_v4, %v7203_v3  ;;  %v1375_v14 = vpack.c.bf16 %v7206_v11, %v7205_v10  ;;  %v9327_v15 = vadd.s32 48, %v9250_v41 }
 0x271   : > { %v8167_v26 = vpop.f32.mrf.mxu1  ;;  %vm1340_vm14 = vcmp.eq.s32.totalorder %v9320_v13, 0  ;;  %v9330_v16 = vadd.s32 56, %v9250_v41  ;;  %v7207_v17 = vsel %vm1339_vm13, 1.0, %v13599_v28  ;;  %v9380_v39 = vadd.s32 88, %v9250_v41 }
 0x272   : > { %v1299_v27 = vpack.c.bf16 %v1292_v22, %v1292_v22  ;;  %v7208_v18 = vsel %vm1340_vm14, 1.0, %v13599_v28  ;;  %v9341_v19 = vsub.s32 %v9014_v30, %v9327_v15  ;;  %vm1634_vm8 = vcmp.eq.s32.totalorder %v9271_v32, 1 }
 0x273   : > { %v9345_v20 = vsub.s32 %v9014_v30, %v9330_v16  ;;  %v1376_v22 = vpack.c.bf16 %v7208_v18, %v7207_v17  ;;  %v9394_v42 = vsub.s32 %v9014_v30, %v9380_v39  ;;  %v7232_v57 = vsel %vm1634_vm8, 1.0, %v13599_v28 }
 0x274   : > { %v9233_v40 = vsel %vm1403_vm7, %v1299_v27, 0  ;;  %vm1341_vm15 = vcmp.eq.s32.totalorder %v9341_v19, 0  ;;  %v9366_v27 = vsub.s32 %v9014_v30, %v9352_v23  ;;  %vm1633_vm7 = vcmp.eq.s32.totalorder %v9267_v61, 1 }
 0x275   : > { %8169 = vmatpush3.bf16.msra.mxu0 %v9233_v40  ;;  %vm1342_vm0 = vcmp.eq.s32.totalorder %v9345_v20, 0  ;;  %v7209_v25 = vsel %vm1341_vm15, 1.0, %v13599_v28  ;;  %vm1346_vm5 = vcmp.eq.s32.totalorder %v9394_v42, 0  ;;  %v7231_v56 = vsel %vm1633_vm7, 1.0, %v13599_v28 }
 0x276   : > { %8170 = vmatprep.subr.bf16.mxu0 %v13599_v28  ;;  %v7210_v26 = vsel %vm1342_vm0, 1.0, %v13599_v28  ;;  %vm1343_vm1 = vcmp.eq.s32.totalorder %v9366_v27, 0  ;;  %v7214_v50 = vsel %vm1346_vm5, 1.0, %v13599_v28  ;;  %v1672_v36 = vpack.c.bf16 %v7232_v57, %v7231_v56 }
 0x277   : > { %v1377_v34 = vpack.c.bf16 %v7210_v26, %v7209_v25  ;;  %v7211_v44 = vsel %vm1343_vm1, 1.0, %v13599_v28  ;;  %v1379_v46 = vpack.c.bf16 %v7214_v50, %v7213_v52  ;;  %vm1636_vm11 = vcmp.eq.s32.totalorder %v9295_v6, 1 }
 0x278   : > { %v1378_v51 = vpack.c.bf16 %v7212_v45, %v7211_v44  ;;  %v7234_v60 = vsel %vm1636_vm11, 1.0, %v13599_v28  ;;  %vm1637_vm12 = vcmp.eq.s32.totalorder %v9316_v12, 1  ;;  %vm1638_vm13 = vcmp.eq.s32.totalorder %v9320_v13, 1 }
 0x279   : > { %8171 = vmatpush3.bf16.msra.mxu0 %v9241_v53  ;;  %v1673_v29 = vpack.c.bf16 %v7234_v60, %v7233_v59  ;;  %v7235_v3 = vsel %vm1637_vm12, 1.0, %v13599_v28  ;;  %v7236_v4 = vsel %vm1638_vm13, 1.0, %v13599_v28  ;;  %vm1639_vm14 = vcmp.eq.s32.totalorder %v9341_v19, 1 }
 0x27a   : > { %8172 = vmatprep.subr.bf16.mxu0 %v13599_v28  ;;  %vm1640_vm15 = vcmp.eq.s32.totalorder %v9345_v20, 1  ;;  %v7237_v10 = vsel %vm1639_vm14, 1.0, %v13599_v28  ;;  %vm1641_vm0 = vcmp.eq.s32.totalorder %v9366_v27, 1  ;;  %vm1642_vm1 = vcmp.eq.s32.totalorder %v9370_v33, 1 }
 0x27b   : > { %v7238_v11 = vsel %vm1640_vm15, 1.0, %v13599_v28  ;;  %v7239_v17 = vsel %vm1641_vm0, 1.0, %v13599_v28  ;;  %v7240_v18 = vsel %vm1642_vm1, 1.0, %v13599_v28  ;;  %vm1644_vm4 = vcmp.eq.s32.totalorder %v9394_v42, 1 }
 0x27c   : > { %v7241_v25 = vsel %vm1643_vm2, 1.0, %v13599_v28  ;;  %v7242_v26 = vsel %vm1644_vm4, 1.0, %v13599_v28  ;;  %vm1645_vm5 = vcmp.eq.s32.totalorder %v9409_v54, 1  ;;  %vm1926_vm6 = vcmp.eq.s32.totalorder %v9267_v61, 2 }
 0x27d   : > { %8173 = vmatpush3.bf16.msra.mxu0 %v9254_v58  ;;  %v7243_v44 = vsel %vm1645_vm5, 1.0, %v13599_v28  ;;  %vm1927_vm7 = vcmp.eq.s32.totalorder %v9271_v32, 2  ;;  %vm1928_vm8 = vcmp.eq.s32.totalorder %v9291_v5, 2  ;;  %v7264_v47 = vsel %vm1929_vm9, 1.0, %v13599_v28 }
 0x27e   : > { %8174 = vmatprep.subr.bf16.mxu0 %v13599_v28  ;;  %v1678_v45 = vpack.c.bf16 %v7243_v44, %v7243_v44  ;;  %v7262_v52 = vsel %vm1927_vm7, 1.0, %v13599_v28  ;;  %vm1930_vm11 = vcmp.eq.s32.totalorder %v9316_v12, 2  ;;  %vm1931_vm12 = vcmp.eq.s32.totalorder %v9320_v13, 2 }
 0x27f   : > { %v7266_v56 = vsel %vm1931_vm12, 1.0, %v13599_v28  ;;  %vm1932_vm13 = vcmp.eq.s32.totalorder %v9341_v19, 2  ;;  %vm1933_vm14 = vcmp.eq.s32.totalorder %v9345_v20, 2  ;;  %vm1934_vm15 = vcmp.eq.s32.totalorder %v9366_v27, 2 }
 0x280   : > { %v7268_v59 = vsel %vm1933_vm14, 1.0, %v13599_v28  ;;  %vm1935_vm0 = vcmp.eq.s32.totalorder %v9370_v33, 2  ;;  %vm1936_vm1 = vcmp.eq.s32.totalorder %v9390_v48, 2  ;;  %vm1937_vm2 = vcmp.eq.s32.totalorder %v9394_v42, 2 }
 0x281   : > { %8175 = vmatpush3.bf16.msra.mxu0 %v9261_v62  ;;  %vm1938_vm4 = vcmp.eq.s32.totalorder %v9409_v54, 2  ;;  %vm2219_vm5 = vcmp.eq.s32.totalorder %v9267_v61, 3  ;;  %vm2221_vm7 = vcmp.eq.s32.totalorder %v9291_v5, 3  ;;  %vm2223_vm9 = vcmp.eq.s32.totalorder %v9316_v12, 3 }
 0x282   : > { %8176 = vmatprep.subr.bf16.mxu0 %v13599_v28  ;;  %vm2225_vm12 = vcmp.eq.s32.totalorder %v9341_v19, 3  ;;  %vm2227_vm14 = vcmp.eq.s32.totalorder %v9366_v27, 3 }
 0x285   : > { %8177 = vmatpush3.bf16.msra.mxu0 %v9273_v63 }
 0x286   : > { %8178 = vmatprep.subr.bf16.mxu0 %v13599_v28 }
 0x289   : > { %8179 = vmatpush3.bf16.msra.mxu0 %v9218_v37 }
 0x28a   : > { %8180 = vmatprep.subr.bf16.mxu0 %v13599_v28 }
 0x28d   : > { %8181 = vmatpush3.bf16.msra.mxu0 %v9210_v21 }
 0x28e   : > { %8240 = vmatprep.subr.bf16.mxu0 %v13599_v28 }
 0x290   : > { %8183 = vmatmul.mubr.msk.bf16.vlgmr.msra.gmra.mxu0 %vm1381_vm10, %v1374_v7  ;;  %v1674_v7 = vpack.c.bf16 %v7236_v4, %v7235_v3  ;;  %v7270_v3 = vsel %vm1935_vm0, 1.0, %v13599_v28  ;;  %vm1510_vm0 = vcmask 130048  }
 0x291   : > { %8241 = vmatpush3.bf16.msra.mxu0 %v9233_v40  ;;  %8186 = vmatprep.mubr.msk.bf16.mxu0 %vm13604_vm3, %v13599_v28 }
 0x292   : > { %8242 = vmatprep.subr.bf16.mxu0 %v13599_v28 }
 0x295   : > { %8243 = vmatpush3.bf16.msra.mxu0 %v9241_v53 }
 0x296   : > { %8244 = vmatprep.subr.bf16.mxu0 %v13599_v28 }
 0x298   : > { %8187 = vmatmul.mubr.msk.bf16.gmra.mxu0 %vm1381_vm10, %v1375_v14  ;;  %v1675_v14 = vpack.c.bf16 %v7238_v11, %v7237_v10  ;;  %v7272_v10 = vsel %vm1937_vm2, 1.0, %v13599_v28  ;;  %vm2230_vm2 = vcmp.eq.s32.totalorder %v9394_v42, 3 }
 0x299   : > { %8245 = vmatpush3.bf16.msra.mxu0 %v9254_v58  ;;  %8190 = vmatprep.mubr.msk.bf16.mxu0 %vm13604_vm3, %v13599_v28 }
 0x29a   : > { %8246 = vmatprep.subr.bf16.mxu0 %v13599_v28 }
 0x29d   : > { %8247 = vmatpush3.bf16.msra.mxu0 %v9261_v62 }
 0x29e   : > { %8248 = vmatprep.subr.bf16.mxu0 %v13599_v28 }
 0x2a0   : > { %8191 = vmatmul.mubr.msk.bf16.gmra.mxu0 %vm1381_vm10, %v1376_v22  ;;  %v1676_v22 = vpack.c.bf16 %v7240_v18, %v7239_v17  ;;  %v7291_v18 = vsel %vm2219_vm5, 1.0, %v13599_v28  ;;  %vm2512_vm5 = vcmp.eq.s32.totalorder %v9267_v61, 4 }
 0x2a1   : > { %8249 = vmatpush3.bf16.msra.mxu0 %v9273_v63  ;;  %8194 = vmatprep.mubr.msk.bf16.mxu0 %vm13604_vm3, %v13599_v28 }
 0x2a2   : > { %8250 = vmatprep.subr.bf16.mxu0 %v13599_v28 }
 0x2a5   : > { %8251 = vmatpush3.bf16.msra.mxu0 %v9218_v37 }
 0x2a6   : > { %8252 = vmatprep.subr.bf16.mxu0 %v13599_v28 }
 0x2a8   : > { %8195 = vmatmul.mubr.msk.bf16.gmra.mxu0 %vm1381_vm10, %v1377_v34  ;;  %v1677_v34 = vpack.c.bf16 %v7242_v26, %v7241_v25  ;;  %v7293_v26 = vsel %vm2221_vm7, 1.0, %v13599_v28  ;;  %vm2514_vm7 = vcmp.eq.s32.totalorder %v9291_v5, 4 }
 0x2a9   : > { %8253 = vmatpush3.bf16.msra.mxu0 %v9210_v21  ;;  %8198 = vmatprep.mubr.msk.bf16.mxu0 %vm13604_vm3, %v13599_v28 }
 0x2aa   : > { %8312 = vmatprep.subr.bf16.mxu0 %v13599_v28 }
 0x2b0   : > { %8199 = vmatmul.mubr.msk.bf16.gmra.mxu0 %vm1381_vm10, %v1378_v51  ;;  %v7261_v51 = vsel %vm1926_vm6, 1.0, %v13599_v28  ;;  %vm2220_vm6 = vcmp.eq.s32.totalorder %v9271_v32, 3 }
 0x2b1   : > { %8202 = vmatprep.mubr.msk.bf16.mxu0 %vm13604_vm3, %v13599_v28  ;;  %v1965_v50 = vpack.c.bf16 %v7262_v52, %v7261_v51 }
 0x2b8   : > { %8203 = vmatmul.mubr.msk.bf16.gmra.mxu0 %vm1381_vm10, %v1379_v46  ;;  %v7263_v46 = vsel %vm1928_vm8, 1.0, %v13599_v28  ;;  %vm2222_vm8 = vcmp.eq.s32.totalorder %v9295_v6, 3 }
 0x2b9   : > { %8206 = vmatprep.mubr.msk.bf16.mxu0 %vm13604_vm3, %v13599_v28  ;;  %v1966_v55 = vpack.c.bf16 %v7264_v47, %v7263_v46 }
 0x2c0   : > { %8207 = vmatmul.mubr.msk.bf16.gmra.mxu0 %vm1381_vm10, %v1380_v43  ;;  %v7265_v43 = vsel %vm1930_vm11, 1.0, %v13599_v28  ;;  %vm2224_vm11 = vcmp.eq.s32.totalorder %v9320_v13, 3 }
 0x2c1   : > { %8254 = vmatprep.mubr.msk.bf16.mxu0 %vm13604_vm3, %v13599_v28  ;;  %v1967_v57 = vpack.c.bf16 %v7266_v56, %v7265_v43  ;;  %v8675_v43 = vld [vmem:[%s13591_s4 + $0x8] sm:$0xff]  }
 0x2c8   : > { %8255 = vmatmul.mubr.msk.bf16.vlgmr.msra.gmra.mxu0 %vm1381_vm10, %v1672_v36  ;;  %v7267_v36 = vsel %vm1932_vm13, 1.0, %v13599_v28  ;;  %vm2226_vm13 = vcmp.eq.s32.totalorder %v9345_v20, 3 }
 0x2c9   : > { %8313 = vmatpush3.bf16.msra.mxu0 %v9233_v40  ;;  %8258 = vmatprep.mubr.msk.bf16.mxu0 %vm13604_vm3, %v13599_v28  ;;  %v1968_v60 = vpack.c.bf16 %v7268_v59, %v7267_v36  ;;  %v7298_v51 = vsel %vm2226_vm13, 1.0, %v13599_v28  ;;  %v7302_v36 = vsel %vm2230_vm2, 1.0, %v13599_v28  ;;  %vm2519_vm13 = vcmp.eq.s32.totalorder %v9345_v20, 4 }
 0x2ca   : > { %8314 = vmatprep.subr.bf16.mxu0 %v13599_v28  ;;  %vm2523_vm2 = vcmp.eq.s32.totalorder %v9394_v42, 4 }
 0x2cd   : > { %8315 = vmatpush3.bf16.msra.mxu0 %v9241_v53 }
 0x2ce   : > { %8316 = vmatprep.subr.bf16.mxu0 %v13599_v28 }
 0x2d0   : > { %8259 = vmatmul.mubr.msk.bf16.gmra.mxu0 %vm1381_vm10, %v1673_v29  ;;  %v7269_v29 = vsel %vm1934_vm15, 1.0, %v13599_v28  ;;  %vm2228_vm15 = vcmp.eq.s32.totalorder %v9370_v33, 3 }
 0x2d1   : > { %8317 = vmatpush3.bf16.msra.mxu0 %v9254_v58  ;;  %8262 = vmatprep.mubr.msk.bf16.mxu0 %vm13604_vm3, %v13599_v28  ;;  %v1969_v4 = vpack.c.bf16 %v7270_v3, %v7269_v29 }
 0x2d2   : > { %8318 = vmatprep.subr.bf16.mxu0 %v13599_v28 }
 0x2d5   : > { %8319 = vmatpush3.bf16.msra.mxu0 %v9261_v62 }
 0x2d6   : > { %8320 = vmatprep.subr.bf16.mxu0 %v13599_v28 }
 0x2d8   : > { %8263 = vmatmul.mubr.msk.bf16.gmra.mxu0 %vm1381_vm10, %v1674_v7  ;;  %v7271_v7 = vsel %vm1936_vm1, 1.0, %v13599_v28  ;;  %vm2229_vm1 = vcmp.eq.s32.totalorder %v9390_v48, 3 }
 0x2d9   : > { %8321 = vmatpush3.bf16.msra.mxu0 %v9273_v63  ;;  %8266 = vmatprep.mubr.msk.bf16.mxu0 %vm13604_vm3, %v13599_v28  ;;  %v1970_v11 = vpack.c.bf16 %v7272_v10, %v7271_v7 }
 0x2da   : > { %8322 = vmatprep.subr.bf16.mxu0 %v13599_v28 }
 0x2dd   : > { %8323 = vmatpush3.bf16.msra.mxu0 %v9218_v37 }
 0x2de   : > { %8324 = vmatprep.subr.bf16.mxu0 %v13599_v28 }
 0x2e0   : > { %8267 = vmatmul.mubr.msk.bf16.gmra.mxu0 %vm1381_vm10, %v1675_v14  ;;  %v7273_v14 = vsel %vm1938_vm4, 1.0, %v13599_v28  ;;  %vm2231_vm4 = vcmp.eq.s32.totalorder %v9409_v54, 3 }
 0x2e1   : > { %8325 = vmatpush3.bf16.msra.mxu0 %v9210_v21  ;;  %8270 = vmatprep.mubr.msk.bf16.mxu0 %vm13604_vm3, %v13599_v28  ;;  %v1971_v17 = vpack.c.bf16 %v7273_v14, %v7273_v14  ;;  %v7303_v10 = vsel %vm2231_vm4, 1.0, %v13599_v28  ;;  %vm2524_vm4 = vcmp.eq.s32.totalorder %v9409_v54, 4 }
 0x2e2   : > { %8384 = vmatprep.subr.bf16.mxu0 %v13599_v28 }
 0x2e8   : > { %8271 = vmatmul.mubr.msk.bf16.gmra.mxu0 %vm1381_vm10, %v1676_v22  ;;  %v7292_v22 = vsel %vm2220_vm6, 1.0, %v13599_v28  ;;  %vm2513_vm6 = vcmp.eq.s32.totalorder %v9271_v32, 4 }
 0x2e9   : > { %8274 = vmatprep.mubr.msk.bf16.mxu0 %vm13604_vm3, %v13599_v28  ;;  %v2258_v25 = vpack.c.bf16 %v7292_v22, %v7291_v18 }
 0x2f0   : > { %8275 = vmatmul.mubr.msk.bf16.gmra.mxu0 %vm1381_vm10, %v1677_v34  ;;  %v7294_v34 = vsel %vm2222_vm8, 1.0, %v13599_v28  ;;  %vm2515_vm8 = vcmp.eq.s32.totalorder %v9295_v6, 4 }
 0x2f1   : > { %8278 = vmatprep.mubr.msk.bf16.mxu0 %vm13604_vm3, %v13599_v28  ;;  %v2259_v44 = vpack.c.bf16 %v7294_v34, %v7293_v26  ;;  %v7321_v26 = vsel %vm2512_vm5, 1.0, %v13599_v28  ;;  %v7322_v34 = vsel %vm2513_vm6, 1.0, %v13599_v28 }
 0x2f2   : > { %v2551_v61 = vpack.c.bf16 %v7322_v34, %v7321_v26 }
 0x2f8   : > { %8279 = vmatmul.mubr.msk.bf16.gmra.mxu0 %vm1381_vm10, %v1678_v45  ;;  %v7296_v45 = vsel %vm2224_vm11, 1.0, %v13599_v28  ;;  %vm2517_vm11 = vcmp.eq.s32.totalorder %v9320_v13, 4 }
 0x2f9   : > { %8326 = vmatprep.mubr.msk.bf16.mxu0 %vm13604_vm3, %v13599_v28 }
 0x300   : > { %8327 = vmatmul.mubr.msk.bf16.vlgmr.msra.gmra.mxu0 %vm1381_vm10, %v1965_v50  ;;  %v7300_v50 = vsel %vm2228_vm15, 1.0, %v13599_v28  ;;  %vm2521_vm15 = vcmp.eq.s32.totalorder %v9370_v33, 4  ;;  %v8676_v33 = vld [vmem:[%s13591_s4 + $0x10] sm:$0xff]  }
 0x301   : > { %8385 = vmatpush3.bf16.msra.mxu0 %v9233_v40  ;;  %8330 = vmatprep.mubr.msk.bf16.mxu0 %vm13604_vm3, %v13599_v28 }
 0x302   : > { %8386 = vmatprep.subr.bf16.mxu0 %v13599_v28 }
 0x305   : > { %8387 = vmatpush3.bf16.msra.mxu0 %v9241_v53 }
 0x306   : > { %8388 = vmatprep.subr.bf16.mxu0 %v13599_v28 }
 0x308   : > { %8331 = vmatmul.mubr.msk.bf16.gmra.mxu0 %vm1381_vm10, %v1966_v55 }
 0x309   : > { %8389 = vmatpush3.bf16.msra.mxu0 %v9254_v58  ;;  %8334 = vmatprep.mubr.msk.bf16.mxu0 %vm13604_vm3, %v13599_v28 }
 0x30a   : > { %8390 = vmatprep.subr.bf16.mxu0 %v13599_v28 }
 0x30d   : > { %8391 = vmatpush3.bf16.msra.mxu0 %v9261_v62 }
 0x30e   : > { %8392 = vmatprep.subr.bf16.mxu0 %v13599_v28 }
 0x310   : > { %8335 = vmatmul.mubr.msk.bf16.gmra.mxu0 %vm1381_vm10, %v1967_v57  ;;  %v7301_v57 = vsel %vm2229_vm1, 1.0, %v13599_v28  ;;  %vm2522_vm1 = vcmp.eq.s32.totalorder %v9390_v48, 4 }
 0x311   : > { %8393 = vmatpush3.bf16.msra.mxu0 %v9273_v63  ;;  %8338 = vmatprep.mubr.msk.bf16.mxu0 %vm13604_vm3, %v13599_v28  ;;  %v2263_v29 = vpack.c.bf16 %v7302_v36, %v7301_v57  ;;  %v7328_v57 = vsel %vm2519_vm13, 1.0, %v13599_v28 }
 0x312   : > { %8394 = vmatprep.subr.bf16.mxu0 %v13599_v28 }
 0x315   : > { %8395 = vmatpush3.bf16.msra.mxu0 %v9218_v37 }
 0x316   : > { %8396 = vmatprep.subr.bf16.mxu0 %v13599_v28 }
 0x318   : > { %8339 = vmatmul.mubr.msk.bf16.gmra.mxu0 %vm1381_vm10, %v1968_v60 }
 0x319   : > { %8397 = vmatpush3.bf16.msra.mxu0 %v9210_v21  ;;  %8342 = vmatprep.mubr.msk.bf16.mxu0 %vm13604_vm3, %v13599_v28 }
 0x31a   : > { %8456 = vmatprep.subr.bf16.mxu0 %v13599_v28 }
 0x320   : > { %8343 = vmatmul.mubr.msk.bf16.gmra.mxu0 %vm1381_vm10, %v1969_v4 }
 0x321   : > { %8346 = vmatprep.mubr.msk.bf16.mxu0 %vm13604_vm3, %v13599_v28 }
 0x328   : > { %8347 = vmatmul.mubr.msk.bf16.gmra.mxu0 %vm1381_vm10, %v1970_v11 }
 0x329   : > { %8350 = vmatprep.mubr.msk.bf16.mxu0 %vm13604_vm3, %v13599_v28 }
 0x330   : > { %8351 = vmatmul.mubr.msk.bf16.gmra.mxu0 %vm1381_vm10, %v1971_v17  ;;  %v2264_v17 = vpack.c.bf16 %v7303_v10, %v7303_v10 }
 0x331   : > { %8398 = vmatprep.mubr.msk.bf16.mxu0 %vm13604_vm3, %v13599_v28 }
 0x338   : > { %8399 = vmatmul.mubr.msk.bf16.vlgmr.msra.gmra.mxu0 %vm1381_vm10, %v2258_v25 }
 0x339   : > { %8457 = vmatpush3.bf16.msra.mxu0 %v9233_v40  ;;  %8402 = vmatprep.mubr.msk.bf16.mxu0 %vm13604_vm3, %v13599_v28  ;;  %v7295_v40 = vsel %vm2223_vm9, 1.0, %v13599_v28  ;;  %vm2516_vm9 = vcmp.eq.s32.totalorder %v9316_v12, 4 }
 0x33a   : > { %8458 = vmatprep.subr.bf16.mxu0 %v13599_v28 }
 0x33d   : > { %8459 = vmatpush3.bf16.msra.mxu0 %v9241_v53  ;;  %v2260_v53 = vpack.c.bf16 %v7296_v45, %v7295_v40 }
 0x33e   : > { %8460 = vmatprep.subr.bf16.mxu0 %v13599_v28 }
 0x340   : > { %8403 = vmatmul.mubr.msk.bf16.gmra.mxu0 %vm1381_vm10, %v2259_v44 }
 0x341   : > { %8461 = vmatpush3.bf16.msra.mxu0 %v9254_v58  ;;  %8406 = vmatprep.mubr.msk.bf16.mxu0 %vm13604_vm3, %v13599_v28  ;;  %v7297_v58 = vsel %vm2225_vm12, 1.0, %v13599_v28  ;;  %vm2518_vm12 = vcmp.eq.s32.totalorder %v9341_v19, 4 }
 0x342   : > { %8462 = vmatprep.subr.bf16.mxu0 %v13599_v28 }
 0x345   : > { %8463 = vmatpush3.bf16.msra.mxu0 %v9261_v62  ;;  %v2261_v62 = vpack.c.bf16 %v7298_v51, %v7297_v58  ;;  %v7323_v58 = vsel %vm2514_vm7, 1.0, %v13599_v28  ;;  %v7324_v51 = vsel %vm2515_vm8, 1.0, %v13599_v28 }
 0x346   : > { %8464 = vmatprep.subr.bf16.mxu0 %v13599_v28  ;;  %v2552_v5 = vpack.c.bf16 %v7324_v51, %v7323_v58 }
 0x348   : > { %8407 = vmatmul.mubr.msk.bf16.gmra.mxu0 %vm1381_vm10, %v2260_v53 }
 0x349   : > { %8465 = vmatpush3.bf16.msra.mxu0 %v9273_v63  ;;  %8410 = vmatprep.mubr.msk.bf16.mxu0 %vm13604_vm3, %v13599_v28  ;;  %v7299_v63 = vsel %vm2227_vm14, 1.0, %v13599_v28  ;;  %vm2520_vm14 = vcmp.eq.s32.totalorder %v9366_v27, 4 }
 0x34a   : > { %8466 = vmatprep.subr.bf16.mxu0 %v13599_v28  ;;  %v2262_v47 = vpack.c.bf16 %v7300_v50, %v7299_v63 }
 0x34d   : > { %8467 = vmatpush3.bf16.msra.mxu0 %v9218_v37 }
 0x34e   : > { %8468 = vmatprep.subr.bf16.mxu0 %v13599_v28 }
 0x350   : > { %v1441_v52 = vpop.f32.mrf.mxu0  ;;  %8411 = vmatmul.mubr.msk.bf16.gmra.mxu0 %vm1381_vm10, %v2261_v62 }
 0x351   : > { %8469 = vmatpush3.bf16.msra.mxu0 %v9210_v21  ;;  %8414 = vmatprep.mubr.msk.bf16.mxu0 %vm13604_vm3, %v13599_v28 }
 0x352   : > { %v8184_v46 = vpop.f32.mrf.mxu0 }
 0x353   : > { %v7325_v46 = vsel %vm2516_vm9, 1.0, %v13599_v28 }
 0x354   : > { %v1444_v37 = vpop.f32.mrf.mxu0 }
 0x355   : > { %v1495_v55 = vpack.c.bf16 %v1444_v37, %v1441_v52  ;;  %v7326_v37 = vsel %vm2517_vm11, 1.0, %v13599_v28 }
 0x356   : > { %v8185_v56 = vpop.f32.mrf.mxu0  ;;  %v2553_v12 = vpack.c.bf16 %v7326_v37, %v7325_v46 }
 0x357   : > { %8213 = vmatmul.mubr.msk.bf16.vlgmr.msra.gmra.mxu1 %vm1510_vm0, %v1495_v55 }
 0x358   : > { %v1449_v21 = vpop.f32.mrf.mxu0  ;;  %8415 = vmatmul.mubr.msk.bf16.gmra.mxu0 %vm1381_vm10, %v2262_v47  ;;  %8216 = vmatprep.mubr.msk.bf16.mxu1 %vm13604_vm3, %v13599_v28 }
 0x359   : > { %8418 = vmatprep.mubr.msk.bf16.mxu0 %vm13604_vm3, %v13599_v28  ;;  %8283 = vmatpush3.bf16.msra.mxu1 %v8675_v43 }
 0x35a   : > { %v8188_v59 = vpop.f32.mrf.mxu0  ;;  %8354 = vmatprep.subr.bf16.mxu1 %v13599_v28 }
 0x35c   : > { %v1452_v60 = vpop.f32.mrf.mxu0 }
 0x35d   : > { %v1496_v3 = vpack.c.bf16 %v1452_v60, %v1449_v21  ;;  %v7327_v21 = vsel %vm2518_vm12, 1.0, %v13599_v28 }
 0x35e   : > { %v8189_v4 = vpop.f32.mrf.mxu0  ;;  %v2554_v19 = vpack.c.bf16 %v7328_v57, %v7327_v21 }
 0x35f   : > { %8217 = vmatmul.mubr.msk.bf16.gmra.mxu1 %vm1510_vm0, %v1496_v3  ;;  %v7329_v3 = vsel %vm2520_vm14, 1.0, %v13599_v28  ;;  %v7330_v4 = vsel %vm2521_vm15, 1.0, %v13599_v28 }
 0x360   : > { %v1457_v7 = vpop.f32.mrf.mxu0  ;;  %8419 = vmatmul.mubr.msk.bf16.gmra.mxu0 %vm1381_vm10, %v2263_v29  ;;  %8220 = vmatprep.mubr.msk.bf16.mxu1 %vm13604_vm3, %v13599_v28  ;;  %v2555_v27 = vpack.c.bf16 %v7330_v4, %v7329_v3 }
 0x361   : > { %8422 = vmatprep.mubr.msk.bf16.mxu0 %vm13604_vm3, %v13599_v28 }
 0x362   : > { %v8192_v11 = vpop.f32.mrf.mxu0 }
 0x364   : > { %v1460_v14 = vpop.f32.mrf.mxu0 }
 0x365   : > { %v1497_v18 = vpack.c.bf16 %v1460_v14, %v1457_v7 }
 0x366   : > { %v8193_v22 = vpop.f32.mrf.mxu0 }
 0x367   : > { %8221 = vmatmul.mubr.msk.bf16.gmra.mxu1 %vm1510_vm0, %v1497_v18  ;;  %v7331_v18 = vsel %vm2522_vm1, 1.0, %v13599_v28  ;;  %v7332_v22 = vsel %vm2523_vm2, 1.0, %v13599_v28 }
 0x368   : > { %v1465_v25 = vpop.f32.mrf.mxu0  ;;  %8423 = vmatmul.mubr.msk.bf16.gmra.mxu0 %vm1381_vm10, %v2264_v17  ;;  %8224 = vmatprep.mubr.msk.bf16.mxu1 %vm13604_vm3, %v13599_v28  ;;  %v2556_v42 = vpack.c.bf16 %v7332_v22, %v7331_v18 }
 0x369   : > { %8470 = vmatprep.mubr.msk.bf16.mxu0 %vm13604_vm3, %v13599_v28 }
 0x36a   : > { %v8196_v44 = vpop.f32.mrf.mxu0 }
 0x36c   : > { %v1468_v40 = vpop.f32.mrf.mxu0 }
 0x36d   : > { %v1498_v45 = vpack.c.bf16 %v1468_v40, %v1465_v25  ;;  %v7333_v40 = vsel %vm2524_vm4, 1.0, %v13599_v28 }
 0x36e   : > { %v8197_v32 = vpop.f32.mrf.mxu0 }
 0x36f   : > { %8225 = vmatmul.mubr.msk.bf16.gmra.mxu1 %vm1510_vm0, %v1498_v45  ;;  %v2557_v32 = vpack.c.bf16 %v7333_v40, %v7333_v40 }
 0x370   : > { %v1473_v53 = vpop.f32.mrf.mxu0  ;;  %8471 = vmatmul.mubr.msk.bf16.vlgmr.msra.gmra.mxu0 %vm1381_vm10, %v2551_v61  ;;  %8228 = vmatprep.mubr.msk.bf16.mxu1 %vm13604_vm3, %v13599_v28 }
 0x371   : > { %8474 = vmatprep.mubr.msk.bf16.mxu0 %vm13604_vm3, %v13599_v28 }
 0x372   : > { %v8200_v62 = vpop.f32.mrf.mxu0 }
 0x374   : > { %v1476_v52 = vpop.f32.mrf.mxu0 }
 0x375   : > { %v1499_v63 = vpack.c.bf16 %v1476_v52, %v1473_v53 }
 0x376   : > { %v8201_v6 = vpop.f32.mrf.mxu0 }
 0x377   : > { %8229 = vmatmul.mubr.msk.bf16.gmra.mxu1 %vm1510_vm0, %v1499_v63 }
 0x378   : > { %v1481_v50 = vpop.f32.mrf.mxu0  ;;  %8475 = vmatmul.mubr.msk.bf16.gmra.mxu0 %vm1381_vm10, %v2552_v5  ;;  %8232 = vmatprep.mubr.msk.bf16.mxu1 %vm13604_vm3, %v13599_v28 }
 0x379   : > { %8478 = vmatprep.mubr.msk.bf16.mxu0 %vm13604_vm3, %v13599_v28 }
 0x37a   : > { %v8204_v47 = vpop.f32.mrf.mxu0 }
 0x37c   : > { %v1484_v55 = vpop.f32.mrf.mxu0 }
 0x37d   : > { %v1500_v43 = vpack.c.bf16 %v1484_v55, %v1481_v50 }
 0x37e   : > { %v8205_v13 = vpop.f32.mrf.mxu0 }
 0x37f   : > { %8233 = vmatmul.mubr.msk.bf16.gmra.mxu1 %vm1510_vm0, %v1500_v43 }
 0x380   : > { %v1489_v56 = vpop.f32.mrf.mxu0  ;;  %8479 = vmatmul.mubr.msk.bf16.gmra.mxu0 %vm1381_vm10, %v2553_v12  ;;  %8236 = vmatprep.mubr.msk.bf16.mxu1 %vm13604_vm3, %v13599_v28 }
 0x381   : > { %8482 = vmatprep.mubr.msk.bf16.mxu0 %vm13604_vm3, %v13599_v28  ;;  %v1501_v60 = vpack.c.bf16 %v1489_v56, %v1489_v56 }
 0x382   : > { %v8208_v36 = vpop.f32.mrf.mxu0 }
 0x384   : > { %v1492_v59 = vpop.f32.mrf.mxu0 }
 0x386   : > { %v8209_v20 = vpop.f32.mrf.mxu0 }
 0x387   : > { %8237 = vmatmul.mubr.msk.bf16.gmra.mxu1 %vm1510_vm0, %v1501_v60 }
 0x388   : > { %v1734_v29 = vpop.f32.mrf.mxu0  ;;  %8483 = vmatmul.mubr.msk.bf16.gmra.mxu0 %vm1381_vm10, %v2554_v19  ;;  %8284 = vmatprep.mubr.msk.bf16.mxu1 %vm13604_vm3, %v13599_v28 }
 0x389   : > { %8486 = vmatprep.mubr.msk.bf16.mxu0 %vm13604_vm3, %v13599_v28 }
 0x38a   : > { %v8256_v7 = vpop.f32.mrf.mxu0 }
 0x38c   : > { %v1737_v10 = vpop.f32.mrf.mxu0 }
 0x38d   : > { %v1788_v11 = vpack.c.bf16 %v1737_v10, %v1734_v29  ;;  %v8677_v29 = vld [vmem:[%s13591_s4 + $0x18] sm:$0xff]  }
 0x38e   : > { %v8257_v14 = vpop.f32.mrf.mxu0 }
 0x38f   : > { %8285 = vmatmul.mubr.msk.bf16.vlgmr.msra.gmra.mxu1 %vm1510_vm0, %v1788_v11 }
 0x390   : > { %v1742_v17 = vpop.f32.mrf.mxu0  ;;  %8487 = vmatmul.mubr.msk.bf16.gmra.mxu0 %vm1381_vm10, %v2555_v27  ;;  %8288 = vmatprep.mubr.msk.bf16.mxu1 %vm13604_vm3, %v13599_v28 }
 0x391   : > { %8490 = vmatprep.mubr.msk.bf16.mxu0 %vm13604_vm3, %v13599_v28  ;;  %8355 = vmatpush3.bf16.msra.mxu1 %v8676_v33 }
 0x392   : > { %v8260_v25 = vpop.f32.mrf.mxu0  ;;  %8426 = vmatprep.subr.bf16.mxu1 %v13599_v28 }
 0x394   : > { %v1745_v48 = vpop.f32.mrf.mxu0 }
 0x395   : > { %v1789_v26 = vpack.c.bf16 %v1745_v48, %v1742_v17 }
 0x396   : > { %v8261_v34 = vpop.f32.mrf.mxu0 }
 0x397   : > { %8289 = vmatmul.mubr.msk.bf16.gmra.mxu1 %vm1510_vm0, %v1789_v26 }
 0x398   : > { %v1750_v44 = vpop.f32.mrf.mxu0  ;;  %8491 = vmatmul.mubr.msk.bf16.gmra.mxu0 %vm1381_vm10, %v2556_v42  ;;  %8292 = vmatprep.mubr.msk.bf16.mxu1 %vm13604_vm3, %v13599_v28 }
 0x399   : > { %8494 = vmatprep.mubr.msk.bf16.mxu0 %vm13604_vm3, %v13599_v28 }
 0x39a   : > { %v8264_v61 = vpop.f32.mrf.mxu0 }
 0x39c   : > { %v1753_v45 = vpop.f32.mrf.mxu0 }
 0x39d   : > { %v1790_v53 = vpack.c.bf16 %v1753_v45, %v1750_v44 }
 0x39e   : > { %v8265_v58 = vpop.f32.mrf.mxu0 }
 0x39f   : > { %8293 = vmatmul.mubr.msk.bf16.gmra.mxu1 %vm1510_vm0, %v1790_v53 }
 0x3a0   : > { %v1758_v54 = vpop.f32.mrf.mxu0  ;;  %8495 = vmatmul.mubr.msk.bf16.gmra.mxu0 %vm1381_vm10, %v2557_v32  ;;  %8296 = vmatprep.mubr.msk.bf16.mxu1 %vm13604_vm3, %v13599_v28  ;;  %vm13606_vm10 = vcmask 261120  }
 0x3a1   : > { %3183 = vmatprep.mubr.bf16.mxu0 %v8816_v1 }
 0x3a2   : > { %v8268_v51 = vpop.f32.mrf.mxu0 }
 0x3a4   : > { %v1761_v62 = vpop.f32.mrf.mxu0 }
 0x3a5   : > { %v1791_v52 = vpack.c.bf16 %v1761_v62, %v1758_v54 }
 0x3a6   : > { %v8269_v5 = vpop.f32.mrf.mxu0 }
 0x3a7   : > { %8297 = vmatmul.mubr.msk.bf16.gmra.mxu1 %vm1510_vm0, %v1791_v52 }
 0x3a8   : > { %v1766_v63 = vpop.f32.mrf.mxu0  ;;  %8300 = vmatprep.mubr.msk.bf16.mxu1 %vm13604_vm3, %v13599_v28 }
 0x3aa   : > { %v8272_v6 = vpop.f32.mrf.mxu0 }
 0x3ac   : > { %v1769_v50 = vpop.f32.mrf.mxu0 }
 0x3ad   : > { %v1792_v46 = vpack.c.bf16 %v1769_v50, %v1766_v63 }
 0x3ae   : > { %v8273_v37 = vpop.f32.mrf.mxu0 }
 0x3af   : > { %8301 = vmatmul.mubr.msk.bf16.gmra.mxu1 %vm1510_vm0, %v1792_v46 }
 0x3b0   : > { %v1774_v47 = vpop.f32.mrf.mxu0  ;;  %8304 = vmatprep.mubr.msk.bf16.mxu1 %vm13604_vm3, %v13599_v28 }
 0x3b2   : > { %v8276_v55 = vpop.f32.mrf.mxu0 }
 0x3b4   : > { %v1777_v12 = vpop.f32.mrf.mxu0 }
 0x3b5   : > { %v1793_v43 = vpack.c.bf16 %v1777_v12, %v1774_v47  ;;  %v8678_v12 = vld [vmem:[%s13591_s4 + $0x20] sm:$0xff]  }
 0x3b6   : > { %v8277_v13 = vpop.f32.mrf.mxu0 }
 0x3b7   : > { %8305 = vmatmul.mubr.msk.bf16.gmra.mxu1 %vm1510_vm0, %v1793_v43 }
 0x3b8   : > { %v1782_v56 = vpop.f32.mrf.mxu0  ;;  %8308 = vmatprep.mubr.msk.bf16.mxu1 %vm13604_vm3, %v13599_v28 }
 0x3b9   : > { %v1794_v36 = vpack.c.bf16 %v1782_v56, %v1782_v56 }
 0x3ba   : > { %v8280_v21 = vpop.f32.mrf.mxu0 }
 0x3bc   : > { %v1785_v57 = vpop.f32.mrf.mxu0 }
 0x3be   : > { %v8281_v59 = vpop.f32.mrf.mxu0 }
 0x3bf   : > { %8309 = vmatmul.mubr.msk.bf16.gmra.mxu1 %vm1510_vm0, %v1794_v36 }
 0x3c0   : > { %v2027_v19 = vpop.f32.mrf.mxu0  ;;  %8356 = vmatprep.mubr.msk.bf16.mxu1 %vm13604_vm3, %v13599_v28 }
 0x3c2   : > { %v8328_v60 = vpop.f32.mrf.mxu0 }
 0x3c4   : > { %v2030_v20 = vpop.f32.mrf.mxu0 }
 0x3c5   : > { %v2081_v3 = vpack.c.bf16 %v2030_v20, %v2027_v19 }
 0x3c6   : > { %v8329_v4 = vpop.f32.mrf.mxu0 }
 0x3c7   : > { %8357 = vmatmul.mubr.msk.bf16.vlgmr.msra.gmra.mxu1 %vm1510_vm0, %v2081_v3 }
 0x3c8   : > { %v2035_v7 = vpop.f32.mrf.mxu0  ;;  %8360 = vmatprep.mubr.msk.bf16.mxu1 %vm13604_vm3, %v13599_v28  ;;  %8427 = vmatpush3.bf16.msra.mxu1 %v8677_v29 }
 0x3c9   : > { %8498 = vmatprep.subr.bf16.mxu1 %v13599_v28 }
 0x3ca   : > { %v8332_v10 = vpop.f32.mrf.mxu0 }
 0x3cc   : > { %v2038_v27 = vpop.f32.mrf.mxu0 }
 0x3cd   : > { %v2082_v11 = vpack.c.bf16 %v2038_v27, %v2035_v7 }
 0x3ce   : > { %v8333_v33 = vpop.f32.mrf.mxu0 }
 0x3cf   : > { %8361 = vmatmul.mubr.msk.bf16.gmra.mxu1 %vm1510_vm0, %v2082_v11 }
 0x3d0   : > { %v2043_v14 = vpop.f32.mrf.mxu0  ;;  %8364 = vmatprep.mubr.msk.bf16.mxu1 %vm13604_vm3, %v13599_v28 }
 0x3d2   : > { %v8336_v17 = vpop.f32.mrf.mxu0 }
 0x3d4   : > { %v2046_v18 = vpop.f32.mrf.mxu0 }
 0x3d5   : > { %v2083_v22 = vpack.c.bf16 %v2046_v18, %v2043_v14 }
 0x3d6   : > { %v8337_v25 = vpop.f32.mrf.mxu0 }
 0x3d7   : > { %8365 = vmatmul.mubr.msk.bf16.gmra.mxu1 %vm1510_vm0, %v2083_v22 }
 0x3d8   : > { %v2051_v48 = vpop.f32.mrf.mxu0  ;;  %8368 = vmatprep.mubr.msk.bf16.mxu1 %vm13604_vm3, %v13599_v28 }
 0x3da   : > { %v8340_v42 = vpop.f32.mrf.mxu0 }
 0x3dc   : > { %v2054_v26 = vpop.f32.mrf.mxu0 }
 0x3dd   : > { %v2084_v34 = vpack.c.bf16 %v2054_v26, %v2051_v48 }
 0x3de   : > { %v8341_v44 = vpop.f32.mrf.mxu0 }
 0x3df   : > { %8369 = vmatmul.mubr.msk.bf16.gmra.mxu1 %vm1510_vm0, %v2084_v34 }
 0x3e0   : > { %v2059_v40 = vpop.f32.mrf.mxu0  ;;  %8372 = vmatprep.mubr.msk.bf16.mxu1 %vm13604_vm3, %v13599_v28 }
 0x3e2   : > { %v8344_v61 = vpop.f32.mrf.mxu0 }
 0x3e4   : > { %v2062_v45 = vpop.f32.mrf.mxu0 }
 0x3e5   : > { %v2085_v32 = vpack.c.bf16 %v2062_v45, %v2059_v40 }
 0x3e6   : > { %v8345_v53 = vpop.f32.mrf.mxu0 }
 0x3e7   : > { %8373 = vmatmul.mubr.msk.bf16.gmra.mxu1 %vm1510_vm0, %v2085_v32 }
 0x3e8   : > { %v2067_v58 = vpop.f32.mrf.mxu0  ;;  %8376 = vmatprep.mubr.msk.bf16.mxu1 %vm13604_vm3, %v13599_v28 }
 0x3ea   : > { %v8348_v54 = vpop.f32.mrf.mxu0 }
 0x3ec   : > { %v2070_v51 = vpop.f32.mrf.mxu0 }
 0x3ed   : > { %v2086_v62 = vpack.c.bf16 %v2070_v51, %v2067_v58 }
 0x3ee   : > { %v8349_v52 = vpop.f32.mrf.mxu0 }
 0x3ef   : > { %8377 = vmatmul.mubr.msk.bf16.gmra.mxu1 %vm1510_vm0, %v2086_v62 }
 0x3f0   : > { %v2075_v5 = vpop.f32.mrf.mxu0  ;;  %8380 = vmatprep.mubr.msk.bf16.mxu1 %vm13604_vm3, %v13599_v28 }
 0x3f1   : > { %v2087_v50 = vpack.c.bf16 %v2075_v5, %v2075_v5 }
 0x3f2   : > { %v8352_v63 = vpop.f32.mrf.mxu0 }
 0x3f4   : > { %v2078_v6 = vpop.f32.mrf.mxu0 }
 0x3f6   : > { %v8353_v46 = vpop.f32.mrf.mxu0 }
 0x3f7   : > { %8381 = vmatmul.mubr.msk.bf16.gmra.mxu1 %vm1510_vm0, %v2087_v50 }
 0x3f8   : > { %v2320_v37 = vpop.f32.mrf.mxu0  ;;  %8428 = vmatprep.mubr.msk.bf16.mxu1 %vm13604_vm3, %v13599_v28 }
 0x3fa   : > { %v8400_v47 = vpop.f32.mrf.mxu0 }
 0x3fc   : > { %v2323_v55 = vpop.f32.mrf.mxu0 }
 0x3fd   : > { %v2374_v43 = vpack.c.bf16 %v2323_v55, %v2320_v37 }
 0x3fe   : > { %v8401_v13 = vpop.f32.mrf.mxu0 }
 0x3ff   : > { %8429 = vmatmul.mubr.msk.bf16.vlgmr.msra.gmra.mxu1 %vm1510_vm0, %v2374_v43 }
 0x400   : > { %v2328_v56 = vpop.f32.mrf.mxu0  ;;  %8432 = vmatprep.mubr.msk.bf16.mxu1 %vm13604_vm3, %v13599_v28  ;;  %8499 = vmatpush3.bf16.msra.mxu1 %v8678_v12 }
 0x402   : > { %v8404_v21 = vpop.f32.mrf.mxu0 }
 0x404   : > { %v2331_v57 = vpop.f32.mrf.mxu0 }
 0x405   : > { %v2375_v36 = vpack.c.bf16 %v2331_v57, %v2328_v56 }
 0x406   : > { %v8405_v59 = vpop.f32.mrf.mxu0 }
 0x407   : > { %8433 = vmatmul.mubr.msk.bf16.gmra.mxu1 %vm1510_vm0, %v2375_v36 }
 0x408   : > { %v2336_v19 = vpop.f32.mrf.mxu0  ;;  %8436 = vmatprep.mubr.msk.bf16.mxu1 %vm13604_vm3, %v13599_v28 }
 0x40a   : > { %v8408_v60 = vpop.f32.mrf.mxu0 }
 0x40c   : > { %v2339_v20 = vpop.f32.mrf.mxu0 }
 0x40d   : > { %v2376_v29 = vpack.c.bf16 %v2339_v20, %v2336_v19 }
 0x40e   : > { %v8409_v3 = vpop.f32.mrf.mxu0 }
 0x40f   : > { %8437 = vmatmul.mubr.msk.bf16.gmra.mxu1 %vm1510_vm0, %v2376_v29 }
 0x410   : > { %v2344_v4 = vpop.f32.mrf.mxu0  ;;  %8440 = vmatprep.mubr.msk.bf16.mxu1 %vm13604_vm3, %v13599_v28 }
 0x412   : > { %v8412_v7 = vpop.f32.mrf.mxu0 }
 0x414   : > { %v2347_v10 = vpop.f32.mrf.mxu0 }
 0x415   : > { %v2377_v27 = vpack.c.bf16 %v2347_v10, %v2344_v4 }
 0x416   : > { %v8413_v11 = vpop.f32.mrf.mxu0 }
 0x417   : > { %v9738_v33 = vpop.f32.mrf.mxu1  ;;  %8441 = vmatmul.mubr.msk.bf16.gmra.mxu1 %vm1510_vm0, %v2377_v27 }
 0x418   : > { %v2352_v14 = vpop.f32.mrf.mxu0  ;;  %8444 = vmatprep.mubr.msk.bf16.mxu1 %vm13604_vm3, %v13599_v28 }
 0x419   : > { %v8214_v17 = vpop.f32.mrf.mxu1 }
 0x41a   : > { %v8416_v18 = vpop.f32.mrf.mxu0 }
 0x41b   : > { %v9743_v22 = vpop.f32.mrf.mxu1 }
 0x41c   : > { %v2355_v25 = vpop.f32.mrf.mxu0 }
 0x41d   : > { %v2378_v48 = vpack.c.bf16 %v2355_v25, %v2352_v14  ;;  %v8215_v42 = vpop.f32.mrf.mxu1 }
 0x41e   : > { %v8417_v26 = vpop.f32.mrf.mxu0 }
 0x41f   : > { %v9745_v34 = vpop.f32.mrf.mxu1  ;;  %8445 = vmatmul.mubr.msk.bf16.gmra.mxu1 %vm1510_vm0, %v2378_v48 }
 0x420   : > { %v2360_v44 = vpop.f32.mrf.mxu0  ;;  %8448 = vmatprep.mubr.msk.bf16.mxu1 %vm13604_vm3, %v13599_v28 }
 0x421   : > { %v8218_v40 = vpop.f32.mrf.mxu1 }
 0x422   : > { %v8420_v61 = vpop.f32.mrf.mxu0 }
 0x423   : > { %v9750_v45 = vpop.f32.mrf.mxu1 }
 0x424   : > { %v2363_v32 = vpop.f32.mrf.mxu0 }
 0x425   : > { %v2379_v53 = vpack.c.bf16 %v2363_v32, %v2360_v44  ;;  %v8219_v58 = vpop.f32.mrf.mxu1 }
 0x426   : > { %v8421_v54 = vpop.f32.mrf.mxu0 }
 0x427   : > { %v9752_v51 = vpop.f32.mrf.mxu1  ;;  %8449 = vmatmul.mubr.msk.bf16.gmra.mxu1 %vm1510_vm0, %v2379_v53  ;;  %v9788_v53 = vld [vmem:[%s13592_s5] ss:$0 sm:$0xff] }
 0x428   : > { %v2368_v62 = vpop.f32.mrf.mxu0  ;;  %8452 = vmatprep.mubr.msk.bf16.mxu1 %vm13604_vm3, %v13599_v28 }
 0x429   : > { %v8222_v52 = vpop.f32.mrf.mxu1  ;;  %v2380_v50 = vpack.c.bf16 %v2368_v62, %v2368_v62 }
 0x42a   : > { %v8424_v5 = vpop.f32.mrf.mxu0 }
 0x42b   : > { %v9757_v63 = vpop.f32.mrf.mxu1  ;;  %v1620_v5 = vadd.f32 %v9788_v53, %v9738_v33 }
 0x42c   : > { %v2371_v6 = vpop.f32.mrf.mxu0 }
 0x42d   : > { %v8223_v46 = vpop.f32.mrf.mxu1 }
 0x42e   : > { %v8425_v37 = vpop.f32.mrf.mxu0 }
 0x42f   : > { %v9759_v47 = vpop.f32.mrf.mxu1  ;;  %8453 = vmatmul.mubr.msk.bf16.gmra.mxu1 %vm1510_vm0, %v2380_v50 }
 0x430   : > { %v2613_v55 = vpop.f32.mrf.mxu0  ;;  %8500 = vmatprep.mubr.msk.bf16.mxu1 %vm13604_vm3, %v13599_v28 }
 0x431   : > { %v8226_v12 = vpop.f32.mrf.mxu1 }
 0x432   : > { %v8472_v43 = vpop.f32.mrf.mxu0  ;;  %v1621_v12 = vadd.f32 %v9788_v53, %v9743_v22 }
 0x433   : > { %v9764_v13 = vpop.f32.mrf.mxu1 }
 0x434   : > { %v2616_v56 = vpop.f32.mrf.mxu0 }
 0x435   : > { %v2667_v21 = vpack.c.bf16 %v2616_v56, %v2613_v55  ;;  %v8227_v57 = vpop.f32.mrf.mxu1 }
 0x436   : > { %v8473_v36 = vpop.f32.mrf.mxu0 }
 0x437   : > { %v9766_v59 = vpop.f32.mrf.mxu1  ;;  %8501 = vmatmul.mubr.msk.bf16.vlgmr.msra.gmra.mxu1 %vm1510_vm0, %v2667_v21 }
 0x438   : > { %v2621_v19 = vpop.f32.mrf.mxu0  ;;  %8504 = vmatprep.mubr.msk.bf16.mxu1 %vm13604_vm3, %v13599_v28 }
 0x439   : > { %v8230_v60 = vpop.f32.mrf.mxu1 }
 0x43a   : > { %v8476_v20 = vpop.f32.mrf.mxu0 }
 0x43b   : > { %v9771_v29 = vpop.f32.mrf.mxu1 }
 0x43c   : > { %v2624_v3 = vpop.f32.mrf.mxu0 }
 0x43d   : > { %v2668_v4 = vpack.c.bf16 %v2624_v3, %v2621_v19  ;;  %v8231_v7 = vpop.f32.mrf.mxu1  ;;  %v1622_v19 = vadd.f32 %v9788_v53, %v9745_v34 }
 0x43e   : > { %v8477_v10 = vpop.f32.mrf.mxu0  ;;  %v1623_v7 = vadd.f32 %v9788_v53, %v9750_v45 }
 0x43f   : > { %v9773_v27 = vpop.f32.mrf.mxu1  ;;  %8505 = vmatmul.mubr.msk.bf16.gmra.mxu1 %vm1510_vm0, %v2668_v4 }
 0x440   : > { %v2629_v11 = vpop.f32.mrf.mxu0  ;;  %8508 = vmatprep.mubr.msk.bf16.mxu1 %vm13604_vm3, %v13599_v28 }
 0x441   : > { %v8234_v14 = vpop.f32.mrf.mxu1 }
 0x442   : > { %v8480_v17 = vpop.f32.mrf.mxu0 }
 0x443   : > { %v9778_v18 = vpop.f32.mrf.mxu1 }
 0x444   : > { %v2632_v25 = vpop.f32.mrf.mxu0 }
 0x445   : > { %v2669_v48 = vpack.c.bf16 %v2632_v25, %v2629_v11  ;;  %v8235_v42 = vpop.f32.mrf.mxu1 }
 0x446   : > { %v8481_v26 = vpop.f32.mrf.mxu0 }
 0x447   : > { %v9780_v44 = vpop.f32.mrf.mxu1  ;;  %8509 = vmatmul.mubr.msk.bf16.gmra.mxu1 %vm1510_vm0, %v2669_v48  ;;  %v1624_v48 = vadd.f32 %v9788_v53, %v9752_v51 }
 0x448   : > { %v2637_v40 = vpop.f32.mrf.mxu0  ;;  %8512 = vmatprep.mubr.msk.bf16.mxu1 %vm13604_vm3, %v13599_v28 }
 0x449   : > { %v8238_v61 = vpop.f32.mrf.mxu1 }
 0x44a   : > { %v8484_v32 = vpop.f32.mrf.mxu0 }
 0x44b   : > { %v1617_v58 = vpop.f32.mrf.mxu1  ;;  %v1625_v32 = vadd.f32 %v9788_v53, %v9757_v63 }
 0x44c   : > { %v2640_v54 = vpop.f32.mrf.mxu0 }
 0x44d   : > { %v2670_v62 = vpack.c.bf16 %v2640_v54, %v2637_v40  ;;  %v8239_v52 = vpop.f32.mrf.mxu1 }
 0x44e   : > { %v8485_v6 = vpop.f32.mrf.mxu0 }
 0x44f   : > { %v1859_v50 = vpop.f32.mrf.mxu1  ;;  %8513 = vmatmul.mubr.msk.bf16.gmra.mxu1 %vm1510_vm0, %v2670_v62  ;;  %v8679_v6 = vld [vmem:[%s13593_s6 + $0xc8] ss:$100 sps:$4 sm:$0xff]  }
 0x450   : > { %v9793_v46 = vadd.f32 %v1859_v50, %v1620_v5  ;;  %v2645_v37 = vpop.f32.mrf.mxu0  ;;  %8516 = vmatprep.mubr.msk.bf16.mxu1 %vm13604_vm3, %v13599_v28  ;;  %v8681_v50 = vld [vmem:[%s13593_s6 + $0xcc] ss:$100 sps:$4 sm:$0xff]  }
 0x451   : > { %v8286_v55 = vpop.f32.mrf.mxu1  ;;  %3163 = vmatprep.subr.bf16.mxu0 %v8681_v50 }
 0x452   : > { %v8488_v43 = vpop.f32.mrf.mxu0  ;;  %3164 = vmatpush1.bf16.msra.mxu0 %v8679_v6 }
 0x453   : > { %v1862_v56 = vpop.f32.mrf.mxu1 }
 0x454   : > { %v9799_v21 = vadd.f32 %v1862_v56, %v1621_v12  ;;  %v2648_v57 = vpop.f32.mrf.mxu0  ;;  %v1627_v56 = vadd.f32 %v9788_v53, %v9764_v13 }
 0x455   : > { %v2671_v33 = vpack.c.bf16 %v2648_v57, %v2645_v37  ;;  %v8287_v36 = vpop.f32.mrf.mxu1  ;;  %v1626_v37 = vadd.f32 %v9788_v53, %v9759_v47 }
 0x456   : > { %v8489_v60 = vpop.f32.mrf.mxu0 }
 0x457   : > { %v1867_v20 = vpop.f32.mrf.mxu1  ;;  %8517 = vmatmul.mubr.msk.bf16.gmra.mxu1 %vm1510_vm0, %v2671_v33 }
 0x458   : > { %v9804_v3 = vadd.f32 %v1867_v20, %v1622_v19  ;;  %v2653_v4 = vpop.f32.mrf.mxu0  ;;  %8520 = vmatprep.mubr.msk.bf16.mxu1 %vm13604_vm3, %v13599_v28  ;;  %v1628_v19 = vadd.f32 %v9788_v53, %v9766_v59  ;;  %v1631_v59 = vadd.f32 %v9788_v53, %v9778_v18  ;;  %v1632_v18 = vadd.f32 %v9788_v53, %v9780_v44 }
 0x459   : > { %v8290_v22 = vpop.f32.mrf.mxu1 }
 0x45a   : > { %v8492_v10 = vpop.f32.mrf.mxu0 }
 0x45b   : > { %v1870_v11 = vpop.f32.mrf.mxu1 }
 0x45c   : > { %v9810_v14 = vadd.f32 %v1870_v11, %v1623_v7  ;;  %v2656_v17 = vpop.f32.mrf.mxu0  ;;  %v1630_v11 = vadd.f32 %v9788_v53, %v9773_v27  ;;  %v8687_v27 = vld [vmem:[%s13593_s6 + $0x4] ss:$100 sps:$4 sm:$0xff]  }
 0x45d   : > { %v2672_v34 = vpack.c.bf16 %v2656_v17, %v2653_v4  ;;  %v8291_v25 = vpop.f32.mrf.mxu1  ;;  %v1629_v4 = vadd.f32 %v9788_v53, %v9771_v29  ;;  %v8682_v29 = vld [vmem:[%s13593_s6 + $0xd0] ss:$100 sps:$4 sm:$0xff]   ;;  %3165 = vmatprep.subr.bf16.mxu0 %v8687_v27 }
 0x45e   : > { %v8493_v42 = vpop.f32.mrf.mxu0  ;;  %v8684_v25 = vld [vmem:[%s13593_s6 + $0xd4] ss:$100 sps:$4 sm:$0xff]  }
 0x45f   : > { %v1875_v26 = vpop.f32.mrf.mxu1  ;;  %8521 = vmatmul.mubr.msk.bf16.gmra.mxu1 %vm1510_vm0, %v2672_v34  ;;  %3264 = vmatprep.subr.bf16.mxu1 %v8684_v25 }
 0x460   : > { %v9815_v40 = vadd.f32 %v1875_v26, %v1624_v48  ;;  %v2661_v61 = vpop.f32.mrf.mxu0  ;;  %8524 = vmatprep.mubr.msk.bf16.mxu1 %vm13604_vm3, %v13599_v28  ;;  %3265 = vmatpush1.bf16.msra.mxu1 %v8682_v29 }
 0x461   : > { %v8294_v45 = vpop.f32.mrf.mxu1  ;;  %v2673_v62 = vpack.c.bf16 %v2661_v61, %v2661_v61  ;;  %v8690_v61 = vld [vmem:[%s13593_s6 + $0xc] ss:$100 sps:$4 sm:$0xff]  }
 0x462   : > { %v8496_v58 = vpop.f32.mrf.mxu0  ;;  %v8685_v45 = vld [vmem:[%s13593_s6] ss:$100 sps:$4 sm:$0xff]   ;;  %3266 = vmatprep.subr.bf16.mxu1 %v8690_v61 }
 0x463   : > { %v1878_v54 = vpop.f32.mrf.mxu1  ;;  %3166 = vmatpush1.bf16.msra.mxu0 %v8685_v45 }
 0x464   : > { %v9821_v52 = vadd.f32 %v1878_v54, %v1625_v32  ;;  %v2664_v51 = vpop.f32.mrf.mxu0  ;;  %v8688_v32 = vld [vmem:[%s13593_s6 + $0x8] ss:$100 sps:$4 sm:$0xff]  }
 0x465   : > { %v8295_v5 = vpop.f32.mrf.mxu1  ;;  %3267 = vmatpush1.bf16.msra.mxu1 %v8688_v32 }
 0x466   : > { %v8497_v55 = vpop.f32.mrf.mxu0 }
 0x467   : > { %v1883_v63 = vpop.f32.mrf.mxu1  ;;  %8525 = vmatmul.mubr.msk.bf16.gmra.mxu1 %vm1510_vm0, %v2673_v62 }
 0x468   : > { %v1919_v12 = vadd.f32 %v1883_v63, %v1626_v37  ;;  %3284 = vmatprep.mubr.bf16.mxu1 %v8816_v1 }
 0x469   : > { %v8298_v43 = vpop.f32.mrf.mxu1 }
 0x46b   : > { %v1886_v57 = vpop.f32.mrf.mxu1 }
 0x46c   : > { %v1920_v33 = vadd.f32 %v1886_v57, %v1627_v56 }
 0x46d   : > { %v8299_v36 = vpop.f32.mrf.mxu1 }
 0x46f   : > { %v1891_v47 = vpop.f32.mrf.mxu1 }
 0x470   : > { %v1921_v60 = vadd.f32 %v1891_v47, %v1628_v19 }
 0x471   : > { %v8302_v20 = vpop.f32.mrf.mxu1 }
 0x473   : > { %v1894_v22 = vpop.f32.mrf.mxu1 }
 0x474   : > { %v1922_v7 = vadd.f32 %v1894_v22, %v1629_v4 }
 0x475   : > { %v8303_v10 = vpop.f32.mrf.mxu1 }
 0x477   : > { %v1899_v17 = vpop.f32.mrf.mxu1 }
 0x478   : > { %v1923_v13 = vadd.f32 %v1899_v17, %v1630_v11 }
 0x479   : > { %v8306_v34 = vpop.f32.mrf.mxu1 }
 0x47b   : > { %v1902_v48 = vpop.f32.mrf.mxu1 }
 0x47c   : > { %v1924_v42 = vadd.f32 %v1902_v48, %v1631_v59 }
 0x47d   : > { %v8307_v26 = vpop.f32.mrf.mxu1 }
 0x47f   : > { %v1907_v58 = vpop.f32.mrf.mxu1 }
 0x480   : > { %v1925_v54 = vadd.f32 %v1907_v58, %v1632_v18  ;;  %v8696_v18 = vld [vmem:[%s13593_s6 + $0xe4] ss:$100 sps:$4 sm:$0xff]  }
 0x481   : > { %v8310_v62 = vpop.f32.mrf.mxu1  ;;  %3466 = vmatprep.subr.bf16.mxu1 %v8696_v18 }
 0x483   : > { %v1910_v51 = vpop.f32.mrf.mxu1 }
 0x485   : > { %v8311_v5 = vpop.f32.mrf.mxu1 }
 0x487   : > { %v2152_v6 = vpop.f32.mrf.mxu1 }
 0x488   : > { %v9864_v44 = vadd.f32 %v2152_v6, %v9793_v46 }
 0x489   : > { %v8358_v53 = vpop.f32.mrf.mxu1 }
 0x48b   : > { %v2155_v50 = vpop.f32.mrf.mxu1 }
 0x48c   : > { %v9867_v37 = vadd.f32 %v2155_v50, %v9799_v21 }
 0x48d   : > { %v8359_v55 = vpop.f32.mrf.mxu1 }
 0x48f   : > { %v2160_v63 = vpop.f32.mrf.mxu1 }
 0x490   : > { %v9870_v43 = vadd.f32 %v2160_v63, %v9804_v3  ;;  %v8693_v3 = vld [vmem:[%s13593_s6 + $0xdc] ss:$100 sps:$4 sm:$0xff]  }
 0x491   : > { %v8362_v56 = vpop.f32.mrf.mxu1  ;;  %3365 = vmatprep.subr.bf16.mxu0 %v8693_v3 }
 0x493   : > { %v2163_v57 = vpop.f32.mrf.mxu1 }
 0x494   : > { %v9873_v36 = vadd.f32 %v2163_v57, %v9810_v14 }
 0x495   : > { %v8363_v19 = vpop.f32.mrf.mxu1 }
 0x497   : > { %v2168_v47 = vpop.f32.mrf.mxu1 }
 0x498   : > { %v9876_v46 = vadd.f32 %v2168_v47, %v9815_v40 }
 0x499   : > { %v8366_v20 = vpop.f32.mrf.mxu1 }
 0x49b   : > { %v2171_v4 = vpop.f32.mrf.mxu1 }
 0x49c   : > { %v9879_v21 = vadd.f32 %v2171_v4, %v9821_v52 }
 0x49d   : > { %v8367_v22 = vpop.f32.mrf.mxu1 }
 0x49f   : > { %v2176_v10 = vpop.f32.mrf.mxu1 }
 0x4a0   : > { %v9881_v11 = vadd.f32 %v2176_v10, %v1919_v12 }
 0x4a1   : > { %v8370_v14 = vpop.f32.mrf.mxu1 }
 0x4a3   : > { %v2179_v17 = vpop.f32.mrf.mxu1 }
 0x4a4   : > { %v9886_v34 = vadd.f32 %v2179_v17, %v1920_v33 }
 0x4a5   : > { %v8371_v40 = vpop.f32.mrf.mxu1 }
 0x4a7   : > { %v2184_v25 = vpop.f32.mrf.mxu1 }
 0x4a8   : > { %v9888_v59 = vadd.f32 %v2184_v25, %v1921_v60 }
 0x4a9   : > { %v8374_v29 = vpop.f32.mrf.mxu1 }
 0x4ab   : > { %v2187_v52 = vpop.f32.mrf.mxu1 }
 0x4ac   : > { %v9890_v48 = vadd.f32 %v2187_v52, %v1922_v7 }
 0x4ad   : > { %v8375_v26 = vpop.f32.mrf.mxu1 }
 0x4af   : > { %v2192_v12 = vpop.f32.mrf.mxu1 }
 0x4b0   : > { %v9892_v27 = vadd.f32 %v2192_v12, %v1923_v13 }
 0x4b1   : > { %v8378_v61 = vpop.f32.mrf.mxu1 }
 0x4b3   : > { %v2195_v45 = vpop.f32.mrf.mxu1 }
 0x4b4   : > { %v9897_v33 = vadd.f32 %v2195_v45, %v1924_v42 }
 0x4b5   : > { %v8379_v32 = vpop.f32.mrf.mxu1 }
 0x4b7   : > { %v2200_v60 = vpop.f32.mrf.mxu1 }
 0x4b8   : > { %v9899_v58 = vadd.f32 %v2200_v60, %v1925_v54 }
 0x4b9   : > { %v8382_v62 = vpop.f32.mrf.mxu1 }
 0x4bb   : > { %v2203_v7 = vpop.f32.mrf.mxu1 }
 0x4bd   : > { %v8383_v51 = vpop.f32.mrf.mxu1 }
 0x4bf   : > { %v2445_v5 = vpop.f32.mrf.mxu1 }
 0x4c0   : > { %v2499_v32 = vadd.f32 %v2445_v5, %v9864_v44  ;;  %v8694_v44 = vld [vmem:[%s13593_s6 + $0xe0] ss:$100 sps:$4 sm:$0xff]   ;;  %v8699_v5 = vld [vmem:[%s13593_s6 + $0x14] ss:$100 sps:$4 sm:$0xff]  }
 0x4c1   : > { %v8430_v6 = vpop.f32.mrf.mxu1 }
 0x4c3   : > { %v2448_v13 = vpop.f32.mrf.mxu1 }
 0x4c4   : > { %v2500_v62 = vadd.f32 %v2448_v13, %v9867_v37  ;;  %v8702_v13 = vld [vmem:[%s13593_s6 + $0x1c] ss:$100 sps:$4 sm:$0xff]  }
 0x4c5   : > { %v8431_v53 = vpop.f32.mrf.mxu1 }
 0x4c7   : > { %v2453_v50 = vpop.f32.mrf.mxu1 }
 0x4c9   : > { %v8434_v55 = vpop.f32.mrf.mxu1 }
 0x4cb   : > { %v2456_v63 = vpop.f32.mrf.mxu1 }
 0x4cd   : > { %v8435_v56 = vpop.f32.mrf.mxu1 }
 0x4cf   : > { %v2461_v57 = vpop.f32.mrf.mxu1 }
 0x4d1   : > { %v8438_v19 = vpop.f32.mrf.mxu1 }
 0x4d3   : > { %v9901_v47 = vpop.f32.mrf.mxu1 }
 0x4d5   : > { %v8439_v42 = vpop.f32.mrf.mxu1 }
 0x4d6   : > { %v2501_v42 = vadd.f32 %v2453_v50, %v9870_v43  ;;  %v2502_v43 = vadd.f32 %v2456_v63, %v9873_v36  ;;  %v8700_v36 = vld [vmem:[%s13593_s6 + $0x18] ss:$100 sps:$4 sm:$0xff]  }
 0x4d7   : > { %v9903_v20 = vpop.f32.mrf.mxu1 }
 0x4d9   : > { %v8442_v54 = vpop.f32.mrf.mxu1 }
 0x4db   : > { %v9905_v4 = vpop.f32.mrf.mxu1 }
 0x4dd   : > { %v8443_v22 = vpop.f32.mrf.mxu1 }
 0x4de   : > { %v8691_v22 = vld [vmem:[%s13593_s6 + $0xd8] ss:$100 sps:$4 sm:$0xff]  }
 0x4df   : > { %v9907_v10 = vpop.f32.mrf.mxu1 }
 0x4e1   : > { %v8446_v3 = vpop.f32.mrf.mxu1 }
 0x4e3   : > { %v9909_v14 = vpop.f32.mrf.mxu1 }
 0x4e5   : > { %v8447_v17 = vpop.f32.mrf.mxu1 }
 0x4e7   : > { %v9911_v40 = vpop.f32.mrf.mxu1 }
 0x4e9   : > { %v8450_v25 = vpop.f32.mrf.mxu1 }
 0x4ea   : > { %v8697_v25 = vld [vmem:[%s13593_s6 + $0x10] ss:$100 sps:$4 sm:$0xff]  }
 0x4eb   : > { %v9913_v29 = vpop.f32.mrf.mxu1 }
 0x4ed   : > { %v8451_v52 = vpop.f32.mrf.mxu1 }
 0x4ee   : > { %v8705_v52 = vld [vmem:[%s13593_s6 + $0xec] ss:$100 sps:$4 sm:$0xff]  }
 0x4ef   : > { %v9915_v26 = vpop.f32.mrf.mxu1 }
 0x4f1   : > { %v8454_v12 = vpop.f32.mrf.mxu1 }
 0x4f2   : > { %v8708_v12 = vld [vmem:[%s13593_s6 + $0xf4] ss:$100 sps:$4 sm:$0xff]  }
 0x4f3   : > { %v2496_v61 = vpop.f32.mrf.mxu1 }
 0x4f5   : > { %v8455_v18 = vpop.f32.mrf.mxu1 }
 0x4f7   : > { %v2738_v45 = vpop.f32.mrf.mxu1 }
 0x4f8   : > { %v2792_v7 = vadd.f32 %v2738_v45, %v2499_v32  ;;  %v2503_v32 = vadd.f32 %v2461_v57, %v9876_v46 }
 0x4f9   : > { %v8502_v60 = vpop.f32.mrf.mxu1 }
 0x4fa   : > { %v2805_v55 = vmax.f32 %v2792_v7, 0.0  ;;  %v2504_v7 = vadd.f32 %v9901_v47, %v9879_v21  ;;  %v2505_v21 = vadd.f32 %v9903_v20, %v9881_v11 }
 0x4fb   : > { %v2741_v51 = vpop.f32.mrf.mxu1 }
 0x4fc   : > { %v2793_v6 = vadd.f32 %v2741_v51, %v2500_v62 }
 0x4fd   : > { %v8503_v53 = vpop.f32.mrf.mxu1 }
 0x4fe   : > { %v2806_v56 = vmax.f32 %v2793_v6, 0.0 }
 0x4ff   : > { %v2746_v19 = vpop.f32.mrf.mxu1 }
 0x500   : > { %v9920_v54 = vpack.c.bf16 %v2806_v56, %v2805_v55  ;;  %v2794_v50 = vadd.f32 %v2746_v19, %v2501_v42  ;;  %v2506_v42 = vadd.f32 %v9905_v4, %v9886_v34  ;;  %v2507_v34 = vadd.f32 %v9907_v10, %v9888_v59 }
 0x501   : > { %v8506_v37 = vpop.f32.mrf.mxu1 }
 0x502   : > { %7401 = vmatmul.mubr.msk.bf16.vlgmr.msra.gmra.mxu0 %vm13606_vm10, %v9920_v54  ;;  %7408 = vmatmul.mubr.msk.bf16.vlgmr.msra.gmra.mxu1 %vm13606_vm10, %v9920_v54  ;;  %v2807_v61 = vmax.f32 %v2794_v50, 0.0  ;;  %v2508_v50 = vadd.f32 %v9909_v14, %v9890_v48  ;;  %v2509_v48 = vadd.f32 %v9911_v40, %v9892_v27  ;;  %v2511_v40 = vadd.f32 %v9915_v26, %v9899_v58 }
 0x503   : > { %v2749_v3 = vpop.f32.mrf.mxu1  ;;  %3193 = vmatprep.mubr.bf16.mxu0 %v8816_v1  ;;  %3294 = vmatprep.mubr.bf16.mxu1 %v8816_v1 }
 0x504   : > { %v2795_v17 = vadd.f32 %v2749_v3, %v2502_v43  ;;  %3366 = vmatpush1.bf16.msra.mxu0 %v8691_v22  ;;  %3467 = vmatpush1.bf16.msra.mxu1 %v8694_v44 }
 0x505   : > { %v8507_v63 = vpop.f32.mrf.mxu1  ;;  %3367 = vmatprep.subr.bf16.mxu0 %v8699_v5  ;;  %3468 = vmatprep.subr.bf16.mxu1 %v8702_v13 }
 0x506   : > { %v2808_v18 = vmax.f32 %v2795_v17, 0.0 }
 0x507   : > { %v2754_v45 = vpop.f32.mrf.mxu1 }
 0x508   : > { %v9954_v60 = vpack.c.bf16 %v2808_v18, %v2807_v61  ;;  %3368 = vmatpush1.bf16.msra.mxu0 %v8697_v25  ;;  %3469 = vmatpush1.bf16.msra.mxu1 %v8700_v36  ;;  %v2796_v51 = vadd.f32 %v2754_v45, %v2503_v32 }
 0x509   : > { %v8510_v62 = vpop.f32.mrf.mxu1  ;;  %3567 = vmatprep.subr.bf16.mxu0 %v8705_v52  ;;  %3668 = vmatprep.subr.bf16.mxu1 %v8708_v12  ;;  %v2510_v12 = vadd.f32 %v9913_v29, %v9897_v33 }
 0x50a   : > { %7402 = vmatmul.mubr.msk.bf16.gmra.mxu0 %vm13606_vm10, %v9954_v60  ;;  %7409 = vmatmul.mubr.msk.bf16.gmra.mxu1 %vm13606_vm10, %v9954_v60  ;;  %v2809_v53 = vmax.f32 %v2796_v51, 0.0 }
 0x50b   : > { %v2757_v6 = vpop.f32.mrf.mxu1  ;;  %3203 = vmatprep.mubr.bf16.mxu0 %v8816_v1  ;;  %3304 = vmatprep.mubr.bf16.mxu1 %v8816_v1 }
 0x50c   : > { %v2797_v46 = vadd.f32 %v2757_v6, %v2504_v7 }
 0x50d   : > { %v8511_v57 = vpop.f32.mrf.mxu1 }
 0x50e   : > { %v2810_v55 = vmax.f32 %v2797_v46, 0.0  ;;  %v8703_v57 = vld [vmem:[%s13593_s6 + $0xe8] ss:$100 sps:$4 sm:$0xff]  }
 0x50f   : > { %v2762_v56 = vpop.f32.mrf.mxu1 }
 0x510   : > { %v9966_v47 = vpack.c.bf16 %v2810_v55, %v2809_v53  ;;  %v2798_v22 = vadd.f32 %v2762_v56, %v2505_v21  ;;  %v8706_v53 = vld [vmem:[%s13593_s6 + $0xf0] ss:$100 sps:$4 sm:$0xff]   ;;  %v8711_v55 = vld [vmem:[%s13593_s6 + $0x24] ss:$100 sps:$4 sm:$0xff]  }
 0x511   : > { %v8514_v19 = vpop.f32.mrf.mxu1  ;;  %v8714_v56 = vld [vmem:[%s13593_s6 + $0x2c] ss:$100 sps:$4 sm:$0xff]   ;;  %v8709_v21 = vld [vmem:[%s13593_s6 + $0x20] ss:$100 sps:$4 sm:$0xff]  }
 0x512   : > { %7403 = vmatmul.mubr.msk.bf16.gmra.mxu0 %vm13606_vm10, %v9966_v47  ;;  %7410 = vmatmul.mubr.msk.bf16.gmra.mxu1 %vm13606_vm10, %v9966_v47  ;;  %v2811_v20 = vmax.f32 %v2798_v22, 0.0  ;;  %v8712_v19 = vld [vmem:[%s13593_s6 + $0x28] ss:$100 sps:$4 sm:$0xff]  }
 0x513   : > { %v2765_v44 = vpop.f32.mrf.mxu1  ;;  %3213 = vmatprep.mubr.bf16.mxu0 %v8816_v1  ;;  %3314 = vmatprep.mubr.bf16.mxu1 %v8816_v1  ;;  %v8720_v22 = vld [vmem:[%s13593_s6 + $0x104] ss:$100 sps:$4 sm:$0xff]  }
 0x514   : > { %v2799_v37 = vadd.f32 %v2765_v44, %v2506_v42  ;;  %v8717_v42 = vld [vmem:[%s13593_s6 + $0xfc] ss:$100 sps:$4 sm:$0xff]  }
 0x515   : > { %v8515_v11 = vpop.f32.mrf.mxu1  ;;  %v8715_v44 = vld [vmem:[%s13593_s6 + $0xf8] ss:$100 sps:$4 sm:$0xff]  }
 0x516   : > { %v2812_v5 = vmax.f32 %v2799_v37, 0.0  ;;  %v8718_v37 = vld [vmem:[%s13593_s6 + $0x100] ss:$100 sps:$4 sm:$0xff]   ;;  %v8723_v11 = vld [vmem:[%s13593_s6 + $0x34] ss:$100 sps:$4 sm:$0xff]  }
 0x517   : > { %v2770_v13 = vpop.f32.mrf.mxu1 }
 0x518   : > { %v9978_v4 = vpack.c.bf16 %v2812_v5, %v2811_v20  ;;  %v2800_v3 = vadd.f32 %v2770_v13, %v2507_v34  ;;  %v8726_v20 = vld [vmem:[%s13593_s6 + $0x3c] ss:$100 sps:$4 sm:$0xff]   ;;  %v8721_v5 = vld [vmem:[%s13593_s6 + $0x30] ss:$100 sps:$4 sm:$0xff]  }
 0x519   : > { %v8518_v43 = vpop.f32.mrf.mxu1  ;;  %v8724_v13 = vld [vmem:[%s13593_s6 + $0x38] ss:$100 sps:$4 sm:$0xff]   ;;  %v8729_v34 = vld [vmem:[%s13593_s6 + $0x10c] ss:$100 sps:$4 sm:$0xff]  }
 0x51a   : > { %7404 = vmatmul.mubr.msk.bf16.gmra.mxu0 %vm13606_vm10, %v9978_v4  ;;  %7411 = vmatmul.mubr.msk.bf16.gmra.mxu1 %vm13606_vm10, %v9978_v4  ;;  %v2813_v10 = vmax.f32 %v2800_v3, 0.0  ;;  %v8732_v43 = vld [vmem:[%s13593_s6 + $0x114] ss:$100 sps:$4 sm:$0xff]  }
 0x51b   : > { %v2773_v17 = vpop.f32.mrf.mxu1  ;;  %3223 = vmatprep.mubr.bf16.mxu0 %v8816_v1  ;;  %3324 = vmatprep.mubr.bf16.mxu1 %v8816_v1  ;;  %v8730_v3 = vld [vmem:[%s13593_s6 + $0x110] ss:$100 sps:$4 sm:$0xff]  }
 0x51c   : > { %v2801_v25 = vadd.f32 %v2773_v17, %v2508_v50  ;;  %v8727_v50 = vld [vmem:[%s13593_s6 + $0x108] ss:$100 sps:$4 sm:$0xff]  }
 0x51d   : > { %v8519_v59 = vpop.f32.mrf.mxu1  ;;  %v8735_v17 = vld [vmem:[%s13593_s6 + $0x44] ss:$100 sps:$4 sm:$0xff]  }
 0x51e   : > { %v2814_v36 = vmax.f32 %v2801_v25, 0.0  ;;  %v8738_v25 = vld [vmem:[%s13593_s6 + $0x4c] ss:$100 sps:$4 sm:$0xff]   ;;  %v8733_v59 = vld [vmem:[%s13593_s6 + $0x40] ss:$100 sps:$4 sm:$0xff]  }
 0x51f   : > { %v2778_v63 = vpop.f32.mrf.mxu1 }
 0x520   : > { %v9990_v14 = vpack.c.bf16 %v2814_v36, %v2813_v10  ;;  %v2802_v61 = vadd.f32 %v2778_v63, %v2509_v48  ;;  %v8736_v10 = vld [vmem:[%s13593_s6 + $0x48] ss:$100 sps:$4 sm:$0xff]   ;;  %v8741_v36 = vld [vmem:[%s13593_s6 + $0x11c] ss:$100 sps:$4 sm:$0xff]   ;;  %v4451_v48 = vadd.s32 256, %v9014_v30 }
 0x521   : > { %v8522_v52 = vpop.f32.mrf.mxu1  ;;  %v8744_v63 = vld [vmem:[%s13593_s6 + $0x124] ss:$100 sps:$4 sm:$0xff]  }
 0x522   : > { %7405 = vmatmul.mubr.msk.bf16.gmra.mxu0 %vm13606_vm10, %v9990_v14  ;;  %7412 = vmatmul.mubr.msk.bf16.gmra.mxu1 %vm13606_vm10, %v9990_v14  ;;  %v2815_v32 = vmax.f32 %v2802_v61, 0.0  ;;  %v4452_v52 = vadd.s32 384, %v9014_v30  ;;  %v10197_v61 = vshra.s32 %v4451_v48, 5 }
 0x523   : > { %v2781_v18 = vpop.f32.mrf.mxu1  ;;  %3233 = vmatprep.mubr.bf16.mxu0 %v8816_v1  ;;  %3334 = vmatprep.mubr.bf16.mxu1 %v8816_v1 }
 0x524   : > { %v2803_v45 = vadd.f32 %v2781_v18, %v2510_v12  ;;  %v10195_v12 = vshra.s32 %v9014_v30, 5  ;;  %v10200_v18 = vshra.s32 %v9017_v31, 5  ;;  %vm4501_vm5 = vcmp.eq.s32.totalorder %v10197_v61, %v9250_v41 }
 0x525   : > { %v8523_v27 = vpop.f32.mrf.mxu1  ;;  %vm4526_vm7 = vcmp.eq.s32.totalorder %v10197_v61, %v9259_v38  ;;  %vm4551_vm14 = vcmp.eq.s32.totalorder %v10197_v61, %v9280_v0  ;;  %vm4576_vm4 = vcmp.eq.s32.totalorder %v10197_v61, %v9283_v2 }
 0x526   : > { %v2816_v62 = vmax.f32 %v2803_v45, 0.0  ;;  %vm4499_vm0 = vcmp.eq.s32.totalorder %v10195_v12, %v9250_v41  ;;  %vm4524_vm6 = vcmp.eq.s32.totalorder %v10195_v12, %v9259_v38  ;;  %vm4500_vm8 = vcmp.eq.s32.totalorder %v10200_v18, %v9250_v41 }
 0x527   : > { %v2786_v33 = vpop.f32.mrf.mxu1  ;;  %vm4525_vm11 = vcmp.eq.s32.totalorder %v10200_v18, %v9259_v38  ;;  %vm4549_vm13 = vcmp.eq.s32.totalorder %v10195_v12, %v9280_v0  ;;  %vm4550_vm15 = vcmp.eq.s32.totalorder %v10200_v18, %v9280_v0  ;;  %vm4574_vm2 = vcmp.eq.s32.totalorder %v10195_v12, %v9283_v2 }
 0x528   : > { %v10002_v29 = vpack.c.bf16 %v2816_v62, %v2815_v32  ;;  %v2804_v7 = vadd.f32 %v2786_v33, %v2511_v40  ;;  %v10206_v40 = vshra.s32 %v4452_v52, 5 }
 0x529   : > { %v8526_v51 = vpop.f32.mrf.mxu1 }
 0x52a   : > { %13616 = vst [vmem:[#allocation6_spill] sm:$0xff] %v10002_v29  ;;  %7406 = vmatmul.mubr.msk.bf16.gmra.mxu0 %vm13606_vm10, %v10002_v29  ;;  %7413 = vmatmul.mubr.msk.bf16.gmra.mxu1 %vm13606_vm10, %v10002_v29  ;;  %v2817_v46 = vmax.f32 %v2804_v7, 0.0  ;;  %vm4502_vm9 = vcmp.eq.s32.totalorder %v10206_v40, %v9250_v41  ;;  %vm4527_vm12 = vcmp.eq.s32.totalorder %v10206_v40, %v9259_v38 }
 0x52b   : > { %3243 = vmatprep.mubr.bf16.mxu0 %v8816_v1  ;;  %3344 = vmatprep.mubr.bf16.mxu1 %v8816_v1  ;;  %v2789_v6 = vpop.f32.mrf.mxu1  ;;  %vm4552_vm1 = vcmp.eq.s32.totalorder %v10206_v40, %v9280_v0 }
 0x52c   : > { %v10010_v26 = vpack.c.bf16 %v2817_v46, %v2817_v46 }
 0x52d   : > { %v8527_v58 = vpop.f32.mrf.mxu1 }
 0x52e   : > { %13617 = vst [vmem:[#allocation7_spill] sm:$0xff] %v10010_v26 }
 0x532   : > { %7407 = vmatmul.mubr.msk.bf16.gmra.mxu0 %vm13606_vm10, %v10010_v26  ;;  %7414 = vmatmul.mubr.msk.bf16.gmra.mxu1 %vm13606_vm10, %v10010_v26 }
 0x533   : > { %3385 = vmatprep.mubr.bf16.mxu0 %v8816_v1  ;;  %3486 = vmatprep.mubr.bf16.mxu1 %v8816_v1 }
 0x53a   : > { %7415 = vmatmul.mubr.msk.bf16.vlgmr.msra.gmra.mxu0 %vm13606_vm10, %v9920_v54  ;;  %7422 = vmatmul.mubr.msk.bf16.vlgmr.msra.gmra.mxu1 %vm13606_vm10, %v9920_v54 }
 0x53b   : > { %3395 = vmatprep.mubr.bf16.mxu0 %v8816_v1  ;;  %3496 = vmatprep.mubr.bf16.mxu1 %v8816_v1 }
 0x53c   : > { %3568 = vmatpush1.bf16.msra.mxu0 %v8703_v57  ;;  %3669 = vmatpush1.bf16.msra.mxu1 %v8706_v53 }
 0x53d   : > { %3569 = vmatprep.subr.bf16.mxu0 %v8711_v55  ;;  %3670 = vmatprep.subr.bf16.mxu1 %v8714_v56 }
 0x540   : > { %3570 = vmatpush1.bf16.msra.mxu0 %v8709_v21  ;;  %3671 = vmatpush1.bf16.msra.mxu1 %v8712_v19 }
 0x541   : > { %3769 = vmatprep.subr.bf16.mxu0 %v8717_v42  ;;  %3870 = vmatprep.subr.bf16.mxu1 %v8720_v22 }
 0x542   : > { %7416 = vmatmul.mubr.msk.bf16.gmra.mxu0 %vm13606_vm10, %v9954_v60  ;;  %7423 = vmatmul.mubr.msk.bf16.gmra.mxu1 %vm13606_vm10, %v9954_v60 }
 0x543   : > { %3405 = vmatprep.mubr.bf16.mxu0 %v8816_v1  ;;  %3506 = vmatprep.mubr.bf16.mxu1 %v8816_v1 }
 0x54a   : > { %7417 = vmatmul.mubr.msk.bf16.gmra.mxu0 %vm13606_vm10, %v9966_v47  ;;  %7424 = vmatmul.mubr.msk.bf16.gmra.mxu1 %vm13606_vm10, %v9966_v47 }
 0x54b   : > { %3415 = vmatprep.mubr.bf16.mxu0 %v8816_v1  ;;  %3516 = vmatprep.mubr.bf16.mxu1 %v8816_v1 }
 0x552   : > { %7418 = vmatmul.mubr.msk.bf16.gmra.mxu0 %vm13606_vm10, %v9978_v4  ;;  %7425 = vmatmul.mubr.msk.bf16.gmra.mxu1 %vm13606_vm10, %v9978_v4 }
 0x553   : > { %3425 = vmatprep.mubr.bf16.mxu0 %v8816_v1  ;;  %3526 = vmatprep.mubr.bf16.mxu1 %v8816_v1 }
 0x55a   : > { %7419 = vmatmul.mubr.msk.bf16.gmra.mxu0 %vm13606_vm10, %v9990_v14  ;;  %7426 = vmatmul.mubr.msk.bf16.gmra.mxu1 %vm13606_vm10, %v9990_v14 }
 0x55b   : > { %3435 = vmatprep.mubr.bf16.mxu0 %v8816_v1  ;;  %3536 = vmatprep.mubr.bf16.mxu1 %v8816_v1 }
 0x562   : > { %7420 = vmatmul.mubr.msk.bf16.gmra.mxu0 %vm13606_vm10, %v10002_v29  ;;  %7427 = vmatmul.mubr.msk.bf16.gmra.mxu1 %vm13606_vm10, %v10002_v29 }
 0x563   : > { %3445 = vmatprep.mubr.bf16.mxu0 %v8816_v1  ;;  %3546 = vmatprep.mubr.bf16.mxu1 %v8816_v1 }
 0x56a   : > { %7421 = vmatmul.mubr.msk.bf16.gmra.mxu0 %vm13606_vm10, %v10010_v26  ;;  %7428 = vmatmul.mubr.msk.bf16.gmra.mxu1 %vm13606_vm10, %v10010_v26 }
 0x56b   : > { %3587 = vmatprep.mubr.bf16.mxu0 %v8816_v1  ;;  %3688 = vmatprep.mubr.bf16.mxu1 %v8816_v1 }
 0x572   : > { %7429 = vmatmul.mubr.msk.bf16.vlgmr.msra.gmra.mxu0 %vm13606_vm10, %v9920_v54  ;;  %7436 = vmatmul.mubr.msk.bf16.vlgmr.msra.gmra.mxu1 %vm13606_vm10, %v9920_v54 }
 0x573   : > { %3597 = vmatprep.mubr.bf16.mxu0 %v8816_v1  ;;  %3698 = vmatprep.mubr.bf16.mxu1 %v8816_v1 }
 0x574   : > { %3770 = vmatpush1.bf16.msra.mxu0 %v8715_v44  ;;  %3871 = vmatpush1.bf16.msra.mxu1 %v8718_v37 }
 0x575   : > { %3771 = vmatprep.subr.bf16.mxu0 %v8723_v11  ;;  %3872 = vmatprep.subr.bf16.mxu1 %v8726_v20 }
 0x578   : > { %3772 = vmatpush1.bf16.msra.mxu0 %v8721_v5  ;;  %3873 = vmatpush1.bf16.msra.mxu1 %v8724_v13 }
 0x579   : > { %3971 = vmatprep.subr.bf16.mxu0 %v8729_v34  ;;  %4072 = vmatprep.subr.bf16.mxu1 %v8732_v43 }
 0x57a   : > { %7430 = vmatmul.mubr.msk.bf16.gmra.mxu0 %vm13606_vm10, %v9954_v60  ;;  %7437 = vmatmul.mubr.msk.bf16.gmra.mxu1 %vm13606_vm10, %v9954_v60 }
 0x57b   : > { %3607 = vmatprep.mubr.bf16.mxu0 %v8816_v1  ;;  %3708 = vmatprep.mubr.bf16.mxu1 %v8816_v1 }
 0x582   : > { %7431 = vmatmul.mubr.msk.bf16.gmra.mxu0 %vm13606_vm10, %v9966_v47  ;;  %7438 = vmatmul.mubr.msk.bf16.gmra.mxu1 %vm13606_vm10, %v9966_v47 }
 0x583   : > { %3617 = vmatprep.mubr.bf16.mxu0 %v8816_v1  ;;  %3718 = vmatprep.mubr.bf16.mxu1 %v8816_v1 }
 0x58a   : > { %7432 = vmatmul.mubr.msk.bf16.gmra.mxu0 %vm13606_vm10, %v9978_v4  ;;  %7439 = vmatmul.mubr.msk.bf16.gmra.mxu1 %vm13606_vm10, %v9978_v4 }
 0x58b   : > { %3627 = vmatprep.mubr.bf16.mxu0 %v8816_v1  ;;  %3728 = vmatprep.mubr.bf16.mxu1 %v8816_v1 }
 0x592   : > { %7433 = vmatmul.mubr.msk.bf16.gmra.mxu0 %vm13606_vm10, %v9990_v14  ;;  %7440 = vmatmul.mubr.msk.bf16.gmra.mxu1 %vm13606_vm10, %v9990_v14 }
 0x593   : > { %3637 = vmatprep.mubr.bf16.mxu0 %v8816_v1  ;;  %3738 = vmatprep.mubr.bf16.mxu1 %v8816_v1 }
 0x59a   : > { %7434 = vmatmul.mubr.msk.bf16.gmra.mxu0 %vm13606_vm10, %v10002_v29  ;;  %7441 = vmatmul.mubr.msk.bf16.gmra.mxu1 %vm13606_vm10, %v10002_v29 }
 0x59b   : > { %3647 = vmatprep.mubr.bf16.mxu0 %v8816_v1  ;;  %3748 = vmatprep.mubr.bf16.mxu1 %v8816_v1 }
 0x5a2   : > { %7435 = vmatmul.mubr.msk.bf16.gmra.mxu0 %vm13606_vm10, %v10010_v26  ;;  %7442 = vmatmul.mubr.msk.bf16.gmra.mxu1 %vm13606_vm10, %v10010_v26 }
 0x5a3   : > { %3789 = vmatprep.mubr.bf16.mxu0 %v8816_v1  ;;  %3890 = vmatprep.mubr.bf16.mxu1 %v8816_v1 }
 0x5aa   : > { %7443 = vmatmul.mubr.msk.bf16.vlgmr.msra.gmra.mxu0 %vm13606_vm10, %v9920_v54  ;;  %7450 = vmatmul.mubr.msk.bf16.vlgmr.msra.gmra.mxu1 %vm13606_vm10, %v9920_v54 }
 0x5ab   : > { %3799 = vmatprep.mubr.bf16.mxu0 %v8816_v1  ;;  %3900 = vmatprep.mubr.bf16.mxu1 %v8816_v1 }
 0x5ac   : > { %3972 = vmatpush1.bf16.msra.mxu0 %v8727_v50  ;;  %4073 = vmatpush1.bf16.msra.mxu1 %v8730_v3 }
 0x5ad   : > { %3973 = vmatprep.subr.bf16.mxu0 %v8735_v17  ;;  %4074 = vmatprep.subr.bf16.mxu1 %v8738_v25 }
 0x5b0   : > { %3974 = vmatpush1.bf16.msra.mxu0 %v8733_v59  ;;  %4075 = vmatpush1.bf16.msra.mxu1 %v8736_v10 }
 0x5b1   : > { %4173 = vmatprep.subr.bf16.mxu0 %v8741_v36  ;;  %4274 = vmatprep.subr.bf16.mxu1 %v8744_v63 }
 0x5b2   : > { %7444 = vmatmul.mubr.msk.bf16.gmra.mxu0 %vm13606_vm10, %v9954_v60  ;;  %7451 = vmatmul.mubr.msk.bf16.gmra.mxu1 %vm13606_vm10, %v9954_v60 }
 0x5b3   : > { %3809 = vmatprep.mubr.bf16.mxu0 %v8816_v1  ;;  %3910 = vmatprep.mubr.bf16.mxu1 %v8816_v1 }
 0x5ba   : > { %7445 = vmatmul.mubr.msk.bf16.gmra.mxu0 %vm13606_vm10, %v9966_v47  ;;  %7452 = vmatmul.mubr.msk.bf16.gmra.mxu1 %vm13606_vm10, %v9966_v47 }
 0x5bb   : > { %3819 = vmatprep.mubr.bf16.mxu0 %v8816_v1  ;;  %3920 = vmatprep.mubr.bf16.mxu1 %v8816_v1 }
 0x5c2   : > { %v3185_v45 = vpop.f32.mrf.mxu0  ;;  %v3286_v27 = vpop.f32.mrf.mxu1  ;;  %7446 = vmatmul.mubr.msk.bf16.gmra.mxu0 %vm13606_vm10, %v9978_v4  ;;  %7453 = vmatmul.mubr.msk.bf16.gmra.mxu1 %vm13606_vm10, %v9978_v4 }
 0x5c3   : > { %3829 = vmatprep.mubr.bf16.mxu0 %v8816_v1  ;;  %3930 = vmatprep.mubr.bf16.mxu1 %v8816_v1  ;;  %v4824_v7 = vsel %vm4499_vm0, %v3185_v45, 0.0  ;;  %v4826_v51 = vsel %vm4501_vm5, %v3286_v27, 0.0  ;;  %vm4575_vm0 = vcmp.eq.s32.totalorder %v10200_v18, %v9283_v2  ;;  %vm4577_vm5 = vcmp.eq.s32.totalorder %v10206_v40, %v9283_v2 }
 0x5c4   : > { %v3187_v31 = vpop.f32.mrf.mxu0  ;;  %v3288_v32 = vpop.f32.mrf.mxu1 }
 0x5c5   : > { %v4825_v56 = vsel %vm4500_vm8, %v3187_v31, 0.0  ;;  %v4827_v21 = vsel %vm4502_vm9, %v3288_v32, 0.0  ;;  %vm4600_vm8 = vcmp.eq.s32.totalorder %v10200_v18, %v9302_v8  ;;  %vm4602_vm9 = vcmp.eq.s32.totalorder %v10206_v40, %v9302_v8 }
 0x5c6   : > { %v3189_v62 = vpop.f32.mrf.mxu0  ;;  %v3290_v33 = vpop.f32.mrf.mxu1 }
 0x5c7   : > { %v4849_v6 = vsel %vm4524_vm6, %v3189_v62, 0.0  ;;  %v4851_v46 = vsel %vm4526_vm7, %v3290_v33, 0.0  ;;  %vm4599_vm6 = vcmp.eq.s32.totalorder %v10195_v12, %v9302_v8  ;;  %vm4601_vm7 = vcmp.eq.s32.totalorder %v10197_v61, %v9302_v8 }
 0x5c8   : > { %v5149_v58 = vadd.f32 %v4849_v6, %v4824_v7  ;;  %v5185_v57 = vadd.f32 %v4851_v46, %v4826_v51  ;;  %v3191_v53 = vpop.f32.mrf.mxu0  ;;  %v3292_v55 = vpop.f32.mrf.mxu1 }
 0x5c9   : > { %v4850_v19 = vsel %vm4525_vm11, %v3191_v53, 0.0  ;;  %v4852_v42 = vsel %vm4527_vm12, %v3292_v55, 0.0  ;;  %vm4624_vm11 = vcmp.eq.s32.totalorder %v10195_v12, %v9305_v9  ;;  %vm4626_vm12 = vcmp.eq.s32.totalorder %v10197_v61, %v9305_v9 }
 0x5ca   : > { %v5167_v22 = vadd.f32 %v4850_v19, %v4825_v56  ;;  %v5203_v44 = vadd.f32 %v4852_v42, %v4827_v21  ;;  %v3195_v37 = vpop.f32.mrf.mxu0  ;;  %v3296_v11 = vpop.f32.mrf.mxu1  ;;  %7447 = vmatmul.mubr.msk.bf16.gmra.mxu0 %vm13606_vm10, %v9990_v14  ;;  %7454 = vmatmul.mubr.msk.bf16.gmra.mxu1 %vm13606_vm10, %v9990_v14 }
 0x5cb   : > { %v4874_v20 = vsel %vm4549_vm13, %v3195_v37, 0.0  ;;  %v4876_v5 = vsel %vm4551_vm14, %v3296_v11, 0.0  ;;  %3839 = vmatprep.mubr.bf16.mxu0 %v8816_v1  ;;  %3940 = vmatprep.mubr.bf16.mxu1 %v8816_v1  ;;  %vm4625_vm13 = vcmp.eq.s32.totalorder %v10200_v18, %v9305_v9  ;;  %vm4627_vm14 = vcmp.eq.s32.totalorder %v10206_v40, %v9305_v9 }
 0x5cc   : > { %v5150_v13 = vadd.f32 %v5149_v58, %v4874_v20  ;;  %v5186_v34 = vadd.f32 %v5185_v57, %v4876_v5  ;;  %v3197_v43 = vpop.f32.mrf.mxu0  ;;  %v3298_v50 = vpop.f32.mrf.mxu1 }
 0x5cd   : > { %v4875_v3 = vsel %vm4550_vm15, %v3197_v43, 0.0  ;;  %v4877_v17 = vsel %vm4552_vm1, %v3298_v50, 0.0  ;;  %vm4649_vm15 = vcmp.eq.s32.totalorder %v10195_v12, %v9327_v15  ;;  %vm4651_vm1 = vcmp.eq.s32.totalorder %v10197_v61, %v9327_v15 }
 0x5ce   : > { %v5168_v25 = vadd.f32 %v5167_v22, %v4875_v3  ;;  %v5204_v59 = vadd.f32 %v5203_v44, %v4877_v17  ;;  %v3199_v10 = vpop.f32.mrf.mxu0  ;;  %v3300_v36 = vpop.f32.mrf.mxu1 }
 0x5cf   : > { %v4899_v63 = vsel %vm4574_vm2, %v3199_v10, 0.0  ;;  %v4901_v48 = vsel %vm4576_vm4, %v3300_v36, 0.0  ;;  %vm4650_vm2 = vcmp.eq.s32.totalorder %v10200_v18, %v9327_v15  ;;  %vm4652_vm4 = vcmp.eq.s32.totalorder %v10206_v40, %v9327_v15 }
 0x5d0   : > { %v5151_v52 = vadd.f32 %v5150_v13, %v4899_v63  ;;  %v5187_v45 = vadd.f32 %v5186_v34, %v4901_v48  ;;  %v3201_v27 = vpop.f32.mrf.mxu0  ;;  %v3302_v31 = vpop.f32.mrf.mxu1 }
 0x5d1   : > { %v4900_v32 = vsel %vm4575_vm0, %v3201_v27, 0.0  ;;  %v4902_v62 = vsel %vm4577_vm5, %v3302_v31, 0.0  ;;  %vm4674_vm0 = vcmp.eq.s32.totalorder %v10195_v12, %v9330_v16  ;;  %vm4676_vm5 = vcmp.eq.s32.totalorder %v10197_v61, %v9330_v16 }
 0x5d2   : > { %v5169_v33 = vadd.f32 %v5168_v25, %v4900_v32  ;;  %v5205_v7 = vadd.f32 %v5204_v59, %v4902_v62  ;;  %v3205_v51 = vpop.f32.mrf.mxu0  ;;  %v3306_v6 = vpop.f32.mrf.mxu1  ;;  %7448 = vmatmul.mubr.msk.bf16.gmra.mxu0 %vm13606_vm10, %v10002_v29  ;;  %7455 = vmatmul.mubr.msk.bf16.gmra.mxu1 %vm13606_vm10, %v10002_v29 }
 0x5d3   : > { %v4924_v46 = vsel %vm4599_vm6, %v3205_v51, 0.0  ;;  %v4926_v58 = vsel %vm4601_vm7, %v3306_v6, 0.0  ;;  %3849 = vmatprep.mubr.bf16.mxu0 %v8816_v1  ;;  %3950 = vmatprep.mubr.bf16.mxu1 %v8816_v1  ;;  %vm4675_vm6 = vcmp.eq.s32.totalorder %v10200_v18, %v9330_v16  ;;  %vm4677_vm7 = vcmp.eq.s32.totalorder %v10206_v40, %v9330_v16 }
 0x5d4   : > { %v5152_v57 = vadd.f32 %v5151_v52, %v4924_v46  ;;  %v5188_v53 = vadd.f32 %v5187_v45, %v4926_v58  ;;  %v3207_v55 = vpop.f32.mrf.mxu0  ;;  %v3308_v56 = vpop.f32.mrf.mxu1 }
 0x5d5   : > { %v4925_v21 = vsel %vm4600_vm8, %v3207_v55, 0.0  ;;  %v4927_v19 = vsel %vm4602_vm9, %v3308_v56, 0.0  ;;  %vm4699_vm8 = vcmp.eq.s32.totalorder %v10195_v12, %v9352_v23  ;;  %vm4701_vm9 = vcmp.eq.s32.totalorder %v10197_v61, %v9352_v23  ;;  %v8739_v56 = vld [vmem:[%s13593_s6 + $0x118] ss:$100 sps:$4 sm:$0xff]  }
 0x5d6   : > { %v5170_v42 = vadd.f32 %v5169_v33, %v4925_v21  ;;  %v5206_v22 = vadd.f32 %v5205_v7, %v4927_v19  ;;  %v3209_v44 = vpop.f32.mrf.mxu0  ;;  %v3310_v37 = vpop.f32.mrf.mxu1  ;;  %v8742_v21 = vld [vmem:[%s13593_s6 + $0x120] ss:$100 sps:$4 sm:$0xff]  }
 0x5d7   : > { %v4949_v11 = vsel %vm4624_vm11, %v3209_v44, 0.0  ;;  %v4951_v20 = vsel %vm4626_vm12, %v3310_v37, 0.0  ;;  %vm4700_vm11 = vcmp.eq.s32.totalorder %v10200_v18, %v9352_v23  ;;  %v8750_v44 = vld [vmem:[%s13593_s6 + $0x5c] ss:$100 sps:$4 sm:$0xff]   ;;  %vm4702_vm12 = vcmp.eq.s32.totalorder %v10206_v40, %v9352_v23 }
 0x5d8   : > { %v5153_v5 = vadd.f32 %v5152_v57, %v4949_v11  ;;  %v5189_v13 = vadd.f32 %v5188_v53, %v4951_v20  ;;  %v3211_v34 = vpop.f32.mrf.mxu0  ;;  %v3312_v43 = vpop.f32.mrf.mxu1 }
 0x5d9   : > { %v4950_v50 = vsel %vm4625_vm13, %v3211_v34, 0.0  ;;  %v4952_v3 = vsel %vm4627_vm14, %v3312_v43, 0.0  ;;  %vm4724_vm13 = vcmp.eq.s32.totalorder %v10195_v12, %v9355_v24  ;;  %vm4726_vm14 = vcmp.eq.s32.totalorder %v10197_v61, %v9355_v24 }
 0x5da   : > { %v5171_v17 = vadd.f32 %v5170_v42, %v4950_v50  ;;  %v5207_v25 = vadd.f32 %v5206_v22, %v4952_v3  ;;  %v3215_v59 = vpop.f32.mrf.mxu0  ;;  %v3316_v10 = vpop.f32.mrf.mxu1  ;;  %7449 = vmatmul.mubr.msk.bf16.gmra.mxu0 %vm13606_vm10, %v10010_v26  ;;  %7456 = vmatmul.mubr.msk.bf16.gmra.mxu1 %vm13606_vm10, %v10010_v26  ;;  %v8747_v22 = vld [vmem:[%s13593_s6 + $0x54] ss:$100 sps:$4 sm:$0xff]  }
 0x5db   : > { %v4974_v36 = vsel %vm4649_vm15, %v3215_v59, 0.0  ;;  %v4976_v63 = vsel %vm4651_vm1, %v3316_v10, 0.0  ;;  %3991 = vmatprep.mubr.bf16.mxu0 %v8816_v1  ;;  %4092 = vmatprep.mubr.bf16.mxu1 %v8816_v1  ;;  %v8748_v59 = vld [vmem:[%s13593_s6 + $0x58] ss:$100 sps:$4 sm:$0xff]   ;;  %vm4725_vm15 = vcmp.eq.s32.totalorder %v10200_v18, %v9355_v24  ;;  %vm4727_vm1 = vcmp.eq.s32.totalorder %v10206_v40, %v9355_v24 }
 0x5dc   : > { %v5154_v48 = vadd.f32 %v5153_v5, %v4974_v36  ;;  %v5190_v52 = vadd.f32 %v5189_v13, %v4976_v63  ;;  %v3217_v45 = vpop.f32.mrf.mxu0  ;;  %v3318_v27 = vpop.f32.mrf.mxu1 }
 0x5dd   : > { %v4975_v31 = vsel %vm4650_vm2, %v3217_v45, 0.0  ;;  %v4977_v32 = vsel %vm4652_vm4, %v3318_v27, 0.0  ;;  %v5644_v27 = vld [vmem:[%s13594_s7 + $0xf8] sm:$0xff]  ;;  %vm4749_vm2 = vcmp.eq.s32.totalorder %v10195_v12, %v9377_v35  ;;  %vm4751_vm4 = vcmp.eq.s32.totalorder %v10197_v61, %v9377_v35 }
 0x5de   : > { %v5172_v62 = vadd.f32 %v5171_v17, %v4975_v31  ;;  %v5208_v33 = vadd.f32 %v5207_v25, %v4977_v32  ;;  %v3219_v7 = vpop.f32.mrf.mxu0  ;;  %v3320_v51 = vpop.f32.mrf.mxu1  ;;  %v8745_v25 = vld [vmem:[%s13593_s6 + $0x50] ss:$100 sps:$4 sm:$0xff]  }
 0x5df   : > { %v4999_v6 = vsel %vm4674_vm0, %v3219_v7, 0.0  ;;  %v5001_v46 = vsel %vm4676_vm5, %v3320_v51, 0.0  ;;  %vm4750_vm0 = vcmp.eq.s32.totalorder %v10200_v18, %v9377_v35  ;;  %vm4752_vm5 = vcmp.eq.s32.totalorder %v10206_v40, %v9377_v35 }
 0x5e0   : > { %v5155_v58 = vadd.f32 %v5154_v48, %v4999_v6  ;;  %v5191_v57 = vadd.f32 %v5190_v52, %v5001_v46  ;;  %v3221_v53 = vpop.f32.mrf.mxu0  ;;  %v3322_v55 = vpop.f32.mrf.mxu1 }
 0x5e1   : > { %v5000_v19 = vsel %vm4675_vm6, %v3221_v53, 0.0  ;;  %v5002_v42 = vsel %vm4677_vm7, %v3322_v55, 0.0  ;;  %vm4774_vm6 = vcmp.eq.s32.totalorder %v10195_v12, %v9380_v39  ;;  %vm4776_vm7 = vcmp.eq.s32.totalorder %v10197_v61, %v9380_v39 }
 0x5e2   : > { %v5173_v37 = vadd.f32 %v5172_v62, %v5000_v19  ;;  %v5209_v11 = vadd.f32 %v5208_v33, %v5002_v42  ;;  %v3225_v20 = vpop.f32.mrf.mxu0  ;;  %v3326_v5 = vpop.f32.mrf.mxu1  ;;  %7457 = vmatmul.mubr.msk.bf16.vlgmr.msra.gmra.mxu0 %vm13606_vm10, %v9920_v54  ;;  %7464 = vmatmul.mubr.msk.bf16.vlgmr.msra.gmra.mxu1 %vm13606_vm10, %v9920_v54 }
 0x5e3   : > { %v5024_v13 = vsel %vm4699_vm8, %v3225_v20, 0.0  ;;  %v5026_v34 = vsel %vm4701_vm9, %v3326_v5, 0.0  ;;  %4001 = vmatprep.mubr.bf16.mxu0 %v8816_v1  ;;  %4102 = vmatprep.mubr.bf16.mxu1 %v8816_v1  ;;  %vm4775_vm8 = vcmp.eq.s32.totalorder %v10200_v18, %v9380_v39  ;;  %vm4777_vm9 = vcmp.eq.s32.totalorder %v10206_v40, %v9380_v39 }
 0x5e4   : > { %v5156_v43 = vadd.f32 %v5155_v58, %v5024_v13  ;;  %v5192_v50 = vadd.f32 %v5191_v57, %v5026_v34  ;;  %v3227_v3 = vpop.f32.mrf.mxu0  ;;  %v3328_v17 = vpop.f32.mrf.mxu1  ;;  %4174 = vmatpush1.bf16.msra.mxu0 %v8739_v56  ;;  %4275 = vmatpush1.bf16.msra.mxu1 %v8742_v21 }
 0x5e5   : > { %v5025_v10 = vsel %vm4700_vm11, %v3227_v3, 0.0  ;;  %v5027_v36 = vsel %vm4702_vm12, %v3328_v17, 0.0  ;;  %4175 = vmatprep.subr.bf16.mxu0 %v8747_v22  ;;  %4276 = vmatprep.subr.bf16.mxu1 %v8750_v44  ;;  %vm4799_vm11 = vcmp.eq.s32.totalorder %v10195_v12, %v9400_v49  ;;  %vm4801_vm12 = vcmp.eq.s32.totalorder %v10197_v61, %v9400_v49 }
 0x5e6   : > { %v5174_v63 = vadd.f32 %v5173_v37, %v5025_v10  ;;  %v5210_v48 = vadd.f32 %v5209_v11, %v5027_v36  ;;  %v3229_v52 = vpop.f32.mrf.mxu0  ;;  %v3330_v45 = vpop.f32.mrf.mxu1 }
 0x5e7   : > { %v5049_v31 = vsel %vm4724_vm13, %v3229_v52, 0.0  ;;  %v5051_v32 = vsel %vm4726_vm14, %v3330_v45, 0.0  ;;  %vm4800_vm13 = vcmp.eq.s32.totalorder %v10200_v18, %v9400_v49  ;;  %vm4802_vm14 = vcmp.eq.s32.totalorder %v10206_v40, %v9400_v49 }
 0x5e8   : > { %v5157_v62 = vadd.f32 %v5156_v43, %v5049_v31  ;;  %v5193_v33 = vadd.f32 %v5192_v50, %v5051_v32  ;;  %v3231_v7 = vpop.f32.mrf.mxu0  ;;  %v3332_v51 = vpop.f32.mrf.mxu1  ;;  %4176 = vmatpush1.bf16.msra.mxu0 %v8745_v25  ;;  %4277 = vmatpush1.bf16.msra.mxu1 %v8748_v59 }
 0x5e9   : > { %v5050_v6 = vsel %vm4725_vm15, %v3231_v7, 0.0  ;;  %v5052_v46 = vsel %vm4727_vm1, %v3332_v51, 0.0  ;;  %7646 = vmatprep.subr.mxu1 %v5644_v27  ;;  %8528 = vmatprep.subr.bf16.mxu0 %v13599_v28  ;;  %v4455_v7 = vadd.s32 768, %v9014_v30 }
 0x5ea   : > { %v5175_v58 = vadd.f32 %v5174_v63, %v5050_v6  ;;  %v5211_v57 = vadd.f32 %v5210_v48, %v5052_v46  ;;  %v3235_v53 = vpop.f32.mrf.mxu0  ;;  %v3336_v55 = vpop.f32.mrf.mxu1  ;;  %7458 = vmatmul.mubr.msk.bf16.gmra.mxu0 %vm13606_vm10, %v9954_v60  ;;  %7465 = vmatmul.mubr.msk.bf16.gmra.mxu1 %vm13606_vm10, %v9954_v60  ;;  %v4454_v6 = vadd.s32 640, %v9014_v30 }
 0x5eb   : > { %v5074_v56 = vsel %vm4749_vm2, %v3235_v53, 0.0  ;;  %v5076_v21 = vsel %vm4751_vm4, %v3336_v55, 0.0  ;;  %4011 = vmatprep.mubr.bf16.mxu0 %v8816_v1  ;;  %4112 = vmatprep.mubr.bf16.mxu1 %v8816_v1  ;;  %v4456_v55 = vadd.s32 896, %v9014_v30 }
 0x5ec   : > { %v5158_v19 = vadd.f32 %v5157_v62, %v5074_v56  ;;  %v5194_v42 = vadd.f32 %v5193_v33, %v5076_v21  ;;  %v3237_v22 = vpop.f32.mrf.mxu0  ;;  %v3338_v44 = vpop.f32.mrf.mxu1  ;;  %v4453_v33 = vadd.s32 512, %v9014_v30 }
 0x5ed   : > { %v5075_v37 = vsel %vm4750_vm0, %v3237_v22, 0.0  ;;  %v5077_v11 = vsel %vm4752_vm5, %v3338_v44, 0.0  ;;  %v10436_v22 = vshra.s32 %v4454_v6, 5 }
 0x5ee   : > { %v5176_v20 = vadd.f32 %v5175_v58, %v5075_v37  ;;  %v5212_v5 = vadd.f32 %v5211_v57, %v5077_v11  ;;  %v3239_v13 = vpop.f32.mrf.mxu0  ;;  %v3340_v34 = vpop.f32.mrf.mxu1  ;;  %v10442_v37 = vshra.s32 %v4456_v55, 5 }
 0x5ef   : > { %v5099_v43 = vsel %vm4774_vm6, %v3239_v13, 0.0  ;;  %v5101_v50 = vsel %vm4776_vm7, %v3340_v34, 0.0  ;;  %vm4504_vm0 = vcmp.eq.s32.totalorder %v10436_v22, %v9250_v41  ;;  %vm4529_vm6 = vcmp.eq.s32.totalorder %v10436_v22, %v9259_v38 }
 0x5f0   : > { %v5159_v3 = vadd.f32 %v5158_v19, %v5099_v43  ;;  %v5195_v17 = vadd.f32 %v5194_v42, %v5101_v50  ;;  %v3241_v25 = vpop.f32.mrf.mxu0  ;;  %v3342_v59 = vpop.f32.mrf.mxu1  ;;  %v10432_v19 = vshra.s32 %v4453_v33, 5  ;;  %v10434_v42 = vshra.s32 %v4455_v7, 5 }
 0x5f1   : > { %v5100_v10 = vsel %vm4775_vm8, %v3241_v25, 0.0  ;;  %v5102_v36 = vsel %vm4777_vm9, %v3342_v59, 0.0  ;;  %vm4506_vm5 = vcmp.eq.s32.totalorder %v10442_v37, %v9250_v41  ;;  %vm4531_vm7 = vcmp.eq.s32.totalorder %v10442_v37, %v9259_v38 }
 0x5f2   : > { %v5177_v63 = vadd.f32 %v5176_v20, %v5100_v10  ;;  %v5213_v48 = vadd.f32 %v5212_v5, %v5102_v36  ;;  %v3245_v52 = vpop.f32.mrf.mxu0  ;;  %v3346_v45 = vpop.f32.mrf.mxu1  ;;  %7459 = vmatmul.mubr.msk.bf16.gmra.mxu0 %vm13606_vm10, %v9966_v47  ;;  %7466 = vmatmul.mubr.msk.bf16.gmra.mxu1 %vm13606_vm10, %v9966_v47  ;;  %vm4503_vm15 = vcmp.eq.s32.totalorder %v10432_v19, %v9250_v41 }
 0x5f3   : > { %v5124_v12 = vsel %vm4799_vm11, %v3245_v52, 0.0  ;;  %v5126_v61 = vsel %vm4801_vm12, %v3346_v45, 0.0  ;;  %4021 = vmatprep.mubr.bf16.mxu0 %v8816_v1  ;;  %4122 = vmatprep.mubr.bf16.mxu1 %v8816_v1  ;;  %vm4505_vm1 = vcmp.eq.s32.totalorder %v10434_v42, %v9250_v41  ;;  %vm4528_vm2 = vcmp.eq.s32.totalorder %v10432_v19, %v9259_v38 }
 0x5f4   : > { %v10417_v27 = vadd.f32 %v5159_v3, %v5124_v12  ;;  %v10419_v31 = vadd.f32 %v5195_v17, %v5126_v61  ;;  %v3247_v32 = vpop.f32.mrf.mxu0  ;;  %v3348_v62 = vpop.f32.mrf.mxu1  ;;  %vm4530_vm4 = vcmp.eq.s32.totalorder %v10434_v42, %v9259_v38  ;;  %vm4553_vm8 = vcmp.eq.s32.totalorder %v10432_v19, %v9280_v0 }
 0x5f5   : > { %v5125_v40 = vsel %vm4800_vm13, %v3247_v32, 0.0  ;;  %v5127_v51 = vsel %vm4802_vm14, %v3348_v62, 0.0  ;;  %vm4555_vm9 = vcmp.eq.s32.totalorder %v10434_v42, %v9280_v0  ;;  %vm4554_vm11 = vcmp.eq.s32.totalorder %v10436_v22, %v9280_v0 }
 0x5f6   : > { %v10427_v46 = vadd.f32 %v5177_v63, %v5125_v40  ;;  %v10429_v58 = vadd.f32 %v5213_v48, %v5127_v51  ;;  %v3249_v57 = vpop.f32.mrf.mxu0  ;;  %v3350_v53 = vpop.f32.mrf.mxu1  ;;  %vm4556_vm12 = vcmp.eq.s32.totalorder %v10442_v37, %v9280_v0  ;;  %vm4578_vm13 = vcmp.eq.s32.totalorder %v10432_v19, %v9283_v2 }
 0x5f7   : > { %vm4580_vm14 = vcmp.eq.s32.totalorder %v10434_v42, %v9283_v2 }
 0x5f8   : > { %v3250_v56 = vpop.f32.mrf.mxu0  ;;  %v3351_v21 = vpop.f32.mrf.mxu1 }
 0x5fa   : > { %v3387_v18 = vpop.f32.mrf.mxu0  ;;  %v3488_v44 = vpop.f32.mrf.mxu1  ;;  %7460 = vmatmul.mubr.msk.bf16.gmra.mxu0 %vm13606_vm10, %v9978_v4  ;;  %7467 = vmatmul.mubr.msk.bf16.gmra.mxu1 %vm13606_vm10, %v9978_v4 }
 0x5fb   : > { %4031 = vmatprep.mubr.bf16.mxu0 %v8816_v1  ;;  %4132 = vmatprep.mubr.bf16.mxu1 %v8816_v1  ;;  %v4828_v34 = vsel %vm4503_vm15, %v3387_v18, 0.0  ;;  %v4830_v43 = vsel %vm4505_vm1, %v3488_v44, 0.0  ;;  %vm4579_vm15 = vcmp.eq.s32.totalorder %v10436_v22, %v9283_v2  ;;  %vm4581_vm1 = vcmp.eq.s32.totalorder %v10442_v37, %v9283_v2 }
 0x5fc   : > { %v3389_v11 = vpop.f32.mrf.mxu0  ;;  %v3490_v20 = vpop.f32.mrf.mxu1 }
 0x5fd   : > { %v4829_v36 = vsel %vm4504_vm0, %v3389_v11, 0.0  ;;  %v4831_v63 = vsel %vm4506_vm5, %v3490_v20, 0.0  ;;  %vm4604_vm0 = vcmp.eq.s32.totalorder %v10436_v22, %v9302_v8  ;;  %vm4606_vm5 = vcmp.eq.s32.totalorder %v10442_v37, %v9302_v8 }
 0x5fe   : > { %v3391_v5 = vpop.f32.mrf.mxu0  ;;  %v3492_v13 = vpop.f32.mrf.mxu1 }
 0x5ff   : > { %v4853_v50 = vsel %vm4528_vm2, %v3391_v5, 0.0  ;;  %v4855_v3 = vsel %vm4530_vm4, %v3492_v13, 0.0  ;;  %vm4603_vm2 = vcmp.eq.s32.totalorder %v10432_v19, %v9302_v8  ;;  %vm4605_vm4 = vcmp.eq.s32.totalorder %v10434_v42, %v9302_v8 }
 0x600   : > { %v5221_v17 = vadd.f32 %v4853_v50, %v4828_v34  ;;  %v5257_v25 = vadd.f32 %v4855_v3, %v4830_v43  ;;  %v3393_v59 = vpop.f32.mrf.mxu0  ;;  %v3494_v10 = vpop.f32.mrf.mxu1 }
 0x601   : > { %v4854_v48 = vsel %vm4529_vm6, %v3393_v59, 0.0  ;;  %v4856_v52 = vsel %vm4531_vm7, %v3494_v10, 0.0  ;;  %vm4628_vm6 = vcmp.eq.s32.totalorder %v10432_v19, %v9305_v9  ;;  %vm4630_vm7 = vcmp.eq.s32.totalorder %v10434_v42, %v9305_v9 }
 0x602   : > { %v5239_v45 = vadd.f32 %v4854_v48, %v4829_v36  ;;  %v5275_v12 = vadd.f32 %v4856_v52, %v4831_v63  ;;  %v3397_v61 = vpop.f32.mrf.mxu0  ;;  %v3498_v32 = vpop.f32.mrf.mxu1  ;;  %7461 = vmatmul.mubr.msk.bf16.gmra.mxu0 %vm13606_vm10, %v9990_v14  ;;  %7468 = vmatmul.mubr.msk.bf16.gmra.mxu1 %vm13606_vm10, %v9990_v14 }
 0x603   : > { %v4878_v62 = vsel %vm4553_vm8, %v3397_v61, 0.0  ;;  %v4880_v33 = vsel %vm4555_vm9, %v3498_v32, 0.0  ;;  %4041 = vmatprep.mubr.bf16.mxu0 %v8816_v1  ;;  %4142 = vmatprep.mubr.bf16.mxu1 %v8816_v1  ;;  %vm4629_vm8 = vcmp.eq.s32.totalorder %v10436_v22, %v9305_v9  ;;  %vm4631_vm9 = vcmp.eq.s32.totalorder %v10442_v37, %v9305_v9 }
 0x604   : > { %v5222_v7 = vadd.f32 %v5221_v17, %v4878_v62  ;;  %v5258_v40 = vadd.f32 %v5257_v25, %v4880_v33  ;;  %v3399_v51 = vpop.f32.mrf.mxu0  ;;  %v3500_v6 = vpop.f32.mrf.mxu1 }
 0x605   : > { %v4879_v57 = vsel %vm4554_vm11, %v3399_v51, 0.0  ;;  %v4881_v53 = vsel %vm4556_vm12, %v3500_v6, 0.0  ;;  %vm4653_vm11 = vcmp.eq.s32.totalorder %v10432_v19, %v9327_v15  ;;  %vm4655_vm12 = vcmp.eq.s32.totalorder %v10434_v42, %v9327_v15 }
 0x606   : > { %v5240_v55 = vadd.f32 %v5239_v45, %v4879_v57  ;;  %v5276_v56 = vadd.f32 %v5275_v12, %v4881_v53  ;;  %v3401_v21 = vpop.f32.mrf.mxu0  ;;  %v3502_v18 = vpop.f32.mrf.mxu1 }
 0x607   : > { %v4903_v44 = vsel %vm4578_vm13, %v3401_v21, 0.0  ;;  %v4905_v11 = vsel %vm4580_vm14, %v3502_v18, 0.0  ;;  %vm4654_vm13 = vcmp.eq.s32.totalorder %v10436_v22, %v9327_v15  ;;  %vm4656_vm14 = vcmp.eq.s32.totalorder %v10442_v37, %v9327_v15 }
 0x608   : > { %v5223_v20 = vadd.f32 %v5222_v7, %v4903_v44  ;;  %v5259_v5 = vadd.f32 %v5258_v40, %v4905_v11  ;;  %v3403_v13 = vpop.f32.mrf.mxu0  ;;  %v3504_v34 = vpop.f32.mrf.mxu1 }
 0x609   : > { %v4904_v43 = vsel %vm4579_vm15, %v3403_v13, 0.0  ;;  %v4906_v50 = vsel %vm4581_vm1, %v3504_v34, 0.0  ;;  %vm4678_vm15 = vcmp.eq.s32.totalorder %v10432_v19, %v9330_v16  ;;  %vm4680_vm1 = vcmp.eq.s32.totalorder %v10434_v42, %v9330_v16 }
 0x60a   : > { %v5241_v3 = vadd.f32 %v5240_v55, %v4904_v43  ;;  %v5277_v17 = vadd.f32 %v5276_v56, %v4906_v50  ;;  %v3407_v25 = vpop.f32.mrf.mxu0  ;;  %v3508_v59 = vpop.f32.mrf.mxu1  ;;  %7462 = vmatmul.mubr.msk.bf16.gmra.mxu0 %vm13606_vm10, %v10002_v29  ;;  %7469 = vmatmul.mubr.msk.bf16.gmra.mxu1 %vm13606_vm10, %v10002_v29 }
 0x60b   : > { %v4928_v10 = vsel %vm4603_vm2, %v3407_v25, 0.0  ;;  %v4930_v36 = vsel %vm4605_vm4, %v3508_v59, 0.0  ;;  %4051 = vmatprep.mubr.bf16.mxu0 %v8816_v1  ;;  %4152 = vmatprep.mubr.bf16.mxu1 %v8816_v1  ;;  %vm4679_vm2 = vcmp.eq.s32.totalorder %v10436_v22, %v9330_v16  ;;  %vm4681_vm4 = vcmp.eq.s32.totalorder %v10442_v37, %v9330_v16 }
 0x60c   : > { %v5224_v63 = vadd.f32 %v5223_v20, %v4928_v10  ;;  %v5260_v48 = vadd.f32 %v5259_v5, %v4930_v36  ;;  %v3409_v52 = vpop.f32.mrf.mxu0  ;;  %v3510_v45 = vpop.f32.mrf.mxu1 }
 0x60d   : > { %v4929_v12 = vsel %vm4604_vm0, %v3409_v52, 0.0  ;;  %v4931_v61 = vsel %vm4606_vm5, %v3510_v45, 0.0  ;;  %vm4703_vm0 = vcmp.eq.s32.totalorder %v10432_v19, %v9352_v23  ;;  %vm4705_vm5 = vcmp.eq.s32.totalorder %v10434_v42, %v9352_v23 }
 0x60e   : > { %v5242_v32 = vadd.f32 %v5241_v3, %v4929_v12  ;;  %v5278_v62 = vadd.f32 %v5277_v17, %v4931_v61  ;;  %v3411_v33 = vpop.f32.mrf.mxu0  ;;  %v3512_v7 = vpop.f32.mrf.mxu1 }
 0x60f   : > { %v4953_v40 = vsel %vm4628_vm6, %v3411_v33, 0.0  ;;  %v4955_v51 = vsel %vm4630_vm7, %v3512_v7, 0.0  ;;  %vm4704_vm6 = vcmp.eq.s32.totalorder %v10436_v22, %v9352_v23  ;;  %vm4706_vm7 = vcmp.eq.s32.totalorder %v10442_v37, %v9352_v23 }
 0x610   : > { %v5225_v6 = vadd.f32 %v5224_v63, %v4953_v40  ;;  %v5261_v57 = vadd.f32 %v5260_v48, %v4955_v51  ;;  %v3413_v53 = vpop.f32.mrf.mxu0  ;;  %v3514_v55 = vpop.f32.mrf.mxu1  ;;  %v5628_v40 = vld [vmem:[%s13594_s7 + $0x78] sm:$0xff] }
 0x611   : > { %v4954_v56 = vsel %vm4629_vm8, %v3413_v53, 0.0  ;;  %v4956_v21 = vsel %vm4631_vm9, %v3514_v55, 0.0  ;;  %v5643_v55 = vld [vmem:[%s13594_s7 + $0xf0] sm:$0xff]  ;;  %vm4728_vm8 = vcmp.eq.s32.totalorder %v10432_v19, %v9355_v24  ;;  %vm4730_vm9 = vcmp.eq.s32.totalorder %v10434_v42, %v9355_v24 }
 0x612   : > { %v5243_v18 = vadd.f32 %v5242_v32, %v4954_v56  ;;  %v5279_v44 = vadd.f32 %v5278_v62, %v4956_v21  ;;  %v3417_v11 = vpop.f32.mrf.mxu0  ;;  %v3518_v20 = vpop.f32.mrf.mxu1  ;;  %7463 = vmatmul.mubr.msk.bf16.gmra.mxu0 %vm13606_vm10, %v10010_v26  ;;  %7470 = vmatmul.mubr.msk.bf16.gmra.mxu1 %vm13606_vm10, %v10010_v26  ;;  %v8751_v62 = vld [vmem:[%s13593_s6 + $0x128] ss:$100 sps:$4 sm:$0xff]  }
 0x613   : > { %v4978_v5 = vsel %vm4653_vm11, %v3417_v11, 0.0  ;;  %v4980_v13 = vsel %vm4655_vm12, %v3518_v20, 0.0  ;;  %4193 = vmatprep.mubr.bf16.mxu0 %v8816_v1  ;;  %4294 = vmatprep.mubr.bf16.mxu1 %v8816_v1  ;;  %vm4729_vm11 = vcmp.eq.s32.totalorder %v10436_v22, %v9355_v24  ;;  %vm4753_vm12 = vcmp.eq.s32.totalorder %v10432_v19, %v9377_v35 }
 0x614   : > { %v5226_v34 = vadd.f32 %v5225_v6, %v4978_v5  ;;  %v5262_v43 = vadd.f32 %v5261_v57, %v4980_v13  ;;  %v3419_v50 = vpop.f32.mrf.mxu0  ;;  %v3520_v3 = vpop.f32.mrf.mxu1  ;;  %v5642_v13 = vld [vmem:[%s13594_s7 + $0xe8] sm:$0xff] }
 0x615   : > { %v4979_v17 = vsel %vm4654_vm13, %v3419_v50, 0.0  ;;  %v4981_v25 = vsel %vm4656_vm14, %v3520_v3, 0.0  ;;  %v5626_v3 = vld [vmem:[%s13594_s7 + $0x68] sm:$0xff]  ;;  %vm4755_vm13 = vcmp.eq.s32.totalorder %v10434_v42, %v9377_v35  ;;  %vm4754_vm14 = vcmp.eq.s32.totalorder %v10436_v22, %v9377_v35 }
 0x616   : > { %v5244_v59 = vadd.f32 %v5243_v18, %v4979_v17  ;;  %v5280_v10 = vadd.f32 %v5279_v44, %v4981_v25  ;;  %v3421_v36 = vpop.f32.mrf.mxu0  ;;  %v3522_v63 = vpop.f32.mrf.mxu1  ;;  %v5627_v18 = vld [vmem:[%s13594_s7 + $0x70] sm:$0xff] }
 0x617   : > { %v5003_v48 = vsel %vm4678_vm15, %v3421_v36, 0.0  ;;  %v5005_v52 = vsel %vm4680_vm1, %v3522_v63, 0.0  ;;  %v5641_v36 = vld [vmem:[%s13594_s7 + $0xe0] sm:$0xff]  ;;  %v5708_v63 = vld [vmem:[%s13594_s7 + $0x2f8] sm:$0xff]  ;;  %vm4778_vm15 = vcmp.eq.s32.totalorder %v10432_v19, %v9380_v39  ;;  %vm4780_vm1 = vcmp.eq.s32.totalorder %v10434_v42, %v9380_v39 }
 0x618   : > { %v5227_v45 = vadd.f32 %v5226_v34, %v5003_v48  ;;  %v5263_v12 = vadd.f32 %v5262_v43, %v5005_v52  ;;  %v3423_v61 = vpop.f32.mrf.mxu0  ;;  %v3524_v32 = vpop.f32.mrf.mxu1  ;;  %v8752_v34 = vld [vmem:[%s13593_s6 + $0x60] ss:$100 sps:$4 sm:$0xff]  }
 0x619   : > { %v5004_v33 = vsel %vm4679_vm2, %v3423_v61, 0.0  ;;  %v5006_v7 = vsel %vm4681_vm4, %v3524_v32, 0.0  ;;  %vm4779_vm2 = vcmp.eq.s32.totalorder %v10436_v22, %v9380_v39  ;;  %vm4803_vm4 = vcmp.eq.s32.totalorder %v10432_v19, %v9400_v49  ;;  %v5637_v19 = vld [vmem:[%s13594_s7 + $0xc0] sm:$0xff] }
 0x61a   : > { %v5245_v51 = vadd.f32 %v5244_v59, %v5004_v33  ;;  %v5281_v6 = vadd.f32 %v5280_v10, %v5006_v7  ;;  %v3427_v57 = vpop.f32.mrf.mxu0  ;;  %v3528_v53 = vpop.f32.mrf.mxu1  ;;  %7471 = vmatmul.mubr.msk.bf16.vlgmr.msra.gmra.mxu0 %vm13606_vm10, %v9920_v54  ;;  %7478 = vmatmul.mubr.msk.bf16.vlgmr.msra.gmra.mxu1 %vm13606_vm10, %v9920_v54  ;;  %v5625_v33 = vld [vmem:[%s13594_s7 + $0x60] sm:$0xff] }
 0x61b   : > { %v5028_v56 = vsel %vm4703_vm0, %v3427_v57, 0.0  ;;  %v5030_v21 = vsel %vm4705_vm5, %v3528_v53, 0.0  ;;  %4203 = vmatprep.mubr.bf16.mxu0 %v8816_v1  ;;  %4304 = vmatprep.mubr.bf16.mxu1 %v8816_v1  ;;  %vm4805_vm0 = vcmp.eq.s32.totalorder %v10434_v42, %v9400_v49  ;;  %vm4804_vm5 = vcmp.eq.s32.totalorder %v10436_v22, %v9400_v49 }
 0x61c   : > { %v5228_v44 = vadd.f32 %v5227_v45, %v5028_v56  ;;  %v5264_v11 = vadd.f32 %v5263_v12, %v5030_v21  ;;  %v3429_v20 = vpop.f32.mrf.mxu0  ;;  %v3530_v5 = vpop.f32.mrf.mxu1  ;;  %7647 = vmatpush3.msra.mxu1 %v5628_v40  ;;  %8529 = vmatpush3.bf16.msra.mxu0 %v8751_v62 }
 0x61d   : > { %v5029_v43 = vsel %vm4704_vm6, %v3429_v20, 0.0  ;;  %v5031_v50 = vsel %vm4706_vm7, %v3530_v5, 0.0  ;;  %7648 = vmatprep.subr.mxu1 %v5643_v55  ;;  %8530 = vmatprep.subr.bf16.mxu0 %v13599_v28  ;;  %v5624_v55 = vld [vmem:[%s13594_s7 + $0x58] sm:$0xff]  ;;  %v5623_v5 = vld [vmem:[%s13594_s7 + $0x50] sm:$0xff] }
 0x61e   : > { %v5246_v17 = vadd.f32 %v5245_v51, %v5029_v43  ;;  %v10592_v25 = vadd.f32 %v5281_v6, %v5031_v50  ;;  %v3431_v59 = vpop.f32.mrf.mxu0  ;;  %v3532_v10 = vpop.f32.mrf.mxu1  ;;  %7649 = vmatpush3.msra.mxu1 %v5627_v18  ;;  %v5640_v6 = vld [vmem:[%s13594_s7 + $0xd8] sm:$0xff]  ;;  %v5638_v50 = vld [vmem:[%s13594_s7 + $0xc8] sm:$0xff] }
 0x61f   : > { %v5053_v48 = vsel %vm4728_vm8, %v3431_v59, 0.0  ;;  %v5055_v52 = vsel %vm4730_vm9, %v3532_v10, 0.0  ;;  %7650 = vmatprep.subr.mxu1 %v5642_v13 }
 0x620   : > { %v5229_v45 = vadd.f32 %v5228_v44, %v5053_v48  ;;  %v5265_v12 = vadd.f32 %v5264_v11, %v5055_v52  ;;  %v3433_v61 = vpop.f32.mrf.mxu0  ;;  %v10610_v32 = vpop.f32.mrf.mxu1  ;;  %7651 = vmatpush3.msra.mxu1 %v5626_v3  ;;  %8531 = vmatpush3.bf16.msra.mxu0 %v8752_v34  ;;  %v5639_v11 = vld [vmem:[%s13594_s7 + $0xd0] sm:$0xff]  ;;  %v5622_v52 = vld [vmem:[%s13594_s7 + $0x48] sm:$0xff] }
 0x621   : > { %v5054_v62 = vsel %vm4729_vm11, %v3433_v61, 0.0  ;;  %7652 = vmatprep.subr.mxu1 %v5641_v36  ;;  %7716 = vmatprep.subr.mxu0 %v5708_v63 }
 0x622   : > { %v5247_v7 = vadd.f32 %v5246_v17, %v5054_v62  ;;  %v3437_v40 = vpop.f32.mrf.mxu0  ;;  %v3538_v51 = vpop.f32.mrf.mxu1  ;;  %7472 = vmatmul.mubr.msk.bf16.gmra.mxu0 %vm13606_vm10, %v9954_v60  ;;  %7479 = vmatmul.mubr.msk.bf16.gmra.mxu1 %vm13606_vm10, %v9954_v60 }
 0x623   : > { %v5078_v57 = vsel %vm4753_vm12, %v3437_v40, 0.0  ;;  %v5080_v53 = vsel %vm4755_vm13, %v3538_v51, 0.0  ;;  %4213 = vmatprep.mubr.bf16.mxu0 %v8816_v1  ;;  %4314 = vmatprep.mubr.bf16.mxu1 %v8816_v1 }
 0x624   : > { %v5230_v56 = vadd.f32 %v5229_v45, %v5078_v57  ;;  %v5266_v21 = vadd.f32 %v5265_v12, %v5080_v53  ;;  %v3439_v18 = vpop.f32.mrf.mxu0  ;;  %v10634_v44 = vpop.f32.mrf.mxu1  ;;  %7653 = vmatpush3.msra.mxu1 %v5625_v33  ;;  %v5621_v33 = vld [vmem:[%s13594_s7 + $0x40] sm:$0xff]  ;;  %v4459_v57 = vadd.s32 1280, %v9014_v30  ;;  %v5636_v53 = vld [vmem:[%s13594_s7 + $0xb8] sm:$0xff] }
 0x625   : > { %v5079_v20 = vsel %vm4754_vm14, %v3439_v18, 0.0  ;;  %7654 = vmatprep.subr.mxu1 %v5640_v6  ;;  %v4457_v6 = vadd.s32 1024, %v9014_v30 }
 0x626   : > { %v5248_v13 = vadd.f32 %v5247_v7, %v5079_v20  ;;  %v3441_v34 = vpop.f32.mrf.mxu0  ;;  %v3542_v43 = vpop.f32.mrf.mxu1  ;;  %7655 = vmatpush3.msra.mxu1 %v5624_v55  ;;  %v5635_v20 = vld [vmem:[%s13594_s7 + $0xb0] sm:$0xff] }
 0x627   : > { %v5103_v3 = vsel %vm4778_vm15, %v3441_v34, 0.0  ;;  %v5105_v17 = vsel %vm4780_vm1, %v3542_v43, 0.0  ;;  %7656 = vmatprep.subr.mxu1 %v5639_v11  ;;  %v10693_v34 = vshra.s32 %v4457_v6, 5  ;;  %v10695_v43 = vshra.s32 %v4459_v57, 5 }
 0x628   : > { %v5231_v59 = vadd.f32 %v5230_v56, %v5103_v3  ;;  %v5267_v10 = vadd.f32 %v5266_v21, %v5105_v17  ;;  %v3443_v36 = vpop.f32.mrf.mxu0  ;;  %v10651_v63 = vpop.f32.mrf.mxu1  ;;  %7657 = vmatpush3.msra.mxu1 %v5623_v5  ;;  %v5620_v56 = vld [vmem:[%s13594_s7 + $0x38] sm:$0xff] }
 0x629   : > { %v5104_v48 = vsel %vm4779_vm2, %v3443_v36, 0.0  ;;  %7658 = vmatprep.subr.mxu1 %v5638_v50  ;;  %v5619_v50 = vld [vmem:[%s13594_s7 + $0x30] sm:$0xff]  ;;  %vm4507_vm6 = vcmp.eq.s32.totalorder %v10693_v34, %v9250_v41  ;;  %vm4509_vm7 = vcmp.eq.s32.totalorder %v10695_v43, %v9250_v41  ;;  %vm4532_vm8 = vcmp.eq.s32.totalorder %v10693_v34, %v9259_v38 }
 0x62a   : > { %v5249_v45 = vadd.f32 %v5248_v13, %v5104_v48  ;;  %v3447_v12 = vpop.f32.mrf.mxu0  ;;  %v3548_v61 = vpop.f32.mrf.mxu1  ;;  %7473 = vmatmul.mubr.msk.bf16.gmra.mxu0 %vm13606_vm10, %v9966_v47  ;;  %7480 = vmatmul.mubr.msk.bf16.gmra.mxu1 %vm13606_vm10, %v9966_v47  ;;  %vm4534_vm9 = vcmp.eq.s32.totalorder %v10695_v43, %v9259_v38  ;;  %vm4557_vm11 = vcmp.eq.s32.totalorder %v10693_v34, %v9280_v0 }
 0x62b   : > { %v5128_v42 = vsel %vm4803_vm4, %v3447_v12, 0.0  ;;  %v5130_v62 = vsel %vm4805_vm0, %v3548_v61, 0.0  ;;  %4223 = vmatprep.mubr.bf16.mxu0 %v8816_v1  ;;  %4324 = vmatprep.mubr.bf16.mxu1 %v8816_v1  ;;  %v5617_v12 = vld [vmem:[%s13594_s7 + $0x20] sm:$0xff]  ;;  %vm4559_vm12 = vcmp.eq.s32.totalorder %v10695_v43, %v9280_v0  ;;  %vm4582_vm13 = vcmp.eq.s32.totalorder %v10693_v34, %v9283_v2 }
 0x62c   : > { %v10674_v7 = vadd.f32 %v5231_v59, %v5128_v42  ;;  %v10676_v40 = vadd.f32 %v5267_v10, %v5130_v62  ;;  %v3449_v51 = vpop.f32.mrf.mxu0  ;;  %v10678_v22 = vpop.f32.mrf.mxu1  ;;  %7659 = vmatpush3.msra.mxu1 %v5622_v52  ;;  %v5634_v59 = vld [vmem:[%s13594_s7 + $0xa8] sm:$0xff]  ;;  %v5633_v52 = vld [vmem:[%s13594_s7 + $0xa0] sm:$0xff]  ;;  %v5632_v42 = vld [vmem:[%s13594_s7 + $0x98] sm:$0xff]  ;;  %vm4584_vm14 = vcmp.eq.s32.totalorder %v10695_v43, %v9283_v2  ;;  %vm4607_vm15 = vcmp.eq.s32.totalorder %v10693_v34, %v9302_v8 }
 0x62d   : > { %v5129_v55 = vsel %vm4804_vm5, %v3449_v51, 0.0  ;;  %7660 = vmatprep.subr.mxu1 %v5637_v19  ;;  %v5618_v10 = vld [vmem:[%s13594_s7 + $0x28] sm:$0xff]  ;;  %vm4609_vm1 = vcmp.eq.s32.totalorder %v10695_v43, %v9302_v8  ;;  %vm4632_vm2 = vcmp.eq.s32.totalorder %v10693_v34, %v9305_v9  ;;  %vm4634_vm4 = vcmp.eq.s32.totalorder %v10695_v43, %v9305_v9 }
 0x62e   : > { %13618 = vst [vmem:[#allocation8_spill] sm:$0xff] %v10676_v40  ;;  %v10688_v21 = vadd.f32 %v5249_v45, %v5129_v55  ;;  %v3451_v18 = vpop.f32.mrf.mxu0  ;;  %v3552_v11 = vpop.f32.mrf.mxu1  ;;  %7661 = vmatpush3.msra.mxu1 %v5621_v33  ;;  %v5179_v45 = vrot.slane %v10427_v46, 4  ;;  %vm4657_vm0 = vcmp.eq.s32.totalorder %v10693_v34, %v9327_v15  ;;  %vm4659_vm5 = vcmp.eq.s32.totalorder %v10695_v43, %v9327_v15 }
 0x62f   : > { %7662 = vmatprep.subr.mxu1 %v5636_v53  ;;  %v5616_v11 = vld [vmem:[%s13594_s7 + $0x18] sm:$0xff] }
 0x630   : > { %v3452_v5 = vpop.f32.mrf.mxu0  ;;  %v3553_v13 = vpop.f32.mrf.mxu1  ;;  %7663 = vmatpush3.msra.mxu1 %v5620_v56  ;;  %v5180_v18 = vadd.f32 %v5179_v45, %v10427_v46  ;;  %v5615_v46 = vld [vmem:[%s13594_s7 + $0x10] sm:$0xff] }
 0x631   : > { %7664 = vmatprep.subr.mxu1 %v5635_v20  ;;  %v5631_v13 = vld [vmem:[%s13594_s7 + $0x90] sm:$0xff] }
 0x632   : > { %v3589_v3 = vpop.f32.mrf.mxu0  ;;  %v3690_v17 = vpop.f32.mrf.mxu1  ;;  %7474 = vmatmul.mubr.msk.bf16.gmra.mxu0 %vm13606_vm10, %v9978_v4  ;;  %7481 = vmatmul.mubr.msk.bf16.gmra.mxu1 %vm13606_vm10, %v9978_v4 }
 0x633   : > { %4233 = vmatprep.mubr.bf16.mxu0 %v8816_v1  ;;  %4334 = vmatprep.mubr.bf16.mxu1 %v8816_v1  ;;  %v4832_v62 = vsel %vm4507_vm6, %v3589_v3, 0.0  ;;  %v4834_v33 = vsel %vm4509_vm7, %v3690_v17, 0.0  ;;  %v5161_v17 = vrot.slane %v10417_v27, 4  ;;  %vm4682_vm6 = vcmp.eq.s32.totalorder %v10693_v34, %v9330_v16 }
 0x634   : > { %v10716_v36 = vpop.f32.mrf.mxu0  ;;  %v10718_v48 = vpop.f32.mrf.mxu1  ;;  %7665 = vmatpush3.msra.mxu1 %v5619_v50  ;;  %vm4684_vm7 = vcmp.eq.s32.totalorder %v10695_v43, %v9330_v16 }
 0x635   : > { %7666 = vmatprep.subr.mxu1 %v5634_v59 }
 0x636   : > { %v3593_v61 = vpop.f32.mrf.mxu0  ;;  %v3694_v19 = vpop.f32.mrf.mxu1  ;;  %7667 = vmatpush3.msra.mxu1 %v5618_v10 }
 0x637   : > { %v4857_v51 = vsel %vm4532_vm8, %v3593_v61, 0.0  ;;  %v4859_v6 = vsel %vm4534_vm9, %v3694_v19, 0.0  ;;  %7668 = vmatprep.subr.mxu1 %v5633_v52  ;;  %v5181_v61 = vrot.slane %v5180_v18, 2  ;;  %v5215_v19 = vrot.slane %v10429_v58, 4 }
 0x638   : > { %v5293_v57 = vadd.f32 %v4857_v51, %v4832_v62  ;;  %v5329_v53 = vadd.f32 %v4859_v6, %v4834_v33  ;;  %v10734_v55 = vpop.f32.mrf.mxu0  ;;  %v10736_v56 = vpop.f32.mrf.mxu1  ;;  %7669 = vmatpush3.msra.mxu1 %v5617_v12  ;;  %v5630_v12 = vld [vmem:[%s13594_s7 + $0x88] sm:$0xff]  ;;  %v5629_v51 = vld [vmem:[%s13594_s7 + $0x80] sm:$0xff]  ;;  %vm4731_vm8 = vcmp.eq.s32.totalorder %v10442_v37, %v9355_v24  ;;  %vm4756_vm9 = vcmp.eq.s32.totalorder %v10442_v37, %v9377_v35 }
 0x639   : > { %7670 = vmatprep.subr.mxu1 %v5632_v42  ;;  %v5614_v42 = vld [vmem:[%s13594_s7 + $0x8] sm:$0xff] }
 0x63a   : > { %v3599_v20 = vpop.f32.mrf.mxu0  ;;  %v3700_v5 = vpop.f32.mrf.mxu1  ;;  %7475 = vmatmul.mubr.msk.bf16.gmra.mxu0 %vm13606_vm10, %v9990_v14  ;;  %7482 = vmatmul.mubr.msk.bf16.gmra.mxu1 %vm13606_vm10, %v9990_v14 }
 0x63b   : > { %v4882_v50 = vsel %vm4557_vm11, %v3599_v20, 0.0  ;;  %v4884_v3 = vsel %vm4559_vm12, %v3700_v5, 0.0  ;;  %4243 = vmatprep.mubr.bf16.mxu0 %v8816_v1  ;;  %4344 = vmatprep.mubr.bf16.mxu1 %v8816_v1  ;;  %vm4707_vm11 = vcmp.eq.s32.totalorder %v10693_v34, %v9352_v23  ;;  %vm4709_vm12 = vcmp.eq.s32.totalorder %v10695_v43, %v9352_v23 }
 0x63c   : > { %v5294_v59 = vadd.f32 %v5293_v57, %v4882_v50  ;;  %v5330_v10 = vadd.f32 %v5329_v53, %v4884_v3  ;;  %v10761_v52 = vpop.f32.mrf.mxu0  ;;  %v10763_v45 = vpop.f32.mrf.mxu1  ;;  %7671 = vmatpush3.msra.mxu1 %v5616_v11  ;;  %v5162_v53 = vadd.f32 %v5161_v17, %v10417_v27  ;;  %v5182_v50 = vadd.f32 %v5181_v61, %v5180_v18  ;;  %v5676_v17 = vld [vmem:[%s13594_s7 + $0x1f8] sm:$0xff] }
 0x63d   : > { %7672 = vmatprep.subr.mxu1 %v5631_v13  ;;  %v5216_v3 = vadd.f32 %v5215_v19, %v10429_v58 }
 0x63e   : > { %v3603_v62 = vpop.f32.mrf.mxu0  ;;  %v3704_v33 = vpop.f32.mrf.mxu1  ;;  %7673 = vmatpush3.msra.mxu1 %v5615_v46  ;;  %v5613_v46 = vld [vmem:[%s13594_s7] sm:$0xff] }
 0x63f   : > { %v4907_v6 = vsel %vm4582_vm13, %v3603_v62, 0.0  ;;  %v4909_v57 = vsel %vm4584_vm14, %v3704_v33, 0.0  ;;  %7674 = vmatprep.subr.mxu1 %v5630_v12  ;;  %v5217_v62 = vrot.slane %v5216_v3, 2  ;;  %v5183_v33 = vrot.slane %v5182_v50, 1 }
 0x640   : > { %v5295_v11 = vadd.f32 %v5294_v59, %v4907_v6  ;;  %v5331_v20 = vadd.f32 %v5330_v10, %v4909_v57  ;;  %v10783_v5 = vpop.f32.mrf.mxu0  ;;  %v10785_v13 = vpop.f32.mrf.mxu1  ;;  %7675 = vmatpush3.msra.mxu1 %v5614_v42  ;;  %v5163_v59 = vrot.slane %v5162_v53, 2  ;;  %vm4781_vm13 = vcmp.eq.s32.totalorder %v10442_v37, %v9380_v39 }
 0x641   : > { %7676 = vmatprep.subr.mxu1 %v5629_v51  ;;  %vm4806_vm14 = vcmp.eq.s32.totalorder %v10442_v37, %v9400_v49 }
 0x642   : > { %v3609_v12 = vpop.f32.mrf.mxu0  ;;  %v3710_v27 = vpop.f32.mrf.mxu1  ;;  %7476 = vmatmul.mubr.msk.bf16.gmra.mxu0 %vm13606_vm10, %v10002_v29  ;;  %7483 = vmatmul.mubr.msk.bf16.gmra.mxu1 %vm13606_vm10, %v10002_v29 }
 0x643   : > { %v4932_v58 = vsel %vm4607_vm15, %v3609_v12, 0.0  ;;  %v4934_v18 = vsel %vm4609_vm1, %v3710_v27, 0.0  ;;  %4253 = vmatprep.mubr.bf16.mxu0 %v8816_v1  ;;  %4354 = vmatprep.mubr.bf16.mxu1 %v8816_v1  ;;  %v5164_v1 = vadd.f32 %v5163_v59, %v5162_v53  ;;  %vm4732_vm15 = vcmp.eq.s32.totalorder %v10693_v34, %v9355_v24 }
 0x644   : > { %v5296_v10 = vadd.f32 %v5295_v11, %v4932_v58  ;;  %v5332_v61 = vadd.f32 %v5331_v20, %v4934_v18  ;;  %v10807_v19 = vpop.f32.mrf.mxu0  ;;  %v10809_v42 = vpop.f32.mrf.mxu1  ;;  %7677 = vmatpush3.msra.mxu1 %v5613_v46  ;;  %v5218_v46 = vadd.f32 %v5217_v62, %v5216_v3  ;;  %v5184_v18 = vadd.f32 %v5183_v33, %v5182_v50 }
 0x645   : > { %7681 = vmatprep.subr.mxu1 %v5676_v17  ;;  %vm4734_vm1 = vcmp.eq.s32.totalorder %v10695_v43, %v9355_v24 }
 0x646   : > { %v3613_v51 = vpop.f32.mrf.mxu0  ;;  %v3714_v6 = vpop.f32.mrf.mxu1 }
 0x647   : > { %v4957_v57 = vsel %vm4632_vm2, %v3613_v51, 0.0  ;;  %v4959_v12 = vsel %vm4634_vm4, %v3714_v6, 0.0  ;;  %v5219_v51 = vrot.slane %v5218_v46, 1  ;;  %vm4759_vm4 = vcmp.eq.s32.totalorder %v10695_v43, %v9377_v35 }
 0x648   : > { %v5297_v11 = vadd.f32 %v5296_v10, %v4957_v57  ;;  %v5333_v20 = vadd.f32 %v5332_v61, %v4959_v12  ;;  %v10815_v27 = vpop.f32.mrf.mxu0  ;;  %v10817_v58 = vpop.f32.mrf.mxu1  ;;  %v13619_v10 = vmov 0.0   ;;  %v5165_v61 = vrot.slane %v5164_v1, 1 }
 0x649   : > { %v4458_v57 = vadd.s32 1152, %v9014_v30 }
 0x64a   : > { %v3619_v17 = vpop.f32.mrf.mxu0  ;;  %v3720_v28 = vpop.f32.mrf.mxu1  ;;  %7477 = vmatmul.mubr.msk.bf16.gmra.mxu0 %vm13606_vm10, %v10010_v26  ;;  %7484 = vmatmul.mubr.msk.bf16.gmra.mxu1 %vm13606_vm10, %v10010_v26  ;;  %v5660_v26 = vld [vmem:[%s13594_s7 + $0x178] sm:$0xff] }
 0x64b   : > { %v4982_v53 = vsel %vm4657_vm0, %v3619_v17, 0.0  ;;  %v4984_v59 = vsel %vm4659_vm5, %v3720_v28, 0.0  ;;  %6073 = vmatprep.mubr.f32.mxu1 %v5184_v18  ;;  %8532 = vmatprep.mubr.msk.bf16.mxu0 %vm13604_vm3, %v13619_v10 }
 0x64c   : > { %v5298_v3 = vadd.f32 %v5297_v11, %v4982_v53  ;;  %v5334_v50 = vadd.f32 %v5333_v20, %v4984_v59  ;;  %v10829_v62 = vpop.f32.mrf.mxu0  ;;  %v10831_v33 = vpop.f32.mrf.mxu1  ;;  %v5166_v20 = vadd.f32 %v5165_v61, %v5164_v1  ;;  %v5220_v1 = vadd.f32 %v5219_v51, %v5218_v46  ;;  %v5692_v46 = vld [vmem:[%s13594_s7 + $0x278] sm:$0xff] }
 0x64d   : > { %v4460_v61 = vadd.s32 1408, %v9014_v30  ;;  %v5081_v51 = vsel %vm4756_vm9, %v10634_v44, 0.0  ;;  %v5707_v44 = vld [vmem:[%s13594_s7 + $0x2f0] sm:$0xff] }
 0x64e   : > { %v3623_v28 = vpop.f32.mrf.mxu0  ;;  %v3724_v6 = vpop.f32.mrf.mxu1 }
 0x64f   : > { %v5007_v12 = vsel %vm4682_vm6, %v3623_v28, 0.0  ;;  %v5009_v11 = vsel %vm4684_vm7, %v3724_v6, 0.0  ;;  %v5056_v28 = vsel %vm4731_vm8, %v10610_v32, 0.0  ;;  %v5675_v6 = vld [vmem:[%s13594_s7 + $0x1f0] sm:$0xff]  ;;  %vm4784_vm8 = vcmp.eq.s32.totalorder %v10695_v43, %v9380_v39 }
 0x650   : > { %v5299_v18 = vadd.f32 %v5298_v3, %v5007_v12  ;;  %v5335_v17 = vadd.f32 %v5334_v50, %v5009_v11  ;;  %v10842_v53 = vpop.f32.mrf.mxu0  ;;  %v10844_v59 = vpop.f32.mrf.mxu1  ;;  %v5659_v32 = vld [vmem:[%s13594_s7 + $0x170] sm:$0xff]  ;;  %v5674_v11 = vld [vmem:[%s13594_s7 + $0x1e8] sm:$0xff] }
 0x652   : > { %v3629_v3 = vpop.f32.mrf.mxu0  ;;  %v3730_v50 = vpop.f32.mrf.mxu1  ;;  %8533 = vmatmul.mubr.msk.bf16.vlgmr.msra.gmra.mxu0 %vm13606_vm10, %v9920_v54  ;;  %6074 = vmatmul.mubr.f32.vlgmr.msra.gmra.mxu1 %v5166_v20  ;;  %v5283_v20 = vadd.f32 %v10592_v25, %v5056_v28  ;;  %v5691_v25 = vld [vmem:[%s13594_s7 + $0x270] sm:$0xff] }
 0x653   : > { %v5032_v54 = vsel %vm4707_vm11, %v3629_v3, 0.0  ;;  %v5034_v12 = vsel %vm4709_vm12, %v3730_v50, 0.0  ;;  %7682 = vmatpush3.msra.mxu1 %v5660_v26  ;;  %6143 = vmatprep.mubr.f32.mxu1 %v5220_v1  ;;  %v10889_v3 = vshra.s32 %v4458_v57, 5  ;;  %v5658_v50 = vld [vmem:[%s13594_s7 + $0x168] sm:$0xff]  ;;  %v5106_v57 = vsel %vm4781_vm13, %v10651_v63, 0.0  ;;  %v5657_v63 = vld [vmem:[%s13594_s7 + $0x160] sm:$0xff] }
 0x654   : > { %v5300_v40 = vadd.f32 %v5299_v18, %v5032_v54  ;;  %v5336_v29 = vadd.f32 %v5335_v17, %v5034_v12  ;;  %7683 = vmatprep.subr.mxu1 %v5675_v6  ;;  %v10891_v26 = vpop.f32.mrf.mxu0  ;;  %v10893_v1 = vpop.f32.mrf.mxu1  ;;  %8536 = vmatprep.mubr.msk.bf16.mxu0 %vm13604_vm3, %v13619_v10  ;;  %v5673_v18 = vld [vmem:[%s13594_s7 + $0x1e0] sm:$0xff]  ;;  %v5706_v17 = vld [vmem:[%s13594_s7 + $0x2e8] sm:$0xff]  ;;  %v5284_v28 = vadd.f32 %v5283_v20, %v5081_v51  ;;  %v10913_v6 = vshra.s32 %v4460_v61, 5 }
 0x655   : > { %7684 = vmatpush3.msra.mxu1 %v5659_v32  ;;  %7717 = vmatpush3.msra.mxu0 %v5692_v46  ;;  %vm4533_vm2 = vcmp.eq.s32.totalorder %v10889_v3, %v9259_v38  ;;  %v5690_v32 = vld [vmem:[%s13594_s7 + $0x268] sm:$0xff]  ;;  %v5131_v61 = vsel %vm4806_vm14, %v10678_v22, 0.0  ;;  %vm4508_vm0 = vcmp.eq.s32.totalorder %v10889_v3, %v9250_v41  ;;  %vm4558_vm5 = vcmp.eq.s32.totalorder %v10889_v3, %v9280_v0 }
 0x656   : > { %7685 = vmatprep.subr.mxu1 %v5674_v11  ;;  %v3633_v54 = vpop.f32.mrf.mxu0  ;;  %v3734_v12 = vpop.f32.mrf.mxu1  ;;  %7718 = vmatprep.subr.mxu0 %v5707_v44  ;;  %v5672_v11 = vld [vmem:[%s13594_s7 + $0x1d8] sm:$0xff]  ;;  %v5285_v44 = vadd.f32 %v5284_v28, %v5106_v57  ;;  %v4858_v57 = vsel %vm4533_vm2, %v10734_v55, 0.0  ;;  %v5655_v28 = vld [vmem:[%s13594_s7 + $0x150] sm:$0xff]  ;;  %vm4510_vm6 = vcmp.eq.s32.totalorder %v10913_v6, %v9250_v41  ;;  %vm4583_vm7 = vcmp.eq.s32.totalorder %v10889_v3, %v9283_v2 }
 0x657   : > { %v5057_v46 = vsel %vm4732_vm15, %v3633_v54, 0.0  ;;  %v5059_v51 = vsel %vm4734_vm1, %v3734_v12, 0.0  ;;  %7686 = vmatpush3.msra.mxu1 %v5658_v50  ;;  %7719 = vmatpush3.msra.mxu0 %v5691_v25  ;;  %v5656_v50 = vld [vmem:[%s13594_s7 + $0x158] sm:$0xff]  ;;  %v5689_v12 = vld [vmem:[%s13594_s7 + $0x260] sm:$0xff]  ;;  %vm4535_vm9 = vcmp.eq.s32.totalorder %v10913_v6, %v9259_v38  ;;  %vm4608_vm11 = vcmp.eq.s32.totalorder %v10889_v3, %v9302_v8 }
 0x658   : > { %v10938_v37 = vadd.f32 %v5300_v40, %v5057_v46  ;;  %v5337_v22 = vadd.f32 %v5336_v29, %v5059_v51  ;;  %7687 = vmatprep.subr.mxu1 %v5673_v18  ;;  %v10940_v20 = vpop.f32.mrf.mxu0  ;;  %v10942_v54 = vpop.f32.mrf.mxu1  ;;  %7720 = vmatprep.subr.mxu0 %v5706_v17  ;;  %v5671_v29 = vld [vmem:[%s13594_s7 + $0x1d0] sm:$0xff]  ;;  %v5705_v40 = vld [vmem:[%s13594_s7 + $0x2e0] sm:$0xff]  ;;  %v10957_v25 = vadd.f32 %v5285_v44, %v5131_v61  ;;  %v4833_v61 = vsel %vm4508_vm0, %v10716_v36, 0.0  ;;  %v5688_v36 = vld [vmem:[%s13594_s7 + $0x258] sm:$0xff] }
 0x659   : > { %7688 = vmatpush3.msra.mxu1 %v5657_v63  ;;  %7721 = vmatpush3.msra.mxu0 %v5690_v32  ;;  %v5704_v63 = vld [vmem:[%s13594_s7 + $0x2d8] sm:$0xff]  ;;  %v5197_v32 = vrot.slane %v10419_v31, 4  ;;  %v4883_v46 = vsel %vm4558_vm5, %v10761_v52, 0.0  ;;  %v5669_v52 = vld [vmem:[%s13594_s7 + $0x1c0] sm:$0xff]  ;;  %vm4560_vm12 = vcmp.eq.s32.totalorder %v10913_v6, %v9280_v0  ;;  %vm4585_vm13 = vcmp.eq.s32.totalorder %v10913_v6, %v9283_v2 }
 0x65a   : > { %13620 = vst [vmem:[#allocation9_spill] sm:$0xff] %v10938_v37  ;;  %7689 = vmatprep.subr.mxu1 %v5672_v11  ;;  %v10963_v18 = vpop.f32.mrf.mxu0  ;;  %v3740_v17 = vpop.f32.mrf.mxu1  ;;  %8537 = vmatmul.mubr.msk.bf16.gmra.mxu0 %vm13606_vm10, %v9954_v60  ;;  %v5670_v60 = vld [vmem:[%s13594_s7 + $0x1c8] sm:$0xff]  ;;  %vm4610_vm14 = vcmp.eq.s32.totalorder %v10913_v6, %v9302_v8  ;;  %vm4633_vm15 = vcmp.eq.s32.totalorder %v10889_v3, %v9305_v9 }
 0x65b   : > { %v5084_v55 = vsel %vm4759_vm4, %v3740_v17, 0.0  ;;  %7690 = vmatpush3.msra.mxu1 %v5656_v50  ;;  %8540 = vmatprep.mubr.msk.bf16.mxu0 %vm13604_vm3, %v13619_v10  ;;  %v5654_v50 = vld [vmem:[%s13594_s7 + $0x148] sm:$0xff]  ;;  %v5311_v17 = vadd.f32 %v4858_v57, %v4833_v61  ;;  %vm4809_vm1 = vcmp.eq.s32.totalorder %v10695_v43, %v9400_v49  ;;  %vm4635_vm2 = vcmp.eq.s32.totalorder %v10913_v6, %v9305_v9 }
 0x65c   : > { %v5338_v51 = vadd.f32 %v5337_v22, %v5084_v55  ;;  %7691 = vmatprep.subr.mxu1 %v5671_v29  ;;  %v10999_v11 = vpop.f32.mrf.mxu0  ;;  %v11001_v44 = vpop.f32.mrf.mxu1  ;;  %7722 = vmatprep.subr.mxu0 %v5705_v40  ;;  %v5703_v22 = vld [vmem:[%s13594_s7 + $0x2d0] sm:$0xff]  ;;  %v5287_v29 = vrot.slane %v10957_v25, 4  ;;  %v4908_v40 = vsel %vm4583_vm7, %v10783_v5, 0.0  ;;  %vm4658_vm4 = vcmp.eq.s32.totalorder %v10889_v3, %v9327_v15 }
 0x65d   : > { %7692 = vmatpush3.msra.mxu1 %v5655_v28  ;;  %7723 = vmatpush3.msra.mxu0 %v5689_v12  ;;  %v5653_v12 = vld [vmem:[%s13594_s7 + $0x140] sm:$0xff]  ;;  %v5687_v55 = vld [vmem:[%s13594_s7 + $0x250] sm:$0xff]  ;;  %v5312_v61 = vadd.f32 %v5311_v17, %v4883_v46  ;;  %v4933_v46 = vsel %vm4608_vm11, %v10807_v19, 0.0  ;;  %vm4683_vm0 = vcmp.eq.s32.totalorder %v10889_v3, %v9330_v16  ;;  %v4983_v43 = vsel %vm4658_vm4, %v10829_v62, 0.0 }
 0x65e   : > { %7693 = vmatprep.subr.mxu1 %v5670_v60  ;;  %v11028_v57 = vpop.f32.mrf.mxu0  ;;  %v3744_v28 = vpop.f32.mrf.mxu1  ;;  %7724 = vmatprep.subr.mxu0 %v5704_v63  ;;  %v5668_v60 = vld [vmem:[%s13594_s7 + $0x1b8] sm:$0xff]  ;;  %v11047_v63 = vadd.f32 %v5197_v32, %v10419_v31  ;;  %v4860_v31 = vsel %vm4535_vm9, %v10736_v56, 0.0  ;;  %v5667_v32 = vld [vmem:[%s13594_s7 + $0x1b0] sm:$0xff]  ;;  %v4958_v56 = vsel %vm4633_vm15, %v10815_v27, 0.0  ;;  %v5686_v27 = vld [vmem:[%s13594_s7 + $0x248] sm:$0xff]  ;;  %v4910_v62 = vsel %vm4585_vm13, %v10785_v13, 0.0 }
 0x65f   : > { %13621 = vst [vmem:[#allocation10_spill] sm:$0xff] %v11028_v57  ;;  %v5109_v5 = vsel %vm4784_vm8, %v3744_v28, 0.0  ;;  %7694 = vmatpush3.msra.mxu1 %v5654_v50  ;;  %7725 = vmatpush3.msra.mxu0 %v5688_v36  ;;  %v5652_v50 = vld [vmem:[%s13594_s7 + $0x138] sm:$0xff]  ;;  %v5313_v19 = vadd.f32 %v5312_v61, %v4908_v40  ;;  %v11077_v36 = vadd.f32 %v5287_v29, %v10957_v25  ;;  %v5651_v25 = vld [vmem:[%s13594_s7 + $0x130] sm:$0xff]  ;;  %v4463_v29 = vadd.s32 1792, %v9014_v30 }
 0x660   : > { %v5339_v17 = vadd.f32 %v5338_v51, %v5109_v5  ;;  %7695 = vmatprep.subr.mxu1 %v5669_v52  ;;  %v11053_v57 = vpop.f32.mrf.mxu0  ;;  %v11055_v37 = vpop.f32.mrf.mxu1  ;;  %7726 = vmatprep.subr.mxu0 %v5703_v22  ;;  %v5702_v51 = vld [vmem:[%s13594_s7 + $0x2c8] sm:$0xff]  ;;  %v4835_v40 = vsel %vm4510_vm6, %v10718_v48, 0.0  ;;  %v5701_v48 = vld [vmem:[%s13594_s7 + $0x2c0] sm:$0xff]  ;;  %v5199_v61 = vrot.slane %v11047_v63, 2  ;;  %vm4660_vm5 = vcmp.eq.s32.totalorder %v10913_v6, %v9327_v15 }
 0x661   : > { %7696 = vmatpush3.msra.mxu1 %v5653_v12  ;;  %7727 = vmatpush3.msra.mxu0 %v5687_v55  ;;  %v5314_v28 = vadd.f32 %v5313_v19, %v4933_v46  ;;  %v5666_v55 = vld [vmem:[%s13594_s7 + $0x1a8] sm:$0xff]  ;;  %vm4708_vm6 = vcmp.eq.s32.totalorder %v10889_v3, %v9352_v23  ;;  %v5665_v19 = vld [vmem:[%s13594_s7 + $0x1a0] sm:$0xff]  ;;  %vm4685_vm7 = vcmp.eq.s32.totalorder %v10913_v6, %v9330_v16 }
 0x662   : > { %7697 = vmatprep.subr.mxu1 %v5668_v60  ;;  %v11085_v52 = vpop.f32.mrf.mxu0  ;;  %v3750_v22 = vpop.f32.mrf.mxu1  ;;  %8541 = vmatmul.mubr.msk.bf16.gmra.mxu0 %vm13606_vm10, %v9966_v47  ;;  %v4885_v47 = vsel %vm4560_vm12, %v10763_v45, 0.0  ;;  %v5347_v45 = vadd.f32 %v4860_v31, %v4835_v40  ;;  %v5685_v31 = vld [vmem:[%s13594_s7 + $0x240] sm:$0xff]  ;;  %v5684_v40 = vld [vmem:[%s13594_s7 + $0x238] sm:$0xff]  ;;  %vm4733_vm8 = vcmp.eq.s32.totalorder %v10889_v3, %v9355_v24  ;;  %vm4710_vm9 = vcmp.eq.s32.totalorder %v10913_v6, %v9352_v23 }
 0x663   : > { %v5134_v12 = vsel %vm4809_vm1, %v3750_v22, 0.0  ;;  %7698 = vmatpush3.msra.mxu1 %v5652_v50  ;;  %8544 = vmatprep.mubr.msk.bf16.mxu0 %vm13604_vm3, %v13619_v10  ;;  %v5650_v50 = vld [vmem:[%s13594_s7 + $0x128] sm:$0xff]  ;;  %vm4735_vm11 = vcmp.eq.s32.totalorder %v10913_v6, %v9355_v24  ;;  %vm4758_vm12 = vcmp.eq.s32.totalorder %v10889_v3, %v9377_v35  ;;  %vm4760_vm13 = vcmp.eq.s32.totalorder %v10913_v6, %v9377_v35 }
 0x664   : > { %v11120_v5 = vadd.f32 %v5339_v17, %v5134_v12  ;;  %7699 = vmatprep.subr.mxu1 %v5667_v32  ;;  %v11122_v60 = vpop.f32.mrf.mxu0  ;;  %v11124_v46 = vpop.f32.mrf.mxu1  ;;  %7728 = vmatprep.subr.mxu0 %v5702_v51  ;;  %v5315_v17 = vadd.f32 %v5314_v28, %v4958_v56  ;;  %v5700_v32 = vld [vmem:[%s13594_s7 + $0x2b8] sm:$0xff]  ;;  %v5289_v51 = vrot.slane %v11077_v36, 2  ;;  %v5348_v13 = vadd.f32 %v5347_v45, %v4885_v47 }
 0x665   : > { %7700 = vmatpush3.msra.mxu1 %v5651_v25  ;;  %7729 = vmatpush3.msra.mxu0 %v5686_v27  ;;  %v5008_v56 = vsel %vm4683_vm0, %v10842_v53, 0.0  ;;  %v5649_v27 = vld [vmem:[%s13594_s7 + $0x120] sm:$0xff]  ;;  %v4935_v53 = vsel %vm4610_vm14, %v10809_v42, 0.0  ;;  %v5664_v28 = vld [vmem:[%s13594_s7 + $0x198] sm:$0xff]  ;;  %v11168_v12 = vshra.s32 %v4463_v29, 5  ;;  %v5033_v42 = vsel %vm4708_vm6, %v10891_v26, 0.0 }
 0x666   : > { %13622 = vst [vmem:[#allocation11_spill] sm:$0xff] %v11120_v5  ;;  %7701 = vmatprep.subr.mxu1 %v5666_v55  ;;  %v3653_v22 = vpop.f32.mrf.mxu0  ;;  %v3754_v25 = vpop.f32.mrf.mxu1  ;;  %7730 = vmatprep.subr.mxu0 %v5701_v48  ;;  %v5316_v47 = vadd.f32 %v5315_v17, %v4983_v43  ;;  %v11171_v55 = vadd.f32 %v5199_v61, %v11047_v63  ;;  %v5648_v29 = vld [vmem:[%s13594_s7 + $0x118] sm:$0xff]  ;;  %v4960_v63 = vsel %vm4635_vm2, %v10817_v58, 0.0  ;;  %v5663_v26 = vld [vmem:[%s13594_s7 + $0x190] sm:$0xff] }
 0x667   : > { %7702 = vmatpush3.msra.mxu1 %v5650_v50  ;;  %7731 = vmatpush3.msra.mxu0 %v5685_v31  ;;  %v5349_v48 = vadd.f32 %v5348_v13, %v4910_v62  ;;  %v5699_v50 = vld [vmem:[%s13594_s7 + $0x2b0] sm:$0xff]  ;;  %v11197_v31 = vadd.f32 %v5289_v51, %v11077_v36  ;;  %v5058_v62 = vsel %vm4733_vm8, %v10940_v20, 0.0  ;;  %v4985_v20 = vsel %vm4660_vm5, %v10831_v33, 0.0  ;;  %v5698_v13 = vld [vmem:[%s13594_s7 + $0x2a8] sm:$0xff] }
 0x668   : > { %7703 = vmatprep.subr.mxu1 %v5665_v19  ;;  %v3654_v45 = vpop.f32.mrf.mxu0  ;;  %v3755_v43 = vpop.f32.mrf.mxu1  ;;  %7732 = vmatprep.subr.mxu0 %v5700_v32  ;;  %v5317_v61 = vadd.f32 %v5316_v47, %v5008_v56  ;;  %v5647_v36 = vld [vmem:[%s13594_s7 + $0x110] sm:$0xff]  ;;  %vm4783_vm14 = vcmp.eq.s32.totalorder %v10889_v3, %v9380_v39  ;;  %vm4513_vm15 = vcmp.eq.s32.totalorder %v11168_v12, %v9250_v41  ;;  %v5201_v33 = vrot.slane %v11171_v55, 1 }
 0x669   : > { %7704 = vmatpush3.msra.mxu1 %v5649_v27  ;;  %7733 = vmatpush3.msra.mxu0 %v5684_v40  ;;  %v5350_v58 = vadd.f32 %v5349_v48, %v4935_v53  ;;  %v5683_v32 = vld [vmem:[%s13594_s7 + $0x230] sm:$0xff]  ;;  %v5083_v22 = vsel %vm4758_vm12, %v10999_v11, 0.0  ;;  %vm4538_vm1 = vcmp.eq.s32.totalorder %v11168_v12, %v9259_v38  ;;  %v5646_v40 = vld [vmem:[%s13594_s7 + $0x108] sm:$0xff]  ;;  %v5010_v11 = vsel %vm4685_vm7, %v10844_v59, 0.0 }
 0x66a   : > { %7705 = vmatprep.subr.mxu1 %v5664_v28  ;;  %v11205_v17 = vpop.f32.mrf.mxu0  ;;  %v3892_v19 = vpop.f32.mrf.mxu1  ;;  %8545 = vmatmul.mubr.msk.bf16.gmra.mxu0 %vm13606_vm10, %v9978_v4  ;;  %v5318_v51 = vadd.f32 %v5317_v61, %v5033_v42  ;;  %v5662_v4 = vld [vmem:[%s13594_s7 + $0x188] sm:$0xff]  ;;  %vm4808_vm2 = vcmp.eq.s32.totalorder %v10889_v3, %v9400_v49  ;;  %v5661_v28 = vld [vmem:[%s13594_s7 + $0x180] sm:$0xff]  ;;  %vm4563_vm4 = vcmp.eq.s32.totalorder %v11168_v12, %v9280_v0  ;;  %v5251_v48 = vrot.slane %v10688_v21, 4  ;;  %v5739_v3 = vld [vmem:[%s13594_s7 + $0x3f0] sm:$0xff] }
 0x66b   : > { %7706 = vmatpush3.msra.mxu1 %v5648_v29  ;;  %8548 = vmatprep.mubr.msk.bf16.mxu0 %vm13604_vm3, %v13619_v10  ;;  %v5351_v56 = vadd.f32 %v5350_v58, %v4960_v63  ;;  %v5682_v53 = vld [vmem:[%s13594_s7 + $0x228] sm:$0xff]  ;;  %v5108_v59 = vsel %vm4783_vm14, %v11053_v57, 0.0  ;;  %v5645_v29 = vld [vmem:[%s13594_s7 + $0x100] sm:$0xff]  ;;  %v5291_v63 = vrot.slane %v11197_v31, 1  ;;  %v5035_v57 = vsel %vm4710_vm9, %v10893_v1, 0.0  ;;  %v5771_v5 = vld [vmem:[%s13594_s7 + $0x4f0] sm:$0xff] }
 0x66c   : > { %7707 = vmatprep.subr.mxu1 %v5663_v26  ;;  %v11236_v25 = vpop.f32.mrf.mxu0  ;;  %v11238_v27 = vpop.f32.mrf.mxu1  ;;  %7734 = vmatprep.subr.mxu0 %v5699_v50  ;;  %v5319_v47 = vadd.f32 %v5318_v51, %v5058_v62  ;;  %v5697_v61 = vld [vmem:[%s13594_s7 + $0x2a0] sm:$0xff]  ;;  %v4838_v50 = vsel %vm4513_vm15, %v3892_v19, 0.0  ;;  %v5740_v62 = vld [vmem:[%s13594_s7 + $0x3f8] sm:$0xff]  ;;  %v5133_v1 = vsel %vm4808_vm2, %v11122_v60, 0.0  ;;  %vm4785_vm0 = vcmp.eq.s32.totalorder %v10913_v6, %v9380_v39 }
 0x66d   : > { %7708 = vmatpush3.msra.mxu1 %v5647_v36  ;;  %7735 = vmatpush3.msra.mxu0 %v5683_v32  ;;  %v5352_v42 = vadd.f32 %v5351_v56, %v4985_v20  ;;  %v5202_v36 = vadd.f32 %v5201_v33, %v11171_v55  ;;  %v5060_v55 = vsel %vm4735_vm11, %v10942_v54, 0.0  ;;  %v5252_v60 = vadd.f32 %v5251_v48, %v10688_v21 }
 0x66e   : > { %7709 = vmatprep.subr.mxu1 %v5662_v4  ;;  %v11264_v45 = vpop.f32.mrf.mxu0  ;;  %v3896_v43 = vpop.f32.mrf.mxu1  ;;  %7736 = vmatprep.subr.mxu0 %v5698_v13  ;;  %v5320_v26 = vadd.f32 %v5319_v47, %v5083_v22  ;;  %v5724_v4 = vld [vmem:[%s13594_s7 + $0x378] sm:$0xff]  ;;  %v5292_v54 = vadd.f32 %v5291_v63, %v11197_v31  ;;  %v5738_v31 = vld [vmem:[%s13594_s7 + $0x3e8] sm:$0xff]  ;;  %v5681_v47 = vld [vmem:[%s13594_s7 + $0x220] sm:$0xff]  ;;  %vm4810_vm5 = vcmp.eq.s32.totalorder %v10913_v6, %v9400_v49 }
 0x66f   : > { %v4863_v58 = vsel %vm4538_vm1, %v3896_v43, 0.0  ;;  %7710 = vmatpush3.msra.mxu1 %v5646_v40  ;;  %7737 = vmatpush3.msra.mxu0 %v5682_v53  ;;  %v5353_v32 = vadd.f32 %v5352_v42, %v5010_v11  ;;  %v5723_v40 = vld [vmem:[%s13594_s7 + $0x370] sm:$0xff]  ;;  %v5085_v53 = vsel %vm4760_vm13, %v11001_v44, 0.0  ;;  %v5722_v42 = vld [vmem:[%s13594_s7 + $0x368] sm:$0xff]  ;;  %v5233_v43 = vrot.slane %v10674_v7, 4  ;;  %v5737_v63 = vld [vmem:[%s13594_s7 + $0x3e0] sm:$0xff] }
 0x670   : > { %v5401_v20 = vadd.f32 %v4863_v58, %v4838_v50  ;;  %7711 = vmatprep.subr.mxu1 %v5661_v28  ;;  %v11291_v19 = vpop.f32.mrf.mxu0  ;;  %v11293_v51 = vpop.f32.mrf.mxu1  ;;  %v5321_v13 = vadd.f32 %v5320_v26, %v5108_v59  ;;  %7738 = vmatprep.subr.mxu0 %v5697_v61  ;;  %v5696_v59 = vld [vmem:[%s13594_s7 + $0x298] sm:$0xff]  ;;  %vm4757_vm6 = vcmp.eq.s32.totalorder %v10693_v34, %v9377_v35 }
 0x671   : > { %7712 = vmatpush3.msra.mxu1 %v5645_v29  ;;  %v5354_v33 = vadd.f32 %v5353_v32, %v5035_v57  ;;  %v5110_v29 = vsel %vm4785_vm0, %v11055_v37, 0.0  ;;  %v5680_v61 = vld [vmem:[%s13594_s7 + $0x218] sm:$0xff]  ;;  %v5253_v57 = vrot.slane %v5252_v60, 2  ;;  %v5721_v37 = vld [vmem:[%s13594_s7 + $0x360] sm:$0xff]  ;;  %7739 = vmatpush3.msra.mxu0 %v5681_v47  ;;  %v5135_v32 = vsel %vm4810_vm5, %v11124_v46, 0.0 }
 0x672   : > { %6144 = vmatmul.mubr.f32.vlgmr.msra.gmra.mxu1 %v5202_v36  ;;  %7751 = vmatprep.subr.mxu1 %v5740_v62  ;;  %v11308_v56 = vpop.f32.mrf.mxu0  ;;  %v3902_v22 = vpop.f32.mrf.mxu1  ;;  %v5322_v11 = vadd.f32 %v5321_v13, %v5133_v1  ;;  %v5695_v62 = vld [vmem:[%s13594_s7 + $0x290] sm:$0xff]  ;;  %v4462_v1 = vadd.s32 1664, %v9014_v30  ;;  %v5720_v46 = vld [vmem:[%s13594_s7 + $0x358] sm:$0xff]  ;;  %vm4782_vm7 = vcmp.eq.s32.totalorder %v10693_v34, %v9380_v39  ;;  %vm4807_vm14 = vcmp.eq.s32.totalorder %v10693_v34, %v9400_v49 }
 0x673   : > { %v4888_v21 = vsel %vm4563_vm4, %v3902_v22, 0.0  ;;  %8549 = vmatmul.mubr.msk.bf16.gmra.mxu0 %vm13606_vm10, %v9990_v14  ;;  %7752 = vmatpush3.msra.mxu1 %v5724_v4  ;;  %v5355_v28 = vadd.f32 %v5354_v33, %v5060_v55  ;;  %v5736_v4 = vld [vmem:[%s13594_s7 + $0x3d8] sm:$0xff]  ;;  %v5679_v55 = vld [vmem:[%s13594_s7 + $0x210] sm:$0xff]  ;;  %v5234_v33 = vadd.f32 %v5233_v43, %v10674_v7  ;;  %v5694_v7 = vld [vmem:[%s13594_s7 + $0x288] sm:$0xff] }
 0x674   : > { %v11331_v44 = vadd.f32 %v5401_v20, %v4888_v21  ;;  %6283 = vmatprep.mubr.f32.mxu1 %v5292_v54  ;;  %7753 = vmatprep.subr.mxu1 %v5739_v3  ;;  %v11333_v48 = vpop.f32.mrf.mxu0  ;;  %v11335_v14 = vpop.f32.mrf.mxu1  ;;  %v5323_v36 = vrot.slane %v5322_v11, 4  ;;  %v4464_v20 = vadd.s32 1920, %v9014_v30  ;;  %v5735_v22 = vld [vmem:[%s13594_s7 + $0x3d0] sm:$0xff]  ;;  %v11389_v54 = vadd.f32 %v5253_v57, %v5252_v60  ;;  %v5678_v43 = vld [vmem:[%s13594_s7 + $0x208] sm:$0xff] }
 0x675   : > { %7754 = vmatpush3.msra.mxu1 %v5723_v40  ;;  %8552 = vmatprep.mubr.msk.bf16.mxu0 %vm13604_vm3, %v13619_v10  ;;  %v5356_v26 = vadd.f32 %v5355_v28, %v5085_v53  ;;  %v11401_v28 = vshra.s32 %v4462_v1, 5  ;;  %v5235_v57 = vrot.slane %v5234_v33, 2 }
 0x676   : > { %7755 = vmatprep.subr.mxu1 %v5738_v31  ;;  %v11356_v50 = vpop.f32.mrf.mxu0  ;;  %v11358_v58 = vpop.f32.mrf.mxu1  ;;  %7740 = vmatprep.subr.mxu0 %v5696_v59  ;;  %v5719_v31 = vld [vmem:[%s13594_s7 + $0x350] sm:$0xff]  ;;  %v5324_v47 = vadd.f32 %v5323_v36, %v5322_v11  ;;  %v11403_v60 = vshra.s32 %v4464_v20, 5  ;;  %v5734_v59 = vld [vmem:[%s13594_s7 + $0x3c8] sm:$0xff]  ;;  %v5677_v36 = vld [vmem:[%s13594_s7 + $0x200] sm:$0xff] }
 0x677   : > { %7756 = vmatpush3.msra.mxu1 %v5722_v42  ;;  %v5357_v13 = vadd.f32 %v5356_v26, %v5110_v29  ;;  %7741 = vmatpush3.msra.mxu0 %v5680_v61  ;;  %v13623_v42 = vld [vmem:[#allocation6_spill] sm:$0xff]  ;;  %v5693_v61 = vld [vmem:[%s13594_s7 + $0x280] sm:$0xff]  ;;  %vm4512_vm8 = vcmp.eq.s32.totalorder %v11401_v28, %v9250_v41  ;;  %vm4537_vm11 = vcmp.eq.s32.totalorder %v11401_v28, %v9259_v38 }
 0x678   : > { %7757 = vmatprep.subr.mxu1 %v5737_v63  ;;  %v11378_v3 = vpop.f32.mrf.mxu0  ;;  %v11380_v6 = vpop.f32.mrf.mxu1  ;;  %7742 = vmatprep.subr.mxu0 %v5695_v62  ;;  %v5718_v63 = vld [vmem:[%s13594_s7 + $0x348] sm:$0xff]  ;;  %v13624_v26 = vld [vmem:[#allocation8_spill] sm:$0xff]  ;;  %vm4514_vm9 = vcmp.eq.s32.totalorder %v11403_v60, %v9250_v41  ;;  %vm4539_vm12 = vcmp.eq.s32.totalorder %v11403_v60, %v9259_v38  ;;  %vm4562_vm13 = vcmp.eq.s32.totalorder %v11401_v28, %v9280_v0 }
 0x679   : > { %7758 = vmatpush3.msra.mxu1 %v5721_v37  ;;  %v5358_v40 = vadd.f32 %v5357_v13, %v5135_v32  ;;  %7743 = vmatpush3.msra.mxu0 %v5679_v55  ;;  %v5269_v37 = vrot.slane %v13624_v26, 4  ;;  %v5733_v62 = vld [vmem:[%s13594_s7 + $0x3c0] sm:$0xff]  ;;  %v5255_v55 = vrot.slane %v11389_v54, 1  ;;  %v5772_v13 = vld [vmem:[%s13594_s7 + $0x4f8] sm:$0xff]  ;;  %vm4564_vm15 = vcmp.eq.s32.totalorder %v11403_v60, %v9280_v0 }
 0x67a   : > { %7759 = vmatprep.subr.mxu1 %v5736_v4  ;;  %v11391_v53 = vpop.f32.mrf.mxu0  ;;  %v11393_v21 = vpop.f32.mrf.mxu1  ;;  %7744 = vmatprep.subr.mxu0 %v5694_v7  ;;  %v5717_v4 = vld [vmem:[%s13594_s7 + $0x340] sm:$0xff]  ;;  %vm4587_vm1 = vcmp.eq.s32.totalorder %v11401_v28, %v9283_v2  ;;  %vm4589_vm2 = vcmp.eq.s32.totalorder %v11403_v60, %v9283_v2  ;;  %vm4612_vm4 = vcmp.eq.s32.totalorder %v11401_v28, %v9302_v8 }
 0x67b   : > { %8553 = vmatmul.mubr.msk.bf16.gmra.mxu0 %vm13606_vm10, %v13623_v42  ;;  %7760 = vmatpush3.msra.mxu1 %v5720_v46  ;;  %v5359_v32 = vrot.slane %v5358_v40, 4  ;;  %v5325_v46 = vrot.slane %v5324_v47, 2  ;;  %vm4614_vm0 = vcmp.eq.s32.totalorder %v11403_v60, %v9302_v8  ;;  %vm4637_vm5 = vcmp.eq.s32.totalorder %v11401_v28, %v9305_v9 }
 0x67c   : > { %7761 = vmatprep.subr.mxu1 %v5735_v22  ;;  %v11413_v29 = vpop.f32.mrf.mxu0  ;;  %v11415_v11 = vpop.f32.mrf.mxu1  ;;  %8556 = vmatprep.mubr.msk.bf16.mxu0 %vm13604_vm3, %v13619_v10  ;;  %v5732_v22 = vld [vmem:[%s13594_s7 + $0x3b8] sm:$0xff]  ;;  %vm4639_vm3 = vcmp.eq.s32.totalorder %v11403_v60, %v9305_v9 }
 0x67d   : > { %7762 = vmatpush3.msra.mxu1 %v5719_v31  ;;  %7745 = vmatpush3.msra.mxu0 %v5678_v43  ;;  %v4461_v31 = vadd.s32 1536, %v9014_v30  ;;  %v5236_v43 = vadd.f32 %v5235_v57, %v5234_v33  ;;  %v5728_v10 = vld [vmem:[%s13594_s7 + $0x398] sm:$0xff] }
 0x67e   : > { %7763 = vmatprep.subr.mxu1 %v5734_v59  ;;  %v11434_v1 = vpop.f32.mrf.mxu0  ;;  %v11436_v20 = vpop.f32.mrf.mxu1  ;;  %7746 = vmatprep.subr.mxu0 %v5693_v61  ;;  %v5716_v59 = vld [vmem:[%s13594_s7 + $0x338] sm:$0xff]  ;;  %v5731_v61 = vld [vmem:[%s13594_s7 + $0x3b0] sm:$0xff] }
 0x67f   : > { %7764 = vmatpush3.msra.mxu1 %v5718_v63  ;;  %7747 = vmatpush3.msra.mxu0 %v5677_v36  ;;  %v5270_v63 = vadd.f32 %v5269_v37, %v13624_v26  ;;  %v5256_v26 = vadd.f32 %v5255_v55, %v11389_v54  ;;  %v5715_v37 = vld [vmem:[%s13594_s7 + $0x330] sm:$0xff]  ;;  %v11490_v36 = vadd.f32 %v5325_v46, %v5324_v47  ;;  %v5730_v54 = vld [vmem:[%s13594_s7 + $0x3a8] sm:$0xff] }
 0x680   : > { %7765 = vmatprep.subr.mxu1 %v5733_v62  ;;  %v11461_v7 = vpop.f32.mrf.mxu0  ;;  %v11463_v42 = vpop.f32.mrf.mxu1  ;;  %7786 = vmatprep.subr.mxu0 %v5772_v13  ;;  %v11476_v62 = vadd.f32 %v5359_v32, %v5358_v40  ;;  %v13627_v40 = vld [vmem:[#allocation7_spill] sm:$0xff]  ;;  %v11501_v32 = vshra.s32 %v4461_v31, 5  ;;  %v5714_v55 = vld [vmem:[%s13594_s7 + $0x328] sm:$0xff]  ;;  %v5237_v13 = vrot.slane %v5236_v43, 1  ;;  %v4864_v31 = vsel %vm4539_vm12, %v11293_v51, 0.0 }
 0x681   : > { %7766 = vmatpush3.msra.mxu1 %v5717_v4  ;;  %v5271_v46 = vrot.slane %v5270_v63, 2  ;;  %v5327_v30 = vrot.slane %v11490_v36, 1 }
 0x682   : > { %7767 = vmatprep.subr.mxu1 %v5732_v22  ;;  %v11482_v33 = vpop.f32.mrf.mxu0  ;;  %v11484_v57 = vpop.f32.mrf.mxu1  ;;  %v4862_v22 = vsel %vm4537_vm11, %v11291_v19, 0.0  ;;  %v4837_v19 = vsel %vm4512_vm8, %v11236_v25, 0.0  ;;  %vm4664_vm11 = vcmp.eq.s32.totalorder %v11403_v60, %v9327_v15  ;;  %v4887_v25 = vsel %vm4562_vm13, %v11333_v48, 0.0 }
 0x683   : > { %13625 = vst [vmem:[#allocation6_spill] sm:$0xff] %v11482_v33  ;;  %13626 = vst [vmem:[#allocation8_spill] sm:$0xff] %v11484_v57  ;;  %8557 = vmatmul.mubr.msk.bf16.gmra.mxu0 %vm13606_vm10, %v13627_v40  ;;  %7768 = vmatpush3.msra.mxu1 %v5716_v59  ;;  %vm4662_vm10 = vcmp.eq.s32.totalorder %v11401_v28, %v9327_v15  ;;  %v5729_v59 = vld [vmem:[%s13594_s7 + $0x3a0] sm:$0xff]  ;;  %vm4689_vm8 = vcmp.eq.s32.totalorder %v11403_v60, %v9330_v16 }
 0x684   : > { %6213 = vmatprep.mubr.f32.mxu0 %v5256_v26  ;;  %7769 = vmatprep.subr.mxu1 %v5731_v61  ;;  %v11507_v47 = vpop.f32.mrf.mxu0  ;;  %v11511_v4 = vpop.f32.mrf.mxu1  ;;  %v5082_v61 = vsel %vm4757_vm6, %v10963_v18, 0.0  ;;  %v5361_v26 = vrot.slane %v11476_v62, 2  ;;  %v5713_v40 = vld [vmem:[%s13594_s7 + $0x320] sm:$0xff]  ;;  %v4839_v18 = vsel %vm4514_vm9, %v11238_v27, 0.0  ;;  %vm4687_vm6 = vcmp.eq.s32.totalorder %v11401_v28, %v9330_v16 }
 0x685   : > { %7770 = vmatpush3.msra.mxu1 %v5715_v37  ;;  %v11572_v57 = vadd.f32 %v5271_v46, %v5270_v63  ;;  %vm4536_vm9 = vcmp.eq.s32.totalorder %v11501_v32, %v9259_v38  ;;  %v5727_v63 = vld [vmem:[%s13594_s7 + $0x390] sm:$0xff]  ;;  %vm4511_vm12 = vcmp.eq.s32.totalorder %v11501_v32, %v9250_v41  ;;  %vm4712_vm13 = vcmp.eq.s32.totalorder %v11401_v28, %v9352_v23 }
 0x686   : > { %7771 = vmatprep.subr.mxu1 %v5730_v54  ;;  %v11538_v51 = vpop.f32.mrf.mxu0  ;;  %v11540_v37 = vpop.f32.mrf.mxu1  ;;  %v4889_v54 = vsel %vm4564_vm15, %v11335_v14, 0.0  ;;  %v5712_v14 = vld [vmem:[%s13594_s7 + $0x318] sm:$0xff]  ;;  %v11603_v33 = vadd.f32 %v5361_v26, %v11476_v62  ;;  %v5328_v62 = vadd.f32 %v5327_v30, %v11490_v36  ;;  %v5711_v26 = vld [vmem:[%s13594_s7 + $0x310] sm:$0xff]  ;;  %v5726_v36 = vld [vmem:[%s13594_s7 + $0x388] sm:$0xff]  ;;  %vm4588_vm15 = vcmp.eq.s32.totalorder %v11168_v12, %v9283_v2 }
 0x687   : > { %13628 = vst [vmem:[#allocation7_spill] sm:$0xff] %v11538_v51  ;;  %13629 = vst [vmem:[#allocation12_spill] sm:$0xff] %v11540_v37  ;;  %7772 = vmatpush3.msra.mxu1 %v5714_v55  ;;  %v5383_v37 = vadd.f32 %v4862_v22, %v4837_v19  ;;  %v5419_v51 = vadd.f32 %v4864_v31, %v4839_v18  ;;  %v5238_v55 = vadd.f32 %v5237_v13, %v5236_v43  ;;  %v5756_v43 = vld [vmem:[%s13594_s7 + $0x478] sm:$0xff]  ;;  %v13630_v13 = vld [vmem:[#allocation9_spill] sm:$0xff] }
 0x688   : > { %7773 = vmatprep.subr.mxu1 %v5729_v59  ;;  %v11561_v27 = vpop.f32.mrf.mxu0  ;;  %v11565_v48 = vpop.f32.mrf.mxu1  ;;  %v4912_v22 = vsel %vm4587_vm1, %v11378_v3, 0.0  ;;  %v4914_v31 = vsel %vm4589_vm2, %v11380_v6, 0.0  ;;  %v5302_v46 = vadd.f32 %v13630_v13, %v5082_v61  ;;  %v13631_v59 = vld [vmem:[#allocation10_spill] sm:$0xff]  ;;  %v4939_v61 = vsel %vm4614_vm0, %v11415_v11, 0.0  ;;  %v5769_v13 = vld [vmem:[%s13594_s7 + $0x4e0] sm:$0xff] }
 0x689   : > { %7774 = vmatpush3.msra.mxu1 %v5713_v40  ;;  %v5107_v3 = vsel %vm4782_vm7, %v13631_v59, 0.0  ;;  %v5384_v19 = vadd.f32 %v5383_v37, %v4887_v25  ;;  %v5420_v18 = vadd.f32 %v5419_v51, %v4889_v54  ;;  %vm4561_vm7 = vcmp.eq.s32.totalorder %v11501_v32, %v9280_v0  ;;  %v5755_v51 = vld [vmem:[%s13594_s7 + $0x470] sm:$0xff]  ;;  %v5770_v54 = vld [vmem:[%s13594_s7 + $0x4e8] sm:$0xff] }
 0x68a   : > { %7775 = vmatprep.subr.mxu1 %v5728_v10  ;;  %v11595_v6 = vpop.f32.mrf.mxu0  ;;  %v11597_v40 = vpop.f32.mrf.mxu1  ;;  %v4937_v10 = vsel %vm4612_vm4, %v11413_v29, 0.0  ;;  %v5132_v29 = vsel %vm4807_vm14, %v11085_v52, 0.0  ;;  %v5273_v34 = vrot.slane %v11572_v57, 1  ;;  %v5303_v52 = vadd.f32 %v5302_v46, %v5107_v3 }
 0x68b   : > { %6214 = vmatmul.mubr.f32.vlgmr.msra.gmra.mxu0 %v5238_v55  ;;  %7776 = vmatpush3.msra.mxu1 %v5712_v14  ;;  %v5385_v37 = vadd.f32 %v5384_v19, %v4912_v22  ;;  %v5421_v25 = vadd.f32 %v5420_v18, %v4914_v31  ;;  %vm4586_vm14 = vcmp.eq.s32.totalorder %v11501_v32, %v9283_v2  ;;  %v4962_v14 = vsel %vm4637_vm5, %v11461_v7, 0.0  ;;  %v5710_v22 = vld [vmem:[%s13594_s7 + $0x308] sm:$0xff]  ;;  %v5709_v19 = vld [vmem:[%s13594_s7 + $0x300] sm:$0xff] }
 0x68c   : > { %7787 = vmatpush3.msra.mxu0 %v5756_v43  ;;  %7777 = vmatprep.subr.mxu1 %v5727_v63  ;;  %v3833_v11 = vpop.f32.mrf.mxu0  ;;  %v3934_v30 = vpop.f32.mrf.mxu1  ;;  %v4964_v55 = vsel %vm4639_vm3, %v11463_v42, 0.0  ;;  %v5754_v31 = vld [vmem:[%s13594_s7 + $0x468] sm:$0xff]  ;;  %vm4714_vm1 = vcmp.eq.s32.totalorder %v11403_v60, %v9352_v23  ;;  %v5725_v63 = vld [vmem:[%s13594_s7 + $0x380] sm:$0xff]  ;;  %v11667_v46 = vadd.f32 %v5303_v52, %v5132_v29  ;;  %vm4611_vm3 = vcmp.eq.s32.totalorder %v11501_v32, %v9302_v8 }
 0x68d   : > { %7788 = vmatprep.subr.mxu0 %v5771_v5  ;;  %6353 = vmatprep.mubr.f32.mxu0 %v5328_v62  ;;  %v5386_v43 = vadd.f32 %v5385_v37, %v4937_v10  ;;  %v5422_v7 = vadd.f32 %v5421_v25, %v4939_v61  ;;  %v4987_v59 = vsel %vm4662_vm10, %v11507_v47, 0.0  ;;  %v4989_v3 = vsel %vm4664_vm11, %v11511_v4, 0.0  ;;  %v5753_v18 = vld [vmem:[%s13594_s7 + $0x460] sm:$0xff]  ;;  %v5752_v25 = vld [vmem:[%s13594_s7 + $0x458] sm:$0xff] }
 0x68e   : > { %7778 = vmatpush3.msra.mxu1 %v5711_v26  ;;  %7789 = vmatpush3.msra.mxu0 %v5755_v51  ;;  %v11657_v5 = vpop.f32.mrf.mxu0  ;;  %v11659_v42 = vpop.f32.mrf.mxu1  ;;  %v5363_v10 = vrot.slane %v11603_v33, 1  ;;  %vm4613_vm10 = vcmp.eq.s32.totalorder %v11168_v12, %v9302_v8  ;;  %vm4737_vm2 = vcmp.eq.s32.totalorder %v11401_v28, %v9355_v24  ;;  %v5768_v26 = vld [vmem:[%s13594_s7 + $0x4d8] sm:$0xff]  ;;  %v5274_v51 = vadd.f32 %v5273_v34, %v11572_v57 }
 0x68f   : > { %7779 = vmatprep.subr.mxu1 %v5726_v36  ;;  %7790 = vmatprep.subr.mxu0 %v5770_v54  ;;  %v5387_v47 = vadd.f32 %v5386_v43, %v4962_v14  ;;  %v5423_v61 = vadd.f32 %v5422_v7, %v4964_v55  ;;  %vm4636_vm4 = vcmp.eq.s32.totalorder %v11501_v32, %v9305_v9  ;;  %v5012_v29 = vsel %vm4687_vm6, %v11561_v27, 0.0  ;;  %v5804_v57 = vld [vmem:[%s13594_s7 + $0x5f8] sm:$0xff]  ;;  %v5803_v43 = vld [vmem:[%s13594_s7 + $0x5f0] sm:$0xff] }
 0x690   : > { %7780 = vmatpush3.msra.mxu1 %v5710_v22  ;;  %7791 = vmatpush3.msra.mxu0 %v5754_v31  ;;  %v3837_v4 = vpop.f32.mrf.mxu0  ;;  %v3938_v62 = vpop.f32.mrf.mxu1  ;;  %v5014_v37 = vsel %vm4689_vm8, %v11565_v48, 0.0  ;;  %vm4739_vm0 = vcmp.eq.s32.totalorder %v11403_v60, %v9355_v24  ;;  %vm4638_vm5 = vcmp.eq.s32.totalorder %v11168_v12, %v9305_v9  ;;  %v5788_v34 = vld [vmem:[%s13594_s7 + $0x578] sm:$0xff]  ;;  %vm4762_vm11 = vcmp.eq.s32.totalorder %v11401_v28, %v9377_v35  ;;  %v5767_v31 = vld [vmem:[%s13594_s7 + $0x4d0] sm:$0xff] }
 0x691   : > { %7781 = vmatprep.subr.mxu1 %v5725_v63  ;;  %7792 = vmatprep.subr.mxu0 %v5769_v13  ;;  %v5388_v27 = vadd.f32 %v5387_v47, %v4987_v59  ;;  %v5424_v36 = vadd.f32 %v5423_v61, %v4989_v3  ;;  %v5305_v52 = vrot.slane %v11667_v46, 4  ;;  %vm4661_vm6 = vcmp.eq.s32.totalorder %v11501_v32, %v9327_v15  ;;  %v5751_v13 = vld [vmem:[%s13594_s7 + $0x450] sm:$0xff] }
 0x692   : > { %7782 = vmatpush3.msra.mxu1 %v5709_v19  ;;  %7793 = vmatpush3.msra.mxu0 %v5753_v18  ;;  %v11714_v48 = vpop.f32.mrf.mxu0  ;;  %v11716_v54 = vpop.f32.mrf.mxu1  ;;  %v5037_v14 = vsel %vm4712_vm13, %v3833_v11, 0.0  ;;  %v5039_v55 = vsel %vm4714_vm1, %v3934_v30, 0.0  ;;  %v5364_v22 = vadd.f32 %v5363_v10, %v11603_v33  ;;  %v4861_v11 = vsel %vm4536_vm9, %v11264_v45, 0.0  ;;  %v5787_v45 = vld [vmem:[%s13594_s7 + $0x570] sm:$0xff]  ;;  %v5766_v19 = vld [vmem:[%s13594_s7 + $0x4c8] sm:$0xff] }
 0x693   : > { %6284 = vmatmul.mubr.f32.vlgmr.msra.gmra.mxu1 %v5274_v51  ;;  %7794 = vmatprep.subr.mxu0 %v5768_v26  ;;  %vm4663_vm8 = vcmp.eq.s32.totalorder %v11168_v12, %v9327_v15  ;;  %v5389_v30 = vadd.f32 %v5388_v27, %v5012_v29  ;;  %v5425_v7 = vadd.f32 %v5424_v36, %v5014_v37  ;;  %v5062_v59 = vsel %vm4737_vm2, %v3837_v4, 0.0  ;;  %v5802_v18 = vld [vmem:[%s13594_s7 + $0x5e8] sm:$0xff] }
 0x694   : > { %7821 = vmatprep.subr.mxu1 %v5804_v57  ;;  %7795 = vmatpush3.msra.mxu0 %v5752_v25  ;;  %v3843_v33 = vpop.f32.mrf.mxu0  ;;  %v3944_v63 = vpop.f32.mrf.mxu1  ;;  %vm4764_vm13 = vcmp.eq.s32.totalorder %v11403_v60, %v9377_v35  ;;  %vm4686_vm9 = vcmp.eq.s32.totalorder %v11501_v32, %v9330_v16  ;;  %v5064_v3 = vsel %vm4739_vm0, %v3938_v62, 0.0  ;;  %vm4787_vm1 = vcmp.eq.s32.totalorder %v11401_v28, %v9380_v39  ;;  %v5786_v51 = vld [vmem:[%s13594_s7 + $0x568] sm:$0xff]  ;;  %v5765_v25 = vld [vmem:[%s13594_s7 + $0x4c0] sm:$0xff] }
 0x695   : > { %7822 = vmatpush3.msra.mxu1 %v5788_v34  ;;  %6423 = vmatprep.mubr.f32.mxu1 %v5364_v22  ;;  %vm4789_vm2 = vcmp.eq.s32.totalorder %v11403_v60, %v9380_v39  ;;  %v4836_v10 = vsel %vm4511_vm12, %v11205_v17, 0.0  ;;  %v4886_v47 = vsel %vm4561_vm7, %v11308_v56, 0.0  ;;  %vm4688_vm0 = vcmp.eq.s32.totalorder %v11168_v12, %v9330_v16  ;;  %v5750_v17 = vld [vmem:[%s13594_s7 + $0x448] sm:$0xff]  ;;  %v5785_v22 = vld [vmem:[%s13594_s7 + $0x560] sm:$0xff] }
 0x696   : > { %v5390_v61 = vadd.f32 %v5389_v30, %v5037_v14  ;;  %v5426_v4 = vadd.f32 %v5425_v7, %v5039_v55  ;;  %7796 = vmatprep.subr.mxu0 %v5767_v31  ;;  %7823 = vmatprep.subr.mxu1 %v5803_v43  ;;  %v11781_v62 = vpop.f32.mrf.mxu0  ;;  %v11783_v26 = vpop.f32.mrf.mxu1  ;;  %v11792_v56 = vadd.f32 %v5305_v52, %v11667_v46  ;;  %v5087_v37 = vsel %vm4762_vm11, %v3843_v33, 0.0  ;;  %v5801_v46 = vld [vmem:[%s13594_s7 + $0x5e0] sm:$0xff]  ;;  %v5764_v30 = vld [vmem:[%s13594_s7 + $0x4b8] sm:$0xff] }
 0x697   : > { %v5365_v29 = vadd.f32 %v4861_v11, %v4836_v10  ;;  %vm4711_vm12 = vcmp.eq.s32.totalorder %v11501_v32, %v9352_v23  ;;  %v5089_v57 = vsel %vm4764_vm13, %v3944_v63, 0.0  ;;  %7797 = vmatpush3.msra.mxu0 %v5751_v13  ;;  %7824 = vmatpush3.msra.mxu1 %v5787_v45  ;;  %v4911_v27 = vsel %vm4586_vm14, %v11356_v50, 0.0  ;;  %v5749_v55 = vld [vmem:[%s13594_s7 + $0x440] sm:$0xff]  ;;  %v5800_v7 = vld [vmem:[%s13594_s7 + $0x5d8] sm:$0xff]  ;;  %v5763_v10 = vld [vmem:[%s13594_s7 + $0x4b0] sm:$0xff] }
 0x698   : > { %v5391_v36 = vadd.f32 %v5390_v61, %v5062_v59  ;;  %v5427_v34 = vadd.f32 %v5426_v4, %v5064_v3  ;;  %7798 = vmatprep.subr.mxu0 %v5766_v19  ;;  %7825 = vmatprep.subr.mxu1 %v5802_v18  ;;  %v3847_v52 = vpop.f32.mrf.mxu0  ;;  %v3948_v14 = vpop.f32.mrf.mxu1  ;;  %vm4812_vm7 = vcmp.eq.s32.totalorder %v11401_v28, %v9400_v49  ;;  %v4913_v50 = vsel %vm4588_vm15, %v11358_v58, 0.0  ;;  %v5748_v59 = vld [vmem:[%s13594_s7 + $0x438] sm:$0xff] }
 0x699   : > { %v5366_v31 = vadd.f32 %v5365_v29, %v4886_v47  ;;  %7799 = vmatpush3.msra.mxu0 %v5750_v17  ;;  %7826 = vmatpush3.msra.mxu1 %v5786_v51  ;;  %v5112_v43 = vsel %vm4787_vm1, %v3847_v52, 0.0  ;;  %v5114_v11 = vsel %vm4789_vm2, %v3948_v14, 0.0  ;;  %v4936_v58 = vsel %vm4611_vm3, %v11391_v53, 0.0  ;;  %v5784_v3 = vld [vmem:[%s13594_s7 + $0x558] sm:$0xff]  ;;  %v5799_v47 = vld [vmem:[%s13594_s7 + $0x5d0] sm:$0xff] }
 0x69a   : > { %v5392_v33 = vadd.f32 %v5391_v36, %v5087_v37  ;;  %v5428_v63 = vadd.f32 %v5427_v34, %v5089_v57  ;;  %7800 = vmatprep.subr.mxu0 %v5765_v25  ;;  %7827 = vmatprep.subr.mxu1 %v5801_v46  ;;  %v11840_v13 = vpop.f32.mrf.mxu0  ;;  %v11842_v45 = vpop.f32.mrf.mxu1  ;;  %vm4814_vm14 = vcmp.eq.s32.totalorder %v11403_v60, %v9400_v49  ;;  %v5307_v53 = vrot.slane %v11792_v56, 2  ;;  %v5747_v37 = vld [vmem:[%s13594_s7 + $0x430] sm:$0xff]  ;;  %v5798_v36 = vld [vmem:[%s13594_s7 + $0x5c8] sm:$0xff] }
 0x69b   : > { %v5367_v19 = vadd.f32 %v5366_v31, %v4911_v27  ;;  %v4938_v18 = vsel %vm4613_vm10, %v11393_v21, 0.0  ;;  %vm4713_vm15 = vcmp.eq.s32.totalorder %v11168_v12, %v9352_v23  ;;  %7801 = vmatpush3.msra.mxu0 %v5749_v55  ;;  %7828 = vmatpush3.msra.mxu1 %v5785_v22  ;;  %v5403_v61 = vadd.f32 %v11331_v44, %v4913_v50  ;;  %v5783_v57 = vld [vmem:[%s13594_s7 + $0x550] sm:$0xff]  ;;  %v5762_v27 = vld [vmem:[%s13594_s7 + $0x4a8] sm:$0xff] }
 0x69c   : > { %v4961_v21 = vsel %vm4636_vm4, %v11434_v1, 0.0  ;;  %v5393_v4 = vadd.f32 %v5392_v33, %v5112_v43  ;;  %v5429_v17 = vadd.f32 %v5428_v63, %v5114_v11  ;;  %7802 = vmatprep.subr.mxu0 %v5764_v30  ;;  %7829 = vmatprep.subr.mxu1 %v5800_v7  ;;  %v3853_v51 = vpop.f32.mrf.mxu0  ;;  %v3954_v29 = vpop.f32.mrf.mxu1  ;;  %v4963_v1 = vsel %vm4638_vm5, %v11436_v20, 0.0  ;;  %v13632_v20 = vld [vmem:[#allocation6_spill] sm:$0xff]  ;;  %v13633_v50 = vld [vmem:[#allocation11_spill] sm:$0xff]  ;;  %v13634_v30 = vld [vmem:[#allocation8_spill] sm:$0xff] }
 0x69d   : > { %v5368_v44 = vadd.f32 %v5367_v19, %v4936_v58  ;;  %7803 = vmatpush3.msra.mxu0 %v5748_v59  ;;  %7830 = vmatpush3.msra.mxu1 %v5784_v3  ;;  %v5137_v25 = vsel %vm4812_vm7, %v3853_v51, 0.0  ;;  %v5139_v46 = vsel %vm4814_vm14, %v3954_v29, 0.0  ;;  %v5404_v34 = vadd.f32 %v5403_v61, %v4938_v18  ;;  %v5746_v22 = vld [vmem:[%s13594_s7 + $0x428] sm:$0xff]  ;;  %v5761_v58 = vld [vmem:[%s13594_s7 + $0x4a0] sm:$0xff]  ;;  %v13635_v59 = vld [vmem:[#allocation7_spill] sm:$0xff] }
 0x69e   : > { %v4986_v52 = vsel %vm4661_vm6, %v13632_v20, 0.0  ;;  %7804 = vmatprep.subr.mxu0 %v5763_v10  ;;  %7831 = vmatprep.subr.mxu1 %v5799_v47  ;;  %v5394_v28 = vadd.f32 %v5393_v4, %v5137_v25  ;;  %v5430_v14 = vadd.f32 %v5429_v17, %v5139_v46  ;;  %v3855_v60 = vpop.f32.mrf.mxu0  ;;  %v3956_v55 = vpop.f32.mrf.mxu1  ;;  %v5782_v31 = vld [vmem:[%s13594_s7 + $0x548] sm:$0xff]  ;;  %v5341_v43 = vrot.slane %v13633_v50, 4  ;;  %v5797_v33 = vld [vmem:[%s13594_s7 + $0x5c0] sm:$0xff]  ;;  %v5760_v29 = vld [vmem:[%s13594_s7 + $0x498] sm:$0xff] }
 0x69f   : > { %v5369_v11 = vadd.f32 %v5368_v44, %v4961_v21  ;;  %v4988_v7 = vsel %vm4663_vm8, %v13634_v30, 0.0  ;;  %vm4736_vm3 = vcmp.eq.s32.totalorder %v11501_v32, %v9355_v24  ;;  %7805 = vmatpush3.msra.mxu0 %v5747_v37  ;;  %7832 = vmatpush3.msra.mxu1 %v5783_v57  ;;  %v5405_v63 = vadd.f32 %v5404_v34, %v4963_v1  ;;  %v5745_v47 = vld [vmem:[%s13594_s7 + $0x420] sm:$0xff]  ;;  %v5796_v37 = vld [vmem:[%s13594_s7 + $0x5b8] sm:$0xff]  ;;  %v5759_v20 = vld [vmem:[%s13594_s7 + $0x490] sm:$0xff] }
 0x6a0   : > { %v5011_v3 = vsel %vm4686_vm9, %v13635_v59, 0.0  ;;  %vm4738_vm10 = vcmp.eq.s32.totalorder %v11168_v12, %v9355_v24  ;;  %v5395_v19 = vrot.slane %v5394_v28, 4  ;;  %7806 = vmatprep.subr.mxu0 %v5762_v27  ;;  %7833 = vmatprep.subr.mxu1 %v5798_v36  ;;  %v3856_v18 = vpop.f32.mrf.mxu0  ;;  %v3957_v10 = vpop.f32.mrf.mxu1  ;;  %v5781_v61 = vld [vmem:[%s13594_s7 + $0x540] sm:$0xff]  ;;  %vm4761_vm4 = vcmp.eq.s32.totalorder %v11501_v32, %v9377_v35  ;;  %v5744_v36 = vld [vmem:[%s13594_s7 + $0x418] sm:$0xff]  ;;  %v5758_v30 = vld [vmem:[%s13594_s7 + $0x488] sm:$0xff] }
 0x6a1   : > { %v5370_v21 = vadd.f32 %v5369_v11, %v4986_v52  ;;  %v13636_v4 = vld [vmem:[#allocation12_spill] sm:$0xff]  ;;  %v5431_v51 = vrot.slane %v5430_v14, 4  ;;  %7807 = vmatpush3.msra.mxu0 %v5746_v22  ;;  %7834 = vmatpush3.msra.mxu1 %v5782_v31  ;;  %v11940_v57 = vadd.f32 %v5307_v53, %v11792_v56  ;;  %v5406_v44 = vadd.f32 %v5405_v63, %v4988_v7  ;;  %v5795_v52 = vld [vmem:[%s13594_s7 + $0x5b0] sm:$0xff]  ;;  %v5794_v7 = vld [vmem:[%s13594_s7 + $0x5a8] sm:$0xff] }
 0x6a2   : > { %v5013_v17 = vsel %vm4688_vm0, %v13636_v4, 0.0  ;;  %v5036_v1 = vsel %vm4711_vm12, %v11595_v6, 0.0  ;;  %v5396_v25 = vadd.f32 %v5395_v19, %v5394_v28  ;;  %7808 = vmatprep.subr.mxu0 %v5761_v58  ;;  %7835 = vmatprep.subr.mxu1 %v5797_v33  ;;  %v11946_v46 = vpop.f32.mrf.mxu0  ;;  %v11948_v27 = vpop.f32.mrf.mxu1  ;;  %v5780_v56 = vld [vmem:[%s13594_s7 + $0x538] sm:$0xff]  ;;  %v11957_v53 = vadd.f32 %v5341_v43, %v13633_v50  ;;  %v5743_v31 = vld [vmem:[%s13594_s7 + $0x410] sm:$0xff]  ;;  %v5778_v19 = vld [vmem:[%s13594_s7 + $0x528] sm:$0xff] }
 0x6a3   : > { %v5371_v34 = vadd.f32 %v5370_v21, %v5011_v3  ;;  %v5038_v6 = vsel %vm4713_vm15, %v11597_v40, 0.0  ;;  %vm4763_vm5 = vcmp.eq.s32.totalorder %v11168_v12, %v9377_v35  ;;  %7809 = vmatpush3.msra.mxu0 %v5745_v47  ;;  %7836 = vmatpush3.msra.mxu1 %v5781_v61  ;;  %v5407_v28 = vadd.f32 %v5406_v44, %v5013_v17  ;;  %v5779_v50 = vld [vmem:[%s13594_s7 + $0x530] sm:$0xff]  ;;  %v5742_v3 = vld [vmem:[%s13594_s7 + $0x408] sm:$0xff]  ;;  %v5757_v47 = vld [vmem:[%s13594_s7 + $0x480] sm:$0xff] }
 0x6a4   : > { %v5061_v60 = vsel %vm4736_vm3, %v11657_v5, 0.0  ;;  %vm4786_vm11 = vcmp.eq.s32.totalorder %v11501_v32, %v9380_v39  ;;  %v5397_v40 = vrot.slane %v5396_v25, 2  ;;  %7810 = vmatprep.subr.mxu0 %v5760_v29  ;;  %7837 = vmatprep.subr.mxu1 %v5796_v37  ;;  %v11977_v55 = vpop.f32.mrf.mxu0  ;;  %v11979_v22 = vpop.f32.mrf.mxu1  ;;  %v5063_v5 = vsel %vm4738_vm10, %v11659_v42, 0.0  ;;  %v5793_v61 = vld [vmem:[%s13594_s7 + $0x5a0] sm:$0xff] }
 0x6a5   : > { %v5372_v43 = vadd.f32 %v5371_v34, %v5036_v1  ;;  %vm4788_vm6 = vcmp.eq.s32.totalorder %v11168_v12, %v9380_v39  ;;  %v11993_v11 = vadd.f32 %v5431_v51, %v5430_v14  ;;  %7811 = vmatpush3.msra.mxu0 %v5744_v36  ;;  %7838 = vmatpush3.msra.mxu1 %v5780_v56  ;;  %v5309_v58 = vrot.slane %v11940_v57, 1  ;;  %v5741_v51 = vld [vmem:[%s13594_s7 + $0x400] sm:$0xff] }
 0x6a6   : > { %v5408_v33 = vadd.f32 %v5407_v28, %v5038_v6  ;;  %v5086_v42 = vsel %vm4761_vm4, %v11714_v48, 0.0  ;;  %v5398_v14 = vadd.f32 %v5397_v40, %v5396_v25  ;;  %7812 = vmatprep.subr.mxu0 %v5759_v20  ;;  %7839 = vmatprep.subr.mxu1 %v5795_v52  ;;  %v12006_v63 = vpop.f32.mrf.mxu0  ;;  %v12008_v59 = vpop.f32.mrf.mxu1  ;;  %v5343_v18 = vrot.slane %v11957_v53, 2  ;;  %v5777_v29 = vld [vmem:[%s13594_s7 + $0x520] sm:$0xff]  ;;  %v5792_v25 = vld [vmem:[%s13594_s7 + $0x598] sm:$0xff] }
 0x6a7   : > { %v5373_v10 = vadd.f32 %v5372_v43, %v5061_v60  ;;  %v5088_v48 = vsel %vm4763_vm5, %v11716_v54, 0.0  ;;  %vm4811_vm8 = vcmp.eq.s32.totalorder %v11501_v32, %v9400_v49  ;;  %7813 = vmatpush3.msra.mxu0 %v5743_v31  ;;  %7840 = vmatpush3.msra.mxu1 %v5779_v50  ;;  %v5111_v4 = vsel %vm4786_vm11, %v11781_v62, 0.0  ;;  %v5791_v60 = vld [vmem:[%s13594_s7 + $0x590] sm:$0xff] }
 0x6a8   : > { %v5409_v21 = vadd.f32 %v5408_v33, %v5063_v5  ;;  %vm4813_vm13 = vcmp.eq.s32.totalorder %v11168_v12, %v9400_v49  ;;  %7814 = vmatprep.subr.mxu0 %v5758_v30  ;;  %7841 = vmatprep.subr.mxu1 %v5794_v7  ;;  %v12035_v54 = vpop.f32.mrf.mxu0  ;;  %v12037_v17 = vpop.f32.mrf.mxu1  ;;  %v5399_v37 = vrot.slane %v5398_v14, 1  ;;  %v5113_v62 = vsel %vm4788_vm6, %v11783_v26, 0.0  ;;  %v5836_v26 = vld [vmem:[%s13594_s7 + $0x6f8] sm:$0xff]  ;;  %v13637_v30 = vld [vmem:[#allocation5_spill] sm:$0xff] }
 0x6a9   : > { %v5374_v44 = vadd.f32 %v5373_v10, %v5086_v42  ;;  %v5433_v1 = vrot.slane %v11993_v11, 2  ;;  %7815 = vmatpush3.msra.mxu0 %v5742_v3  ;;  %7842 = vmatpush3.msra.mxu1 %v5778_v19  ;;  %v5310_v36 = vadd.f32 %v5309_v58, %v11940_v57  ;;  %v5136_v34 = vsel %vm4811_vm8, %v11840_v13, 0.0  ;;  %v5776_v57 = vld [vmem:[%s13594_s7 + $0x518] sm:$0xff]  ;;  %v5819_v58 = vld [vmem:[%s13594_s7 + $0x670] sm:$0xff] }
 0x6aa   : > { %v5410_v56 = vadd.f32 %v5409_v21, %v5088_v48  ;;  %7816 = vmatprep.subr.mxu0 %v5757_v47  ;;  %7843 = vmatprep.subr.mxu1 %v5793_v61  ;;  %v12061_v6 = vpop.f32.mrf.mxu0  ;;  %v12063_v20 = vpop.f32.mrf.mxu1  ;;  %v5344_v52 = vadd.f32 %v5343_v18, %v11957_v53  ;;  %v5138_v32 = vsel %vm4813_vm13, %v11842_v45, 0.0  ;;  %v5820_v13 = vld [vmem:[%s13594_s7 + $0x678] sm:$0xff]  ;;  %v5835_v53 = vld [vmem:[%s13594_s7 + $0x6f0] sm:$0xff]  ;;  %v5400_v50 = vadd.f32 %v5399_v37, %v5398_v14  ;;  %v5790_v14 = vld [vmem:[%s13594_s7 + $0x588] sm:$0xff] }
 0x6ab   : > { %v5375_v28 = vadd.f32 %v5374_v44, %v5111_v4  ;;  %7817 = vmatpush3.msra.mxu0 %v5741_v51  ;;  %7844 = vmatpush3.msra.mxu1 %v5777_v29  ;;  %v5775_v45 = vld [vmem:[%s13594_s7 + $0x510] sm:$0xff]  ;;  %v5434_v5 = vadd.f32 %v5433_v1, %v11993_v11  ;;  %v4465_v7 = vadd.s32 2048, %v13637_v30  ;;  %v4466_v42 = vadd.s32 2176, %v13637_v30  ;;  %v5834_v11 = vld [vmem:[%s13594_s7 + $0x6e8] sm:$0xff]  ;;  %v5789_v21 = vld [vmem:[%s13594_s7 + $0x580] sm:$0xff] }
 0x6ac   : > { %v5411_v40 = vadd.f32 %v5410_v56, %v5113_v62  ;;  %6354 = vmatmul.mubr.f32.vlgmr.msra.gmra.mxu0 %v5310_v36  ;;  %7845 = vmatprep.subr.mxu1 %v5792_v25  ;;  %v12082_v31 = vpop.f32.mrf.mxu0  ;;  %v12084_v12 = vpop.f32.mrf.mxu1  ;;  %v4468_v3 = vadd.s32 2432, %v13637_v30  ;;  %v5345_v10 = vrot.slane %v5344_v52, 1  ;;  %v4467_v48 = vadd.s32 2304, %v13637_v30  ;;  %v5774_v47 = vld [vmem:[%s13594_s7 + $0x508] sm:$0xff]  ;;  %v5833_v4 = vld [vmem:[%s13594_s7 + $0x6e0] sm:$0xff] }
 0x6ad   : > { %v5376_v43 = vadd.f32 %v5375_v28, %v5136_v34  ;;  %7856 = vmatprep.subr.mxu0 %v5836_v26  ;;  %7846 = vmatpush3.msra.mxu1 %v5776_v57  ;;  %v5818_v61 = vld [vmem:[%s13594_s7 + $0x668] sm:$0xff]  ;;  %v12123_v44 = vshra.s32 %v4465_v7, 5  ;;  %v5773_v62 = vld [vmem:[%s13594_s7 + $0x500] sm:$0xff]  ;;  %v5435_v25 = vrot.slane %v5434_v5, 1  ;;  %v12131_v56 = vshra.s32 %v4466_v42, 5  ;;  %v5832_v26 = vld [vmem:[%s13594_s7 + $0x6d8] sm:$0xff] }
 0x6ae   : > { %v5412_v33 = vadd.f32 %v5411_v40, %v5138_v32  ;;  %7857 = vmatpush3.msra.mxu0 %v5820_v13  ;;  %7847 = vmatprep.subr.mxu1 %v5791_v60  ;;  %v12102_v19 = vpop.f32.mrf.mxu0  ;;  %v12104_v18 = vpop.f32.mrf.mxu1  ;;  %v5817_v1 = vld [vmem:[%s13594_s7 + $0x660] sm:$0xff]  ;;  %v12133_v34 = vshra.s32 %v4468_v3, 5  ;;  %v5346_v32 = vadd.f32 %v5345_v10, %v5344_v52  ;;  %v12142_v13 = vshra.s32 %v4467_v48, 5  ;;  %v5868_v60 = vld [vmem:[%s13594_s7 + $0x7f8] sm:$0xff]  ;;  %v5867_v42 = vld [vmem:[%s13594_s7 + $0x7f0] sm:$0xff] }
 0x6af   : > { %7858 = vmatprep.subr.mxu0 %v5835_v53  ;;  %7848 = vmatpush3.msra.mxu1 %v5775_v45  ;;  %v5377_v37 = vrot.slane %v5376_v43, 4  ;;  %v5816_v40 = vld [vmem:[%s13594_s7 + $0x658] sm:$0xff]  ;;  %vm4515_vm9 = vcmp.eq.s32.totalorder %v12123_v44, %v9250_v41  ;;  %v5436_v7 = vadd.f32 %v5435_v25, %v5434_v5  ;;  %vm4516_vm1 = vcmp.eq.s32.totalorder %v12131_v56, %v9250_v41  ;;  %v5851_v5 = vld [vmem:[%s13594_s7 + $0x770] sm:$0xff]  ;;  %v5866_v10 = vld [vmem:[%s13594_s7 + $0x7e8] sm:$0xff] }
 0x6b0   : > { %7859 = vmatpush3.msra.mxu0 %v5819_v58  ;;  %6493 = vmatprep.mubr.f32.mxu0 %v5400_v50  ;;  %v12119_v51 = vpop.f32.mrf.mxu0  ;;  %v12121_v29 = vpop.f32.mrf.mxu1  ;;  %v5413_v36 = vrot.slane %v5412_v33, 4  ;;  %v5852_v53 = vld [vmem:[%s13594_s7 + $0x778] sm:$0xff]  ;;  %v5831_v58 = vld [vmem:[%s13594_s7 + $0x6d0] sm:$0xff]  ;;  %vm4518_vm2 = vcmp.eq.s32.totalorder %v12133_v34, %v9250_v41  ;;  %vm4540_vm12 = vcmp.eq.s32.totalorder %v12123_v44, %v9259_v38  ;;  %vm4541_vm7 = vcmp.eq.s32.totalorder %v12131_v56, %v9259_v38  ;;  %v5814_v48 = vld [vmem:[%s13594_s7 + $0x648] sm:$0xff] }
 0x6b1   : > { %7849 = vmatprep.subr.mxu1 %v5790_v14  ;;  %7860 = vmatprep.subr.mxu0 %v5834_v11  ;;  %v12157_v50 = vadd.f32 %v5377_v37, %v5376_v43  ;;  %v5815_v43 = vld [vmem:[%s13594_s7 + $0x650] sm:$0xff]  ;;  %vm4543_vm14 = vcmp.eq.s32.totalorder %v12133_v34, %v9259_v38  ;;  %v5830_v11 = vld [vmem:[%s13594_s7 + $0x6c8] sm:$0xff]  ;;  %vm4565_vm15 = vcmp.eq.s32.totalorder %v12123_v44, %v9280_v0  ;;  %v5829_v37 = vld [vmem:[%s13594_s7 + $0x6c0] sm:$0xff] }
 0x6b2   : > { %7850 = vmatpush3.msra.mxu1 %v5774_v47  ;;  %7861 = vmatpush3.msra.mxu0 %v5818_v61  ;;  %v12138_v57 = vpop.f32.mrf.mxu0  ;;  %v12140_v28 = vpop.f32.mrf.mxu1  ;;  %v12167_v3 = vadd.f32 %v5413_v36, %v5412_v33  ;;  %vm4566_vm3 = vcmp.eq.s32.totalorder %v12131_v56, %v9280_v0  ;;  %vm4568_vm10 = vcmp.eq.s32.totalorder %v12133_v34, %v9280_v0  ;;  %v5850_v47 = vld [vmem:[%s13594_s7 + $0x768] sm:$0xff]  ;;  %v5813_v25 = vld [vmem:[%s13594_s7 + $0x640] sm:$0xff] }
 0x6b3   : > { %7851 = vmatprep.subr.mxu1 %v5789_v21  ;;  %7862 = vmatprep.subr.mxu0 %v5833_v4  ;;  %v5379_v4 = vrot.slane %v12157_v50, 2  ;;  %vm4590_vm5 = vcmp.eq.s32.totalorder %v12123_v44, %v9283_v2  ;;  %vm4591_vm11 = vcmp.eq.s32.totalorder %v12131_v56, %v9283_v2  ;;  %vm4593_vm6 = vcmp.eq.s32.totalorder %v12133_v34, %v9283_v2  ;;  %v5849_v36 = vld [vmem:[%s13594_s7 + $0x760] sm:$0xff] }
 0x6b4   : > { %7852 = vmatpush3.msra.mxu1 %v5773_v62  ;;  %7863 = vmatpush3.msra.mxu0 %v5817_v1  ;;  %v12153_v45 = vpop.f32.mrf.mxu0  ;;  %v12155_v52 = vpop.f32.mrf.mxu1  ;;  %v5865_v62 = vld [vmem:[%s13594_s7 + $0x7e0] sm:$0xff]  ;;  %v5415_v1 = vrot.slane %v12167_v3, 2  ;;  %vm4640_vm4 = vcmp.eq.s32.totalorder %v12123_v44, %v9305_v9  ;;  %vm4665_vm13 = vcmp.eq.s32.totalorder %v12123_v44, %v9327_v15  ;;  %vm4666_vm0 = vcmp.eq.s32.totalorder %v12131_v56, %v9327_v15 }
 0x6b5   : > { %6424 = vmatmul.mubr.f32.vlgmr.msra.gmra.mxu1 %v5346_v32  ;;  %7864 = vmatprep.subr.mxu0 %v5832_v26  ;;  %vm4592_vm8 = vcmp.eq.s32.totalorder %v12142_v13, %v9283_v2 }
 0x6b6   : > { %7891 = vmatprep.subr.mxu1 %v5868_v60  ;;  %7865 = vmatpush3.msra.mxu0 %v5816_v40  ;;  %v12179_v14 = vpop.f32.mrf.mxu0  ;;  %v12181_v33 = vpop.f32.mrf.mxu1  ;;  %v5828_v60 = vld [vmem:[%s13594_s7 + $0x6b8] sm:$0xff] }
 0x6b7   : > { %7892 = vmatpush3.msra.mxu1 %v5852_v53  ;;  %6563 = vmatprep.mubr.f32.mxu1 %v5436_v7  ;;  %v5864_v40 = vld [vmem:[%s13594_s7 + $0x7d8] sm:$0xff] }
 0x6b8   : > { %7866 = vmatprep.subr.mxu0 %v5831_v58  ;;  %7893 = vmatprep.subr.mxu1 %v5867_v42  ;;  %v12209_v61 = vpop.f32.mrf.mxu0  ;;  %v12211_v21 = vpop.f32.mrf.mxu1  ;;  %v5812_v53 = vld [vmem:[%s13594_s7 + $0x638] sm:$0xff] }
 0x6b9   : > { %7867 = vmatpush3.msra.mxu0 %v5815_v43  ;;  %7894 = vmatpush3.msra.mxu1 %v5851_v5  ;;  %v5848_v7 = vld [vmem:[%s13594_s7 + $0x758] sm:$0xff]  ;;  %v12276_v43 = vadd.f32 %v5379_v4, %v12157_v50  ;;  %v4865_v5 = vsel %vm4540_vm12, %v12006_v63, 0.0  ;;  %v5827_v50 = vld [vmem:[%s13594_s7 + $0x6b0] sm:$0xff]  ;;  %vm4693_vm12 = vcmp.eq.s32.totalorder %v12133_v34, %v9330_v16 }
 0x6ba   : > { %7868 = vmatprep.subr.mxu0 %v5830_v11  ;;  %7895 = vmatprep.subr.mxu1 %v5866_v10  ;;  %v12241_v26 = vpop.f32.mrf.mxu0  ;;  %v12243_v32 = vpop.f32.mrf.mxu1  ;;  %v4866_v11 = vsel %vm4541_vm7, %v12035_v54, 0.0  ;;  %v4868_v10 = vsel %vm4543_vm14, %v12037_v17, 0.0  ;;  %v5863_v63 = vld [vmem:[%s13594_s7 + $0x7d0] sm:$0xff]  ;;  %v12299_v54 = vadd.f32 %v5415_v1, %v12167_v3  ;;  %v4840_v17 = vsel %vm4515_vm9, %v11946_v46, 0.0 }
 0x6bb   : > { %7869 = vmatpush3.msra.mxu0 %v5814_v48  ;;  %7896 = vmatpush3.msra.mxu1 %v5850_v47  ;;  %v4841_v48 = vsel %vm4516_vm1, %v11977_v55, 0.0  ;;  %v5811_v47 = vld [vmem:[%s13594_s7 + $0x630] sm:$0xff]  ;;  %vm4690_vm9 = vcmp.eq.s32.totalorder %v12123_v44, %v9330_v16  ;;  %vm4691_vm1 = vcmp.eq.s32.totalorder %v12131_v56, %v9330_v16  ;;  %v4843_v55 = vsel %vm4518_vm2, %v11979_v22, 0.0  ;;  %v5826_v22 = vld [vmem:[%s13594_s7 + $0x6a8] sm:$0xff] }
 0x6bc   : > { %7870 = vmatprep.subr.mxu0 %v5829_v37  ;;  %7897 = vmatprep.subr.mxu1 %v5865_v62  ;;  %v12267_v58 = vpop.f32.mrf.mxu0  ;;  %v12271_v42 = vpop.f32.mrf.mxu1  ;;  %v5847_v3 = vld [vmem:[%s13594_s7 + $0x750] sm:$0xff]  ;;  %v4890_v37 = vsel %vm4565_vm15, %v12061_v6, 0.0  ;;  %v4891_v62 = vsel %vm4566_vm3, %v12082_v31, 0.0  ;;  %v4893_v1 = vsel %vm4568_vm10, %v12084_v12, 0.0  ;;  %vm4617_vm7 = vcmp.eq.s32.totalorder %v12142_v13, %v9302_v8  ;;  %v5862_v6 = vld [vmem:[%s13594_s7 + $0x7c8] sm:$0xff] }
 0x6bd   : > { %7871 = vmatpush3.msra.mxu0 %v5813_v25  ;;  %7898 = vmatpush3.msra.mxu1 %v5849_v36  ;;  %v5437_v25 = vadd.f32 %v4865_v5, %v4840_v17  ;;  %v5455_v31 = vadd.f32 %v4866_v11, %v4841_v48  ;;  %v5491_v36 = vadd.f32 %v4868_v10, %v4843_v55  ;;  %v5810_v12 = vld [vmem:[%s13594_s7 + $0x628] sm:$0xff]  ;;  %v4915_v5 = vsel %vm4590_vm5, %v12102_v19, 0.0  ;;  %v5861_v19 = vld [vmem:[%s13594_s7 + $0x7c0] sm:$0xff] }
 0x6be   : > { %7872 = vmatprep.subr.mxu0 %v5828_v60  ;;  %7899 = vmatprep.subr.mxu1 %v5864_v40  ;;  %v12315_v4 = vpop.f32.mrf.mxu0  ;;  %v12319_v46 = vpop.f32.mrf.mxu1  ;;  %v5846_v60 = vld [vmem:[%s13594_s7 + $0x748] sm:$0xff]  ;;  %vm4715_vm2 = vcmp.eq.s32.totalorder %v12123_v44, %v9352_v23  ;;  %vm4716_vm14 = vcmp.eq.s32.totalorder %v12131_v56, %v9352_v23  ;;  %vm4718_vm15 = vcmp.eq.s32.totalorder %v12133_v34, %v9352_v23  ;;  %v4916_v11 = vsel %vm4591_vm11, %v12119_v51, 0.0  ;;  %v5809_v48 = vld [vmem:[%s13594_s7 + $0x620] sm:$0xff] }
 0x6bf   : > { %7873 = vmatpush3.msra.mxu0 %v5812_v53  ;;  %7900 = vmatpush3.msra.mxu1 %v5848_v7  ;;  %v5381_v7 = vrot.slane %v12276_v43, 1  ;;  %v4918_v10 = vsel %vm4593_vm6, %v12121_v29, 0.0  ;;  %vm13638_vm10 = vcmp.eq.s32.totalorder %v12142_v13, %v9250_v41  ;;  %v5456_v29 = vadd.f32 %v5455_v31, %v4891_v62  ;;  %v5808_v31 = vld [vmem:[%s13594_s7 + $0x618] sm:$0xff] }
 0x6c0   : > { %7874 = vmatprep.subr.mxu0 %v5827_v50  ;;  %7901 = vmatprep.subr.mxu1 %v5863_v63  ;;  %v12355_v40 = vpop.f32.mrf.mxu0  ;;  %v12357_v53 = vpop.f32.mrf.mxu1  ;;  %v5825_v50 = vld [vmem:[%s13594_s7 + $0x6a0] sm:$0xff]  ;;  %v4842_v51 = vsel %vm13638_vm10, %v11948_v27, 0.0  ;;  %v5438_v63 = vadd.f32 %v5437_v25, %v4890_v37  ;;  %v5492_v17 = vadd.f32 %v5491_v36, %v4893_v1  ;;  %vm4741_vm11 = vcmp.eq.s32.totalorder %v12131_v56, %v9355_v24  ;;  %v5844_v36 = vld [vmem:[%s13594_s7 + $0x738] sm:$0xff] }
 0x6c1   : > { %7875 = vmatpush3.msra.mxu0 %v5811_v47  ;;  %7902 = vmatpush3.msra.mxu1 %v5847_v3  ;;  %v5845_v47 = vld [vmem:[%s13594_s7 + $0x740] sm:$0xff]  ;;  %v5417_v27 = vrot.slane %v12299_v54, 1  ;;  %vm13639_vm10 = vcmp.eq.s32.totalorder %v12123_v44, %v9302_v8  ;;  %vm13640_vm3 = vcmp.eq.s32.totalorder %v12131_v56, %v9302_v8  ;;  %vm13641_vm5 = vcmp.eq.s32.totalorder %v12133_v34, %v9302_v8 }
 0x6c2   : > { %7876 = vmatprep.subr.mxu0 %v5826_v22  ;;  %7903 = vmatprep.subr.mxu1 %v5862_v6  ;;  %v12396_v3 = vpop.f32.mrf.mxu0  ;;  %v12398_v55 = vpop.f32.mrf.mxu1  ;;  %v4940_v37 = vsel %vm13639_vm10, %v12138_v57, 0.0  ;;  %v4941_v62 = vsel %vm13640_vm3, %v12153_v45, 0.0  ;;  %v4943_v1 = vsel %vm13641_vm5, %v12155_v52, 0.0  ;;  %v5824_v22 = vld [vmem:[%s13594_s7 + $0x698] sm:$0xff]  ;;  %vm13642_vm3 = vcmp.eq.s32.totalorder %v12142_v13, %v9259_v38 }
 0x6c3   : > { %7877 = vmatpush3.msra.mxu0 %v5810_v12  ;;  %7904 = vmatpush3.msra.mxu1 %v5846_v60  ;;  %v5860_v57 = vld [vmem:[%s13594_s7 + $0x7b8] sm:$0xff]  ;;  %v4867_v45 = vsel %vm13642_vm3, %v12008_v59, 0.0  ;;  %v5439_v6 = vadd.f32 %v5438_v63, %v4915_v5  ;;  %v5457_v52 = vadd.f32 %v5456_v29, %v4916_v11  ;;  %v5493_v25 = vadd.f32 %v5492_v17, %v4918_v10  ;;  %v5843_v63 = vld [vmem:[%s13594_s7 + $0x730] sm:$0xff] }
 0x6c4   : > { %7878 = vmatprep.subr.mxu0 %v5825_v50  ;;  %7905 = vmatprep.subr.mxu1 %v5861_v19  ;;  %v12437_v12 = vpop.f32.mrf.mxu0  ;;  %v12439_v60 = vpop.f32.mrf.mxu1  ;;  %vm4765_vm5 = vcmp.eq.s32.totalorder %v12123_v44, %v9377_v35  ;;  %v12448_v59 = vadd.f32 %v5381_v7, %v12276_v43  ;;  %v4965_v5 = vsel %vm4640_vm4, %v12179_v14, 0.0  ;;  %vm13643_vm6 = vcmp.eq.s32.totalorder %v12131_v56, %v9305_v9  ;;  %v5823_v43 = vld [vmem:[%s13594_s7 + $0x690] sm:$0xff] }
 0x6c5   : > { %v4966_v11 = vsel %vm13643_vm6, %v12209_v61, 0.0  ;;  %vm13644_vm10 = vcmp.eq.s32.totalorder %v12133_v34, %v9305_v9  ;;  %vm4692_vm3 = vcmp.eq.s32.totalorder %v12142_v13, %v9330_v16  ;;  %7879 = vmatpush3.msra.mxu0 %v5809_v48  ;;  %7906 = vmatpush3.msra.mxu1 %v5845_v47  ;;  %v5859_v14 = vld [vmem:[%s13594_s7 + $0x7b0] sm:$0xff]  ;;  %vm13645_vm4 = vcmp.eq.s32.totalorder %v12142_v13, %v9280_v0 }
 0x6c6   : > { %v4968_v10 = vsel %vm13644_vm10, %v12211_v21, 0.0  ;;  %v4892_v61 = vsel %vm13645_vm4, %v12063_v20, 0.0  ;;  %v5440_v7 = vadd.f32 %v5439_v6, %v4940_v37  ;;  %v5458_v21 = vadd.f32 %v5457_v52, %v4941_v62  ;;  %7880 = vmatprep.subr.mxu0 %v5824_v22  ;;  %7907 = vmatprep.subr.mxu1 %v5860_v57  ;;  %v5807_v19 = vld [vmem:[%s13594_s7 + $0x610] sm:$0xff]  ;;  %v12480_v29 = vpop.f32.mrf.mxu0  ;;  %v12482_v17 = vpop.f32.mrf.mxu1  ;;  %v5806_v22 = vld [vmem:[%s13594_s7 + $0x608] sm:$0xff] }
 0x6c7   : > { %v5494_v50 = vadd.f32 %v5493_v25, %v4943_v1  ;;  %vm4793_vm4 = vcmp.eq.s32.totalorder %v12133_v34, %v9380_v39  ;;  %v5473_v20 = vadd.f32 %v4867_v45, %v4842_v51  ;;  %v4990_v48 = vsel %vm4665_vm13, %v12241_v26, 0.0  ;;  %7881 = vmatpush3.msra.mxu0 %v5808_v31  ;;  %7908 = vmatpush3.msra.mxu1 %v5844_v36  ;;  %v5822_v51 = vld [vmem:[%s13594_s7 + $0x688] sm:$0xff]  ;;  %v5821_v36 = vld [vmem:[%s13594_s7 + $0x680] sm:$0xff] }
 0x6c8   : > { %v4991_v47 = vsel %vm4666_vm0, %v12267_v58, 0.0  ;;  %vm13646_vm6 = vcmp.eq.s32.totalorder %v12133_v34, %v9327_v15  ;;  %vm4717_vm10 = vcmp.eq.s32.totalorder %v12142_v13, %v9352_v23  ;;  %v5858_v26 = vld [vmem:[%s13594_s7 + $0x7a8] sm:$0xff]  ;;  %v4917_v58 = vsel %vm4592_vm8, %v12104_v18, 0.0  ;;  %7882 = vmatprep.subr.mxu0 %v5823_v43  ;;  %7909 = vmatprep.subr.mxu1 %v5859_v14  ;;  %v4039_v45 = vpop.f32.mrf.mxu0  ;;  %v4140_v6 = vpop.f32.mrf.mxu1  ;;  %v5841_v43 = vld [vmem:[%s13594_s7 + $0x720] sm:$0xff] }
 0x6c9   : > { %v4993_v37 = vsel %vm13646_vm6, %v12271_v42, 0.0  ;;  %v5441_v62 = vadd.f32 %v5440_v7, %v4965_v5  ;;  %v5459_v42 = vadd.f32 %v5458_v21, %v4966_v11  ;;  %v5495_v1 = vadd.f32 %v5494_v50, %v4968_v10  ;;  %v5842_v57 = vld [vmem:[%s13594_s7 + $0x728] sm:$0xff]  ;;  %7883 = vmatpush3.msra.mxu0 %v5807_v19  ;;  %7910 = vmatpush3.msra.mxu1 %v5843_v63  ;;  %v5856_v19 = vld [vmem:[%s13594_s7 + $0x798] sm:$0xff] }
 0x6ca   : > { %vm4815_vm0 = vcmp.eq.s32.totalorder %v12123_v44, %v9400_v49  ;;  %v5474_v52 = vadd.f32 %v5473_v20, %v4892_v61  ;;  %v5015_v18 = vsel %vm4690_vm9, %v12315_v4, 0.0  ;;  %v5016_v25 = vsel %vm4691_vm1, %v12355_v40, 0.0  ;;  %v5857_v4 = vld [vmem:[%s13594_s7 + $0x7a0] sm:$0xff]  ;;  %7884 = vmatprep.subr.mxu0 %v5822_v51  ;;  %7911 = vmatprep.subr.mxu1 %v5858_v26  ;;  %v4043_v14 = vpop.f32.mrf.mxu0  ;;  %v12552_v61 = vpop.f32.mrf.mxu1 }
 0x6cb   : > { %v5018_v31 = vsel %vm4693_vm12, %v12357_v53, 0.0  ;;  %v4942_v40 = vsel %vm4617_vm7, %v12140_v28, 0.0  ;;  %v5442_v5 = vadd.f32 %v5441_v62, %v4990_v48  ;;  %v5460_v11 = vadd.f32 %v5459_v42, %v4991_v47  ;;  %v5805_v53 = vld [vmem:[%s13594_s7 + $0x600] sm:$0xff]  ;;  %7885 = vmatpush3.msra.mxu0 %v5806_v22  ;;  %7912 = vmatpush3.msra.mxu1 %v5842_v57  ;;  %v5884_v62 = vld [vmem:[%s13594_s7 + $0x878] sm:$0xff]  ;;  %v5855_v42 = vld [vmem:[%s13594_s7 + $0x790] sm:$0xff] }
 0x6cc   : > { %v5496_v10 = vadd.f32 %v5495_v1, %v4993_v37  ;;  %vm4742_vm8 = vcmp.eq.s32.totalorder %v12142_v13, %v9355_v24  ;;  %vm4816_vm13 = vcmp.eq.s32.totalorder %v12131_v56, %v9400_v49  ;;  %vm4818_vm9 = vcmp.eq.s32.totalorder %v12133_v34, %v9400_v49  ;;  %7886 = vmatprep.subr.mxu0 %v5821_v36  ;;  %v4045_v47 = vpop.f32.mrf.mxu0  ;;  %v4146_v37 = vpop.f32.mrf.mxu1  ;;  %v5883_v36 = vld [vmem:[%s13594_s7 + $0x870] sm:$0xff] }
 0x6cd   : > { %v5475_v28 = vadd.f32 %v5474_v52, %v4917_v58  ;;  %v5040_v7 = vsel %vm4715_vm2, %v12396_v3, 0.0  ;;  %v5041_v21 = vsel %vm4716_vm14, %v12437_v12, 0.0  ;;  %v5043_v50 = vsel %vm4718_vm15, %v12439_v60, 0.0  ;;  %7913 = vmatprep.subr.mxu1 %v5857_v4  ;;  %v5900_v12 = vld [vmem:[%s13594_s7 + $0x8f8] sm:$0xff]  ;;  %7887 = vmatpush3.msra.mxu0 %v5805_v53  ;;  %v5854_v4 = vld [vmem:[%s13594_s7 + $0x788] sm:$0xff] }
 0x6ce   : > { %vm13647_vm1 = vcmp.eq.s32.totalorder %v12142_v13, %v9305_v9  ;;  %v5443_v63 = vadd.f32 %v5442_v5, %v5015_v18  ;;  %v5461_v20 = vadd.f32 %v5460_v11, %v5016_v25  ;;  %v5497_v48 = vadd.f32 %v5496_v10, %v5018_v31  ;;  %v5840_v60 = vld [vmem:[%s13594_s7 + $0x718] sm:$0xff]  ;;  %7914 = vmatpush3.msra.mxu1 %v5841_v43  ;;  %v4047_v52 = vpop.f32.mrf.mxu0  ;;  %v12612_v18 = vpop.f32.mrf.mxu1  ;;  %v5898_v53 = vld [vmem:[%s13594_s7 + $0x8e8] sm:$0xff] }
 0x6cf   : > { %v4967_v3 = vsel %vm13647_vm1, %v12181_v33, 0.0  ;;  %vm4767_vm12 = vcmp.eq.s32.totalorder %v12142_v13, %v9377_v35  ;;  %v5476_v51 = vadd.f32 %v5475_v28, %v4942_v40  ;;  %vm13648_vm7 = vcmp.eq.s32.totalorder %v12123_v44, %v9355_v24  ;;  %6494 = vmatmul.mubr.f32.vlgmr.msra.gmra.mxu0 %v12448_v59  ;;  %7915 = vmatprep.subr.mxu1 %v5856_v19  ;;  %v5838_v43 = vld [vmem:[%s13594_s7 + $0x708] sm:$0xff] }
 0x6d0   : > { %v5065_v33 = vsel %vm13648_vm7, %v12480_v29, 0.0  ;;  %v5066_v26 = vsel %vm4741_vm11, %v4039_v45, 0.0  ;;  %vm13649_vm2 = vcmp.eq.s32.totalorder %v12133_v34, %v9355_v24  ;;  %vm13650_vm14 = vcmp.eq.s32.totalorder %v12142_v13, %v9327_v15  ;;  %v5899_v45 = vld [vmem:[%s13594_s7 + $0x8f0] sm:$0xff]  ;;  %7926 = vmatprep.subr.mxu0 %v5900_v12  ;;  %7916 = vmatpush3.msra.mxu1 %v5840_v60  ;;  %v4150_v28 = vpop.f32.mrf.mxu1  ;;  %v5897_v60 = vld [vmem:[%s13594_s7 + $0x8e0] sm:$0xff] }
 0x6d1   : > { %v5068_v58 = vsel %vm13649_vm2, %v4140_v6, 0.0  ;;  %v4992_v29 = vsel %vm13650_vm14, %v12243_v32, 0.0  ;;  %v5444_v1 = vadd.f32 %v5443_v63, %v5040_v7  ;;  %v5462_v22 = vadd.f32 %v5461_v20, %v5041_v21  ;;  %v5839_v6 = vld [vmem:[%s13594_s7 + $0x710] sm:$0xff]  ;;  %7927 = vmatpush3.msra.mxu0 %v5884_v62  ;;  %7917 = vmatprep.subr.mxu1 %v5855_v42  ;;  %v5882_v21 = vld [vmem:[%s13594_s7 + $0x868] sm:$0xff] }
 0x6d2   : > { %v5498_v57 = vadd.f32 %v5497_v48, %v5043_v50  ;;  %v5477_v25 = vadd.f32 %v5476_v51, %v4967_v3  ;;  %v5090_v32 = vsel %vm4765_vm5, %v4043_v14, 0.0  ;;  %vm13651_vm15 = vcmp.eq.s32.totalorder %v12131_v56, %v9377_v35  ;;  %v4049_v14 = vpop.f32.mrf.mxu0  ;;  %7928 = vmatprep.subr.mxu0 %v5899_v45  ;;  %7918 = vmatpush3.msra.mxu1 %v5839_v6  ;;  %v5853_v50 = vld [vmem:[%s13594_s7 + $0x780] sm:$0xff]  ;;  %v12664_v51 = vpop.f32.mrf.mxu1  ;;  %v5880_v45 = vld [vmem:[%s13594_s7 + $0x858] sm:$0xff] }
 0x6d3   : > { %v5091_v59 = vsel %vm13651_vm15, %v4045_v47, 0.0  ;;  %vm13652_vm11 = vcmp.eq.s32.totalorder %v12133_v34, %v9377_v35  ;;  %v5017_v40 = vsel %vm4692_vm3, %v12319_v46, 0.0  ;;  %v5445_v5 = vadd.f32 %v5444_v1, %v5065_v33  ;;  %7929 = vmatpush3.msra.mxu0 %v5883_v36  ;;  %7919 = vmatprep.subr.mxu1 %v5854_v4  ;;  %v5837_v47 = vld [vmem:[%s13594_s7 + $0x700] sm:$0xff]  ;;  %v5916_v6 = vld [vmem:[%s13594_s7 + $0x978] sm:$0xff] }
 0x6d4   : > { %v5093_v31 = vsel %vm13652_vm11, %v4146_v37, 0.0  ;;  %v5463_v11 = vadd.f32 %v5462_v22, %v5066_v26  ;;  %v5499_v10 = vadd.f32 %v5498_v57, %v5068_v58  ;;  %v5478_v7 = vadd.f32 %v5477_v25, %v4992_v29  ;;  %v4053_v37 = vpop.f32.mrf.mxu0  ;;  %7930 = vmatprep.subr.mxu0 %v5898_v53  ;;  %7920 = vmatpush3.msra.mxu1 %v5838_v43  ;;  %v5881_v26 = vld [vmem:[%s13594_s7 + $0x860] sm:$0xff]  ;;  %v4156_v22 = vpop.f32.mrf.mxu1  ;;  %v5930_v43 = vld [vmem:[%s13594_s7 + $0x9e8] sm:$0xff] }
 0x6d5   : > { %vm13653_vm5 = vcmp.eq.s32.totalorder %v12123_v44, %v9380_v39  ;;  %vm13654_vm3 = vcmp.eq.s32.totalorder %v12131_v56, %v9380_v39  ;;  %v5118_v3 = vsel %vm4793_vm4, %v4150_v28, 0.0  ;;  %v5042_v63 = vsel %vm4717_vm10, %v12398_v55, 0.0  ;;  %7931 = vmatpush3.msra.mxu0 %v5882_v21  ;;  %7921 = vmatprep.subr.mxu1 %v5853_v50  ;;  %v5914_v21 = vld [vmem:[%s13594_s7 + $0x968] sm:$0xff] }
 0x6d6   : > { %v5115_v46 = vsel %vm13653_vm5, %v4047_v52, 0.0  ;;  %v5116_v19 = vsel %vm13654_vm3, %v4049_v14, 0.0  ;;  %v5446_v20 = vadd.f32 %v5445_v5, %v5090_v32  ;;  %v5464_v48 = vadd.f32 %v5463_v11, %v5091_v59  ;;  %v4055_v1 = vpop.f32.mrf.mxu0  ;;  %7932 = vmatprep.subr.mxu0 %v5897_v60  ;;  %7922 = vmatpush3.msra.mxu1 %v5837_v47  ;;  %v5895_v32 = vld [vmem:[%s13594_s7 + $0x8d0] sm:$0xff]  ;;  %v4158_v56 = vpop.f32.mrf.mxu1  ;;  %v5877_v47 = vld [vmem:[%s13594_s7 + $0x840] sm:$0xff] }
 0x6d7   : > { %v5500_v12 = vadd.f32 %v5499_v10, %v5093_v31  ;;  %v5418_v55 = vadd.f32 %v5417_v27, %v12299_v54  ;;  %v5479_v33 = vadd.f32 %v5478_v7, %v5017_v40  ;;  %vm4792_vm6 = vcmp.eq.s32.totalorder %v12142_v13, %v9380_v39  ;;  %v5896_v54 = vld [vmem:[%s13594_s7 + $0x8d8] sm:$0xff]  ;;  %7933 = vmatpush3.msra.mxu0 %v5881_v26  ;;  %v5931_v59 = vld [vmem:[%s13594_s7 + $0x9f0] sm:$0xff]  ;;  %v5874_v56 = vld [vmem:[%s13594_s7 + $0x828] sm:$0xff] }
 0x6d8   : > { %v5140_v58 = vsel %vm4815_vm0, %v4053_v37, 0.0  ;;  %v5447_v62 = vadd.f32 %v5446_v20, %v5115_v46  ;;  %v5465_v42 = vadd.f32 %v5464_v48, %v5116_v19  ;;  %v5932_v27 = vld [vmem:[%s13594_s7 + $0x9f8] sm:$0xff]  ;;  %v5067_v44 = vsel %vm4742_vm8, %v12482_v17, 0.0  ;;  %v4057_v4 = vpop.f32.mrf.mxu0  ;;  %7934 = vmatprep.subr.mxu0 %v5896_v54  ;;  %v5879_v40 = vld [vmem:[%s13594_s7 + $0x850] sm:$0xff]  ;;  %v4159_v28 = vpop.f32.mrf.mxu1  ;;  %v5878_v46 = vld [vmem:[%s13594_s7 + $0x848] sm:$0xff] }
 0x6d9   : > { %v5501_v29 = vadd.f32 %v5500_v12, %v5118_v3  ;;  %v5480_v57 = vadd.f32 %v5479_v33, %v5042_v63  ;;  %v5141_v52 = vsel %vm4816_vm13, %v4055_v1, 0.0  ;;  %v5143_v25 = vsel %vm4818_vm9, %v4156_v22, 0.0  ;;  %6564 = vmatmul.mubr.f32.vlgmr.msra.gmra.mxu1 %v5418_v55  ;;  %7961 = vmatprep.subr.mxu1 %v5932_v27  ;;  %v5915_v5 = vld [vmem:[%s13594_s7 + $0x970] sm:$0xff]  ;;  %v5929_v20 = vld [vmem:[%s13594_s7 + $0x9e0] sm:$0xff] }
 0x6da   : > { %v5448_v17 = vadd.f32 %v5447_v62, %v5140_v58  ;;  %v5466_v31 = vadd.f32 %v5465_v42, %v5141_v52  ;;  %v5092_v34 = vsel %vm4767_vm12, %v12552_v61, 0.0  ;;  %vm4817_vm10 = vcmp.eq.s32.totalorder %v12142_v13, %v9400_v49  ;;  %7935 = vmatpush3.msra.mxu0 %v5880_v45  ;;  %7962 = vmatpush3.msra.mxu1 %v5916_v6  ;;  %v5894_v61 = vld [vmem:[%s13594_s7 + $0x8c8] sm:$0xff]  ;;  %v4058_v14 = vpop.f32.mrf.mxu0  ;;  %v12741_v12 = vpop.f32.mrf.mxu1  ;;  %v5913_v37 = vld [vmem:[%s13594_s7 + $0x960] sm:$0xff]  ;;  %v5892_v13 = vld [vmem:[%s13594_s7 + $0x8b8] sm:$0xff] }
 0x6db   : > { %v5502_v36 = vadd.f32 %v5501_v29, %v5143_v25  ;;  %v5481_v11 = vadd.f32 %v5480_v57, %v5067_v44  ;;  %v5117_v7 = vsel %vm4792_vm6, %v12612_v18, 0.0  ;;  %7936 = vmatprep.subr.mxu0 %v5895_v32  ;;  %7963 = vmatprep.subr.mxu1 %v5931_v59  ;;  %v5893_v18 = vld [vmem:[%s13594_s7 + $0x8c0] sm:$0xff]  ;;  %v5142_v60 = vsel %vm4817_vm10, %v12664_v51, 0.0  ;;  %v5928_v51 = vld [vmem:[%s13594_s7 + $0x9d8] sm:$0xff]  ;;  %v5891_v22 = vld [vmem:[%s13594_s7 + $0x8b0] sm:$0xff] }
 0x6dc   : > { %v5467_v10 = vrot.slane %v5466_v31, 4  ;;  %v5449_v19 = vrot.slane %v5448_v17, 4  ;;  %7937 = vmatpush3.msra.mxu0 %v5879_v40  ;;  %7964 = vmatpush3.msra.mxu1 %v5915_v5  ;;  %v12739_v48 = vpop.f32.mrf.mxu0  ;;  %v12761_v62 = vpop.f32.mrf.mxu1  ;;  %v5876_v42 = vld [vmem:[%s13594_s7 + $0x838] sm:$0xff]  ;;  %v5927_v57 = vld [vmem:[%s13594_s7 + $0x9d0] sm:$0xff]  ;;  %v5926_v32 = vld [vmem:[%s13594_s7 + $0x9c8] sm:$0xff]  ;;  %v4471_v4 = vadd.s32 2816, %v13637_v30 }
 0x6dd   : > { %v5503_v53 = vrot.slane %v5502_v36, 4  ;;  %v5482_v50 = vadd.f32 %v5481_v11, %v5092_v34  ;;  %7938 = vmatprep.subr.mxu0 %v5894_v61  ;;  %7965 = vmatprep.subr.mxu1 %v5930_v43  ;;  %v5912_v29 = vld [vmem:[%s13594_s7 + $0x958] sm:$0xff]  ;;  %v5875_v52 = vld [vmem:[%s13594_s7 + $0x830] sm:$0xff]  ;;  %v5910_v34 = vld [vmem:[%s13594_s7 + $0x948] sm:$0xff]  ;;  %v4470_v11 = vadd.s32 2688, %v13637_v30  ;;  %v4472_v28 = vadd.s32 2944, %v13637_v30 }
 0x6de   : > { %v5468_v3 = vadd.f32 %v5467_v10, %v5466_v31  ;;  %7939 = vmatpush3.msra.mxu0 %v5878_v46  ;;  %7966 = vmatpush3.msra.mxu1 %v5914_v21  ;;  %v12759_v58 = vpop.f32.mrf.mxu0  ;;  %v5450_v54 = vadd.f32 %v5449_v19, %v5448_v17  ;;  %v12777_v45 = vpop.f32.mrf.mxu1  ;;  %v5911_v25 = vld [vmem:[%s13594_s7 + $0x950] sm:$0xff]  ;;  %v5890_v17 = vld [vmem:[%s13594_s7 + $0x8a8] sm:$0xff]  ;;  %v5889_v10 = vld [vmem:[%s13594_s7 + $0x8a0] sm:$0xff] }
 0x6df   : > { %v5504_v63 = vadd.f32 %v5503_v53, %v5502_v36  ;;  %v5483_v55 = vadd.f32 %v5482_v50, %v5117_v7  ;;  %7940 = vmatprep.subr.mxu0 %v5893_v18  ;;  %7967 = vmatprep.subr.mxu1 %v5929_v20  ;;  %v4469_v36 = vadd.s32 2560, %v13637_v30  ;;  %v5925_v53 = vld [vmem:[%s13594_s7 + $0x9c0] sm:$0xff]  ;;  %v5888_v50 = vld [vmem:[%s13594_s7 + $0x898] sm:$0xff]  ;;  %v12833_v20 = vshra.s32 %v4471_v4, 5  ;;  %v5906_v4 = vld [vmem:[%s13594_s7 + $0x928] sm:$0xff] }
 0x6e0   : > { %v5469_v33 = vrot.slane %v5468_v3, 2  ;;  %7941 = vmatpush3.msra.mxu0 %v5877_v47  ;;  %7968 = vmatpush3.msra.mxu1 %v5913_v37  ;;  %v12775_v44 = vpop.f32.mrf.mxu0  ;;  %v12793_v31 = vpop.f32.mrf.mxu1  ;;  %v5451_v40 = vrot.slane %v5450_v54, 2  ;;  %v5873_v7 = vld [vmem:[%s13594_s7 + $0x820] sm:$0xff]  ;;  %v5924_v19 = vld [vmem:[%s13594_s7 + $0x9b8] sm:$0xff] }
 0x6e1   : > { %v5505_v26 = vrot.slane %v5504_v63, 2  ;;  %v5484_v27 = vadd.f32 %v5483_v55, %v5142_v60  ;;  %7942 = vmatprep.subr.mxu0 %v5892_v13  ;;  %7969 = vmatprep.subr.mxu1 %v5928_v51  ;;  %v5909_v46 = vld [vmem:[%s13594_s7 + $0x940] sm:$0xff]  ;;  %v12831_v18 = vshra.s32 %v4469_v36, 5  ;;  %v5872_v60 = vld [vmem:[%s13594_s7 + $0x818] sm:$0xff]  ;;  %v5923_v13 = vld [vmem:[%s13594_s7 + $0x9b0] sm:$0xff]  ;;  %vm4521_vm0 = vcmp.eq.s32.totalorder %v12833_v20, %v9250_v41 }
 0x6e2   : > { %v5470_v1 = vadd.f32 %v5469_v33, %v5468_v3  ;;  %7943 = vmatpush3.msra.mxu0 %v5876_v42  ;;  %7970 = vmatpush3.msra.mxu1 %v5912_v29  ;;  %v12791_v59 = vpop.f32.mrf.mxu0  ;;  %v12812_v43 = vpop.f32.mrf.mxu1  ;;  %v5908_v47 = vld [vmem:[%s13594_s7 + $0x938] sm:$0xff]  ;;  %v5452_v37 = vadd.f32 %v5451_v40, %v5450_v54  ;;  %v12841_v33 = vshra.s32 %v4470_v11, 5  ;;  %v5871_v54 = vld [vmem:[%s13594_s7 + $0x810] sm:$0xff]  ;;  %v5870_v36 = vld [vmem:[%s13594_s7 + $0x808] sm:$0xff]  ;;  %vm4546_vm1 = vcmp.eq.s32.totalorder %v12833_v20, %v9259_v38 }
 0x6e3   : > { %v5506_v6 = vadd.f32 %v5505_v26, %v5504_v63  ;;  %7944 = vmatprep.subr.mxu0 %v5891_v22  ;;  %7971 = vmatprep.subr.mxu1 %v5927_v57  ;;  %v5485_v5 = vrot.slane %v5484_v27, 4  ;;  %v5887_v26 = vld [vmem:[%s13594_s7 + $0x890] sm:$0xff]  ;;  %v12853_v22 = vshra.s32 %v4472_v28, 5  ;;  %vm4519_vm4 = vcmp.eq.s32.totalorder %v12831_v18, %v9250_v41  ;;  %v5885_v40 = vld [vmem:[%s13594_s7 + $0x880] sm:$0xff]  ;;  %v5920_v28 = vld [vmem:[%s13594_s7 + $0x998] sm:$0xff] }
 0x6e4   : > { %7945 = vmatpush3.msra.mxu0 %v5875_v52  ;;  %7972 = vmatpush3.msra.mxu1 %v5911_v25  ;;  %v12810_v61 = vpop.f32.mrf.mxu0  ;;  %v5471_v14 = vrot.slane %v5470_v1, 1  ;;  %v12829_v63 = vpop.f32.mrf.mxu1  ;;  %v5907_v57 = vld [vmem:[%s13594_s7 + $0x930] sm:$0xff]  ;;  %v5886_v25 = vld [vmem:[%s13594_s7 + $0x888] sm:$0xff]  ;;  %vm4520_vm8 = vcmp.eq.s32.totalorder %v12841_v33, %v9250_v41  ;;  %vm4544_vm9 = vcmp.eq.s32.totalorder %v12831_v18, %v9259_v38  ;;  %vm4545_vm12 = vcmp.eq.s32.totalorder %v12841_v33, %v9259_v38  ;;  %v5869_v11 = vld [vmem:[%s13594_s7 + $0x800] sm:$0xff] }
 0x6e5   : > { %7946 = vmatprep.subr.mxu0 %v5890_v17  ;;  %7973 = vmatprep.subr.mxu1 %v5926_v32  ;;  %v5507_v21 = vrot.slane %v5506_v6, 1  ;;  %v5486_v55 = vadd.f32 %v5485_v5, %v5484_v27  ;;  %v5453_v17 = vrot.slane %v5452_v37, 1  ;;  %vm4522_vm13 = vcmp.eq.s32.totalorder %v12853_v22, %v9250_v41  ;;  %v5921_v5 = vld [vmem:[%s13594_s7 + $0x9a0] sm:$0xff] }
 0x6e6   : > { %7947 = vmatpush3.msra.mxu0 %v5874_v56  ;;  %7974 = vmatpush3.msra.mxu1 %v5910_v34  ;;  %v12827_v3 = vpop.f32.mrf.mxu0  ;;  %v5472_v51 = vadd.f32 %v5471_v14, %v5470_v1  ;;  %v12851_v29 = vpop.f32.mrf.mxu1  ;;  %vm4547_vm7 = vcmp.eq.s32.totalorder %v12853_v22, %v9259_v38  ;;  %vm4569_vm2 = vcmp.eq.s32.totalorder %v12831_v18, %v9280_v0 }
 0x6e7   : > { %7948 = vmatprep.subr.mxu0 %v5889_v10  ;;  %7975 = vmatprep.subr.mxu1 %v5925_v53  ;;  %v5508_v27 = vadd.f32 %v5507_v21, %v5506_v6  ;;  %v5922_v6 = vld [vmem:[%s13594_s7 + $0x9a8] sm:$0xff]  ;;  %v5487_v32 = vrot.slane %v5486_v55, 2  ;;  %v5905_v10 = vld [vmem:[%s13594_s7 + $0x920] sm:$0xff]  ;;  %vm4571_vm14 = vcmp.eq.s32.totalorder %v12833_v20, %v9280_v0  ;;  %vm4570_vm15 = vcmp.eq.s32.totalorder %v12841_v33, %v9280_v0  ;;  %v5904_v21 = vld [vmem:[%s13594_s7 + $0x918] sm:$0xff] }
 0x6e8   : > { %7949 = vmatpush3.msra.mxu0 %v5873_v7  ;;  %7976 = vmatpush3.msra.mxu1 %v5909_v46  ;;  %v12849_v42 = vpop.f32.mrf.mxu0  ;;  %v12863_v52 = vpop.f32.mrf.mxu1  ;;  %vm4572_vm11 = vcmp.eq.s32.totalorder %v12853_v22, %v9280_v0  ;;  %v5454_v7 = vadd.f32 %v5453_v17, %v5452_v37  ;;  %vm4594_vm5 = vcmp.eq.s32.totalorder %v12831_v18, %v9283_v2  ;;  %v5948_v37 = vld [vmem:[%s13594_s7 + $0xa78] sm:$0xff] }
 0x6e9   : > { %7950 = vmatprep.subr.mxu0 %v5888_v50  ;;  %7977 = vmatprep.subr.mxu1 %v5924_v19  ;;  %v12924_v46 = vadd.f32 %v5487_v32, %v5486_v55  ;;  %v5903_v55 = vld [vmem:[%s13594_s7 + $0x910] sm:$0xff]  ;;  %vm4645_vm3 = vcmp.eq.s32.totalorder %v12841_v33, %v9305_v9  ;;  %v5962_v32 = vld [vmem:[%s13594_s7 + $0xae8] sm:$0xff]  ;;  %vm4671_vm6 = vcmp.eq.s32.totalorder %v12833_v20, %v9327_v15 }
 0x6ea   : > { %7951 = vmatpush3.msra.mxu0 %v5872_v60  ;;  %7978 = vmatpush3.msra.mxu1 %v5908_v47  ;;  %v12861_v1 = vpop.f32.mrf.mxu0  ;;  %v12885_v34 = vpop.f32.mrf.mxu1  ;;  %v5964_v60 = vld [vmem:[%s13594_s7 + $0xaf8] sm:$0xff]  ;;  %v5919_v47 = vld [vmem:[%s13594_s7 + $0x990] sm:$0xff]  ;;  %vm4670_vm10 = vcmp.eq.s32.totalorder %v12841_v33, %v9327_v15 }
 0x6eb   : > { %7952 = vmatprep.subr.mxu0 %v5887_v26  ;;  %7979 = vmatprep.subr.mxu1 %v5923_v13 }
 0x6ec   : > { %7953 = vmatpush3.msra.mxu0 %v5871_v54  ;;  %6633 = vmatprep.mubr.f32.mxu0 %v5472_v51  ;;  %v12883_v56 = vpop.f32.mrf.mxu0  ;;  %v12913_v14 = vpop.f32.mrf.mxu1  ;;  %v5963_v51 = vld [vmem:[%s13594_s7 + $0xaf0] sm:$0xff]  ;;  %v5918_v54 = vld [vmem:[%s13594_s7 + $0x988] sm:$0xff] }
 0x6ed   : > { %7980 = vmatpush3.msra.mxu1 %v5907_v57  ;;  %6703 = vmatprep.mubr.f32.mxu1 %v5508_v27  ;;  %v5947_v27 = vld [vmem:[%s13594_s7 + $0xa70] sm:$0xff]  ;;  %v5489_v57 = vrot.slane %v12924_v46, 1 }
 0x6ee   : > { %7954 = vmatprep.subr.mxu0 %v5886_v25  ;;  %7981 = vmatprep.subr.mxu1 %v5922_v6  ;;  %v12911_v53 = vpop.f32.mrf.mxu0  ;;  %v12933_v19 = vpop.f32.mrf.mxu1  ;;  %v5902_v25 = vld [vmem:[%s13594_s7 + $0x908] sm:$0xff] }
 0x6ef   : > { %7955 = vmatpush3.msra.mxu0 %v5870_v36  ;;  %7982 = vmatpush3.msra.mxu1 %v5906_v4  ;;  %v4869_v36 = vsel %vm4544_vm9, %v12775_v44, 0.0  ;;  %v4871_v4 = vsel %vm4546_vm1, %v12777_v45, 0.0  ;;  %v5946_v44 = vld [vmem:[%s13594_s7 + $0xa68] sm:$0xff]  ;;  %v4844_v45 = vsel %vm4519_vm4, %v12739_v48, 0.0  ;;  %v5901_v48 = vld [vmem:[%s13594_s7 + $0x900] sm:$0xff]  ;;  %vm4672_vm4 = vcmp.eq.s32.totalorder %v12853_v22, %v9327_v15 }
 0x6f0   : > { %7956 = vmatprep.subr.mxu0 %v5885_v40  ;;  %7983 = vmatprep.subr.mxu1 %v5921_v5  ;;  %v12931_v50 = vpop.f32.mrf.mxu0  ;;  %v12961_v13 = vpop.f32.mrf.mxu1  ;;  %v5917_v40 = vld [vmem:[%s13594_s7 + $0x980] sm:$0xff]  ;;  %v4846_v5 = vsel %vm4521_vm0, %v12741_v12, 0.0  ;;  %vm4694_vm0 = vcmp.eq.s32.totalorder %v12831_v18, %v9330_v16  ;;  %vm4695_vm9 = vcmp.eq.s32.totalorder %v12841_v33, %v9330_v16  ;;  %vm4719_vm1 = vcmp.eq.s32.totalorder %v12831_v18, %v9352_v23 }
 0x6f1   : > { %7957 = vmatpush3.msra.mxu0 %v5869_v11  ;;  %7984 = vmatpush3.msra.mxu1 %v5905_v10  ;;  %v4845_v11 = vsel %vm4520_vm8, %v12759_v58, 0.0  ;;  %v4870_v10 = vsel %vm4545_vm12, %v12791_v59, 0.0  ;;  %vm4696_vm8 = vcmp.eq.s32.totalorder %v12833_v20, %v9330_v16  ;;  %v5961_v12 = vld [vmem:[%s13594_s7 + $0xae0] sm:$0xff]  ;;  %v4847_v58 = vsel %vm4522_vm13, %v12761_v62, 0.0  ;;  %v5996_v62 = vld [vmem:[%s13594_s7 + $0xbf8] sm:$0xff] }
 0x6f2   : > { %6634 = vmatmul.mubr.f32.vlgmr.msra.gmra.mxu0 %v5454_v7  ;;  %7985 = vmatprep.subr.mxu1 %v5920_v28  ;;  %v12959_v26 = vpop.f32.mrf.mxu0  ;;  %v12990_v17 = vpop.f32.mrf.mxu1  ;;  %v4872_v59 = vsel %vm4547_vm7, %v12793_v31, 0.0  ;;  %v5490_v31 = vadd.f32 %v5489_v57, %v12924_v46  ;;  %vm4697_vm13 = vcmp.eq.s32.totalorder %v12853_v22, %v9330_v16  ;;  %vm4721_vm12 = vcmp.eq.s32.totalorder %v12833_v20, %v9352_v23  ;;  %v5980_v46 = vld [vmem:[%s13594_s7 + $0xb78] sm:$0xff] }
 0x6f3   : > { %7986 = vmatpush3.msra.mxu1 %v5904_v21  ;;  %7996 = vmatprep.subr.mxu0 %v5964_v60  ;;  %v4894_v21 = vsel %vm4569_vm2, %v12810_v61, 0.0  ;;  %v4896_v60 = vsel %vm4571_vm14, %v12812_v43, 0.0  ;;  %v4895_v61 = vsel %vm4570_vm15, %v12827_v3, 0.0  ;;  %v5945_v3 = vld [vmem:[%s13594_s7 + $0xa60] sm:$0xff]  ;;  %vm13655_vm7 = vcmp.eq.s32.totalorder %v12833_v20, %v9283_v2 }
 0x6f4   : > { %7987 = vmatprep.subr.mxu1 %v5919_v47  ;;  %v12986_v6 = vpop.f32.mrf.mxu0  ;;  %7997 = vmatpush3.msra.mxu0 %v5948_v37  ;;  %v13034_v7 = vpop.f32.mrf.mxu1  ;;  %v5509_v47 = vadd.f32 %v4869_v36, %v4844_v45  ;;  %v5545_v37 = vadd.f32 %v4871_v4, %v4846_v5  ;;  %v4921_v57 = vsel %vm13655_vm7, %v12851_v29, 0.0  ;;  %vm4720_vm2 = vcmp.eq.s32.totalorder %v12841_v33, %v9352_v23 }
 0x6f5   : > { %7988 = vmatpush3.msra.mxu1 %v5903_v55  ;;  %7998 = vmatprep.subr.mxu0 %v5963_v51  ;;  %v5527_v51 = vadd.f32 %v4870_v10, %v4845_v11  ;;  %vm13656_vm14 = vcmp.eq.s32.totalorder %v12841_v33, %v9283_v2  ;;  %vm4722_vm15 = vcmp.eq.s32.totalorder %v12853_v22, %v9352_v23 }
 0x6f6   : > { %7989 = vmatprep.subr.mxu1 %v5918_v54  ;;  %v13032_v28 = vpop.f32.mrf.mxu0  ;;  %7999 = vmatpush3.msra.mxu0 %v5947_v27  ;;  %v13073_v55 = vpop.f32.mrf.mxu1  ;;  %v4897_v54 = vsel %vm4572_vm11, %v12829_v63, 0.0  ;;  %v4919_v27 = vsel %vm4594_vm5, %v12849_v42, 0.0  ;;  %v5960_v63 = vld [vmem:[%s13594_s7 + $0xad8] sm:$0xff]  ;;  %v5510_v42 = vadd.f32 %v5509_v47, %v4894_v21  ;;  %v5546_v36 = vadd.f32 %v5545_v37, %v4896_v60  ;;  %v5978_v60 = vld [vmem:[%s13594_s7 + $0xb68] sm:$0xff] }
 0x6f7   : > { %7990 = vmatpush3.msra.mxu1 %v5902_v25  ;;  %8000 = vmatprep.subr.mxu0 %v5962_v32  ;;  %v5995_v25 = vld [vmem:[%s13594_s7 + $0xbf0] sm:$0xff]  ;;  %v5563_v32 = vadd.f32 %v4872_v59, %v4847_v58  ;;  %v4920_v29 = vsel %vm13656_vm14, %v12861_v1, 0.0  ;;  %v5944_v1 = vld [vmem:[%s13594_s7 + $0xa58] sm:$0xff]  ;;  %v5528_v45 = vadd.f32 %v5527_v51, %v4895_v61  ;;  %vm13657_vm7 = vcmp.eq.s32.totalorder %v12853_v22, %v9283_v2  ;;  %v5993_v61 = vld [vmem:[%s13594_s7 + $0xbe0] sm:$0xff] }
 0x6f8   : > { %7991 = vmatprep.subr.mxu1 %v5917_v40  ;;  %v13071_v43 = vpop.f32.mrf.mxu0  ;;  %8001 = vmatpush3.msra.mxu0 %v5946_v44  ;;  %v13113_v40 = vpop.f32.mrf.mxu1  ;;  %v5979_v44 = vld [vmem:[%s13594_s7 + $0xb70] sm:$0xff]  ;;  %v4922_v5 = vsel %vm13657_vm7, %v12863_v52, 0.0  ;;  %vm13658_vm14 = vcmp.eq.s32.totalorder %v12831_v18, %v9302_v8  ;;  %vm13659_vm5 = vcmp.eq.s32.totalorder %v12833_v20, %v9302_v8  ;;  %v5547_v58 = vadd.f32 %v5546_v36, %v4921_v57 }
 0x6f9   : > { %7992 = vmatpush3.msra.mxu1 %v5901_v48  ;;  %8002 = vmatprep.subr.mxu0 %v5961_v12  ;;  %v4944_v11 = vsel %vm13658_vm14, %v12883_v56, 0.0  ;;  %v4946_v10 = vsel %vm13659_vm5, %v12885_v34, 0.0  ;;  %v5994_v48 = vld [vmem:[%s13594_s7 + $0xbe8] sm:$0xff]  ;;  %v5959_v52 = vld [vmem:[%s13594_s7 + $0xad0] sm:$0xff]  ;;  %v5564_v12 = vadd.f32 %v5563_v32, %v4897_v54  ;;  %v5511_v56 = vadd.f32 %v5510_v42, %v4919_v27  ;;  %v5977_v27 = vld [vmem:[%s13594_s7 + $0xb60] sm:$0xff] }
 0x6fa   : > { %6704 = vmatmul.mubr.f32.vlgmr.msra.gmra.mxu1 %v5490_v31  ;;  %v13111_v4 = vpop.f32.mrf.mxu0  ;;  %8031 = vmatprep.subr.mxu1 %v5996_v62  ;;  %vm13660_vm5 = vcmp.eq.s32.totalorder %v12841_v33, %v9302_v8  ;;  %v13153_v21 = vpop.f32.mrf.mxu1  ;;  %v5529_v62 = vadd.f32 %v5528_v45, %v4920_v29  ;;  %vm13662_vm14 = vcmp.eq.s32.totalorder %v12831_v18, %v9305_v9  ;;  %v4996_v32 = vsel %vm4671_vm6, %v12990_v17, 0.0  ;;  %v5992_v42 = vld [vmem:[%s13594_s7 + $0xbd8] sm:$0xff] }
 0x6fb   : > { %8032 = vmatpush3.msra.mxu1 %v5980_v46  ;;  %8003 = vmatpush3.msra.mxu0 %v5945_v3  ;;  %v4945_v34 = vsel %vm13660_vm5, %v12911_v53, 0.0  ;;  %v5943_v53 = vld [vmem:[%s13594_s7 + $0xa50] sm:$0xff]  ;;  %vm13661_vm5 = vcmp.eq.s32.totalorder %v12853_v22, %v9302_v8  ;;  %v4969_v47 = vsel %vm13662_vm14, %v12931_v50, 0.0  ;;  %vm13663_vm11 = vcmp.eq.s32.totalorder %v12833_v20, %v9305_v9  ;;  %v5976_v45 = vld [vmem:[%s13594_s7 + $0xb58] sm:$0xff] }
 0x6fc   : > { %v13151_v59 = vpop.f32.mrf.mxu0  ;;  %8033 = vmatprep.subr.mxu1 %v5995_v25  ;;  %8004 = vmatprep.subr.mxu0 %v5960_v63  ;;  %v4947_v31 = vsel %vm13661_vm5, %v12913_v14, 0.0  ;;  %v4971_v37 = vsel %vm13663_vm11, %v12933_v19, 0.0  ;;  %vm4770_vm7 = vcmp.eq.s32.totalorder %v12841_v33, %v9377_v35  ;;  %v5958_v14 = vld [vmem:[%s13594_s7 + $0xac8] sm:$0xff]  ;;  %v5565_v46 = vadd.f32 %v5564_v12, %v4922_v5  ;;  %v13191_v54 = vpop.f32.mrf.mxu1  ;;  %v5941_v5 = vld [vmem:[%s13594_s7 + $0xa40] sm:$0xff] }
 0x6fd   : > { %8034 = vmatpush3.msra.mxu1 %v5979_v44  ;;  %8005 = vmatpush3.msra.mxu0 %v5944_v1  ;;  %v5512_v50 = vadd.f32 %v5511_v56, %v4944_v11  ;;  %v5548_v3 = vadd.f32 %v5547_v58, %v4946_v10  ;;  %v4970_v19 = vsel %vm4645_vm3, %v12959_v26, 0.0  ;;  %vm4794_vm14 = vcmp.eq.s32.totalorder %v12831_v18, %v9380_v39  ;;  %v5942_v26 = vld [vmem:[%s13594_s7 + $0xa48] sm:$0xff] }
 0x6fe   : > { %v4237_v51 = vpop.f32.mrf.mxu0  ;;  %8035 = vmatprep.subr.mxu1 %v5994_v48  ;;  %vm4796_vm5 = vcmp.eq.s32.totalorder %v12833_v20, %v9380_v39  ;;  %8006 = vmatprep.subr.mxu0 %v5959_v52  ;;  %v5530_v57 = vadd.f32 %v5529_v62, %v4945_v34  ;;  %vm13664_vm3 = vcmp.eq.s32.totalorder %v12853_v22, %v9305_v9  ;;  %v4340_v17 = vpop.f32.mrf.mxu1  ;;  %v5019_v10 = vsel %vm4694_vm0, %v13071_v43, 0.0  ;;  %v5991_v52 = vld [vmem:[%s13594_s7 + $0xbd0] sm:$0xff] }
 0x6ff   : > { %v4972_v25 = vsel %vm13664_vm3, %v12961_v13, 0.0  ;;  %vm13665_vm11 = vcmp.eq.s32.totalorder %v12831_v18, %v9327_v15  ;;  %8036 = vmatpush3.msra.mxu1 %v5978_v60  ;;  %8007 = vmatpush3.msra.mxu0 %v5943_v53  ;;  %v5957_v13 = vld [vmem:[%s13594_s7 + $0xac0] sm:$0xff]  ;;  %v5566_v36 = vadd.f32 %v5565_v46, %v4947_v31  ;;  %v5513_v29 = vadd.f32 %v5512_v50, %v4969_v47  ;;  %v5975_v60 = vld [vmem:[%s13594_s7 + $0xb50] sm:$0xff]  ;;  %v5940_v53 = vld [vmem:[%s13594_s7 + $0xa38] sm:$0xff] }
 0x700   : > { %v4994_v63 = vsel %vm13665_vm11, %v12986_v6, 0.0  ;;  %v5549_v44 = vadd.f32 %v5548_v3, %v4971_v37  ;;  %v4995_v6 = vsel %vm4670_vm10, %v13032_v28, 0.0  ;;  %v4239_v1 = vpop.f32.mrf.mxu0  ;;  %8037 = vmatprep.subr.mxu1 %v5993_v61  ;;  %vm4795_vm6 = vcmp.eq.s32.totalorder %v12841_v33, %v9380_v39  ;;  %8008 = vmatprep.subr.mxu0 %v5958_v14  ;;  %v5990_v37 = vld [vmem:[%s13594_s7 + $0xbc8] sm:$0xff] }
 0x701   : > { %vm4797_vm11 = vcmp.eq.s32.totalorder %v12853_v22, %v9380_v39  ;;  %v5531_v11 = vadd.f32 %v5530_v57, %v4970_v19  ;;  %v4997_v28 = vsel %vm4672_vm4, %v13034_v7, 0.0  ;;  %v5021_v48 = vsel %vm4696_vm8, %v13073_v55, 0.0  ;;  %8038 = vmatpush3.msra.mxu1 %v5977_v27  ;;  %8009 = vmatpush3.msra.mxu0 %v5942_v26  ;;  %v5956_v7 = vld [vmem:[%s13594_s7 + $0xab8] sm:$0xff]  ;;  %v4342_v55 = vpop.f32.mrf.mxu1  ;;  %v5939_v19 = vld [vmem:[%s13594_s7 + $0xa30] sm:$0xff] }
 0x702   : > { %v5567_v12 = vadd.f32 %v5566_v36, %v4972_v25  ;;  %v5514_v56 = vadd.f32 %v5513_v29, %v4994_v63  ;;  %v5550_v58 = vadd.f32 %v5549_v44, %v4996_v32  ;;  %v5020_v43 = vsel %vm4695_vm9, %v13111_v4, 0.0  ;;  %v4241_v34 = vpop.f32.mrf.mxu0  ;;  %8039 = vmatprep.subr.mxu1 %v5992_v42  ;;  %8010 = vmatprep.subr.mxu0 %v5957_v13  ;;  %v5989_v25 = vld [vmem:[%s13594_s7 + $0xbc0] sm:$0xff]  ;;  %v5954_v63 = vld [vmem:[%s13594_s7 + $0xaa8] sm:$0xff] }
 0x703   : > { %vm4819_vm10 = vcmp.eq.s32.totalorder %v12831_v18, %v9400_v49  ;;  %vm4821_vm4 = vcmp.eq.s32.totalorder %v12833_v20, %v9400_v49  ;;  %v5532_v62 = vadd.f32 %v5531_v11, %v4995_v6  ;;  %v5022_v4 = vsel %vm4697_vm13, %v13113_v40, 0.0  ;;  %8040 = vmatpush3.msra.mxu1 %v5976_v45  ;;  %8011 = vmatpush3.msra.mxu0 %v5941_v5  ;;  %v5955_v40 = vld [vmem:[%s13594_s7 + $0xab0] sm:$0xff]  ;;  %v4346_v3 = vpop.f32.mrf.mxu1  ;;  %v5973_v44 = vld [vmem:[%s13594_s7 + $0xb40] sm:$0xff]  ;;  %v5938_v6 = vld [vmem:[%s13594_s7 + $0xa28] sm:$0xff] }
 0x704   : > { %v5044_v31 = vsel %vm4719_vm1, %v13151_v59, 0.0  ;;  %v5046_v47 = vsel %vm4721_vm12, %v13153_v21, 0.0  ;;  %v5568_v61 = vadd.f32 %v5567_v12, %v4997_v28  ;;  %v5515_v14 = vadd.f32 %v5514_v56, %v5019_v10  ;;  %v4245_v50 = vpop.f32.mrf.mxu0  ;;  %8041 = vmatprep.subr.mxu1 %v5991_v52  ;;  %v5974_v21 = vld [vmem:[%s13594_s7 + $0xb48] sm:$0xff]  ;;  %8012 = vmatprep.subr.mxu0 %v5956_v7  ;;  %v5988_v11 = vld [vmem:[%s13594_s7 + $0xbb8] sm:$0xff]  ;;  %v5953_v28 = vld [vmem:[%s13594_s7 + $0xaa0] sm:$0xff] }
 0x705   : > { %v5551_v46 = vadd.f32 %v5550_v58, %v5021_v48  ;;  %v5045_v59 = vsel %vm4720_vm2, %v4237_v51, 0.0  ;;  %vm4820_vm0 = vcmp.eq.s32.totalorder %v12841_v33, %v9400_v49  ;;  %v5533_v27 = vadd.f32 %v5532_v62, %v5020_v43  ;;  %8042 = vmatpush3.msra.mxu1 %v5975_v60  ;;  %8013 = vmatpush3.msra.mxu0 %v5940_v53  ;;  %v4348_v29 = vpop.f32.mrf.mxu1  ;;  %v5972_v58 = vld [vmem:[%s13594_s7 + $0xb38] sm:$0xff]  ;;  %v5937_v43 = vld [vmem:[%s13594_s7 + $0xa20] sm:$0xff]  ;;  %v5987_v62 = vld [vmem:[%s13594_s7 + $0xbb0] sm:$0xff] }
 0x706   : > { %v5047_v51 = vsel %vm4722_vm15, %v13191_v54, 0.0  ;;  %vm13666_vm8 = vcmp.eq.s32.totalorder %v12831_v18, %v9355_v24  ;;  %vm13667_vm9 = vcmp.eq.s32.totalorder %v12833_v20, %v9355_v24  ;;  %v5569_v32 = vadd.f32 %v5568_v61, %v5022_v4  ;;  %v4247_v36 = vpop.f32.mrf.mxu0  ;;  %8043 = vmatprep.subr.mxu1 %v5990_v37  ;;  %8014 = vmatprep.subr.mxu0 %v5955_v40  ;;  %v5952_v4 = vld [vmem:[%s13594_s7 + $0xa98] sm:$0xff] }
 0x707   : > { %v5069_v26 = vsel %vm13666_vm8, %v4239_v1, 0.0  ;;  %v5071_v57 = vsel %vm13667_vm9, %v4340_v17, 0.0  ;;  %v5516_v54 = vadd.f32 %v5515_v14, %v5044_v31  ;;  %v5552_v42 = vadd.f32 %v5551_v46, %v5046_v47  ;;  %8044 = vmatpush3.msra.mxu1 %v5974_v21  ;;  %8015 = vmatpush3.msra.mxu0 %v5939_v19  ;;  %v4350_v56 = vpop.f32.mrf.mxu1  ;;  %v5971_v14 = vld [vmem:[%s13594_s7 + $0xb30] sm:$0xff]  ;;  %v5936_v46 = vld [vmem:[%s13594_s7 + $0xa18] sm:$0xff]  ;;  %v5986_v21 = vld [vmem:[%s13594_s7 + $0xba8] sm:$0xff] }
 0x708   : > { %vm13668_vm13 = vcmp.eq.s32.totalorder %v12841_v33, %v9355_v24  ;;  %v5534_v1 = vadd.f32 %v5533_v27, %v5045_v59  ;;  %vm13669_vm1 = vcmp.eq.s32.totalorder %v12853_v22, %v9355_v24  ;;  %vm13670_vm12 = vcmp.eq.s32.totalorder %v12831_v18, %v9377_v35  ;;  %v4249_v12 = vpop.f32.mrf.mxu0  ;;  %8045 = vmatprep.subr.mxu1 %v5989_v25  ;;  %v5951_v19 = vld [vmem:[%s13594_s7 + $0xa90] sm:$0xff] }
 0x709   : > { %v5070_v13 = vsel %vm13668_vm13, %v4241_v34, 0.0  ;;  %v5072_v17 = vsel %vm13669_vm1, %v4342_v55, 0.0  ;;  %v5094_v45 = vsel %vm13670_vm12, %v4245_v50, 0.0  ;;  %vm13671_vm2 = vcmp.eq.s32.totalorder %v12833_v20, %v9377_v35  ;;  %8016 = vmatprep.subr.mxu0 %v5954_v63  ;;  %8046 = vmatpush3.msra.mxu1 %v5973_v44  ;;  %v4352_v61 = vpop.f32.mrf.mxu1  ;;  %v5970_v63 = vld [vmem:[%s13594_s7 + $0xb28] sm:$0xff]  ;;  %v5969_v20 = vld [vmem:[%s13594_s7 + $0xb20] sm:$0xff] }
 0x70a   : > { %v5096_v5 = vsel %vm13671_vm2, %v4346_v3, 0.0  ;;  %v5570_v10 = vadd.f32 %v5569_v32, %v5047_v51  ;;  %v5517_v48 = vadd.f32 %v5516_v54, %v5069_v26  ;;  %v5553_v52 = vadd.f32 %v5552_v42, %v5071_v57  ;;  %8017 = vmatpush3.msra.mxu0 %v5938_v6  ;;  %v4251_v40 = vpop.f32.mrf.mxu0  ;;  %8047 = vmatprep.subr.mxu1 %v5988_v11  ;;  %v5935_v32 = vld [vmem:[%s13594_s7 + $0xa10] sm:$0xff] }
 0x70b   : > { %v5095_v7 = vsel %vm4770_vm7, %v4247_v36, 0.0  ;;  %v5535_v34 = vadd.f32 %v5534_v1, %v5070_v13  ;;  %vm13672_vm15 = vcmp.eq.s32.totalorder %v12853_v22, %v9377_v35  ;;  %v5119_v60 = vsel %vm4794_vm14, %v4249_v12, 0.0  ;;  %8018 = vmatprep.subr.mxu0 %v5953_v28  ;;  %8048 = vmatpush3.msra.mxu1 %v5972_v58  ;;  %v4356_v25 = vpop.f32.mrf.mxu1  ;;  %v5985_v36 = vld [vmem:[%s13594_s7 + $0xba0] sm:$0xff]  ;;  %v5984_v28 = vld [vmem:[%s13594_s7 + $0xb98] sm:$0xff] }
 0x70c   : > { %v5097_v55 = vsel %vm13672_vm15, %v4348_v29, 0.0  ;;  %v5121_v53 = vsel %vm4796_vm5, %v4350_v56, 0.0  ;;  %v5571_v31 = vadd.f32 %v5570_v10, %v5072_v17  ;;  %v5518_v47 = vadd.f32 %v5517_v48, %v5094_v45  ;;  %8019 = vmatpush3.msra.mxu0 %v5937_v43  ;;  %v4255_v57 = vpop.f32.mrf.mxu0  ;;  %8049 = vmatprep.subr.mxu1 %v5987_v62  ;;  %v5950_v29 = vld [vmem:[%s13594_s7 + $0xa88] sm:$0xff]  ;;  %v5949_v10 = vld [vmem:[%s13594_s7 + $0xa80] sm:$0xff]  ;;  %v5983_v43 = vld [vmem:[%s13594_s7 + $0xb90] sm:$0xff] }
 0x70d   : > { %v5554_v37 = vadd.f32 %v5553_v52, %v5096_v5  ;;  %v5536_v59 = vadd.f32 %v5535_v34, %v5095_v7  ;;  %v5120_v50 = vsel %vm4795_vm6, %v4251_v40, 0.0  ;;  %v5122_v3 = vsel %vm4797_vm11, %v4352_v61, 0.0  ;;  %8020 = vmatprep.subr.mxu0 %v5952_v4  ;;  %8050 = vmatpush3.msra.mxu1 %v5971_v14  ;;  %v4358_v18 = vpop.f32.mrf.mxu1  ;;  %v5934_v45 = vld [vmem:[%s13594_s7 + $0xa08] sm:$0xff]  ;;  %v5933_v58 = vld [vmem:[%s13594_s7 + $0xa00] sm:$0xff] }
 0x70e   : > { %vm4822_vm7 = vcmp.eq.s32.totalorder %v12853_v22, %v9400_v49  ;;  %v5572_v27 = vadd.f32 %v5571_v31, %v5097_v55  ;;  %v5519_v51 = vadd.f32 %v5518_v47, %v5119_v60  ;;  %v5144_v42 = vsel %vm4819_vm10, %v4255_v57, 0.0  ;;  %8021 = vmatpush3.msra.mxu0 %v5936_v46  ;;  %v4257_v17 = vpop.f32.mrf.mxu0  ;;  %8051 = vmatprep.subr.mxu1 %v5986_v21  ;;  %v5968_v22 = vld [vmem:[%s13594_s7 + $0xb18] sm:$0xff]  ;;  %v5967_v31 = vld [vmem:[%s13594_s7 + $0xb10] sm:$0xff]  ;;  %v5982_v47 = vld [vmem:[%s13594_s7 + $0xb88] sm:$0xff] }
 0x70f   : > { %v5555_v26 = vadd.f32 %v5554_v37, %v5121_v53  ;;  %v5537_v54 = vadd.f32 %v5536_v59, %v5120_v50  ;;  %v5146_v13 = vsel %vm4821_vm4, %v4356_v25, 0.0  ;;  %8022 = vmatprep.subr.mxu0 %v5951_v19  ;;  %v5145_v5 = vsel %vm4820_vm0, %v4257_v17, 0.0  ;;  %8052 = vmatpush3.msra.mxu1 %v5970_v63  ;;  %v4360_v56 = vpop.f32.mrf.mxu1  ;;  %v5966_v59 = vld [vmem:[%s13594_s7 + $0xb08] sm:$0xff]  ;;  %v5965_v57 = vld [vmem:[%s13594_s7 + $0xb00] sm:$0xff] }
 0x710   : > { %v5573_v44 = vadd.f32 %v5572_v27, %v5122_v3  ;;  %v5520_v6 = vadd.f32 %v5519_v51, %v5144_v42  ;;  %v5147_v11 = vsel %vm4822_vm7, %v4358_v18, 0.0  ;;  %8023 = vmatpush3.msra.mxu0 %v5935_v32  ;;  %v4259_v33 = vpop.f32.mrf.mxu0  ;;  %8053 = vmatprep.subr.mxu1 %v5985_v36  ;;  %v13673_v50 = vmov 0.0   ;;  %v5981_v3 = vld [vmem:[%s13594_s7 + $0xb80] sm:$0xff]  ;;  %v6004_v18 = vld [vmem:[%s13594_s7 + $0xc38] sm:$0xff] }
 0x711   : > { %v5556_v1 = vadd.f32 %v5555_v26, %v5146_v13  ;;  %v5538_v7 = vadd.f32 %v5537_v54, %v5145_v5  ;;  %8024 = vmatprep.subr.mxu0 %v5950_v29  ;;  %8054 = vmatpush3.msra.mxu1 %v5969_v20  ;;  %v4361_v4 = vpop.f32.mrf.mxu1  ;;  %v6003_v5 = vld [vmem:[%s13594_s7 + $0xc30] sm:$0xff]  ;;  %vm13674_vm14 = vmmov 0   ;;  %vm5581_vm10 = vcmask 523264  }
 0x712   : > { %v5521_v48 = vrot.slane %v5520_v6, 4  ;;  %v5574_v12 = vadd.f32 %v5573_v44, %v5147_v11  ;;  %8025 = vmatpush3.msra.mxu0 %v5934_v45  ;;  %v4260_v62 = vpop.f32.mrf.mxu0  ;;  %8055 = vmatprep.subr.mxu1 %v5984_v28  ;;  %v6002_v28 = vld [vmem:[%s13594_s7 + $0xc28] sm:$0xff]  ;;  %vm13675_vm7 = vcmask 261120  }
 0x713   : > { %v5557_v52 = vrot.slane %v5556_v1, 4  ;;  %v5539_v60 = vrot.slane %v5538_v7, 4  ;;  %8026 = vmatprep.subr.mxu0 %v5949_v10  ;;  %8056 = vmatpush3.msra.mxu1 %v5968_v22 }
 0x714   : > { %v5522_v34 = vadd.f32 %v5521_v48, %v5520_v6  ;;  %v5575_v53 = vrot.slane %v5574_v12, 4  ;;  %8027 = vmatpush3.msra.mxu0 %v5933_v58  ;;  %v13433_v46 = vpop.f32.mrf.mxu0  ;;  %8057 = vmatprep.subr.mxu1 %v5983_v43  ;;  %v4473_v48 = vadd.s32 3072, %v13637_v30  ;;  %v5999_v30 = vld [vmem:[%s13594_s7 + $0xc10] sm:$0xff]  ;;  %v5998_v58 = vld [vmem:[%s13594_s7 + $0xc08] sm:$0xff] }
 0x715   : > { %v5558_v55 = vadd.f32 %v5557_v52, %v5556_v1  ;;  %v5540_v61 = vadd.f32 %v5539_v60, %v5538_v7  ;;  %8560 = vmatprep.subr.mxu0 %v13673_v50  ;;  %8058 = vmatpush3.msra.mxu1 %v5967_v31  ;;  %v6001_v52 = vld [vmem:[%s13594_s7 + $0xc20] sm:$0xff] }
 0x716   : > { %v5523_v37 = vrot.slane %v5522_v34, 2  ;;  %v5576_v14 = vadd.f32 %v5575_v53, %v5574_v12  ;;  %v8534_v26 = vpop.f32.mrf.mxu0  ;;  %8059 = vmatprep.subr.mxu1 %v5982_v47  ;;  %v6000_v12 = vld [vmem:[%s13594_s7 + $0xc18] sm:$0xff]  ;;  %v13469_v56 = vshra.s32 %v4473_v48, 5 }
 0x717   : > { %v5559_v40 = vrot.slane %v5558_v55, 2  ;;  %v5541_v27 = vrot.slane %v5540_v61, 2  ;;  %8060 = vmatpush3.msra.mxu1 %v5966_v59 }
 0x718   : > { %v5524_v21 = vadd.f32 %v5523_v37, %v5522_v34  ;;  %v5577_v51 = vrot.slane %v5576_v14, 2  ;;  %v4400_v32 = vpop.f32.mrf.mxu0  ;;  %8061 = vmatprep.subr.mxu1 %v5981_v3  ;;  %vm4548_vm5 = vcmp.eq.s32.totalorder %v13469_v56, %v9259_v38  ;;  %vm4523_vm3 = vcmp.eq.s32.totalorder %v13469_v56, %v9250_v41  ;;  %v5997_v38 = vld [vmem:[%s13594_s7 + $0xc00] sm:$0xff] }
 0x719   : > { %v5560_v19 = vadd.f32 %v5559_v40, %v5558_v55  ;;  %v5542_v25 = vadd.f32 %v5541_v27, %v5540_v61  ;;  %8062 = vmatpush3.msra.mxu1 %v5965_v57  ;;  %vm4573_vm6 = vcmp.eq.s32.totalorder %v13469_v56, %v9280_v0  ;;  %v4873_v34 = vsel %vm4548_vm5, %v4400_v32, 0.0 }
 0x71a   : > { %v5578_v63 = vadd.f32 %v5577_v51, %v5576_v14  ;;  %v5525_v54 = vrot.slane %v5524_v21, 1  ;;  %v8535_v13 = vpop.f32.mrf.mxu0  ;;  %8579 = vmatprep.subr.mxu1 %v13673_v50  ;;  %vm4598_vm11 = vcmp.eq.s32.totalorder %v13469_v56, %v9283_v2  ;;  %v4848_v60 = vsel %vm4523_vm3, %v13433_v46, 0.0 }
 0x71b   : > { %v5561_v42 = vrot.slane %v5560_v19, 1  ;;  %v5543_v36 = vrot.slane %v5542_v25, 1  ;;  %v5583_v0 = vsel %vm5581_vm10, %v4873_v34, 0.0  ;;  %vm4623_vm4 = vcmp.eq.s32.totalorder %v13469_v56, %v9302_v8  ;;  %v6920_v34 = vld [vmem:[%s13596_s9] sm:$0xff] }
 0x71c   : > { %v5579_v29 = vrot.slane %v5578_v63, 1  ;;  %v4405_v44 = vpop.f32.mrf.mxu0  ;;  %v5526_v1 = vadd.f32 %v5525_v54, %v5524_v21  ;;  %v5582_v31 = vsel %vm5581_vm10, %v4848_v60, 0.0  ;;  %vm4648_vm0 = vcmp.eq.s32.totalorder %v13469_v56, %v9305_v9 }
 0x71d   : > { %v5544_v6 = vadd.f32 %v5543_v36, %v5542_v25  ;;  %v5562_v20 = vadd.f32 %v5561_v42, %v5560_v19  ;;  %v4898_v41 = vsel %vm4573_vm6, %v4405_v44, 0.0  ;;  %v5584_v2 = vadd.f32 %v5583_v0, %v5582_v31 }
 0x71e   : > { %v5580_v17 = vadd.f32 %v5579_v29, %v5578_v63  ;;  %v8538_v45 = vpop.f32.mrf.mxu0  ;;  %v5585_v47 = vsel %vm5581_vm10, %v4898_v41, 0.0  ;;  %vm4673_vm8 = vcmp.eq.s32.totalorder %v13469_v56, %v9327_v15  ;;  %vm4698_vm9 = vcmp.eq.s32.totalorder %v13469_v56, %v9330_v16 }
 0x71f   : > { %6773 = vmatprep.mubr.f32.mxu0 %v5544_v6  ;;  %v5586_v14 = vadd.f32 %v5585_v47, %v5584_v2  ;;  %vm4723_vm13 = vcmp.eq.s32.totalorder %v13469_v56, %v9352_v23  ;;  %vm4748_vm1 = vcmp.eq.s32.totalorder %v13469_v56, %v9355_v24  ;;  %vm4773_vm12 = vcmp.eq.s32.totalorder %v13469_v56, %v9377_v35 }
 0x720   : > { %6843 = vmatprep.mubr.f32.mxu1 %v5580_v17  ;;  %6774 = vmatmul.mubr.f32.vlgmr.msra.gmra.mxu0 %v5526_v1  ;;  %v4408_v11 = vpop.f32.mrf.mxu0  ;;  %vm4798_vm2 = vcmp.eq.s32.totalorder %v13469_v56, %v9380_v39  ;;  %vm4823_vm15 = vcmp.eq.s32.totalorder %v13469_v56, %v9400_v49  ;;  %v6923_v49 = vld [vmem:[%s13596_s9 + $0x18] sm:$0xff]  ;;  %v6922_v56 = vld [vmem:[%s13596_s9 + $0x10] sm:$0xff] }
 0x721   : > { %6844 = vmatmul.mubr.f32.vlgmr.msra.gmra.mxu1 %v5562_v20  ;;  %8561 = vmatpush3.msra.mxu0 %v6004_v18  ;;  %v4923_v62 = vsel %vm4598_vm11, %v4408_v11, 0.0 }
 0x722   : > { %8562 = vmatprep.subr.mxu0 %v13673_v50  ;;  %8576 = vmatprep.mubr.msk.f32.mxu0 %vm13674_vm14, %v13673_v50  ;;  %v8539_v10 = vpop.f32.mrf.mxu0  ;;  %v5587_v61 = vsel %vm5581_vm10, %v4923_v62, 0.0 }
 0x723   : > { %8563 = vmatpush3.msra.mxu0 %v6003_v5  ;;  %8587 = vmatprep.mubr.msk.f32.mxu1 %vm13674_vm14, %v13673_v50  ;;  %v5588_v3 = vadd.f32 %v5587_v61, %v5586_v14  ;;  %v6005_v61 = vld [vmem:[%s13595_s8] sm:$0x1]  ;;  %vm6998_vm14 = vcmask 24576  }
 0x724   : > { %8564 = vmatprep.subr.mxu0 %v13673_v50  ;;  %v4413_v7 = vpop.f32.mrf.mxu0  ;;  %8580 = vmatpush3.msra.mxu1 %v6923_v49 }
 0x725   : > { %8565 = vmatpush3.msra.mxu0 %v6002_v28  ;;  %v4948_v37 = vsel %vm4623_vm4, %v4413_v7, 0.0  ;;  %8581 = vmatprep.subr.mxu1 %v13673_v50 }
 0x726   : > { %8566 = vmatprep.subr.mxu0 %v13673_v50  ;;  %v8542_v33 = vpop.f32.mrf.mxu0  ;;  %v5589_v8 = vsel %vm5581_vm10, %v4948_v37, 0.0  ;;  %8582 = vmatpush3.msra.mxu1 %v6922_v56 }
 0x727   : > { %8567 = vmatpush3.msra.mxu0 %v6001_v52  ;;  %v5590_v27 = vadd.f32 %v5589_v8, %v5588_v3  ;;  %8583 = vmatprep.subr.mxu1 %v13673_v50 }
 0x728   : > { %8568 = vmatprep.subr.mxu0 %v13673_v50  ;;  %v4416_v22 = vpop.f32.mrf.mxu0 }
 0x729   : > { %8569 = vmatpush3.msra.mxu0 %v6000_v12  ;;  %v4973_v46 = vsel %vm4648_vm0, %v4416_v22, 0.0 }
 0x72a   : > { %8570 = vmatprep.subr.mxu0 %v13673_v50  ;;  %v8543_v43 = vpop.f32.mrf.mxu0  ;;  %v5591_v9 = vsel %vm5581_vm10, %v4973_v46, 0.0 }
 0x72b   : > { %8571 = vmatpush3.msra.mxu0 %v5999_v30  ;;  %v5592_v57 = vadd.f32 %v5591_v9, %v5590_v27 }
 0x72c   : > { %8572 = vmatprep.subr.mxu0 %v13673_v50  ;;  %v4421_v55 = vpop.f32.mrf.mxu0 }
 0x72d   : > { %8573 = vmatpush3.msra.mxu0 %v5998_v58  ;;  %v4998_v21 = vsel %vm4673_vm8, %v4421_v55, 0.0  ;;  %v7678_v55 = vpop.f32.mrf.mxu1 }
 0x72e   : > { %8574 = vmatprep.subr.mxu0 %v13673_v50  ;;  %v8546_v53 = vpop.f32.mrf.mxu0  ;;  %v5593_v15 = vsel %vm5581_vm10, %v4998_v21, 0.0 }
 0x72f   : > { %8575 = vmatpush3.msra.mxu0 %v5997_v38  ;;  %v5594_v32 = vadd.f32 %v5593_v15, %v5592_v57  ;;  %v6921_v38 = vld [vmem:[%s13596_s9 + $0x8] sm:$0xff]  ;;  %v7679_v60 = vpop.f32.mrf.mxu1 }
 0x730   : > { %v4424_v4 = vpop.f32.mrf.mxu0  ;;  %8584 = vmatpush3.msra.mxu1 %v6921_v38 }
 0x731   : > { %v5023_v51 = vsel %vm4698_vm9, %v4424_v4, 0.0  ;;  %8585 = vmatprep.subr.mxu1 %v13673_v50 }
 0x732   : > { %v8547_v40 = vpop.f32.mrf.mxu0  ;;  %v5595_v16 = vsel %vm5581_vm10, %v5023_v51, 0.0  ;;  %8586 = vmatpush3.msra.mxu1 %v6920_v34  ;;  %v7713_v41 = vpop.f32.mrf.mxu1 }
 0x733   : > { %v5596_v13 = vadd.f32 %v5595_v16, %v5594_v32  ;;  %v7680_v40 = vadd.f32 %v7679_v60, %v7678_v55 }
 0x734   : > { %v4429_v59 = vpop.f32.mrf.mxu0  ;;  %v7714_v0 = vpop.f32.mrf.mxu1 }
 0x735   : > { %v5048_v25 = vsel %vm4723_vm13, %v4429_v59, 0.0  ;;  %v7715_v46 = vadd.f32 %v7714_v0, %v7713_v41  ;;  %v6076_v8 = vadd.f32 %v7680_v40, %v6005_v61 }
 0x736   : > { %v8550_v19 = vpop.f32.mrf.mxu0  ;;  %v5597_v23 = vsel %vm5581_vm10, %v5048_v25, 0.0 }
 0x737   : > { %v5598_v24 = vadd.f32 %v5597_v23, %v5596_v13  ;;  %v6146_v9 = vadd.f32 %v7715_v46, %v6076_v8 }
 0x738   : > { %v4432_v26 = vpop.f32.mrf.mxu0 }
 0x739   : > { %v5073_v54 = vsel %vm4748_vm1, %v4432_v26, 0.0 }
 0x73a   : > { %v8551_v63 = vpop.f32.mrf.mxu0  ;;  %v5599_v29 = vsel %vm5581_vm10, %v5073_v54, 0.0 }
 0x73b   : > { %v5600_v17 = vadd.f32 %v5599_v29, %v5598_v24 }
 0x73c   : > { %v4437_v42 = vpop.f32.mrf.mxu0 }
 0x73d   : > { %v5098_v36 = vsel %vm4773_vm12, %v4437_v42, 0.0 }
 0x73e   : > { %v8554_v44 = vpop.f32.mrf.mxu0  ;;  %v5601_v6 = vsel %vm5581_vm10, %v5098_v36, 0.0 }
 0x73f   : > { %v5602_v45 = vadd.f32 %v5601_v6, %v5600_v17 }
 0x740   : > { %v4440_v1 = vpop.f32.mrf.mxu0 }
 0x741   : > { %v5123_v18 = vsel %vm4798_vm2, %v4440_v1, 0.0 }
 0x742   : > { %v5603_v35 = vsel %vm5581_vm10, %v5123_v18, 0.0  ;;  %v8555_v20 = vpop.f32.mrf.mxu0 }
 0x743   : > { %v5604_v11 = vadd.f32 %v5603_v35, %v5602_v45 }
 0x744   : > { %v4445_v5 = vpop.f32.mrf.mxu0 }
 0x745   : > { %v5148_v28 = vsel %vm4823_vm15, %v4445_v5, 0.0 }
 0x746   : > { %v5605_v10 = vsel %vm5581_vm10, %v5148_v28, 0.0  ;;  %v8558_v48 = vpop.f32.mrf.mxu0 }
 0x747   : > { %v5606_v39 = vadd.f32 %v5605_v10, %v5604_v11 }
 0x748   : > { %v4448_v52 = vpop.f32.mrf.mxu0 }
 0x749   : > { %v5607_v7 = vrot.slane %v5606_v39, 4 }
 0x74a   : > { %v8559_v12 = vpop.f32.mrf.mxu0 }
 0x74b   : > { %v5608_v33 = vadd.f32 %v5607_v7, %v5606_v39  ;;  %v6924_v7 = vld [vmem:[%s13597_s10] sm:$0x1] }
 0x74c   : > { %v7748_v53 = vpop.f32.mrf.mxu0 }
 0x74d   : > { %v5609_v30 = vrot.slane %v5608_v33, 2 }
 0x74e   : > { %v7749_v62 = vpop.f32.mrf.mxu0 }
 0x74f   : > { %v5610_v22 = vadd.f32 %v5609_v30, %v5608_v33  ;;  %v7750_v59 = vadd.f32 %v7749_v62, %v7748_v53 }
 0x751   : > { %v5611_v58 = vrot.slane %v5610_v22, 1  ;;  %v6216_v51 = vadd.f32 %v7750_v59, %v6146_v9 }
 0x753   : > { %v5612_v43 = vadd.f32 %v5611_v58, %v5610_v22  ;;  %v7783_v4 = vpop.f32.mrf.mxu1 }
 0x755   : > { %8577 = vmatmul.mubr.msk.f32.vlgmr.msra.gmra.mxu0 %vm5581_vm10, %v5612_v43  ;;  %v7784_v47 = vpop.f32.mrf.mxu1 }
 0x756   : > { %v7785_v19 = vadd.f32 %v7784_v47, %v7783_v4 }
 0x758   : > { %v6286_v57 = vadd.f32 %v7785_v19, %v6216_v51 }
 0x76c   : > { %v7818_v31 = vpop.f32.mrf.mxu0 }
 0x76e   : > { %v7819_v2 = vpop.f32.mrf.mxu0 }
 0x76f   : > { %v7820_v15 = vadd.f32 %v7819_v2, %v7818_v31 }
 0x771   : > { %v6356_v32 = vadd.f32 %v7820_v15, %v6286_v57 }
 0x775   : > { %v7853_v37 = vpop.f32.mrf.mxu1 }
 0x777   : > { %v7854_v50 = vpop.f32.mrf.mxu1 }
 0x778   : > { %v7855_v25 = vadd.f32 %v7854_v50, %v7853_v37 }
 0x77a   : > { %v6426_v42 = vadd.f32 %v7855_v25, %v6356_v32 }
 0x78f   : > { %v7888_v14 = vpop.f32.mrf.mxu0 }
 0x791   : > { %v7889_v3 = vpop.f32.mrf.mxu0 }
 0x792   : > { %v7890_v54 = vadd.f32 %v7889_v3, %v7888_v14 }
 0x794   : > { %v6496_v29 = vadd.f32 %v7890_v54, %v6426_v42 }
 0x799   : > { %v7923_v21 = vpop.f32.mrf.mxu1 }
 0x79b   : > { %v7924_v26 = vpop.f32.mrf.mxu1 }
 0x79c   : > { %v7925_v13 = vadd.f32 %v7924_v26, %v7923_v21 }
 0x79e   : > { %v6566_v6 = vadd.f32 %v7925_v13, %v6496_v29 }
 0x7b2   : > { %v7958_v27 = vpop.f32.mrf.mxu0 }
 0x7b4   : > { %v7959_v16 = vpop.f32.mrf.mxu0 }
 0x7b5   : > { %v7960_v44 = vadd.f32 %v7959_v16, %v7958_v27 }
 0x7b7   : > { %v6636_v18 = vadd.f32 %v7960_v44, %v6566_v6 }
 0x7ba   : > { %v7993_v63 = vpop.f32.mrf.mxu1 }
 0x7bc   : > { %v7994_v36 = vpop.f32.mrf.mxu1 }
 0x7bd   : > { %v7995_v1 = vadd.f32 %v7994_v36, %v7993_v63 }
 0x7bf   : > { %v6706_v20 = vadd.f32 %v7995_v1, %v6636_v18 }
 0x7e0   : > { %v8028_v23 = vpop.f32.mrf.mxu0 }
 0x7e1   : > { %v8063_v17 = vpop.f32.mrf.mxu1 }
 0x7e2   : > { %v8029_v24 = vpop.f32.mrf.mxu0 }
 0x7e3   : > { %v8030_v35 = vadd.f32 %v8029_v24, %v8028_v23  ;;  %v8064_v45 = vpop.f32.mrf.mxu1 }
 0x7e4   : > { %v8065_v11 = vadd.f32 %v8064_v45, %v8063_v17 }
 0x7e5   : > { %v6776_v5 = vadd.f32 %v8030_v35, %v6706_v20 }
 0x7e7   : > { %v6846_v28 = vadd.f32 %v8065_v11, %v6776_v5 }
 0x815   : > { %v6915_v10 = vpop.f32.mrf.mxu0 }
 0x816   : > { %v6916_v48 = vadd.f32 %v6915_v10, %v6846_v28 }
 0x817   : > { %v8578_v39 = vpop.f32.mrf.mxu0 }
 0x818   : > { %v6919_v52 = vmax.f32 %v6916_v48, 0.0 }
 0x81a   : > { %8588 = vmatmul.mubr.msk.f32.vlgmr.msra.gmra.mxu1 %vm13675_vm7, %v6919_v52 }
 0x8da   : > { %v6994_v12 = vpop.f32.mrf.mxu1 }
 0x8db   : > { %v6995_v33 = vadd.f32 %v6994_v12, %v6924_v7 }
 0x8dc   : > { %v8589_v30 = vpop.f32.mrf.mxu1 }
 0x8dd   : > { %6999 = vst.msk [vmem:[%s393_s16] sm:$0x1] %vm6998_vm14, %v6995_v33 }
 0x8de   : > { %8766 = shalt.err (!%p8763_p3)
}
 0x8df   : > { %s8767_s15 = scalar_lea.hbm %s13552_s29, 16  ;;  %s8771_s24 = scalar_lea.hbm %s13598_s11, 32 }
 0x8e0   : > { %p8768_p4 = scmp.ne.s32.totalorder %s13552_s29, %s8767_s15  ;;  %p8772_p9 = scmp.lt.s32.totalorder %s13552_s29, %s13598_s11 }
 0x8e1   : > { %p8773_p10 = scmp.lt.s32.totalorder %s8771_s24, %s8767_s15 }
 0x8e2   : > { %p8769_p7 = pnand %p8768_p4, %p8919_p5 }
 0x8e3   : > { %p8774_p11 = por %p8773_p10, %p8772_p9 }
 0x8e4   : > { %p8770_p8 = pneg %p8769_p7 }
 0x8e6   : > { %p8775_p12 = pnand %p8774_p11, %p8770_p8 }
 0x8e8   : > { %8778 = shalt.err (!%p8775_p12)
}
 0x8e9   : > { %8591 = dma.vmem_to_hbm [thread:$0]  (%p8919_p5), %s7014_s22, 16, %s13552_s29, %s7001_s30  }
 0x8ea PF: > { %p8597_p13 = scmp.ge.s32.totalorder %s8813_s20, 2  ;;  %s7025_s0 = sand.u32 1, %s8801_s17  }
 0x8eb   : > { %s7026_s13 = scalar_lea.sflag [#allocation3], %s7025_s0 }
 0x8ec   : > { %p8594_p0 = pnand %p8597_p13, %p8923_p6 }
 0x8ee   : > { %p8595_p1 = pneg %p8594_p0 }
 0x8f0   : > { %8796 = dma.done.wait (%p8595_p1), %s7026_s13, 16  }
 0x8f1   : > { %8798 = vsyncadd (%p8595_p1), %s7026_s13, 4294967280  ;;  %p21_p2 = scmp.ge.s32.totalorder %s8906_s23, 4   ;;  %s13676_s17 = smov %s8805_s18 }
 0x8f2   : > { %s13677_s18 = smov %s8809_s19  ;;  %s13678_s19 = smov %s8917_s26 }
 0x8f3   : > { %s13679_s20 = smov %s8906_s23  ;;  %23 = sbr.rel (!%p21_p2) target bundleno = 5 (0x5), region = 106 }
 0x8f8   :  { %7030 = vsyncpa [#allocation3], 1 }
 0x8f9   :  { %7032 = vsyncpa [#allocation3 + $0x1], 1 }

</bundles_post_ra>
